<compile_context>
chip_gen: v5e
topology: v5e:2x2
jax: 0.10.0
libtpu: 0.0.40
codegen_flags: <defaults>
</compile_context>

<pallas_src>
import functools

import jax
import jax.numpy as jnp
from jax.experimental import pallas as pl
from jax.experimental.pallas import tpu as pltpu

D_LAYERS = 8
SKIP = 4      # layer index with the skip connection


def _linear_relu(h, w_ref, b_ref):
    # bf16 operands, f32 accumulation on the MXU; cast back to bf16 so the
    # next layer's matmul also gets native bf16 operands.
    y = jnp.dot(h, w_ref[...], preferred_element_type=jnp.float32) + b_ref[...]
    return jnp.maximum(y, 0.0).astype(jnp.bfloat16)


def nerf_mlp_kernel(
    x_ref,
    w0, b0, w1, b1, w2, b2, w3, b3,
    w4x, w4h, b4,
    w5, b5, w6, b6, w7, b7,
    ws, bs,
    out_ref,
):
    # In-kernel f32 -> bf16 cast (VPU op, hidden under the MXU) instead of a
    # separate wrapper-side XLA pad+cast pass over HBM.
    x = x_ref[...].astype(jnp.bfloat16)  # (block_rows, C) with C = 63

    h = _linear_relu(x, w0, b0)
    h = _linear_relu(h, w1, b1)
    h = _linear_relu(h, w2, b2)
    h = _linear_relu(h, w3, b3)

    # skip layer: cat([x, h], -1) @ W4 + b4 == x @ W4[:C] + h @ W4[C:] + b4
    # (matches torch.cat([x, xyz_], -1) ordering). Accumulate-chain form so
    # the second matmul can accumulate into the MXU result buffer on v7x.
    acc = jnp.dot(x, w4x[...], preferred_element_type=jnp.float32)
    acc = acc + jnp.dot(h, w4h[...], preferred_element_type=jnp.float32)
    acc = acc + b4[...]
    h = jnp.maximum(acc, 0.0).astype(jnp.bfloat16)

    h = _linear_relu(h, w5, b5)
    h = _linear_relu(h, w6, b6)
    h = _linear_relu(h, w7, b7)

    out = jnp.dot(h, ws[...], preferred_element_type=jnp.float32) + bs[...]
    out_ref[...] = out.astype(out_ref.dtype)


def init_params(key, W=256, in_channels_xyz=63, out_channels=9):
    """Deterministic uniform init matching the PyTorch nn.Linear layer shapes."""
    params = []
    keys = jax.random.split(key, 2 * D_LAYERS + 2)
    kidx = 0

    def uniform(k, shape, fan_in):
        bound = 1.0 / jnp.sqrt(fan_in)
        return jax.random.uniform(k, shape, jnp.float32, -bound, bound)

    for i in range(D_LAYERS):
        if i == 0:
            fin = in_channels_xyz
        elif i == SKIP:
            fin = W + in_channels_xyz
        else:
            fin = W
        w = uniform(keys[kidx], (fin, W), fin)      # stored as (in, out)
        b = uniform(keys[kidx + 1], (1, W), fin)
        kidx += 2
        params.append((w, b))

    ws = uniform(keys[kidx], (W, out_channels), W)
    bs = uniform(keys[kidx + 1], (1, out_channels), W)
    params.append((ws, bs))
    return params


@functools.partial(jax.jit, static_argnames=("block_rows",))
def nerf_smooth_transport(x, params, block_rows=2048):
    """x: (N, in_channels_xyz) float32 -> (N, 9) float32."""
    N, C = x.shape
    out_c = params[-1][0].shape[1]

    # Row-tile sizing (all static / Python-level):
    #  * never bigger than the (sublane-rounded) batch,
    #  * at least 2 grid steps when N allows, so v7x's 2 TensorCores both
    #    get work under dimension_semantics=("parallel",),
    #  * keep the tile a multiple of 8 sublanes.
    n_ceil8 = ((N + 7) // 8) * 8
    block_rows = min(block_rows, n_ceil8)
    if N >= 16:
        half = ((((N + 1) // 2) + 7) // 8) * 8
        block_rows = min(block_rows, half)
    block_rows = max(8, (block_rows // 8) * 8)

    flat_args = []
    flat_specs = []

    def full_spec(arr):
        return pl.BlockSpec(arr.shape, lambda i: (0,) * arr.ndim)

    def add(arr):
        flat_args.append(arr)
        flat_specs.append(full_spec(arr))

    def bf16(a):
        return a.astype(jnp.bfloat16)

    for i, (w, b) in enumerate(params[:D_LAYERS]):
        b = b.astype(jnp.float32)  # biases stay f32 (added to the f32 accumulator)
        if i == SKIP:
            # split the skip-layer weight: x-branch (K = C) and h-branch (K = W)
            add(bf16(w[:C, :]))
            add(bf16(w[C:, :]))
            add(b)
        else:
            add(bf16(w))
            add(b)

    ws, bs = params[-1]
    add(bf16(ws))
    add(bs.astype(jnp.float32))

    grid = (pl.cdiv(N, block_rows),)
    out = pl.pallas_call(
        nerf_mlp_kernel,
        out_shape=jax.ShapeDtypeStruct((N, out_c), jnp.float32),
        grid_spec=pltpu.PrefetchScalarGridSpec(
            num_scalar_prefetch=0,
            grid=grid,
            # x stays f32 / unpadded: 63 == full last dim is a legal block dim.
            in_specs=[pl.BlockSpec((block_rows, C), lambda i: (i, 0))]
            + flat_specs,
            # Write (N, 9) directly: 9 == full last dim; masked stores are fine
            # for this compute-bound kernel and kill the post-kernel slice pass.
            out_specs=pl.BlockSpec((block_rows, out_c), lambda i: (i, 0)),
        ),
        compiler_params=pltpu.CompilerParams(
            dimension_semantics=("parallel",),
            # 2048-row tiles need ~12 MiB; set explicitly so the same kernel
            # clears v5e's 16 MiB scoped default and stays well under v7x's
            # 64 MiB physical VMEM.
            vmem_limit_bytes=32 * 1024 * 1024,
        ),
    )(x, *flat_args)

    return out


def reference_forward(x, params):
    """Pure-JAX end-to-end f32 reference replicating the PyTorch forward exactly."""
    h = x
    for i in range(D_LAYERS):
        w, b = params[i]
        if i == SKIP:
            h = jnp.concatenate([x, h], axis=-1)
        h = jnp.maximum(h @ w + b, 0.0)
    ws, bs = params[-1]
    return h @ ws + bs


if __name__ == "__main__":
    # Small, module-consistent shapes: N points of 63-dim positional encoding.
    # N is deliberately not a multiple of the row tile to exercise the partial
    # last block (masked OOB rows).
    N = 600
    in_channels_xyz = 63
    W = 256

    key = jax.random.PRNGKey(0)
    kx, kp = jax.random.split(key)
    x = jax.random.normal(kx, (N, in_channels_xyz), jnp.float32)
    params = init_params(kp, W=W, in_channels_xyz=in_channels_xyz, out_channels=9)

    out = nerf_smooth_transport(x, params)  # default block_rows=2048 (capped for small N)
    out = jax.block_until_ready(out)

    ref = reference_forward(x, params)
    assert out.shape == (N, 9)
    # bf16 operands / f32 accumulation vs. the f32 reference: scale-relative tolerance.
    err = float(jnp.max(jnp.abs(out - ref)))
    scale = float(jnp.max(jnp.abs(ref))) + 1e-8
    assert err / scale < 3e-2, f"mismatch vs reference: rel err {err / scale:.3e}"

    print("KERNEL_OK")
</pallas_src>

<mosaic_0001>
module attributes {stable_mosaic.version = 11 : i64} {
  func.func @nerf_mlp_kernel(%arg0: i32, %arg1: memref<304x63xf32, #tpu.memory_space<vmem>>, %arg2: memref<63x256xbf16, #tpu.memory_space<vmem>>, %arg3: memref<1x256xf32, #tpu.memory_space<vmem>>, %arg4: memref<256x256xbf16, #tpu.memory_space<vmem>>, %arg5: memref<1x256xf32, #tpu.memory_space<vmem>>, %arg6: memref<256x256xbf16, #tpu.memory_space<vmem>>, %arg7: memref<1x256xf32, #tpu.memory_space<vmem>>, %arg8: memref<256x256xbf16, #tpu.memory_space<vmem>>, %arg9: memref<1x256xf32, #tpu.memory_space<vmem>>, %arg10: memref<63x256xbf16, #tpu.memory_space<vmem>>, %arg11: memref<256x256xbf16, #tpu.memory_space<vmem>>, %arg12: memref<1x256xf32, #tpu.memory_space<vmem>>, %arg13: memref<256x256xbf16, #tpu.memory_space<vmem>>, %arg14: memref<1x256xf32, #tpu.memory_space<vmem>>, %arg15: memref<256x256xbf16, #tpu.memory_space<vmem>>, %arg16: memref<1x256xf32, #tpu.memory_space<vmem>>, %arg17: memref<256x256xbf16, #tpu.memory_space<vmem>>, %arg18: memref<1x256xf32, #tpu.memory_space<vmem>>, %arg19: memref<256x9xbf16, #tpu.memory_space<vmem>>, %arg20: memref<1x9xf32, #tpu.memory_space<vmem>>, %arg21: memref<304x9xf32, #tpu.memory_space<vmem>>) attributes {dimension_semantics = [#tpu.dimension_semantics<parallel>], iteration_bounds = array<i64: 2>, scalar_prefetch = 0 : i64, scratch_operands = 0 : i64, tpu.core_type = #tpu.core_type<tc>, window_params = [{transform_indices = @transform_0, window_bounds = array<i64: 304, 63>}, {pipeline_mode = #tpu.pipeline_mode<synchronous>, transform_indices = @transform_1, window_bounds = array<i64: 63, 256>}, {pipeline_mode = #tpu.pipeline_mode<synchronous>, transform_indices = @transform_2, window_bounds = array<i64: 1, 256>}, {pipeline_mode = #tpu.pipeline_mode<synchronous>, transform_indices = @transform_3, window_bounds = array<i64: 256, 256>}, {pipeline_mode = #tpu.pipeline_mode<synchronous>, transform_indices = @transform_4, window_bounds = array<i64: 1, 256>}, {pipeline_mode = #tpu.pipeline_mode<synchronous>, transform_indices = @transform_5, window_bounds = array<i64: 256, 256>}, {pipeline_mode = #tpu.pipeline_mode<synchronous>, transform_indices = @transform_6, window_bounds = array<i64: 1, 256>}, {pipeline_mode = #tpu.pipeline_mode<synchronous>, transform_indices = @transform_7, window_bounds = array<i64: 256, 256>}, {pipeline_mode = #tpu.pipeline_mode<synchronous>, transform_indices = @transform_8, window_bounds = array<i64: 1, 256>}, {pipeline_mode = #tpu.pipeline_mode<synchronous>, transform_indices = @transform_9, window_bounds = array<i64: 63, 256>}, {pipeline_mode = #tpu.pipeline_mode<synchronous>, transform_indices = @transform_10, window_bounds = array<i64: 256, 256>}, {pipeline_mode = #tpu.pipeline_mode<synchronous>, transform_indices = @transform_11, window_bounds = array<i64: 1, 256>}, {pipeline_mode = #tpu.pipeline_mode<synchronous>, transform_indices = @transform_12, window_bounds = array<i64: 256, 256>}, {pipeline_mode = #tpu.pipeline_mode<synchronous>, transform_indices = @transform_13, window_bounds = array<i64: 1, 256>}, {pipeline_mode = #tpu.pipeline_mode<synchronous>, transform_indices = @transform_14, window_bounds = array<i64: 256, 256>}, {pipeline_mode = #tpu.pipeline_mode<synchronous>, transform_indices = @transform_15, window_bounds = array<i64: 1, 256>}, {pipeline_mode = #tpu.pipeline_mode<synchronous>, transform_indices = @transform_16, window_bounds = array<i64: 256, 256>}, {pipeline_mode = #tpu.pipeline_mode<synchronous>, transform_indices = @transform_17, window_bounds = array<i64: 1, 256>}, {pipeline_mode = #tpu.pipeline_mode<synchronous>, transform_indices = @transform_18, window_bounds = array<i64: 256, 9>}, {pipeline_mode = #tpu.pipeline_mode<synchronous>, transform_indices = @transform_19, window_bounds = array<i64: 1, 9>}, {transform_indices = @transform_20, window_bounds = array<i64: 304, 9>}]} {
    %c0 = arith.constant 0 : index
    %c0_0 = arith.constant 0 : index
    %0 = vector.load %arg1[%c0, %c0_0] : memref<304x63xf32, #tpu.memory_space<vmem>>, vector<304x63xf32>
    %1 = arith.truncf %0 : vector<304x63xf32> to vector<304x63xbf16>
    %c0_1 = arith.constant 0 : index
    %c0_2 = arith.constant 0 : index
    %2 = vector.load %arg2[%c0_1, %c0_2] : memref<63x256xbf16, #tpu.memory_space<vmem>>, vector<63x256xbf16>
    %cst = arith.constant dense<0.000000e+00> : vector<304x256xf32>
    %3 = tpu.matmul %1, %2, %cst {dimension_numbers = #tpu.dot_dimension_numbers<[1], [0], [0], [1], [0, 0, 1, 1], [], []>} : vector<304x63xbf16>, vector<63x256xbf16>, vector<304x256xf32> -> vector<304x256xf32>
    %c0_3 = arith.constant 0 : index
    %c0_4 = arith.constant 0 : index
    %4 = vector.load %arg3[%c0_3, %c0_4] : memref<1x256xf32, #tpu.memory_space<vmem>>, vector<1x256xf32>
    %5 = vector.broadcast %4 : vector<1x256xf32> to vector<304x256xf32>
    %6 = arith.addf %3, %5 : vector<304x256xf32>
    %cst_5 = arith.constant 0.000000e+00 : f32
    %7 = vector.broadcast %cst_5 : f32 to vector<304x256xf32>
    %8 = arith.maximumf %6, %7 : vector<304x256xf32>
    %9 = arith.truncf %8 : vector<304x256xf32> to vector<304x256xbf16>
    %c0_6 = arith.constant 0 : index
    %c0_7 = arith.constant 0 : index
    %10 = vector.load %arg4[%c0_6, %c0_7] : memref<256x256xbf16, #tpu.memory_space<vmem>>, vector<256x256xbf16>
    %cst_8 = arith.constant dense<0.000000e+00> : vector<304x256xf32>
    %11 = tpu.matmul %9, %10, %cst_8 {dimension_numbers = #tpu.dot_dimension_numbers<[1], [0], [0], [1], [0, 0, 1, 1], [], []>} : vector<304x256xbf16>, vector<256x256xbf16>, vector<304x256xf32> -> vector<304x256xf32>
    %c0_9 = arith.constant 0 : index
    %c0_10 = arith.constant 0 : index
    %12 = vector.load %arg5[%c0_9, %c0_10] : memref<1x256xf32, #tpu.memory_space<vmem>>, vector<1x256xf32>
    %13 = vector.broadcast %12 : vector<1x256xf32> to vector<304x256xf32>
    %14 = arith.addf %11, %13 : vector<304x256xf32>
    %cst_11 = arith.constant 0.000000e+00 : f32
    %15 = vector.broadcast %cst_11 : f32 to vector<304x256xf32>
    %16 = arith.maximumf %14, %15 : vector<304x256xf32>
    %17 = arith.truncf %16 : vector<304x256xf32> to vector<304x256xbf16>
    %c0_12 = arith.constant 0 : index
    %c0_13 = arith.constant 0 : index
    %18 = vector.load %arg6[%c0_12, %c0_13] : memref<256x256xbf16, #tpu.memory_space<vmem>>, vector<256x256xbf16>
    %cst_14 = arith.constant dense<0.000000e+00> : vector<304x256xf32>
    %19 = tpu.matmul %17, %18, %cst_14 {dimension_numbers = #tpu.dot_dimension_numbers<[1], [0], [0], [1], [0, 0, 1, 1], [], []>} : vector<304x256xbf16>, vector<256x256xbf16>, vector<304x256xf32> -> vector<304x256xf32>
    %c0_15 = arith.constant 0 : index
    %c0_16 = arith.constant 0 : index
    %20 = vector.load %arg7[%c0_15, %c0_16] : memref<1x256xf32, #tpu.memory_space<vmem>>, vector<1x256xf32>
    %21 = vector.broadcast %20 : vector<1x256xf32> to vector<304x256xf32>
    %22 = arith.addf %19, %21 : vector<304x256xf32>
    %cst_17 = arith.constant 0.000000e+00 : f32
    %23 = vector.broadcast %cst_17 : f32 to vector<304x256xf32>
    %24 = arith.maximumf %22, %23 : vector<304x256xf32>
    %25 = arith.truncf %24 : vector<304x256xf32> to vector<304x256xbf16>
    %c0_18 = arith.constant 0 : index
    %c0_19 = arith.constant 0 : index
    %26 = vector.load %arg8[%c0_18, %c0_19] : memref<256x256xbf16, #tpu.memory_space<vmem>>, vector<256x256xbf16>
    %cst_20 = arith.constant dense<0.000000e+00> : vector<304x256xf32>
    %27 = tpu.matmul %25, %26, %cst_20 {dimension_numbers = #tpu.dot_dimension_numbers<[1], [0], [0], [1], [0, 0, 1, 1], [], []>} : vector<304x256xbf16>, vector<256x256xbf16>, vector<304x256xf32> -> vector<304x256xf32>
    %c0_21 = arith.constant 0 : index
    %c0_22 = arith.constant 0 : index
    %28 = vector.load %arg9[%c0_21, %c0_22] : memref<1x256xf32, #tpu.memory_space<vmem>>, vector<1x256xf32>
    %29 = vector.broadcast %28 : vector<1x256xf32> to vector<304x256xf32>
    %30 = arith.addf %27, %29 : vector<304x256xf32>
    %cst_23 = arith.constant 0.000000e+00 : f32
    %31 = vector.broadcast %cst_23 : f32 to vector<304x256xf32>
    %32 = arith.maximumf %30, %31 : vector<304x256xf32>
    %33 = arith.truncf %32 : vector<304x256xf32> to vector<304x256xbf16>
    %c0_24 = arith.constant 0 : index
    %c0_25 = arith.constant 0 : index
    %34 = vector.load %arg10[%c0_24, %c0_25] : memref<63x256xbf16, #tpu.memory_space<vmem>>, vector<63x256xbf16>
    %cst_26 = arith.constant dense<0.000000e+00> : vector<304x256xf32>
    %35 = tpu.matmul %1, %34, %cst_26 {dimension_numbers = #tpu.dot_dimension_numbers<[1], [0], [0], [1], [0, 0, 1, 1], [], []>} : vector<304x63xbf16>, vector<63x256xbf16>, vector<304x256xf32> -> vector<304x256xf32>
    %c0_27 = arith.constant 0 : index
    %c0_28 = arith.constant 0 : index
    %36 = vector.load %arg11[%c0_27, %c0_28] : memref<256x256xbf16, #tpu.memory_space<vmem>>, vector<256x256xbf16>
    %cst_29 = arith.constant dense<0.000000e+00> : vector<304x256xf32>
    %37 = tpu.matmul %33, %36, %cst_29 {dimension_numbers = #tpu.dot_dimension_numbers<[1], [0], [0], [1], [0, 0, 1, 1], [], []>} : vector<304x256xbf16>, vector<256x256xbf16>, vector<304x256xf32> -> vector<304x256xf32>
    %38 = arith.addf %35, %37 : vector<304x256xf32>
    %c0_30 = arith.constant 0 : index
    %c0_31 = arith.constant 0 : index
    %39 = vector.load %arg12[%c0_30, %c0_31] : memref<1x256xf32, #tpu.memory_space<vmem>>, vector<1x256xf32>
    %40 = vector.broadcast %39 : vector<1x256xf32> to vector<304x256xf32>
    %41 = arith.addf %38, %40 : vector<304x256xf32>
    %cst_32 = arith.constant 0.000000e+00 : f32
    %42 = vector.broadcast %cst_32 : f32 to vector<304x256xf32>
    %43 = arith.maximumf %41, %42 : vector<304x256xf32>
    %44 = arith.truncf %43 : vector<304x256xf32> to vector<304x256xbf16>
    %c0_33 = arith.constant 0 : index
    %c0_34 = arith.constant 0 : index
    %45 = vector.load %arg13[%c0_33, %c0_34] : memref<256x256xbf16, #tpu.memory_space<vmem>>, vector<256x256xbf16>
    %cst_35 = arith.constant dense<0.000000e+00> : vector<304x256xf32>
    %46 = tpu.matmul %44, %45, %cst_35 {dimension_numbers = #tpu.dot_dimension_numbers<[1], [0], [0], [1], [0, 0, 1, 1], [], []>} : vector<304x256xbf16>, vector<256x256xbf16>, vector<304x256xf32> -> vector<304x256xf32>
    %c0_36 = arith.constant 0 : index
    %c0_37 = arith.constant 0 : index
    %47 = vector.load %arg14[%c0_36, %c0_37] : memref<1x256xf32, #tpu.memory_space<vmem>>, vector<1x256xf32>
    %48 = vector.broadcast %47 : vector<1x256xf32> to vector<304x256xf32>
    %49 = arith.addf %46, %48 : vector<304x256xf32>
    %cst_38 = arith.constant 0.000000e+00 : f32
    %50 = vector.broadcast %cst_38 : f32 to vector<304x256xf32>
    %51 = arith.maximumf %49, %50 : vector<304x256xf32>
    %52 = arith.truncf %51 : vector<304x256xf32> to vector<304x256xbf16>
    %c0_39 = arith.constant 0 : index
    %c0_40 = arith.constant 0 : index
    %53 = vector.load %arg15[%c0_39, %c0_40] : memref<256x256xbf16, #tpu.memory_space<vmem>>, vector<256x256xbf16>
    %cst_41 = arith.constant dense<0.000000e+00> : vector<304x256xf32>
    %54 = tpu.matmul %52, %53, %cst_41 {dimension_numbers = #tpu.dot_dimension_numbers<[1], [0], [0], [1], [0, 0, 1, 1], [], []>} : vector<304x256xbf16>, vector<256x256xbf16>, vector<304x256xf32> -> vector<304x256xf32>
    %c0_42 = arith.constant 0 : index
    %c0_43 = arith.constant 0 : index
    %55 = vector.load %arg16[%c0_42, %c0_43] : memref<1x256xf32, #tpu.memory_space<vmem>>, vector<1x256xf32>
    %56 = vector.broadcast %55 : vector<1x256xf32> to vector<304x256xf32>
    %57 = arith.addf %54, %56 : vector<304x256xf32>
    %cst_44 = arith.constant 0.000000e+00 : f32
    %58 = vector.broadcast %cst_44 : f32 to vector<304x256xf32>
    %59 = arith.maximumf %57, %58 : vector<304x256xf32>
    %60 = arith.truncf %59 : vector<304x256xf32> to vector<304x256xbf16>
    %c0_45 = arith.constant 0 : index
    %c0_46 = arith.constant 0 : index
    %61 = vector.load %arg17[%c0_45, %c0_46] : memref<256x256xbf16, #tpu.memory_space<vmem>>, vector<256x256xbf16>
    %cst_47 = arith.constant dense<0.000000e+00> : vector<304x256xf32>
    %62 = tpu.matmul %60, %61, %cst_47 {dimension_numbers = #tpu.dot_dimension_numbers<[1], [0], [0], [1], [0, 0, 1, 1], [], []>} : vector<304x256xbf16>, vector<256x256xbf16>, vector<304x256xf32> -> vector<304x256xf32>
    %c0_48 = arith.constant 0 : index
    %c0_49 = arith.constant 0 : index
    %63 = vector.load %arg18[%c0_48, %c0_49] : memref<1x256xf32, #tpu.memory_space<vmem>>, vector<1x256xf32>
    %64 = vector.broadcast %63 : vector<1x256xf32> to vector<304x256xf32>
    %65 = arith.addf %62, %64 : vector<304x256xf32>
    %cst_50 = arith.constant 0.000000e+00 : f32
    %66 = vector.broadcast %cst_50 : f32 to vector<304x256xf32>
    %67 = arith.maximumf %65, %66 : vector<304x256xf32>
    %68 = arith.truncf %67 : vector<304x256xf32> to vector<304x256xbf16>
    %c0_51 = arith.constant 0 : index
    %c0_52 = arith.constant 0 : index
    %69 = vector.load %arg19[%c0_51, %c0_52] : memref<256x9xbf16, #tpu.memory_space<vmem>>, vector<256x9xbf16>
    %cst_53 = arith.constant dense<0.000000e+00> : vector<304x9xf32>
    %70 = tpu.matmul %68, %69, %cst_53 {dimension_numbers = #tpu.dot_dimension_numbers<[1], [0], [0], [1], [0, 0, 1, 1], [], []>} : vector<304x256xbf16>, vector<256x9xbf16>, vector<304x9xf32> -> vector<304x9xf32>
    %c0_54 = arith.constant 0 : index
    %c0_55 = arith.constant 0 : index
    %71 = vector.load %arg20[%c0_54, %c0_55] : memref<1x9xf32, #tpu.memory_space<vmem>>, vector<1x9xf32>
    %72 = vector.broadcast %71 : vector<1x9xf32> to vector<304x9xf32>
    %73 = arith.addf %70, %72 : vector<304x9xf32>
    %c0_56 = arith.constant 0 : index
    %c0_57 = arith.constant 0 : index
    %74 = vector.load %arg21[%c0_56, %c0_57] : memref<304x9xf32, #tpu.memory_space<vmem>>, vector<304x9xf32>
    tpu.vector_store %arg21[%c0_56, %c0_57], %73 {strides = array<i32>} : memref<304x9xf32, #tpu.memory_space<vmem>>, vector<304x9xf32>,
    return
  }
  func.func @transform_0(%arg0: i32) -> (i32, i32) {
    %c0_i32 = arith.constant 0 : i32
    %c0_i32_0 = arith.constant 0 : i32
    return %arg0, %c0_i32 : i32, i32
  }
  func.func @transform_1(%arg0: i32) -> (i32, i32) {
    %c0_i32 = arith.constant 0 : i32
    %c0_i32_0 = arith.constant 0 : i32
    %c0_i32_1 = arith.constant 0 : i32
    return %c0_i32, %c0_i32_0 : i32, i32
  }
  func.func @transform_2(%arg0: i32) -> (i32, i32) {
    %c0_i32 = arith.constant 0 : i32
    %c0_i32_0 = arith.constant 0 : i32
    %c0_i32_1 = arith.constant 0 : i32
    return %c0_i32, %c0_i32_0 : i32, i32
  }
  func.func @transform_3(%arg0: i32) -> (i32, i32) {
    %c0_i32 = arith.constant 0 : i32
    %c0_i32_0 = arith.constant 0 : i32
    %c0_i32_1 = arith.constant 0 : i32
    return %c0_i32, %c0_i32_0 : i32, i32
  }
  func.func @transform_4(%arg0: i32) -> (i32, i32) {
    %c0_i32 = arith.constant 0 : i32
    %c0_i32_0 = arith.constant 0 : i32
    %c0_i32_1 = arith.constant 0 : i32
    return %c0_i32, %c0_i32_0 : i32, i32
  }
  func.func @transform_5(%arg0: i32) -> (i32, i32) {
    %c0_i32 = arith.constant 0 : i32
    %c0_i32_0 = arith.constant 0 : i32
    %c0_i32_1 = arith.constant 0 : i32
    return %c0_i32, %c0_i32_0 : i32, i32
  }
  func.func @transform_6(%arg0: i32) -> (i32, i32) {
    %c0_i32 = arith.constant 0 : i32
    %c0_i32_0 = arith.constant 0 : i32
    %c0_i32_1 = arith.constant 0 : i32
    return %c0_i32, %c0_i32_0 : i32, i32
  }
  func.func @transform_7(%arg0: i32) -> (i32, i32) {
    %c0_i32 = arith.constant 0 : i32
    %c0_i32_0 = arith.constant 0 : i32
    %c0_i32_1 = arith.constant 0 : i32
    return %c0_i32, %c0_i32_0 : i32, i32
  }
  func.func @transform_8(%arg0: i32) -> (i32, i32) {
    %c0_i32 = arith.constant 0 : i32
    %c0_i32_0 = arith.constant 0 : i32
    %c0_i32_1 = arith.constant 0 : i32
    return %c0_i32, %c0_i32_0 : i32, i32
  }
  func.func @transform_9(%arg0: i32) -> (i32, i32) {
    %c0_i32 = arith.constant 0 : i32
    %c0_i32_0 = arith.constant 0 : i32
    %c0_i32_1 = arith.constant 0 : i32
    return %c0_i32, %c0_i32_0 : i32, i32
  }
  func.func @transform_10(%arg0: i32) -> (i32, i32) {
    %c0_i32 = arith.constant 0 : i32
    %c0_i32_0 = arith.constant 0 : i32
    %c0_i32_1 = arith.constant 0 : i32
    return %c0_i32, %c0_i32_0 : i32, i32
  }
  func.func @transform_11(%arg0: i32) -> (i32, i32) {
    %c0_i32 = arith.constant 0 : i32
    %c0_i32_0 = arith.constant 0 : i32
    %c0_i32_1 = arith.constant 0 : i32
    return %c0_i32, %c0_i32_0 : i32, i32
  }
  func.func @transform_12(%arg0: i32) -> (i32, i32) {
    %c0_i32 = arith.constant 0 : i32
    %c0_i32_0 = arith.constant 0 : i32
    %c0_i32_1 = arith.constant 0 : i32
    return %c0_i32, %c0_i32_0 : i32, i32
  }
  func.func @transform_13(%arg0: i32) -> (i32, i32) {
    %c0_i32 = arith.constant 0 : i32
    %c0_i32_0 = arith.constant 0 : i32
    %c0_i32_1 = arith.constant 0 : i32
    return %c0_i32, %c0_i32_0 : i32, i32
  }
  func.func @transform_14(%arg0: i32) -> (i32, i32) {
    %c0_i32 = arith.constant 0 : i32
    %c0_i32_0 = arith.constant 0 : i32
    %c0_i32_1 = arith.constant 0 : i32
    return %c0_i32, %c0_i32_0 : i32, i32
  }
  func.func @transform_15(%arg0: i32) -> (i32, i32) {
    %c0_i32 = arith.constant 0 : i32
    %c0_i32_0 = arith.constant 0 : i32
    %c0_i32_1 = arith.constant 0 : i32
    return %c0_i32, %c0_i32_0 : i32, i32
  }
  func.func @transform_16(%arg0: i32) -> (i32, i32) {
    %c0_i32 = arith.constant 0 : i32
    %c0_i32_0 = arith.constant 0 : i32
    %c0_i32_1 = arith.constant 0 : i32
    return %c0_i32, %c0_i32_0 : i32, i32
  }
  func.func @transform_17(%arg0: i32) -> (i32, i32) {
    %c0_i32 = arith.constant 0 : i32
    %c0_i32_0 = arith.constant 0 : i32
    %c0_i32_1 = arith.constant 0 : i32
    return %c0_i32, %c0_i32_0 : i32, i32
  }
  func.func @transform_18(%arg0: i32) -> (i32, i32) {
    %c0_i32 = arith.constant 0 : i32
    %c0_i32_0 = arith.constant 0 : i32
    %c0_i32_1 = arith.constant 0 : i32
    return %c0_i32, %c0_i32_0 : i32, i32
  }
  func.func @transform_19(%arg0: i32) -> (i32, i32) {
    %c0_i32 = arith.constant 0 : i32
    %c0_i32_0 = arith.constant 0 : i32
    %c0_i32_1 = arith.constant 0 : i32
    return %c0_i32, %c0_i32_0 : i32, i32
  }
  func.func @transform_20(%arg0: i32) -> (i32, i32) {
    %c0_i32 = arith.constant 0 : i32
    %c0_i32_0 = arith.constant 0 : i32
    return %arg0, %c0_i32 : i32, i32
  }
}

</mosaic_0001>

<bundles_post_ra>
// kernel: nerf_smooth_transport.1
= control target key start
LH: loop header
LB: loop body
LE: loop exit
PB: predicated region body
PF: predicated region fallthrough
CT: control target
= control target key end

     0   :  { %s12980_s0 = inlined_call_operand.vmem [shape: f32[600,63], index: 0, kind: input, shape index: {}]   ;;  %s12981_s1 = inlined_call_operand.vmem [shape: bf16[63,256], index: 1, kind: input, shape index: {}]   ;;  %s12982_s2 = inlined_call_operand.vmem [shape: f32[1,256], index: 2, kind: input, shape index: {}]   ;;  %s12983_s3 = inlined_call_operand.vmem [shape: bf16[256,256], index: 3, kind: input, shape index: {}]   ;;  %s12984_s4 = inlined_call_operand.vmem [shape: f32[1,256], index: 4, kind: input, shape index: {}]   ;;  %s12985_s5 = inlined_call_operand.vmem [shape: bf16[256,256], index: 5, kind: input, shape index: {}]   ;;  %s12986_s6 = inlined_call_operand.vmem [shape: f32[1,256], index: 6, kind: input, shape index: {}]   ;;  %s12987_s7 = inlined_call_operand.vmem [shape: bf16[256,256], index: 7, kind: input, shape index: {}]   ;;  %s12988_s8 = inlined_call_operand.vmem [shape: f32[1,256], index: 8, kind: input, shape index: {}]   ;;  %s12989_s9 = inlined_call_operand.vmem [shape: bf16[63,256], index: 9, kind: input, shape index: {}]   ;;  %s12990_s10 = inlined_call_operand.vmem [shape: bf16[256,256], index: 10, kind: input, shape index: {}]   ;;  %s12991_s11 = inlined_call_operand.vmem [shape: f32[1,256], index: 11, kind: input, shape index: {}]   ;;  %s12992_s12 = inlined_call_operand.vmem [shape: bf16[256,256], index: 12, kind: input, shape index: {}]   ;;  %s12993_s13 = inlined_call_operand.vmem [shape: f32[1,256], index: 13, kind: input, shape index: {}]   ;;  %s12994_s14 = inlined_call_operand.vmem [shape: bf16[256,256], index: 14, kind: input, shape index: {}]   ;;  %s12995_s15 = inlined_call_operand.vmem [shape: f32[1,256], index: 15, kind: input, shape index: {}]   ;;  %s12996_s16 = inlined_call_operand.vmem [shape: bf16[256,256], index: 16, kind: input, shape index: {}]   ;;  %s12997_s17 = inlined_call_operand.vmem [shape: f32[1,256], index: 17, kind: input, shape index: {}]   ;;  %s12998_s18 = inlined_call_operand.vmem [shape: bf16[256,9], index: 18, kind: input, shape index: {}]   ;;  %s12999_s19 = inlined_call_operand.vmem [shape: f32[1,9], index: 19, kind: input, shape index: {}]   ;;  %s13000_s20 = inlined_call_operand.vmem [shape: f32[600,9], index: 20, kind: output, shape index: {}]  }
   0x1   :  { %13018 = sst [smem:[#allocation56_spill]] %s12980_s0 }
   0x2   :  { %13019 = sst [smem:[#allocation57_spill]] %s12981_s1 }
   0x3   :  { %13020 = sst [smem:[#allocation58_spill]] %s12982_s2 }
   0x4   :  { %13021 = sst [smem:[#allocation59_spill]] %s12983_s3 }
   0x5   :  { %13022 = sst [smem:[#allocation60_spill]] %s12984_s4 }
   0x6   :  { %13023 = sst [smem:[#allocation61_spill]] %s12985_s5 }
   0x7   :  { %13024 = sst [smem:[#allocation62_spill]] %s13000_s20 }
   0x8   :  { %s8974_s1 = smov 0   ;;  %s8976_s22 = smov 0  }
   0x9   :  { %s8978_s23 = smov 0  }
   0xa LB: > { %13025 = sst [smem:[#allocation3_spill]] %s8830_s22  ;;  %s8987_s24 = sadd.s32 4294967295, %s8834_s23   ;;  %s8834_s23 = sphi %s8978_s23, %s13141_s23   ;;  %s8830_s22 = sphi %s8976_s22, %s13143_s22   ;;  %s8826_s1 = sphi %s8974_s1, %s13142_s1  }
   0xb   : > { %13026 = sst [smem:[#allocation4_spill]] %s8987_s24  ;;  %s8989_s2 = sadd.s32 1, %s8834_s23  }
   0xc   : > { %13027 = sst [smem:[#allocation5_spill]] %s8989_s2  ;;  %s459_s25 = ssub.s32 %s8834_s23, %s8989_s2 }
   0xd   : > { %s462_s3 = sadd.s32 1, %s8830_s22  ;;  %p460_p0 = scmp.eq.s32.totalorder %s459_s25, 0 }
   0xe   : > { %p472_p1 = scmp.ne.s32.totalorder %s8830_s22, %s8826_s1  ;;  %p473_p2 = scmp.eq.s32.totalorder %s8987_s24, 1 }
   0xf   : > { %p7305_p3 = scmp.ge.s32.totalorder %s8834_s23, 1  ;;  %p571_p5 = scmp.lt.s32.totalorder %s8834_s23, 3 }
  0x10   : > { %s8997_s26 = scalar_select %p460_p0, %s8830_s22, %s462_s3  }
  0x11   : > { %p8999_p4 = por %p473_p2, %p472_p1  ;;  %p572_p6 = pnand %p7305_p3, %p571_p5 }
  0x12   : > { %13028 = sst [smem:[#allocation6_spill]] %s8997_s26 }
  0x13   : > { %s13029_s27 = scalar_select %p8999_p4, 1, 0 }
  0x14   : > { %575 = sbr.rel (%p572_p6) target bundleno = 2963 (0xb93), region = 100 }
  0x15   : > { %13030 = sst [smem:[#allocation7_spill]] %s13029_s27 }
  0x19   : > { %s13031_s29 = sld [smem:[#allocation57_spill]]  ;;  %vm819_vm0 = vcmask 1046528   ;;  %vm820_vm1 = vcmask 1047552   ;;  %s9016_s26 = smul.u32 38, %s8987_s24  ;;  %v8868_v5 = vmov 65535   ;;  %vm761_vm2 = vcmask 515072  }
  0x1a   : > { %v821_v6 = vsel %vm819_vm0, 4294967295, %v8868_v5  ;;  %s13033_s22 = sld [smem:[#allocation56_spill]]  ;;  %s629_s24 = sand.u32 1, %s8826_s1   ;;  %vm6923_vm3 = vcmask 72704  }
  0x1b   : > { %13032 = sst [smem:[#allocation8_spill]] %s9016_s26  ;;  %v9018_v8 = vsel %vm820_vm1, %v821_v6, 0  ;;  %p637_p7 = scmp.lt.s32.totalorder %s9016_s26, 74 }
  0x1c   : > { %s13034_s4 = sld [smem:[#allocation59_spill]]  ;;  %s8689_s30 = smul.u32 304, %s629_s24 }
  0x1d   : > { %s638_s28 = scalar_select %p637_p7, %s9016_s26, 74 }
  0x1e   : > { %s13038_s5 = sld [smem:[#allocation61_spill]]  ;;  %s12691_s1 = scalar_lea.vmem [#allocation2], %s8689_s30  }
  0x1f   : > { %v7333_v0 = vld [vmem:[%s13031_s29 + $0x30] sm:$0xf]  ;;  %v8429_v1 = vld [vmem:[%s13031_s29 + $0x34] sm:$0xf0]  ;;  %v8428_v3 = vld [vmem:[%s13031_s29 + $0x34] sm:$0xf] }
  0x20   : > { %v7334_v2 = vor.u32 %v8429_v1, %v7333_v0  ;;  %v7335_v4 = vld [vmem:[%s13031_s29 + $0x38] sm:$0xf0]  ;;  %v7325_v9 = vld [vmem:[%s13031_s29 + $0x20] sm:$0xf]  ;;  %v8427_v10 = vld [vmem:[%s13031_s29 + $0x24] sm:$0xf0] }
  0x21   : > { %v7338_v7 = vor.u32 %v8428_v3, %v7335_v4  ;;  %v8426_v13 = vld [vmem:[%s13031_s29 + $0x24] sm:$0xf]  ;;  %v7327_v14 = vld [vmem:[%s13031_s29 + $0x28] sm:$0xf0]  ;;  %v7326_v15 = vor.u32 %v8427_v10, %v7325_v9  ;;  %v7317_v17 = vld [vmem:[%s13031_s29 + $0x10] sm:$0xf] }
  0x22   : > { %v824_v11 = vand.u32 %v7334_v2, %v9018_v8  ;;  %v7330_v16 = vor.u32 %v8426_v13, %v7327_v14  ;;  %v8425_v18 = vld [vmem:[%s13031_s29 + $0x14] sm:$0xf0]  ;;  %v8424_v19 = vld [vmem:[%s13031_s29 + $0x14] sm:$0xf]  ;;  %v7319_v20 = vld [vmem:[%s13031_s29 + $0x18] sm:$0xf0] }
  0x23   : > { %v827_v12 = vand.u32 %v7338_v7, %v9018_v8  ;;  %s7306_s2 = sshll.u32 %s638_s28, 3  ;;  %v7318_v21 = vor.u32 %v8425_v18, %v7317_v17  ;;  %v7309_v22 = vld [vmem:[%s13031_s29] sm:$0xf]  ;;  %v7322_v23 = vor.u32 %v8424_v19, %v7319_v20  ;;  %v8423_v24 = vld [vmem:[%s13031_s29 + $0x4] sm:$0xf0]  ;;  %s13040_s28 = sld [smem:[#allocation58_spill]] }
  0x24   : > { %833 = vmatpush.bf16.msra.mxu0 %v824_v11  ;;  %8681 = vmatpush.bf16.msra.mxu2 %v824_v11  ;;  %s9054_s0 = scalar_lea.vmem %s13033_s22, %s7306_s2  ;;  %v8422_v25 = vld [vmem:[%s13031_s29 + $0x4] sm:$0xf]  ;;  %v7311_v26 = vld [vmem:[%s13031_s29 + $0x8] sm:$0xf0]  ;;  %v7435_v27 = vld [vmem:[%s13034_s4 + $0x70] sm:$0xf]  ;;  %v7310_v32 = vor.u32 %v8423_v24, %v7309_v22 }
  0x25   : > { %937 = vmatpush.bf16.msra.mxu1 %v827_v12  ;;  %8685 = vmatpush.bf16.msra.mxu3 %v827_v12  ;;  %v8445_v28 = vld [vmem:[%s13034_s4 + $0x74] sm:$0xf0]  ;;  %v7499_v29 = vld [vmem:[%s13034_s4 + $0xf0] sm:$0xf]  ;;  %v652_v30 = vld [vmem:[%s9054_s0] sm:$0xff]  ;;  %v7314_v36 = vor.u32 %v8422_v25, %v7311_v26  ;;  %s13041_s26 = sld [smem:[#allocation60_spill]] }
  0x26   : > { %v8461_v31 = vld [vmem:[%s13034_s4 + $0xf4] sm:$0xf0]  ;;  %v653_v33 = vld [vmem:[%s9054_s0 + $0x8] sm:$0xff]  ;;  %v672_v34 = vld [vmem:[%s9054_s0 + $0xa0] sm:$0xff]  ;;  %v7436_v37 = vor.u32 %v8445_v28, %v7435_v27  ;;  %s13135_s27 = sld [smem:[#allocation62_spill]] (%p8999_p4) }
  0x27   : > { %v673_v35 = vld [vmem:[%s9054_s0 + $0xa8] sm:$0xff]  ;;  %v7500_v38 = vor.u32 %v8461_v31, %v7499_v29  ;;  %v7427_v39 = vld [vmem:[%s13034_s4 + $0x60] sm:$0xf]  ;;  %v9084_v40 = vpack.c.bf16 %v653_v33, %v652_v30  ;;  %v7419_v47 = vld [vmem:[%s13034_s4 + $0x50] sm:$0xf] }
  0x28   : > { %834 = vmatpush.bf16.msra.mxu0 %v7326_v15  ;;  %8682 = vmatpush.bf16.msra.mxu2 %v7326_v15  ;;  %v9086_v41 = vpack.c.bf16 %v673_v35, %v672_v34  ;;  %v8443_v42 = vld [vmem:[%s13034_s4 + $0x64] sm:$0xf0]  ;;  %v7491_v43 = vld [vmem:[%s13034_s4 + $0xe0] sm:$0xf]  ;;  %v8441_v48 = vld [vmem:[%s13034_s4 + $0x54] sm:$0xf0] }
  0x29   : > { %938 = vmatpush.bf16.msra.mxu1 %v7330_v16  ;;  %8686 = vmatpush.bf16.msra.mxu3 %v7330_v16  ;;  %v8459_v44 = vld [vmem:[%s13034_s4 + $0xe4] sm:$0xf0]  ;;  %v7428_v45 = vor.u32 %v8443_v42, %v7427_v39  ;;  %v7483_v49 = vld [vmem:[%s13034_s4 + $0xd0] sm:$0xf]  ;;  %v8457_v50 = vld [vmem:[%s13034_s4 + $0xd4] sm:$0xf0]  ;;  %v7420_v51 = vor.u32 %v8441_v48, %v7419_v47 }
  0x2a   : > { %v7492_v46 = vor.u32 %v8459_v44, %v7491_v43  ;;  %v7484_v52 = vor.u32 %v8457_v50, %v7483_v49  ;;  %v654_v53 = vld [vmem:[%s9054_s0 + $0x10] sm:$0xff]  ;;  %v655_v54 = vld [vmem:[%s9054_s0 + $0x18] sm:$0xff]  ;;  %v7411_v59 = vld [vmem:[%s13034_s4 + $0x40] sm:$0xf] }
  0x2b   : > { %v674_v55 = vld [vmem:[%s9054_s0 + $0xb0] sm:$0xff]  ;;  %v675_v56 = vld [vmem:[%s9054_s0 + $0xb8] sm:$0xff]  ;;  %v9121_v57 = vpack.c.bf16 %v655_v54, %v654_v53  ;;  %v8439_v60 = vld [vmem:[%s13034_s4 + $0x44] sm:$0xf0] }
  0x2c   : > { %835 = vmatpush.bf16.msra.mxu0 %v7318_v21  ;;  %8683 = vmatpush.bf16.msra.mxu2 %v7318_v21  ;;  %v9123_v58 = vpack.c.bf16 %v675_v56, %v674_v55  ;;  %v7475_v61 = vld [vmem:[%s13034_s4 + $0xc0] sm:$0xf]  ;;  %v7412_v62 = vor.u32 %v8439_v60, %v7411_v59  ;;  %v8455_v63 = vld [vmem:[%s13034_s4 + $0xc4] sm:$0xf0]  ;;  %v7403_v7 = vld [vmem:[%s13034_s4 + $0x30] sm:$0xf] }
  0x2d   : > { %939 = vmatpush.bf16.msra.mxu1 %v7322_v23  ;;  %8687 = vmatpush.bf16.msra.mxu3 %v7322_v23  ;;  %v7476_v0 = vor.u32 %v8455_v63, %v7475_v61  ;;  %v656_v1 = vld [vmem:[%s9054_s0 + $0x20] sm:$0xff]  ;;  %v657_v2 = vld [vmem:[%s9054_s0 + $0x28] sm:$0xff]  ;;  %v8437_v9 = vld [vmem:[%s13034_s4 + $0x34] sm:$0xf0] }
  0x2e   : > { %v676_v3 = vld [vmem:[%s9054_s0 + $0xc0] sm:$0xff]  ;;  %v677_v4 = vld [vmem:[%s9054_s0 + $0xc8] sm:$0xff]  ;;  %v9149_v5 = vpack.c.bf16 %v657_v2, %v656_v1  ;;  %v7467_v10 = vld [vmem:[%s13034_s4 + $0xb0] sm:$0xf]  ;;  %v7404_v11 = vor.u32 %v8437_v9, %v7403_v7 }
  0x2f   : > { %v9151_v6 = vpack.c.bf16 %v677_v4, %v676_v3  ;;  %v8453_v12 = vld [vmem:[%s13034_s4 + $0xb4] sm:$0xf0]  ;;  %v658_v14 = vld [vmem:[%s9054_s0 + $0x30] sm:$0xff]  ;;  %v7395_v20 = vld [vmem:[%s13034_s4 + $0x20] sm:$0xf] }
  0x30   : > { %836 = vmatpush.bf16.msra.mxu0 %v7310_v32  ;;  %8684 = vmatpush.bf16.msra.mxu2 %v7310_v32  ;;  %v7468_v13 = vor.u32 %v8453_v12, %v7467_v10  ;;  %v659_v15 = vld [vmem:[%s9054_s0 + $0x38] sm:$0xff]  ;;  %v678_v16 = vld [vmem:[%s9054_s0 + $0xd0] sm:$0xff]  ;;  %v8435_v21 = vld [vmem:[%s13034_s4 + $0x24] sm:$0xf0] }
  0x31   : > { %940 = vmatpush.bf16.msra.mxu1 %v7314_v36  ;;  %8688 = vmatpush.bf16.msra.mxu3 %v7314_v36  ;;  %v679_v17 = vld [vmem:[%s9054_s0 + $0xd8] sm:$0xff]  ;;  %v9177_v18 = vpack.c.bf16 %v659_v15, %v658_v14  ;;  %v7459_v22 = vld [vmem:[%s13034_s4 + $0xa0] sm:$0xf]  ;;  %v7396_v23 = vor.u32 %v8435_v21, %v7395_v20  ;;  %v8451_v24 = vld [vmem:[%s13034_s4 + $0xa4] sm:$0xf0] }
  0x32   : > { %v9179_v19 = vpack.c.bf16 %v679_v17, %v678_v16  ;;  %v7460_v25 = vor.u32 %v8451_v24, %v7459_v22  ;;  %v660_v26 = vld [vmem:[%s9054_s0 + $0x40] sm:$0xff]  ;;  %v661_v27 = vld [vmem:[%s9054_s0 + $0x48] sm:$0xff]  ;;  %v7387_v32 = vld [vmem:[%s13034_s4 + $0x10] sm:$0xf] }
  0x33   : > { %7339 = vmatmul.msk.bf16.vlgmr.msra.gmra.mxu0 %vm761_vm2, %v9084_v40  ;;  %7349 = vmatmul.msk.bf16.vlgmr.msra.gmra.mxu2 %vm761_vm2, %v9086_v41  ;;  %v680_v28 = vld [vmem:[%s9054_s0 + $0xe0] sm:$0xff]  ;;  %v681_v29 = vld [vmem:[%s9054_s0 + $0xe8] sm:$0xff]  ;;  %v9205_v30 = vpack.c.bf16 %v661_v27, %v660_v26  ;;  %v8433_v33 = vld [vmem:[%s13034_s4 + $0x14] sm:$0xf0] }
  0x34   : > { %1349 = vmatpush.bf16.msrb.mxu2 %v7436_v37  ;;  %7358 = vmatmul.msk.bf16.vlgmr.msra.gmra.mxu1 %vm761_vm2, %v9084_v40  ;;  %v9207_v31 = vpack.c.bf16 %v681_v29, %v680_v28  ;;  %v7451_v34 = vld [vmem:[%s13034_s4 + $0x90] sm:$0xf]  ;;  %v7388_v35 = vor.u32 %v8433_v33, %v7387_v32  ;;  %v8449_v36 = vld [vmem:[%s13034_s4 + $0x94] sm:$0xf0]  ;;  %v665_v47 = vld [vmem:[%s9054_s0 + $0x68] sm:$0xff] }
  0x35   : > { %1453 = vmatpush.bf16.msrb.mxu3 %v7500_v38  ;;  %v7452_v37 = vor.u32 %v8449_v36, %v7451_v34  ;;  %v662_v38 = vld [vmem:[%s9054_s0 + $0x50] sm:$0xff]  ;;  %v663_v39 = vld [vmem:[%s9054_s0 + $0x58] sm:$0xff]  ;;  %v684_v48 = vld [vmem:[%s9054_s0 + $0x100] sm:$0xff] }
  0x36   : > { %7368 = vmatmul.msk.bf16.vlgmr.msra.gmra.mxu3 %vm761_vm2, %v9086_v41  ;;  %v682_v42 = vld [vmem:[%s9054_s0 + $0xf0] sm:$0xff]  ;;  %v683_v43 = vld [vmem:[%s9054_s0 + $0xf8] sm:$0xff]  ;;  %v9233_v44 = vpack.c.bf16 %v663_v39, %v662_v38  ;;  %v685_v49 = vld [vmem:[%s9054_s0 + $0x108] sm:$0xff] }
  0x37   : > { %v7437_v53 = vld [vmem:[%s13034_s4 + $0x78] sm:$0xf0]  ;;  %v8460_v55 = vld [vmem:[%s13034_s4 + $0xf4] sm:$0xf]  ;;  %v7379_v59 = vld [vmem:[%s13034_s4] sm:$0xf] }
  0x38   : > { %1350 = vmatpush.bf16.msrb.mxu2 %v7428_v45  ;;  %v9235_v45 = vpack.c.bf16 %v683_v43, %v682_v42  ;;  %v7501_v56 = vld [vmem:[%s13034_s4 + $0xf8] sm:$0xf0]  ;;  %v8431_v60 = vld [vmem:[%s13034_s4 + $0x4] sm:$0xf0]  ;;  %v7443_v61 = vld [vmem:[%s13034_s4 + $0x80] sm:$0xf] }
  0x39   : > { %1454 = vmatpush.bf16.msrb.mxu3 %v7492_v46  ;;  %v664_v46 = vld [vmem:[%s9054_s0 + $0x60] sm:$0xff]  ;;  %v7380_v63 = vor.u32 %v8431_v60, %v7379_v59  ;;  %v7429_v3 = vld [vmem:[%s13034_s4 + $0x68] sm:$0xf0]  ;;  %v7421_v12 = vld [vmem:[%s13034_s4 + $0x58] sm:$0xf0] }
  0x3a   : > { %13035 = vst [vmem:[#allocation9_spill] sm:$0xff] %v9235_v45  ;;  %v9249_v50 = vpack.c.bf16 %v665_v47, %v664_v46  ;;  %v8442_v2 = vld [vmem:[%s13034_s4 + $0x64] sm:$0xf]  ;;  %v7493_v9 = vld [vmem:[%s13034_s4 + $0xe8] sm:$0xf0]  ;;  %v666_v14 = vld [vmem:[%s9054_s0 + $0x70] sm:$0xff] }
  0x3b   : > { %v8458_v4 = vld [vmem:[%s13034_s4 + $0xe4] sm:$0xf]  ;;  %v7432_v7 = vor.u32 %v8442_v2, %v7429_v3  ;;  %v7485_v16 = vld [vmem:[%s13034_s4 + $0xd8] sm:$0xf0]  ;;  %v686_v20 = vld [vmem:[%s9054_s0 + $0x110] sm:$0xff] }
  0x3c   : > { %1351 = vmatpush.bf16.msrb.mxu2 %v7420_v51  ;;  %v9251_v51 = vpack.c.bf16 %v685_v49, %v684_v48  ;;  %v7496_v10 = vor.u32 %v8458_v4, %v7493_v9  ;;  %v667_v17 = vld [vmem:[%s9054_s0 + $0x78] sm:$0xff]  ;;  %v7413_v24 = vld [vmem:[%s13034_s4 + $0x48] sm:$0xf0]  ;;  %v8436_v33 = vld [vmem:[%s13034_s4 + $0x34] sm:$0xf] }
  0x3d   : > { %1455 = vmatpush.bf16.msrb.mxu3 %v7484_v52  ;;  %v8444_v52 = vld [vmem:[%s13034_s4 + $0x74] sm:$0xf]  ;;  %v687_v21 = vld [vmem:[%s9054_s0 + $0x118] sm:$0xff]  ;;  %v9322_v26 = vpack.c.bf16 %v667_v17, %v666_v14  ;;  %v7477_v29 = vld [vmem:[%s13034_s4 + $0xc8] sm:$0xf0] }
  0x3e   : > { %13036 = vst [vmem:[#allocation10_spill] sm:$0xff] %v9251_v51  ;;  %v7440_v54 = vor.u32 %v8444_v52, %v7437_v53  ;;  %v9324_v27 = vpack.c.bf16 %v687_v21, %v686_v20  ;;  %v7405_v34 = vld [vmem:[%s13034_s4 + $0x38] sm:$0xf0]  ;;  %v7563_v38 = vld [vmem:[%s13038_s5 + $0x70] sm:$0xf]  ;;  %v688_v2 = vld [vmem:[%s9054_s0 + $0x120] sm:$0xff] }
  0x3f   : > { %v7408_v36 = vor.u32 %v8436_v33, %v7405_v34  ;;  %v8477_v39 = vld [vmem:[%s13038_s5 + $0x74] sm:$0xf0]  ;;  %v7627_v43 = vld [vmem:[%s13038_s5 + $0xf0] sm:$0xf]  ;;  %v8434_v49 = vld [vmem:[%s13034_s4 + $0x24] sm:$0xf] }
  0x40   : > { %1352 = vmatpush.bf16.msrb.mxu2 %v7412_v62  ;;  %v7504_v62 = vor.u32 %v8460_v55, %v7501_v56  ;;  %1557 = vmatpush.bf16.msrb.mxu0 %v7440_v54  ;;  %13037 = vst [vmem:[#allocation11_spill] sm:$0xff] %v9324_v27  ;;  %v7564_v46 = vor.u32 %v8477_v39, %v7563_v38  ;;  %v8493_v47 = vld [vmem:[%s13038_s5 + $0xf4] sm:$0xf0]  ;;  %v7397_v52 = vld [vmem:[%s13034_s4 + $0x28] sm:$0xf0] }
  0x41   : > { %1456 = vmatpush.bf16.msrb.mxu3 %v7476_v0  ;;  %v8447_v0 = vld [vmem:[%s13034_s4 + $0x84] sm:$0xf0]  ;;  %v7628_v48 = vor.u32 %v8493_v47, %v7627_v43  ;;  %v8450_v53 = vld [vmem:[%s13034_s4 + $0xa4] sm:$0xf]  ;;  %v7400_v54 = vor.u32 %v8434_v49, %v7397_v52  ;;  %v7461_v55 = vld [vmem:[%s13034_s4 + $0xa8] sm:$0xf0] }
  0x42   : > { %v7444_v1 = vor.u32 %v8447_v0, %v7443_v61  ;;  %1661 = vmatpush.bf16.msrb.mxu1 %v7504_v62  ;;  %v7464_v56 = vor.u32 %v8450_v53, %v7461_v55  ;;  %v8432_v59 = vld [vmem:[%s13034_s4 + $0x14] sm:$0xf]  ;;  %v7389_v60 = vld [vmem:[%s13034_s4 + $0x18] sm:$0xf0]  ;;  %v668_v62 = vld [vmem:[%s9054_s0 + $0x80] sm:$0xff] }
  0x43   : > { %7340 = vmatmul.msk.bf16.gmra.mxu0 %vm761_vm2, %v9121_v57  ;;  %7350 = vmatmul.msk.bf16.gmra.mxu2 %vm761_vm2, %v9123_v58  ;;  %v8448_v61 = vld [vmem:[%s13034_s4 + $0x94] sm:$0xf]  ;;  %v7453_v0 = vld [vmem:[%s13034_s4 + $0x98] sm:$0xf0]  ;;  %v689_v3 = vld [vmem:[%s9054_s0 + $0x128] sm:$0xff] }
  0x44   : > { %7359 = vmatmul.msk.bf16.gmra.mxu1 %vm761_vm2, %v9121_v57  ;;  %1353 = vmatpush.bf16.msrb.mxu2 %v7404_v11  ;;  %v8440_v11 = vld [vmem:[%s13034_s4 + $0x54] sm:$0xf]  ;;  %v7456_v4 = vor.u32 %v8448_v61, %v7453_v0  ;;  %v7381_v9 = vld [vmem:[%s13034_s4 + $0x8] sm:$0xf0]  ;;  %v717_v20 = vld [vmem:[%s13040_s28] sm:$0x3] }
  0x45   : > { %1457 = vmatpush.bf16.msrb.mxu3 %v7468_v13  ;;  %1558 = vmatpush.bf16.msrb.mxu0 %v7432_v7  ;;  %v8456_v13 = vld [vmem:[%s13034_s4 + $0xd4] sm:$0xf]  ;;  %v7424_v15 = vor.u32 %v8440_v11, %v7421_v12  ;;  %v8430_v7 = vld [vmem:[%s13034_s4 + $0x4] sm:$0xf]  ;;  %v9400_v12 = vpack.c.bf16 %v689_v3, %v688_v2  ;;  %v7445_v14 = vld [vmem:[%s13034_s4 + $0x88] sm:$0xf0] }
  0x46   : > { %7369 = vmatmul.msk.bf16.gmra.mxu3 %vm761_vm2, %v9123_v58  ;;  %1662 = vmatpush.bf16.msrb.mxu1 %v7496_v10  ;;  %v7488_v22 = vor.u32 %v8456_v13, %v7485_v16  ;;  %v8446_v10 = vld [vmem:[%s13034_s4 + $0x84] sm:$0xf]  ;;  %v7384_v13 = vor.u32 %v8430_v7, %v7381_v9  ;;  %s13133_s28 = sld [smem:[#allocation8_spill]] (%p8999_p4) }
  0x47   : > { %13039 = vst [vmem:[#allocation12_spill] sm:$0xff] %v9400_v12  ;;  %v7448_v16 = vor.u32 %v8446_v10, %v7445_v14 }
  0x48   : > { %1354 = vmatpush.bf16.msrb.mxu2 %v7396_v23  ;;  %v8438_v23 = vld [vmem:[%s13034_s4 + $0x44] sm:$0xf] }
  0x49   : > { %1458 = vmatpush.bf16.msrb.mxu3 %v7460_v25  ;;  %1559 = vmatpush.bf16.msrb.mxu0 %v7424_v15  ;;  %v8454_v25 = vld [vmem:[%s13034_s4 + $0xc4] sm:$0xf]  ;;  %v7416_v28 = vor.u32 %v8438_v23, %v7413_v24  ;;  %v9418_v24 = vperm.slane %v717_v20, 1 }
  0x4a   : > { %1663 = vmatpush.bf16.msrb.mxu1 %v7488_v22  ;;  %v7480_v32 = vor.u32 %v8454_v25, %v7477_v29  ;;  %v9416_v22 = vperm.slane %v717_v20, 0 }
  0x4c   : > { %1355 = vmatpush.bf16.msrb.mxu2 %v7388_v35  ;;  %v8452_v35 = vld [vmem:[%s13034_s4 + $0xb4] sm:$0xf]  ;;  %s6970_s21 = ssub.s32 (%p8999_p4), 75, %s13133_s28 }
  0x4d   : > { %1459 = vmatpush.bf16.msrb.mxu3 %v7452_v37  ;;  %1560 = vmatpush.bf16.msrb.mxu0 %v7416_v28  ;;  %v7469_v37 = vld [vmem:[%s13034_s4 + $0xb8] sm:$0xf0]  ;;  %p6971_p8 = scmp.lt.s32.totalorder (%p8999_p4), %s6970_s21, 38 }
  0x4e   : > { %1664 = vmatpush.bf16.msrb.mxu1 %v7480_v32  ;;  %v7472_v42 = vor.u32 %v8452_v35, %v7469_v37  ;;  %v670_v35 = vld [vmem:[%s9054_s0 + $0x90] sm:$0xff] }
  0x50   : > { %1356 = vmatpush.bf16.msrb.mxu2 %v7380_v63  ;;  %v7392_v63 = vor.u32 %v8432_v59, %v7389_v60 }
  0x51   : > { %1460 = vmatpush.bf16.msrb.mxu3 %v7444_v1  ;;  %1561 = vmatpush.bf16.msrb.mxu0 %v7408_v36  ;;  %v669_v1 = vld [vmem:[%s9054_s0 + $0x88] sm:$0xff]  ;;  %v671_v36 = vld [vmem:[%s9054_s0 + $0x98] sm:$0xff]  ;;  %s13134_s0 = sld [smem:[#allocation4_spill]] (%p8999_p4) }
  0x52   : > { %1665 = vmatpush.bf16.msrb.mxu1 %v7472_v42  ;;  %v9398_v11 = vpack.c.bf16 %v669_v1, %v668_v62  ;;  %v9429_v49 = vpack.c.bf16 %v671_v36, %v670_v35 }
  0x53   : > { %7341 = vmatmul.msk.bf16.gmra.mxu0 %vm761_vm2, %v9149_v5  ;;  %7351 = vmatmul.msk.bf16.gmra.mxu2 %vm761_vm2, %v9151_v6 }
  0x54   : > { %7360 = vmatmul.msk.bf16.gmra.mxu1 %vm761_vm2, %v9149_v5  ;;  %2077 = vmatpush.bf16.msra.mxu2 %v7564_v46 }
  0x55   : > { %2181 = vmatpush.bf16.msra.mxu3 %v7628_v48  ;;  %1562 = vmatpush.bf16.msrb.mxu0 %v7400_v54 }
  0x56   : > { %7370 = vmatmul.msk.bf16.gmra.mxu3 %vm761_vm2, %v9151_v6  ;;  %1666 = vmatpush.bf16.msrb.mxu1 %v7464_v56 }
  0x57   : > { %s8678_s25 = smul.u32 (%p8999_p4), 304, %s13134_s0 }
  0x59   : > { %1563 = vmatpush.bf16.msrb.mxu0 %v7392_v63  ;;  %s12845_s20 = scalar_lea.vmem (%p8999_p4), %s13135_s27, %s8678_s25  }
  0x5a   : > { %1667 = vmatpush.bf16.msrb.mxu1 %v7456_v4 }
  0x5d   : > { %1564 = vmatpush.bf16.msrb.mxu0 %v7384_v13 }
  0x5e   : > { %1668 = vmatpush.bf16.msrb.mxu1 %v7448_v16  ;;  %v8475_v16 = vld [vmem:[%s13038_s5 + $0x64] sm:$0xf0] }
  0x63   : > { %7342 = vmatmul.msk.bf16.gmra.mxu0 %vm761_vm2, %v9177_v18  ;;  %7352 = vmatmul.msk.bf16.gmra.mxu2 %vm761_vm2, %v9179_v19 }
  0x64   : > { %7361 = vmatmul.msk.bf16.gmra.mxu1 %vm761_vm2, %v9177_v18 }
  0x66   : > { %7371 = vmatmul.msk.bf16.gmra.mxu3 %vm761_vm2, %v9179_v19 }
  0x73   : > { %7343 = vmatmul.msk.bf16.gmra.mxu0 %vm761_vm2, %v9205_v30  ;;  %7353 = vmatmul.msk.bf16.gmra.mxu2 %vm761_vm2, %v9207_v31 }
  0x74   : > { %7362 = vmatmul.msk.bf16.gmra.mxu1 %vm761_vm2, %v9205_v30 }
  0x76   : > { %7372 = vmatmul.msk.bf16.gmra.mxu3 %vm761_vm2, %v9207_v31 }
  0x83   : > { %7344 = vmatmul.msk.bf16.gmra.mxu0 %vm761_vm2, %v9233_v44  ;;  %7354 = vmatmul.msk.bf16.gmra.mxu2 %vm761_vm2, %v9235_v45 }
  0x84   : > { %7363 = vmatmul.msk.bf16.gmra.mxu1 %vm761_vm2, %v9233_v44 }
  0x86   : > { %7373 = vmatmul.msk.bf16.gmra.mxu3 %vm761_vm2, %v9235_v45 }
  0x93   : > { %7345 = vmatmul.msk.bf16.gmra.mxu0 %vm761_vm2, %v9249_v50  ;;  %7355 = vmatmul.msk.bf16.gmra.mxu2 %vm761_vm2, %v9251_v51 }
  0x94   : > { %7364 = vmatmul.msk.bf16.gmra.mxu1 %vm761_vm2, %v9249_v50 }
  0x96   : > { %7374 = vmatmul.msk.bf16.gmra.mxu3 %vm761_vm2, %v9251_v51 }
  0xa3   : > { %7346 = vmatmul.msk.bf16.gmra.mxu0 %vm761_vm2, %v9322_v26  ;;  %7356 = vmatmul.msk.bf16.gmra.mxu2 %vm761_vm2, %v9324_v27 }
  0xa4   : > { %7365 = vmatmul.msk.bf16.gmra.mxu1 %vm761_vm2, %v9322_v26 }
  0xa6   : > { %7375 = vmatmul.msk.bf16.gmra.mxu3 %vm761_vm2, %v9324_v27 }
  0xb0   : > { %v838_v15 = vpop.f32.mrf.mxu0 }
  0xb1   : > { %v942_v17 = vpop.f32.mrf.mxu1  ;;  %v839_v33 = vadd.f32 %v838_v15, %v9416_v22  ;;  %v7555_v15 = vld [vmem:[%s13038_s5 + $0x60] sm:$0xf] }
  0xb2   : > { %v943_v34 = vadd.f32 %v942_v17, %v9418_v24 }
  0xb3   : > { %7347 = vmatmul.msk.bf16.gmra.mxu0 %vm761_vm2, %v9398_v11  ;;  %7357 = vmatmul.msk.bf16.gmra.mxu2 %vm761_vm2, %v9400_v12  ;;  %v1037_v46 = vmax.f32 %v839_v33, 0.0 }
  0xb4   : > { %7366 = vmatmul.msk.bf16.gmra.mxu1 %vm761_vm2, %v9398_v11  ;;  %v1038_v52 = vmax.f32 %v943_v34, 0.0 }
  0xb6   : > { %7376 = vmatmul.msk.bf16.gmra.mxu3 %vm761_vm2, %v9400_v12  ;;  %v888_v21 = vpop.f32.mrf.mxu2 }
  0xb7   : > { %v889_v37 = vadd.f32 %v888_v21, %v9416_v22  ;;  %v7556_v21 = vor.u32 %v8475_v16, %v7555_v15 }
  0xb8   : > { %v840_v25 = vpop.f32.mrf.mxu0 }
  0xb9   : > { %v992_v23 = vpop.f32.mrf.mxu3  ;;  %v841_v28 = vadd.f32 %v840_v25, %v9416_v22  ;;  %v944_v29 = vpop.f32.mrf.mxu1  ;;  %v1077_v55 = vmax.f32 %v889_v37, 0.0  ;;  %v8491_v25 = vld [vmem:[%s13038_s5 + $0xe4] sm:$0xf0]  ;;  %2078 = vmatpush.bf16.msra.mxu2 %v7556_v21 }
  0xba   : > { %v945_v32 = vadd.f32 %v944_v29, %v9418_v24  ;;  %v993_v39 = vadd.f32 %v992_v23, %v9418_v24  ;;  %v7619_v23 = vld [vmem:[%s13038_s5 + $0xe0] sm:$0xf] }
  0xbb   : > { %v1039_v38 = vmax.f32 %v841_v28, 0.0  ;;  %v7620_v33 = vor.u32 %v8491_v25, %v7619_v23 }
  0xbc   : > { %v1040_v42 = vmax.f32 %v945_v32, 0.0  ;;  %v1078_v61 = vmax.f32 %v993_v39, 0.0 }
  0xbd   : > { %v1113_v60 = vpack.c.bf16 %v1039_v38, %v1037_v46  ;;  %2182 = vmatpush.bf16.msra.mxu3 %v7620_v33 }
  0xbe   : > { %v890_v43 = vpop.f32.mrf.mxu2  ;;  %v1114_v63 = vpack.c.bf16 %v1040_v42, %v1038_v52 }
  0xbf   : > { %v891_v47 = vadd.f32 %v890_v43, %v9416_v22 }
  0xc0   : > { %v843_v54 = vpop.f32.mrf.mxu0 }
  0xc1   : > { %v994_v48 = vpop.f32.mrf.mxu3  ;;  %v1079_v56 = vmax.f32 %v891_v47, 0.0  ;;  %v947_v59 = vpop.f32.mrf.mxu1  ;;  %v844_v13 = vadd.f32 %v843_v54, %v9416_v22 }
  0xc2   : > { %v995_v53 = vadd.f32 %v994_v48, %v9418_v24  ;;  %v948_v14 = vadd.f32 %v947_v59, %v9418_v24 }
  0xc3   : > { %7348 = vmatmul.msk.bf16.gmra.mxu0 %vm761_vm2, %v9429_v49  ;;  %1357 = vmatmul.bf16.vlgmr.msrb.gmra.mxu2 %v1113_v60  ;;  %v9434_v0 = vpack.c.bf16 %v1079_v56, %v1077_v55  ;;  %v1041_v34 = vmax.f32 %v844_v13, 0.0 }
  0xc4   : > { %v1080_v62 = vmax.f32 %v995_v53, 0.0  ;;  %7367 = vmatmul.msk.bf16.gmra.mxu1 %vm761_vm2, %v9429_v49  ;;  %v1042_v37 = vmax.f32 %v948_v14, 0.0 }
  0xc6   : > { %1461 = vmatmul.bf16.vlgmr.msrb.gmra.mxu3 %v1114_v63  ;;  %v9438_v1 = vpack.c.bf16 %v1080_v62, %v1078_v61  ;;  %v893_v2 = vpop.f32.mrf.mxu2 }
  0xc7   : > { %v894_v17 = vadd.f32 %v893_v2, %v9416_v22 }
  0xc8   : > { %v845_v4 = vpop.f32.mrf.mxu0 }
  0xc9   : > { %v997_v3 = vpop.f32.mrf.mxu3  ;;  %v846_v7 = vadd.f32 %v845_v4, %v9416_v22  ;;  %v949_v9 = vpop.f32.mrf.mxu1  ;;  %v1081_v42 = vmax.f32 %v894_v17, 0.0 }
  0xca   : > { %v950_v10 = vadd.f32 %v949_v9, %v9418_v24  ;;  %v998_v28 = vadd.f32 %v997_v3, %v9418_v24 }
  0xcb   : > { %v1043_v20 = vmax.f32 %v846_v7, 0.0 }
  0xcc   : > { %v1044_v29 = vmax.f32 %v950_v10, 0.0  ;;  %v1082_v48 = vmax.f32 %v998_v28, 0.0 }
  0xcd   : > { %v1115_v47 = vpack.c.bf16 %v1043_v20, %v1041_v34 }
  0xce   : > { %v895_v32 = vpop.f32.mrf.mxu2  ;;  %v1116_v53 = vpack.c.bf16 %v1044_v29, %v1042_v37 }
  0xcf   : > { %v896_v35 = vadd.f32 %v895_v32, %v9416_v22 }
  0xd0   : > { %v848_v39 = vpop.f32.mrf.mxu0 }
  0xd1   : > { %v999_v36 = vpop.f32.mrf.mxu3  ;;  %v1083_v43 = vmax.f32 %v896_v35, 0.0  ;;  %v952_v46 = vpop.f32.mrf.mxu1  ;;  %v849_v4 = vadd.f32 %v848_v39, %v9416_v22 }
  0xd2   : > { %v1000_v38 = vadd.f32 %v999_v36, %v9418_v24  ;;  %v953_v7 = vadd.f32 %v952_v46, %v9418_v24 }
  0xd3   : > { %1362 = vmatmul.bf16.gmra.mxu2 %v1115_v47  ;;  %1565 = vmatmul.bf16.vlgmr.msrb.gmra.mxu0 %v1113_v60  ;;  %v9460_v54 = vpack.c.bf16 %v1083_v43, %v1081_v42  ;;  %v1045_v14 = vmax.f32 %v849_v4, 0.0 }
  0xd4   : > { %v1084_v52 = vmax.f32 %v1000_v38, 0.0  ;;  %1669 = vmatmul.bf16.vlgmr.msrb.gmra.mxu1 %v1114_v63  ;;  %v1046_v17 = vmax.f32 %v953_v7, 0.0 }
  0xd6   : > { %1466 = vmatmul.bf16.gmra.mxu3 %v1116_v53  ;;  %v9462_v55 = vpack.c.bf16 %v1084_v52, %v1082_v48  ;;  %v898_v56 = vpop.f32.mrf.mxu2 }
  0xd7   : > { %v899_v60 = vadd.f32 %v898_v56, %v9416_v22 }
  0xd8   : > { %v850_v61 = vpop.f32.mrf.mxu0 }
  0xd9   : > { %v1002_v59 = vpop.f32.mrf.mxu3  ;;  %v851_v62 = vadd.f32 %v850_v61, %v9416_v22  ;;  %v954_v2 = vpop.f32.mrf.mxu1  ;;  %v1085_v23 = vmax.f32 %v899_v60, 0.0 }
  0xda   : > { %v955_v3 = vadd.f32 %v954_v2, %v9418_v24  ;;  %v1003_v10 = vadd.f32 %v1002_v59, %v9418_v24 }
  0xdb   : > { %v1047_v9 = vmax.f32 %v851_v62, 0.0 }
  0xdc   : > { %v1048_v63 = vmax.f32 %v955_v3, 0.0  ;;  %v1086_v32 = vmax.f32 %v1003_v10, 0.0 }
  0xdd   : > { %v1117_v29 = vpack.c.bf16 %v1047_v9, %v1045_v14 }
  0xde   : > { %v900_v13 = vpop.f32.mrf.mxu2  ;;  %v1118_v34 = vpack.c.bf16 %v1048_v63, %v1046_v17  ;;  %v7547_v17 = vld [vmem:[%s13038_s5 + $0x50] sm:$0xf] }
  0xdf   : > { %v901_v15 = vadd.f32 %v900_v13, %v9416_v22 }
  0xe0   : > { %v853_v21 = vpop.f32.mrf.mxu0 }
  0xe1   : > { %v1004_v16 = vpop.f32.mrf.mxu3  ;;  %v1087_v25 = vmax.f32 %v901_v15, 0.0  ;;  %v957_v28 = vpop.f32.mrf.mxu1  ;;  %v854_v48 = vadd.f32 %v853_v21, %v9416_v22 }
  0xe2   : > { %v1005_v20 = vadd.f32 %v1004_v16, %v9418_v24  ;;  %v958_v52 = vadd.f32 %v957_v28, %v9418_v24  ;;  %v8489_v28 = vld [vmem:[%s13038_s5 + $0xd4] sm:$0xf0] }
  0xe3   : > { %1367 = vmatmul.bf16.gmra.mxu2 %v1117_v29  ;;  %1570 = vmatmul.bf16.gmra.mxu0 %v1115_v47  ;;  %v9472_v35 = vpack.c.bf16 %v1087_v25, %v1085_v23  ;;  %v1049_v62 = vmax.f32 %v854_v48, 0.0  ;;  %v7611_v25 = vld [vmem:[%s13038_s5 + $0xd0] sm:$0xf] }
  0xe4   : > { %v1088_v33 = vmax.f32 %v1005_v20, 0.0  ;;  %1674 = vmatmul.bf16.gmra.mxu1 %v1116_v53  ;;  %v1050_v4 = vmax.f32 %v958_v52, 0.0  ;;  %v8473_v20 = vld [vmem:[%s13038_s5 + $0x54] sm:$0xf0] }
  0xe5   : > { %v7548_v21 = vor.u32 %v8473_v20, %v7547_v17 }
  0xe6   : > { %1471 = vmatmul.bf16.gmra.mxu3 %v1118_v34  ;;  %v9474_v36 = vpack.c.bf16 %v1088_v33, %v1086_v32  ;;  %v903_v37 = vpop.f32.mrf.mxu2  ;;  %v7612_v33 = vor.u32 %v8489_v28, %v7611_v25 }
  0xe7   : > { %v904_v47 = vadd.f32 %v903_v37, %v9416_v22  ;;  %2079 = vmatpush.bf16.msra.mxu2 %v7548_v21 }
  0xe8   : > { %v855_v39 = vpop.f32.mrf.mxu0  ;;  %2183 = vmatpush.bf16.msra.mxu3 %v7612_v33 }
  0xe9   : > { %v1007_v38 = vpop.f32.mrf.mxu3  ;;  %v856_v42 = vadd.f32 %v855_v39, %v9416_v22  ;;  %v959_v43 = vpop.f32.mrf.mxu1  ;;  %v1089_v9 = vmax.f32 %v904_v47, 0.0 }
  0xea   : > { %v960_v46 = vadd.f32 %v959_v43, %v9418_v24  ;;  %v1008_v59 = vadd.f32 %v1007_v38, %v9418_v24 }
  0xeb   : > { %v1051_v56 = vmax.f32 %v856_v42, 0.0 }
  0xec   : > { %v1052_v53 = vmax.f32 %v960_v46, 0.0  ;;  %v1090_v14 = vmax.f32 %v1008_v59, 0.0 }
  0xed   : > { %v1119_v13 = vpack.c.bf16 %v1051_v56, %v1049_v62 }
  0xee   : > { %v905_v61 = vpop.f32.mrf.mxu2  ;;  %v1120_v16 = vpack.c.bf16 %v1052_v53, %v1050_v4 }
  0xef   : > { %v906_v2 = vadd.f32 %v905_v61, %v9416_v22 }
  0xf0   : > { %v858_v60 = vpop.f32.mrf.mxu0 }
  0xf1   : > { %v1009_v3 = vpop.f32.mrf.mxu3  ;;  %v1091_v10 = vmax.f32 %v906_v2, 0.0  ;;  %v962_v63 = vpop.f32.mrf.mxu1  ;;  %v859_v43 = vadd.f32 %v858_v60, %v9416_v22 }
  0xf2   : > { %v1010_v7 = vadd.f32 %v1009_v3, %v9418_v24  ;;  %v963_v46 = vadd.f32 %v962_v63, %v9418_v24 }
  0xf3   : > { %1372 = vmatmul.bf16.gmra.mxu2 %v1119_v13  ;;  %1575 = vmatmul.bf16.gmra.mxu0 %v1117_v29  ;;  %v9490_v23 = vpack.c.bf16 %v1091_v10, %v1089_v9  ;;  %v1053_v53 = vmax.f32 %v859_v43, 0.0 }
  0xf4   : > { %v1092_v15 = vmax.f32 %v1010_v7, 0.0  ;;  %1679 = vmatmul.bf16.gmra.mxu1 %v1118_v34  ;;  %v1054_v2 = vmax.f32 %v963_v46, 0.0 }
  0xf6   : > { %1476 = vmatmul.bf16.gmra.mxu3 %v1120_v16  ;;  %v9498_v32 = vpack.c.bf16 %v1092_v15, %v1090_v14  ;;  %v908_v37 = vpop.f32.mrf.mxu2 }
  0xf7   : > { %v909_v48 = vadd.f32 %v908_v37, %v9416_v22 }
  0xf8   : > { %v860_v29 = vpop.f32.mrf.mxu0 }
  0xf9   : > { %v1012_v38 = vpop.f32.mrf.mxu3  ;;  %v861_v39 = vadd.f32 %v860_v29, %v9416_v22  ;;  %v964_v42 = vpop.f32.mrf.mxu1  ;;  %v1093_v7 = vmax.f32 %v909_v48, 0.0 }
  0xfa   : > { %v965_v34 = vadd.f32 %v964_v42, %v9418_v24  ;;  %v1013_v47 = vadd.f32 %v1012_v38, %v9418_v24 }
  0xfb   : > { %v1055_v52 = vmax.f32 %v861_v39, 0.0 }
  0xfc   : > { %v1056_v56 = vmax.f32 %v965_v34, 0.0  ;;  %v1094_v63 = vmax.f32 %v1013_v47, 0.0 }
  0xfd   : > { %v1121_v10 = vpack.c.bf16 %v1055_v52, %v1053_v53 }
  0xfe   : > { %v910_v59 = vpop.f32.mrf.mxu2  ;;  %v1122_v15 = vpack.c.bf16 %v1056_v56, %v1054_v2 }
  0xff   : > { %v911_v61 = vadd.f32 %v910_v59, %v9416_v22 }
 0x100   : > { %v863_v4 = vpop.f32.mrf.mxu0 }
 0x101   : > { %v1014_v62 = vpop.f32.mrf.mxu3  ;;  %v1095_v9 = vmax.f32 %v911_v61, 0.0  ;;  %v967_v60 = vpop.f32.mrf.mxu1  ;;  %v864_v29 = vadd.f32 %v863_v4, %v9416_v22 }
 0x102   : > { %v1015_v3 = vadd.f32 %v1014_v62, %v9418_v24  ;;  %v968_v39 = vadd.f32 %v967_v60, %v9418_v24  ;;  %v7539_v60 = vld [vmem:[%s13038_s5 + $0x40] sm:$0xf] }
 0x103   : > { %1377 = vmatmul.bf16.gmra.mxu2 %v1121_v10  ;;  %1580 = vmatmul.bf16.gmra.mxu0 %v1119_v13  ;;  %v9508_v17 = vpack.c.bf16 %v1095_v9, %v1093_v7  ;;  %v1057_v46 = vmax.f32 %v864_v29, 0.0  ;;  %v8487_v29 = vld [vmem:[%s13038_s5 + $0xc4] sm:$0xf0] }
 0x104   : > { %v1096_v14 = vmax.f32 %v1015_v3, 0.0  ;;  %1684 = vmatmul.bf16.gmra.mxu1 %v1120_v16  ;;  %v1058_v47 = vmax.f32 %v968_v39, 0.0 }
 0x106   : > { %1481 = vmatmul.bf16.gmra.mxu3 %v1122_v15  ;;  %v9510_v20 = vpack.c.bf16 %v1096_v14, %v1094_v63  ;;  %v913_v21 = vpop.f32.mrf.mxu2  ;;  %v8471_v63 = vld [vmem:[%s13038_s5 + $0x44] sm:$0xf0] }
 0x107   : > { %v914_v13 = vadd.f32 %v913_v21, %v9416_v22  ;;  %v7540_v21 = vor.u32 %v8471_v63, %v7539_v60 }
 0x108   : > { %v865_v28 = vpop.f32.mrf.mxu0 }
 0x109   : > { %v1017_v25 = vpop.f32.mrf.mxu3  ;;  %v866_v33 = vadd.f32 %v865_v28, %v9416_v22  ;;  %v969_v37 = vpop.f32.mrf.mxu1  ;;  %v1097_v53 = vmax.f32 %v914_v13, 0.0  ;;  %2080 = vmatpush.bf16.msra.mxu2 %v7540_v21 }
 0x10a   : > { %v970_v38 = vadd.f32 %v969_v37, %v9418_v24  ;;  %v1018_v34 = vadd.f32 %v1017_v25, %v9418_v24 }
 0x10b   : > { %v1059_v42 = vmax.f32 %v866_v33, 0.0 }
 0x10c   : > { %v1060_v16 = vmax.f32 %v970_v38, 0.0  ;;  %v1098_v3 = vmax.f32 %v1018_v34, 0.0  ;;  %v7603_v38 = vld [vmem:[%s13038_s5 + $0xc0] sm:$0xf] }
 0x10d   : > { %v1123_v2 = vpack.c.bf16 %v1059_v42, %v1057_v46  ;;  %v7604_v13 = vor.u32 %v8487_v29, %v7603_v38 }
 0x10e   : > { %v915_v43 = vpop.f32.mrf.mxu2  ;;  %v1124_v7 = vpack.c.bf16 %v1060_v16, %v1058_v47 }
 0x10f   : > { %v916_v48 = vadd.f32 %v915_v43, %v9416_v22  ;;  %2184 = vmatpush.bf16.msra.mxu3 %v7604_v13 }
 0x110   : > { %v868_v59 = vpop.f32.mrf.mxu0 }
 0x111   : > { %v1019_v52 = vpop.f32.mrf.mxu3  ;;  %v1099_v61 = vmax.f32 %v916_v48, 0.0  ;;  %v972_v62 = vpop.f32.mrf.mxu1  ;;  %v869_v39 = vadd.f32 %v868_v59, %v9416_v22 }
 0x112   : > { %v1020_v56 = vadd.f32 %v1019_v52, %v9418_v24  ;;  %v973_v42 = vadd.f32 %v972_v62, %v9418_v24 }
 0x113   : > { %1382 = vmatmul.bf16.gmra.mxu2 %v1123_v2  ;;  %1585 = vmatmul.bf16.gmra.mxu0 %v1121_v10  ;;  %v9520_v9 = vpack.c.bf16 %v1099_v61, %v1097_v53  ;;  %v1061_v52 = vmax.f32 %v869_v39, 0.0 }
 0x114   : > { %v1100_v4 = vmax.f32 %v1020_v56, 0.0  ;;  %1689 = vmatmul.bf16.gmra.mxu1 %v1122_v15  ;;  %v1062_v53 = vmax.f32 %v973_v42, 0.0 }
 0x116   : > { %1486 = vmatmul.bf16.gmra.mxu3 %v1124_v7  ;;  %v9528_v14 = vpack.c.bf16 %v1100_v4, %v1098_v3  ;;  %v918_v25 = vpop.f32.mrf.mxu2 }
 0x117   : > { %v919_v34 = vadd.f32 %v918_v25, %v9416_v22 }
 0x118   : > { %v870_v33 = vpop.f32.mrf.mxu0 }
 0x119   : > { %v1022_v28 = vpop.f32.mrf.mxu3  ;;  %v871_v10 = vadd.f32 %v870_v33, %v9416_v22  ;;  %v974_v37 = vpop.f32.mrf.mxu1  ;;  %v1101_v59 = vmax.f32 %v919_v34, 0.0 }
 0x11a   : > { %v975_v15 = vadd.f32 %v974_v37, %v9418_v24  ;;  %v1023_v43 = vadd.f32 %v1022_v28, %v9418_v24 }
 0x11b   : > { %v1063_v16 = vmax.f32 %v871_v10, 0.0 }
 0x11c   : > { %v1064_v46 = vmax.f32 %v975_v15, 0.0  ;;  %v1102_v63 = vmax.f32 %v1023_v43, 0.0 }
 0x11d   : > { %v1125_v62 = vpack.c.bf16 %v1063_v16, %v1061_v52 }
 0x11e   : > { %v920_v48 = vpop.f32.mrf.mxu2  ;;  %v1126_v25 = vpack.c.bf16 %v1064_v46, %v1062_v53 }
 0x11f   : > { %v921_v47 = vadd.f32 %v920_v48, %v9416_v22 }
 0x120   : > { %v873_v3 = vpop.f32.mrf.mxu0 }
 0x121   : > { %v1024_v56 = vpop.f32.mrf.mxu3  ;;  %v1103_v4 = vmax.f32 %v921_v47, 0.0  ;;  %v977_v60 = vpop.f32.mrf.mxu1  ;;  %v874_v13 = vadd.f32 %v873_v3, %v9416_v22 }
 0x122   : > { %v1025_v61 = vadd.f32 %v1024_v56, %v9418_v24  ;;  %v978_v42 = vadd.f32 %v977_v60, %v9418_v24 }
 0x123   : > { %1387 = vmatmul.bf16.gmra.mxu2 %v1125_v62  ;;  %1590 = vmatmul.bf16.gmra.mxu0 %v1123_v2  ;;  %v9544_v28 = vpack.c.bf16 %v1103_v4, %v1101_v59  ;;  %v1065_v46 = vmax.f32 %v874_v13, 0.0 }
 0x124   : > { %v1104_v21 = vmax.f32 %v1025_v61, 0.0  ;;  %1694 = vmatmul.bf16.gmra.mxu1 %v1124_v7  ;;  %v1066_v47 = vmax.f32 %v978_v42, 0.0 }
 0x126   : > { %1491 = vmatmul.bf16.gmra.mxu3 %v1126_v25  ;;  %v9546_v33 = vpack.c.bf16 %v1104_v21, %v1102_v63  ;;  %v923_v10 = vpop.f32.mrf.mxu2 }
 0x127   : > { %v924_v2 = vadd.f32 %v923_v10, %v9416_v22 }
 0x128   : > { %v875_v15 = vpop.f32.mrf.mxu0 }
 0x129   : > { %v1027_v37 = vpop.f32.mrf.mxu3  ;;  %v876_v38 = vadd.f32 %v875_v15, %v9416_v22  ;;  %v979_v29 = vpop.f32.mrf.mxu1  ;;  %v1105_v61 = vmax.f32 %v924_v2, 0.0 }
 0x12a   : > { %v980_v39 = vadd.f32 %v979_v29, %v9418_v24  ;;  %v1028_v16 = vadd.f32 %v1027_v37, %v9418_v24 }
 0x12b   : > { %v1067_v34 = vmax.f32 %v876_v38, 0.0 }
 0x12c   : > { %v1068_v7 = vmax.f32 %v980_v39, 0.0  ;;  %v1106_v60 = vmax.f32 %v1028_v16, 0.0  ;;  %v7565_v16 = vld [vmem:[%s13038_s5 + $0x78] sm:$0xf0] }
 0x12d   : > { %v1127_v4 = vpack.c.bf16 %v1067_v34, %v1065_v46 }
 0x12e   : > { %v925_v43 = vpop.f32.mrf.mxu2  ;;  %v1128_v21 = vpack.c.bf16 %v1068_v7, %v1066_v47 }
 0x12f   : > { %v926_v48 = vadd.f32 %v925_v43, %v9416_v22 }
 0x130   : > { %v878_v53 = vpop.f32.mrf.mxu0 }
 0x131   : > { %v1029_v52 = vpop.f32.mrf.mxu3  ;;  %v1107_v59 = vmax.f32 %v926_v48, 0.0  ;;  %v982_v3 = vpop.f32.mrf.mxu1  ;;  %v879_v39 = vadd.f32 %v878_v53, %v9416_v22 }
 0x132   : > { %v1030_v56 = vadd.f32 %v1029_v52, %v9418_v24  ;;  %v983_v2 = vadd.f32 %v982_v3, %v9418_v24 }
 0x133   : > { %1392 = vmatmul.bf16.gmra.mxu2 %v1127_v4  ;;  %1595 = vmatmul.bf16.gmra.mxu0 %v1125_v62  ;;  %v9556_v10 = vpack.c.bf16 %v1107_v59, %v1105_v61  ;;  %v1069_v43 = vmax.f32 %v879_v39, 0.0  ;;  %v1183_v61 = vld [vmem:[%s13041_s26] sm:$0x3] }
 0x134   : > { %v1108_v63 = vmax.f32 %v1030_v56, 0.0  ;;  %1699 = vmatmul.bf16.gmra.mxu1 %v1126_v25  ;;  %v8476_v25 = vld [vmem:[%s13038_s5 + $0x74] sm:$0xf]  ;;  %v1070_v48 = vmax.f32 %v983_v2, 0.0  ;;  %v8485_v2 = vld [vmem:[%s13038_s5 + $0xb4] sm:$0xf0] }
 0x135   : > { %v7568_v7 = vor.u32 %v8476_v25, %v7565_v16 }
 0x136   : > { %1496 = vmatmul.bf16.gmra.mxu3 %v1128_v21  ;;  %v9558_v37 = vpack.c.bf16 %v1108_v63, %v1106_v60  ;;  %v928_v15 = vpop.f32.mrf.mxu2  ;;  %v8492_v60 = vld [vmem:[%s13038_s5 + $0xf4] sm:$0xf]  ;;  %v7629_v63 = vld [vmem:[%s13038_s5 + $0xf8] sm:$0xf0] }
 0x137   : > { %v929_v34 = vadd.f32 %v928_v15, %v9416_v22  ;;  %2285 = vmatpush.bf16.msra.mxu0 %v7568_v7  ;;  %v7531_v15 = vld [vmem:[%s13038_s5 + $0x30] sm:$0xf]  ;;  %v7632_v39 = vor.u32 %v8492_v60, %v7629_v63  ;;  %v9595_v63 = vperm.slane %v1183_v61, 0 }
 0x138   : > { %v880_v29 = vpop.f32.mrf.mxu0 }
 0x139   : > { %v1032_v38 = vpop.f32.mrf.mxu3  ;;  %v881_v13 = vadd.f32 %v880_v29, %v9416_v22  ;;  %v984_v42 = vpop.f32.mrf.mxu1  ;;  %v1109_v52 = vmax.f32 %v929_v34, 0.0  ;;  %2389 = vmatpush.bf16.msra.mxu1 %v7632_v39  ;;  %v9606_v39 = vperm.slane %v1183_v61, 1 }
 0x13a   : > { %v985_v62 = vadd.f32 %v984_v42, %v9418_v24  ;;  %v1033_v47 = vadd.f32 %v1032_v38, %v9418_v24  ;;  %v7595_v42 = vld [vmem:[%s13038_s5 + $0xb0] sm:$0xf] }
 0x13b   : > { %v1071_v46 = vmax.f32 %v881_v13, 0.0  ;;  %v8469_v13 = vld [vmem:[%s13038_s5 + $0x34] sm:$0xf0]  ;;  %v7596_v7 = vor.u32 %v8485_v2, %v7595_v42 }
 0x13c   : > { %v1072_v56 = vmax.f32 %v985_v62, 0.0  ;;  %v7532_v16 = vor.u32 %v8469_v13, %v7531_v15 }
 0x13d   : > { %v1129_v25 = vpack.c.bf16 %v1071_v46, %v1069_v43  ;;  %2185 = vmatpush.bf16.msra.mxu3 %v7596_v7 }
 0x13e   : > { %v930_v53 = vpop.f32.mrf.mxu2  ;;  %v1130_v60 = vpack.c.bf16 %v1072_v56, %v1070_v48  ;;  %2081 = vmatpush.bf16.msra.mxu2 %v7532_v16 }
 0x13f   : > { %v931_v59 = vadd.f32 %v930_v53, %v9416_v22  ;;  %v1110_v53 = vmax.f32 %v1033_v47, 0.0 }
 0x140   : > { %v883_v29 = vpop.f32.mrf.mxu0 }
 0x141   : > { %v1034_v3 = vpop.f32.mrf.mxu3  ;;  %v1111_v34 = vmax.f32 %v931_v59, 0.0  ;;  %v987_v62 = vpop.f32.mrf.mxu1 }
 0x142   : > { %v1035_v38 = vadd.f32 %v1034_v3, %v9418_v24 }
 0x143   : > { %1397 = vmatmul.bf16.gmra.mxu2 %v1129_v25  ;;  %1600 = vmatmul.bf16.gmra.mxu0 %v1127_v4  ;;  %v9597_v12 = vpack.c.bf16 %v1111_v34, %v1109_v52  ;;  %v884_v52 = vadd.f32 %v883_v29, %v9416_v22 }
 0x144   : > { %v1112_v3 = vmax.f32 %v1035_v38, 0.0  ;;  %1704 = vmatmul.bf16.gmra.mxu1 %v1128_v21  ;;  %v988_v38 = vadd.f32 %v987_v62, %v9418_v24 }
 0x145   : > { %v1073_v2 = vmax.f32 %v884_v52, 0.0 }
 0x146   : > { %1501 = vmatmul.bf16.gmra.mxu3 %v1130_v60  ;;  %v9599_v27 = vpack.c.bf16 %v1112_v3, %v1110_v53  ;;  %v1358_v59 = vpop.f32.mrf.mxu2  ;;  %v1074_v7 = vmax.f32 %v988_v38, 0.0 }
 0x147   : > { %v1359_v43 = vadd.f32 %v1358_v59, %v9595_v63 }
 0x148   : > { %v885_v47 = vpop.f32.mrf.mxu0 }
 0x149   : > { %v1462_v46 = vpop.f32.mrf.mxu3  ;;  %v886_v48 = vadd.f32 %v885_v47, %v9416_v22  ;;  %v989_v56 = vpop.f32.mrf.mxu1 }
 0x14a   : > { %v1463_v15 = vadd.f32 %v1462_v46, %v1359_v43  ;;  %v990_v4 = vadd.f32 %v989_v56, %v9418_v24 }
 0x14b   : > { %v1075_v21 = vmax.f32 %v886_v48, 0.0 }
 0x14c   : > { %v1076_v13 = vmax.f32 %v990_v4, 0.0  ;;  %v1765_v22 = vmax.f32 %v1463_v15, 0.0 }
 0x14d   : > { %v1131_v46 = vpack.c.bf16 %v1075_v21, %v1073_v2 }
 0x14e   : > { %v1360_v42 = vpop.f32.mrf.mxu2  ;;  %v1132_v47 = vpack.c.bf16 %v1076_v13, %v1074_v7 }
 0x14f   : > { %v1361_v34 = vadd.f32 %v1360_v42, %v9595_v63 }
 0x150   : > { %v1566_v53 = vpop.f32.mrf.mxu0 }
 0x151   : > { %v1464_v16 = vpop.f32.mrf.mxu3  ;;  %v1567_v59 = vadd.f32 %v1566_v53, %v9606_v39  ;;  %v1670_v43 = vpop.f32.mrf.mxu1 }
 0x152   : > { %v1465_v3 = vadd.f32 %v1464_v16, %v1361_v34 }
 0x153   : > { %v1671_v24 = vadd.f32 %v1670_v43, %v1567_v59  ;;  %1402 = vmatmul.bf16.gmra.mxu2 %v1131_v46  ;;  %1605 = vmatmul.bf16.gmra.mxu0 %v1129_v25  ;;  %v8474_v25 = vld [vmem:[%s13038_s5 + $0x64] sm:$0xf] }
 0x154   : > { %v1767_v29 = vmax.f32 %v1465_v3, 0.0  ;;  %1709 = vmatmul.bf16.gmra.mxu1 %v1130_v60  ;;  %v7557_v60 = vld [vmem:[%s13038_s5 + $0x68] sm:$0xf0] }
 0x155   : > { %v1766_v13 = vmax.f32 %v1671_v24, 0.0  ;;  %v7560_v34 = vor.u32 %v8474_v25, %v7557_v60 }
 0x156   : > { %1506 = vmatmul.bf16.gmra.mxu3 %v1132_v47  ;;  %v9610_v61 = vpack.c.bf16 %v1767_v29, %v1765_v22  ;;  %v1363_v62 = vpop.f32.mrf.mxu2 }
 0x157   : > { %v1364_v48 = vadd.f32 %v1363_v62, %v9595_v63  ;;  %2286 = vmatpush.bf16.msra.mxu0 %v7560_v34 }
 0x158   : > { %v1568_v4 = vpop.f32.mrf.mxu0 }
 0x159   : > { %v1467_v56 = vpop.f32.mrf.mxu3  ;;  %v1569_v38 = vadd.f32 %v1568_v4, %v9606_v39  ;;  %v1672_v42 = vpop.f32.mrf.mxu1 }
 0x15a   : > { %v1468_v52 = vadd.f32 %v1467_v56, %v1364_v48  ;;  %v8490_v48 = vld [vmem:[%s13038_s5 + $0xe4] sm:$0xf]  ;;  %v7621_v56 = vld [vmem:[%s13038_s5 + $0xe8] sm:$0xf0] }
 0x15b   : > { %v1673_v21 = vadd.f32 %v1672_v42, %v1569_v38  ;;  %v7624_v4 = vor.u32 %v8490_v48, %v7621_v56 }
 0x15c   : > { %v1769_v29 = vmax.f32 %v1468_v52, 0.0  ;;  %v7523_v52 = vld [vmem:[%s13038_s5 + $0x20] sm:$0xf] }
 0x15d   : > { %v1768_v15 = vmax.f32 %v1673_v21, 0.0  ;;  %2390 = vmatpush.bf16.msra.mxu1 %v7624_v4 }
 0x15e   : > { %v1365_v2 = vpop.f32.mrf.mxu2 }
 0x15f   : > { %v9620_v16 = vpack.c.bf16 %v1768_v15, %v1766_v13  ;;  %v1366_v7 = vadd.f32 %v1365_v2, %v9595_v63  ;;  %v7587_v13 = vld [vmem:[%s13038_s5 + $0xa0] sm:$0xf] }
 0x160   : > { %v1571_v3 = vpop.f32.mrf.mxu0 }
 0x161   : > { %v1469_v53 = vpop.f32.mrf.mxu3  ;;  %v1572_v43 = vadd.f32 %v1571_v3, %v9606_v39  ;;  %v1675_v22 = vpop.f32.mrf.mxu1 }
 0x162   : > { %v1470_v59 = vadd.f32 %v1469_v53, %v1366_v7 }
 0x163   : > { %v1676_v62 = vadd.f32 %v1675_v22, %v1572_v43  ;;  %1407 = vmatmul.bf16.gmra.mxu2 %v9434_v0  ;;  %1610 = vmatmul.bf16.gmra.mxu0 %v1131_v46  ;;  %v8467_v46 = vld [vmem:[%s13038_s5 + $0x24] sm:$0xf0] }
 0x164   : > { %v1771_v24 = vmax.f32 %v1470_v59, 0.0  ;;  %1714 = vmatmul.bf16.gmra.mxu1 %v1132_v47  ;;  %v7524_v21 = vor.u32 %v8467_v46, %v7523_v52  ;;  %v8483_v47 = vld [vmem:[%s13038_s5 + $0xa4] sm:$0xf0] }
 0x165   : > { %v7588_v60 = vor.u32 %v8483_v47, %v7587_v13  ;;  %v1770_v59 = vmax.f32 %v1676_v62, 0.0 }
 0x166   : > { %1511 = vmatmul.bf16.gmra.mxu3 %v9438_v1  ;;  %v9638_v38 = vpack.c.bf16 %v1771_v24, %v1769_v29  ;;  %v1368_v42 = vpop.f32.mrf.mxu2  ;;  %2082 = vmatpush.bf16.msra.mxu2 %v7524_v21 }
 0x167   : > { %v1369_v15 = vadd.f32 %v1368_v42, %v9595_v63  ;;  %2186 = vmatpush.bf16.msra.mxu3 %v7588_v60 }
 0x168   : > { %v1573_v2 = vpop.f32.mrf.mxu0 }
 0x169   : > { %v1472_v25 = vpop.f32.mrf.mxu3  ;;  %v1574_v7 = vadd.f32 %v1573_v2, %v9606_v39  ;;  %v1677_v53 = vpop.f32.mrf.mxu1 }
 0x16a   : > { %v1473_v34 = vadd.f32 %v1472_v25, %v1369_v15 }
 0x16b   : > { %v1678_v3 = vadd.f32 %v1677_v53, %v1574_v7 }
 0x16c   : > { %v1773_v42 = vmax.f32 %v1473_v34, 0.0 }
 0x16d   : > { %v1772_v43 = vmax.f32 %v1678_v3, 0.0 }
 0x16e   : > { %v1370_v22 = vpop.f32.mrf.mxu2 }
 0x16f   : > { %v1371_v29 = vadd.f32 %v1370_v22, %v9595_v63  ;;  %v9649_v48 = vpack.c.bf16 %v1772_v43, %v1770_v59 }
 0x170   : > { %v1576_v56 = vpop.f32.mrf.mxu0 }
 0x171   : > { %v1474_v24 = vpop.f32.mrf.mxu3  ;;  %v1577_v52 = vadd.f32 %v1576_v56, %v9606_v39  ;;  %v1680_v46 = vpop.f32.mrf.mxu1 }
 0x172   : > { %v1475_v4 = vadd.f32 %v1474_v24, %v1371_v29 }
 0x173   : > { %v1681_v13 = vadd.f32 %v1680_v46, %v1577_v52  ;;  %1412 = vmatmul.bf16.gmra.mxu2 %v9460_v54  ;;  %1615 = vmatmul.bf16.gmra.mxu0 %v9434_v0 }
 0x174   : > { %v1775_v21 = vmax.f32 %v1475_v4, 0.0  ;;  %1719 = vmatmul.bf16.gmra.mxu1 %v9438_v1 }
 0x175   : > { %v1774_v3 = vmax.f32 %v1681_v13, 0.0  ;;  %v7549_v13 = vld [vmem:[%s13038_s5 + $0x58] sm:$0xf0] }
 0x176   : > { %1516 = vmatmul.bf16.gmra.mxu3 %v9462_v55  ;;  %v9656_v62 = vpack.c.bf16 %v1775_v21, %v1773_v42  ;;  %v1373_v47 = vpop.f32.mrf.mxu2  ;;  %v8472_v21 = vld [vmem:[%s13038_s5 + $0x54] sm:$0xf] }
 0x177   : > { %v1374_v15 = vadd.f32 %v1373_v47, %v9595_v63 }
 0x178   : > { %v1578_v60 = vpop.f32.mrf.mxu0 }
 0x179   : > { %v1477_v25 = vpop.f32.mrf.mxu3  ;;  %v1579_v34 = vadd.f32 %v1578_v60, %v9606_v39  ;;  %v1682_v7 = vpop.f32.mrf.mxu1 }
 0x17a   : > { %v1478_v2 = vadd.f32 %v1477_v25, %v1374_v15  ;;  %v7552_v25 = vor.u32 %v8472_v21, %v7549_v13 }
 0x17b   : > { %v1683_v53 = vadd.f32 %v1682_v7, %v1579_v34 }
 0x17c   : > { %v1777_v52 = vmax.f32 %v1478_v2, 0.0  ;;  %2287 = vmatpush.bf16.msra.mxu0 %v7552_v25 }
 0x17d   : > { %v1776_v59 = vmax.f32 %v1683_v53, 0.0 }
 0x17e   : > { %v1375_v43 = vpop.f32.mrf.mxu2 }
 0x17f   : > { %v1376_v0 = vadd.f32 %v1375_v43, %v9595_v63  ;;  %v9661_v29 = vpack.c.bf16 %v1776_v59, %v1774_v3 }
 0x180   : > { %v1581_v1 = vpop.f32.mrf.mxu0 }
 0x181   : > { %v1479_v22 = vpop.f32.mrf.mxu3  ;;  %v1582_v56 = vadd.f32 %v1581_v1, %v9606_v39  ;;  %v1685_v4 = vpop.f32.mrf.mxu1 }
 0x182   : > { %v1480_v24 = vadd.f32 %v1479_v22, %v1376_v0  ;;  %v7515_v0 = vld [vmem:[%s13038_s5 + $0x10] sm:$0xf]  ;;  %v8465_v22 = vld [vmem:[%s13038_s5 + $0x14] sm:$0xf0] }
 0x183   : > { %v1686_v42 = vadd.f32 %v1685_v4, %v1582_v56  ;;  %1417 = vmatmul.bf16.gmra.mxu2 %v9472_v35  ;;  %1620 = vmatmul.bf16.gmra.mxu0 %v9460_v54  ;;  %v8488_v54 = vld [vmem:[%s13038_s5 + $0xd4] sm:$0xf]  ;;  %v7516_v1 = vor.u32 %v8465_v22, %v7515_v0  ;;  %v7579_v4 = vld [vmem:[%s13038_s5 + $0x90] sm:$0xf] }
 0x184   : > { %v1779_v46 = vmax.f32 %v1480_v24, 0.0  ;;  %1724 = vmatmul.bf16.gmra.mxu1 %v9462_v55  ;;  %v7613_v55 = vld [vmem:[%s13038_s5 + $0xd8] sm:$0xf0] }
 0x185   : > { %v7616_v34 = vor.u32 %v8488_v54, %v7613_v55  ;;  %v1778_v24 = vmax.f32 %v1686_v42, 0.0  ;;  %2083 = vmatpush.bf16.msra.mxu2 %v7516_v1 }
 0x186   : > { %1521 = vmatmul.bf16.gmra.mxu3 %v9474_v36  ;;  %v9674_v47 = vpack.c.bf16 %v1779_v46, %v1777_v52  ;;  %v1378_v15 = vpop.f32.mrf.mxu2  ;;  %v8481_v52 = vld [vmem:[%s13038_s5 + $0x94] sm:$0xf0] }
 0x187   : > { %v1379_v60 = vadd.f32 %v1378_v15, %v9595_v63  ;;  %2391 = vmatpush.bf16.msra.mxu1 %v7616_v34  ;;  %v7580_v21 = vor.u32 %v8481_v52, %v7579_v4 }
 0x188   : > { %v1583_v7 = vpop.f32.mrf.mxu0 }
 0x189   : > { %v1482_v2 = vpop.f32.mrf.mxu3  ;;  %v1584_v3 = vadd.f32 %v1583_v7, %v9606_v39  ;;  %v1687_v59 = vpop.f32.mrf.mxu1  ;;  %2187 = vmatpush.bf16.msra.mxu3 %v7580_v21 }
 0x18a   : > { %v1483_v53 = vadd.f32 %v1482_v2, %v1379_v60 }
 0x18b   : > { %v1688_v43 = vadd.f32 %v1687_v59, %v1584_v3 }
 0x18c   : > { %v1781_v2 = vmax.f32 %v1483_v53, 0.0 }
 0x18d   : > { %v1780_v56 = vmax.f32 %v1688_v43, 0.0 }
 0x18e   : > { %v1380_v46 = vpop.f32.mrf.mxu2 }
 0x18f   : > { %v1381_v13 = vadd.f32 %v1380_v46, %v9595_v63  ;;  %v9697_v25 = vpack.c.bf16 %v1780_v56, %v1778_v24 }
 0x190   : > { %v1586_v54 = vpop.f32.mrf.mxu0 }
 0x191   : > { %v1484_v15 = vpop.f32.mrf.mxu3  ;;  %v1587_v55 = vadd.f32 %v1586_v54, %v9606_v39  ;;  %v1690_v60 = vpop.f32.mrf.mxu1 }
 0x192   : > { %v1485_v42 = vadd.f32 %v1484_v15, %v1381_v13 }
 0x193   : > { %v1691_v7 = vadd.f32 %v1690_v60, %v1587_v55  ;;  %1422 = vmatmul.bf16.gmra.mxu2 %v9490_v23  ;;  %1625 = vmatmul.bf16.gmra.mxu0 %v9472_v35 }
 0x194   : > { %v1783_v34 = vmax.f32 %v1485_v42, 0.0  ;;  %1729 = vmatmul.bf16.gmra.mxu1 %v9474_v36 }
 0x195   : > { %v1782_v4 = vmax.f32 %v1691_v7, 0.0 }
 0x196   : > { %1526 = vmatmul.bf16.gmra.mxu3 %v9498_v32  ;;  %v9704_v3 = vpack.c.bf16 %v1783_v34, %v1781_v2  ;;  %v1383_v59 = vpop.f32.mrf.mxu2 }
 0x197   : > { %v1384_v43 = vadd.f32 %v1383_v59, %v9595_v63 }
 0x198   : > { %v1588_v22 = vpop.f32.mrf.mxu0 }
 0x199   : > { %v1487_v0 = vpop.f32.mrf.mxu3  ;;  %v1589_v53 = vadd.f32 %v1588_v22, %v9606_v39  ;;  %v1692_v24 = vpop.f32.mrf.mxu1 }
 0x19a   : > { %v1488_v1 = vadd.f32 %v1487_v0, %v1384_v43 }
 0x19b   : > { %v1693_v56 = vadd.f32 %v1692_v24, %v1589_v53 }
 0x19c   : > { %v1785_v55 = vmax.f32 %v1488_v1, 0.0 }
 0x19d   : > { %v1784_v52 = vmax.f32 %v1693_v56, 0.0 }
 0x19e   : > { %v1385_v46 = vpop.f32.mrf.mxu2 }
 0x19f   : > { %v1386_v35 = vadd.f32 %v1385_v46, %v9595_v63  ;;  %v9709_v13 = vpack.c.bf16 %v1784_v52, %v1782_v4 }
 0x1a0   : > { %v1591_v36 = vpop.f32.mrf.mxu0 }
 0x1a1   : > { %v1489_v21 = vpop.f32.mrf.mxu3  ;;  %v1592_v54 = vadd.f32 %v1591_v36, %v9606_v39  ;;  %v1695_v42 = vpop.f32.mrf.mxu1  ;;  %v7507_v36 = vld [vmem:[%s13038_s5] sm:$0xf] }
 0x1a2   : > { %v1490_v15 = vadd.f32 %v1489_v21, %v1386_v35  ;;  %v8486_v35 = vld [vmem:[%s13038_s5 + $0xc4] sm:$0xf]  ;;  %v7605_v21 = vld [vmem:[%s13038_s5 + $0xc8] sm:$0xf0] }
 0x1a3   : > { %v1696_v2 = vadd.f32 %v1695_v42, %v1592_v54  ;;  %1427 = vmatmul.bf16.gmra.mxu2 %v9508_v17  ;;  %1630 = vmatmul.bf16.gmra.mxu0 %v9490_v23  ;;  %v8470_v23 = vld [vmem:[%s13038_s5 + $0x44] sm:$0xf]  ;;  %v7608_v42 = vor.u32 %v8486_v35, %v7605_v21 }
 0x1a4   : > { %v1787_v60 = vmax.f32 %v1490_v15, 0.0  ;;  %1734 = vmatmul.bf16.gmra.mxu1 %v9498_v32  ;;  %v7541_v32 = vld [vmem:[%s13038_s5 + $0x48] sm:$0xf0] }
 0x1a5   : > { %v1786_v56 = vmax.f32 %v1696_v2, 0.0  ;;  %v7544_v46 = vor.u32 %v8470_v23, %v7541_v32  ;;  %2392 = vmatpush.bf16.msra.mxu1 %v7608_v42 }
 0x1a6   : > { %1531 = vmatmul.bf16.gmra.mxu3 %v9510_v20  ;;  %v9716_v34 = vpack.c.bf16 %v1787_v60, %v1785_v55  ;;  %v1388_v7 = vpop.f32.mrf.mxu2  ;;  %v8463_v55 = vld [vmem:[%s13038_s5 + $0x4] sm:$0xf0] }
 0x1a7   : > { %v1389_v59 = vadd.f32 %v1388_v7, %v9595_v63  ;;  %2288 = vmatpush.bf16.msra.mxu0 %v7544_v46  ;;  %v7508_v7 = vor.u32 %v8463_v55, %v7507_v36 }
 0x1a8   : > { %v1593_v0 = vpop.f32.mrf.mxu0 }
 0x1a9   : > { %v1492_v43 = vpop.f32.mrf.mxu3  ;;  %v1594_v1 = vadd.f32 %v1593_v0, %v9606_v39  ;;  %v1697_v53 = vpop.f32.mrf.mxu1  ;;  %2084 = vmatpush.bf16.msra.mxu2 %v7508_v7 }
 0x1aa   : > { %v1493_v22 = vadd.f32 %v1492_v43, %v1389_v59 }
 0x1ab   : > { %v1698_v24 = vadd.f32 %v1697_v53, %v1594_v1 }
 0x1ac   : > { %v1789_v1 = vmax.f32 %v1493_v22, 0.0 }
 0x1ad   : > { %v1788_v4 = vmax.f32 %v1698_v24, 0.0 }
 0x1ae   : > { %v1390_v52 = vpop.f32.mrf.mxu2 }
 0x1af   : > { %v1391_v15 = vadd.f32 %v1390_v52, %v9595_v63  ;;  %v9739_v60 = vpack.c.bf16 %v1788_v4, %v1786_v56  ;;  %v7571_v56 = vld [vmem:[%s13038_s5 + $0x80] sm:$0xf]  ;;  %v8479_v4 = vld [vmem:[%s13038_s5 + $0x84] sm:$0xf0] }
 0x1b0   : > { %v1596_v2 = vpop.f32.mrf.mxu0  ;;  %v7572_v23 = vor.u32 %v8479_v4, %v7571_v56 }
 0x1b1   : > { %v1494_v54 = vpop.f32.mrf.mxu3  ;;  %v1597_v43 = vadd.f32 %v1596_v2, %v9606_v39  ;;  %v1700_v0 = vpop.f32.mrf.mxu1 }
 0x1b2   : > { %v1495_v59 = vadd.f32 %v1494_v54, %v1391_v15  ;;  %2188 = vmatpush.bf16.msra.mxu3 %v7572_v23 }
 0x1b3   : > { %v1701_v24 = vadd.f32 %v1700_v0, %v1597_v43  ;;  %1432 = vmatmul.bf16.gmra.mxu2 %v9520_v9  ;;  %1635 = vmatmul.bf16.gmra.mxu0 %v9508_v17 }
 0x1b4   : > { %v1791_v53 = vmax.f32 %v1495_v59, 0.0  ;;  %1739 = vmatmul.bf16.gmra.mxu1 %v9510_v20 }
 0x1b5   : > { %v1790_v54 = vmax.f32 %v1701_v24, 0.0 }
 0x1b6   : > { %1536 = vmatmul.bf16.gmra.mxu3 %v9528_v14  ;;  %v9752_v22 = vpack.c.bf16 %v1791_v53, %v1789_v1  ;;  %v1393_v32 = vpop.f32.mrf.mxu2 }
 0x1b7   : > { %v1394_v52 = vadd.f32 %v1393_v32, %v9595_v63 }
 0x1b8   : > { %v1598_v46 = vpop.f32.mrf.mxu0 }
 0x1b9   : > { %v1497_v17 = vpop.f32.mrf.mxu3  ;;  %v1599_v21 = vadd.f32 %v1598_v46, %v9606_v39  ;;  %v1702_v36 = vpop.f32.mrf.mxu1 }
 0x1ba   : > { %v1498_v35 = vadd.f32 %v1497_v17, %v1394_v52 }
 0x1bb   : > { %v1703_v15 = vadd.f32 %v1702_v36, %v1599_v21 }
 0x1bc   : > { %v1793_v53 = vmax.f32 %v1498_v35, 0.0 }
 0x1bd   : > { %v1792_v42 = vmax.f32 %v1703_v15, 0.0 }
 0x1be   : > { %v1395_v55 = vpop.f32.mrf.mxu2 }
 0x1bf   : > { %v1396_v2 = vadd.f32 %v1395_v55, %v9595_v63  ;;  %v9757_v7 = vpack.c.bf16 %v1792_v42, %v1790_v54 }
 0x1c0   : > { %v1601_v59 = vpop.f32.mrf.mxu0 }
 0x1c1   : > { %v1499_v20 = vpop.f32.mrf.mxu3  ;;  %v1602_v0 = vadd.f32 %v1601_v59, %v9606_v39  ;;  %v1705_v1 = vpop.f32.mrf.mxu1 }
 0x1c2   : > { %v1500_v43 = vadd.f32 %v1499_v20, %v1396_v2 }
 0x1c3   : > { %v1706_v4 = vadd.f32 %v1705_v1, %v1602_v0  ;;  %1437 = vmatmul.bf16.gmra.mxu2 %v9544_v28  ;;  %1640 = vmatmul.bf16.gmra.mxu0 %v9520_v9  ;;  %v8468_v0 = vld [vmem:[%s13038_s5 + $0x34] sm:$0xf]  ;;  %v7533_v1 = vld [vmem:[%s13038_s5 + $0x38] sm:$0xf0] }
 0x1c4   : > { %v1795_v56 = vmax.f32 %v1500_v43, 0.0  ;;  %1744 = vmatmul.bf16.gmra.mxu1 %v9528_v14 }
 0x1c5   : > { %v1794_v15 = vmax.f32 %v1706_v4, 0.0 }
 0x1c6   : > { %1541 = vmatmul.bf16.gmra.mxu3 %v9546_v33  ;;  %v9764_v24 = vpack.c.bf16 %v1795_v56, %v1793_v53  ;;  %v1398_v23 = vpop.f32.mrf.mxu2  ;;  %v8484_v53 = vld [vmem:[%s13038_s5 + $0xb4] sm:$0xf] }
 0x1c7   : > { %v1399_v32 = vadd.f32 %v1398_v23, %v9595_v63 }
 0x1c8   : > { %v1603_v17 = vpop.f32.mrf.mxu0 }
 0x1c9   : > { %v1502_v52 = vpop.f32.mrf.mxu3  ;;  %v1604_v35 = vadd.f32 %v1603_v17, %v9606_v39  ;;  %v1707_v21 = vpop.f32.mrf.mxu1 }
 0x1ca   : > { %v1503_v46 = vadd.f32 %v1502_v52, %v1399_v32  ;;  %v7536_v32 = vor.u32 %v8468_v0, %v7533_v1  ;;  %v7597_v52 = vld [vmem:[%s13038_s5 + $0xb8] sm:$0xf0] }
 0x1cb   : > { %v1708_v36 = vadd.f32 %v1707_v21, %v1604_v35  ;;  %v7600_v17 = vor.u32 %v8484_v53, %v7597_v52  ;;  %v8509_v35 = vld [vmem:[%s12987_s7 + $0x74] sm:$0xf0]  ;;  %v7517_v52 = vld [vmem:[%s13038_s5 + $0x18] sm:$0xf0] }
 0x1cc   : > { %v1797_v56 = vmax.f32 %v1503_v46, 0.0  ;;  %2289 = vmatpush.bf16.msra.mxu0 %v7536_v32  ;;  %v7691_v46 = vld [vmem:[%s12987_s7 + $0x70] sm:$0xf]  ;;  %v8464_v32 = vld [vmem:[%s13038_s5 + $0x14] sm:$0xf] }
 0x1cd   : > { %v1796_v54 = vmax.f32 %v1708_v36, 0.0  ;;  %2393 = vmatpush.bf16.msra.mxu1 %v7600_v17  ;;  %v7692_v36 = vor.u32 %v8509_v35, %v7691_v46  ;;  %v8480_v17 = vld [vmem:[%s13038_s5 + $0x94] sm:$0xf]  ;;  %v7520_v35 = vor.u32 %v8464_v32, %v7517_v52 }
 0x1ce   : > { %v1400_v42 = vpop.f32.mrf.mxu2 }
 0x1cf   : > { %v1401_v9 = vadd.f32 %v1400_v42, %v9595_v63  ;;  %v9769_v2 = vpack.c.bf16 %v1796_v54, %v1794_v15  ;;  %v7755_v15 = vld [vmem:[%s12987_s7 + $0xf0] sm:$0xf]  ;;  %v8466_v54 = vld [vmem:[%s13038_s5 + $0x24] sm:$0xf]  ;;  %2805 = vmatpush.bf16.msrb.mxu2 %v7692_v36 }
 0x1d0   : > { %v1606_v14 = vpop.f32.mrf.mxu0 }
 0x1d1   : > { %v1504_v55 = vpop.f32.mrf.mxu3  ;;  %v1607_v59 = vadd.f32 %v1606_v14, %v9606_v39  ;;  %v1710_v43 = vpop.f32.mrf.mxu1  ;;  %v7525_v14 = vld [vmem:[%s13038_s5 + $0x28] sm:$0xf0] }
 0x1d2   : > { %v1505_v20 = vadd.f32 %v1504_v55, %v1401_v9  ;;  %v7528_v0 = vor.u32 %v8466_v54, %v7525_v14 }
 0x1d3   : > { %v1711_v23 = vadd.f32 %v1710_v43, %v1607_v59  ;;  %1442 = vmatmul.bf16.gmra.mxu2 %v9556_v10  ;;  %1645 = vmatmul.bf16.gmra.mxu0 %v9544_v28  ;;  %v7589_v59 = vld [vmem:[%s13038_s5 + $0xa8] sm:$0xf0] }
 0x1d4   : > { %v1799_v4 = vmax.f32 %v1505_v20, 0.0  ;;  %1749 = vmatmul.bf16.gmra.mxu1 %v9546_v33  ;;  %v8525_v33 = vld [vmem:[%s12987_s7 + $0xf4] sm:$0xf0]  ;;  %v8482_v20 = vld [vmem:[%s13038_s5 + $0xa4] sm:$0xf]  ;;  %2290 = vmatpush.bf16.msra.mxu0 %v7528_v0 }
 0x1d5   : > { %v7756_v55 = vor.u32 %v8525_v33, %v7755_v15  ;;  %v7592_v1 = vor.u32 %v8482_v20, %v7589_v59  ;;  %v1798_v15 = vmax.f32 %v1711_v23, 0.0  ;;  %v7573_v59 = vld [vmem:[%s13038_s5 + $0x88] sm:$0xf0] }
 0x1d6   : > { %1546 = vmatmul.bf16.gmra.mxu3 %v9558_v37  ;;  %v9794_v28 = vpack.c.bf16 %v1799_v4, %v1797_v56  ;;  %v1403_v21 = vpop.f32.mrf.mxu2 }
 0x1d7   : > { %v1404_v42 = vadd.f32 %v1403_v21, %v9595_v63  ;;  %2909 = vmatpush.bf16.msrb.mxu3 %v7756_v55  ;;  %2394 = vmatpush.bf16.msra.mxu1 %v7592_v1  ;;  %v7581_v21 = vld [vmem:[%s13038_s5 + $0x98] sm:$0xf0]  ;;  %v8478_v55 = vld [vmem:[%s13038_s5 + $0x84] sm:$0xf] }
 0x1d8   : > { %v1608_v43 = vpop.f32.mrf.mxu0  ;;  %v7584_v36 = vor.u32 %v8480_v17, %v7581_v21  ;;  %2291 = vmatpush.bf16.msra.mxu0 %v7520_v35  ;;  %v7576_v1 = vor.u32 %v8478_v55, %v7573_v59 }
 0x1d9   : > { %v1507_v9 = vpop.f32.mrf.mxu3  ;;  %v1609_v56 = vadd.f32 %v1608_v43, %v9606_v39  ;;  %v1712_v4 = vpop.f32.mrf.mxu1 }
 0x1da   : > { %v1508_v53 = vadd.f32 %v1507_v9, %v1404_v42  ;;  %v8462_v42 = vld [vmem:[%s13038_s5 + $0x4] sm:$0xf]  ;;  %v7509_v9 = vld [vmem:[%s13038_s5 + $0x8] sm:$0xf0] }
 0x1db   : > { %v1713_v46 = vadd.f32 %v1712_v4, %v1609_v56  ;;  %2395 = vmatpush.bf16.msra.mxu1 %v7584_v36  ;;  %v7512_v23 = vor.u32 %v8462_v42, %v7509_v9 }
 0x1dc   : > { %v1801_v52 = vmax.f32 %v1508_v53, 0.0 }
 0x1dd   : > { %v1800_v33 = vmax.f32 %v1713_v46, 0.0  ;;  %2292 = vmatpush.bf16.msra.mxu0 %v7512_v23 }
 0x1de   : > { %v1405_v54 = vpop.f32.mrf.mxu2 }
 0x1df   : > { %v1406_v14 = vadd.f32 %v1405_v54, %v9595_v63  ;;  %v9841_v43 = vpack.c.bf16 %v1800_v33, %v1798_v15  ;;  %2396 = vmatpush.bf16.msra.mxu1 %v7576_v1 }
 0x1e0   : > { %v1611_v0 = vpop.f32.mrf.mxu0 }
 0x1e1   : > { %v1509_v20 = vpop.f32.mrf.mxu3  ;;  %v1612_v4 = vadd.f32 %v1611_v0, %v9606_v39  ;;  %v1715_v32 = vpop.f32.mrf.mxu1 }
 0x1e2   : > { %v1510_v56 = vadd.f32 %v1509_v20, %v1406_v14 }
 0x1e3   : > { %v1716_v46 = vadd.f32 %v1715_v32, %v1612_v4  ;;  %1447 = vmatmul.bf16.gmra.mxu2 %v9597_v12  ;;  %1650 = vmatmul.bf16.gmra.mxu0 %v9556_v10 }
 0x1e4   : > { %v1803_v17 = vmax.f32 %v1510_v56, 0.0  ;;  %1754 = vmatmul.bf16.gmra.mxu1 %v9558_v37 }
 0x1e5   : > { %v1802_v55 = vmax.f32 %v1716_v46, 0.0 }
 0x1e6   : > { %1551 = vmatmul.bf16.gmra.mxu3 %v9599_v27  ;;  %v9848_v35 = vpack.c.bf16 %v1803_v17, %v1801_v52  ;;  %v1408_v21 = vpop.f32.mrf.mxu2 }
 0x1e7   : > { %v1409_v36 = vadd.f32 %v1408_v21, %v9595_v63 }
 0x1e8   : > { %v1613_v33 = vpop.f32.mrf.mxu0 }
 0x1e9   : > { %v1512_v15 = vpop.f32.mrf.mxu3  ;;  %v1614_v53 = vadd.f32 %v1613_v33, %v9606_v39  ;;  %v1717_v42 = vpop.f32.mrf.mxu1 }
 0x1ea   : > { %v1513_v54 = vadd.f32 %v1512_v15, %v1409_v36 }
 0x1eb   : > { %v1718_v9 = vadd.f32 %v1717_v42, %v1614_v53 }
 0x1ec   : > { %v1805_v4 = vmax.f32 %v1513_v54, 0.0 }
 0x1ed   : > { %v1804_v14 = vmax.f32 %v1718_v9, 0.0 }
 0x1ee   : > { %v1410_v20 = vpop.f32.mrf.mxu2 }
 0x1ef   : > { %v1411_v10 = vadd.f32 %v1410_v20, %v9595_v63  ;;  %v9853_v59 = vpack.c.bf16 %v1804_v14, %v1802_v55  ;;  %v8507_v55 = vld [vmem:[%s12987_s7 + $0x64] sm:$0xf0] }
 0x1f0   : > { %v1616_v37 = vpop.f32.mrf.mxu0 }
 0x1f1   : > { %v1514_v23 = vpop.f32.mrf.mxu3  ;;  %v1617_v1 = vadd.f32 %v1616_v37, %v9606_v39  ;;  %v1720_v56 = vpop.f32.mrf.mxu1 }
 0x1f2   : > { %v1515_v0 = vadd.f32 %v1514_v23, %v1411_v10  ;;  %v7747_v10 = vld [vmem:[%s12987_s7 + $0xe0] sm:$0xf]  ;;  %v8523_v23 = vld [vmem:[%s12987_s7 + $0xe4] sm:$0xf0] }
 0x1f3   : > { %v1721_v52 = vadd.f32 %v1720_v56, %v1617_v1  ;;  %1655 = vmatmul.bf16.gmra.mxu0 %v9597_v12  ;;  %2085 = vmatmul.bf16.vlgmr.msra.gmra.mxu2 %v9610_v61  ;;  %v7748_v1 = vor.u32 %v8523_v23, %v7747_v10 }
 0x1f4   : > { %v1807_v32 = vmax.f32 %v1515_v0, 0.0  ;;  %1759 = vmatmul.bf16.gmra.mxu1 %v9599_v27  ;;  %v7683_v27 = vld [vmem:[%s12987_s7 + $0x60] sm:$0xf] }
 0x1f5   : > { %v1806_v9 = vmax.f32 %v1721_v52, 0.0  ;;  %v7684_v20 = vor.u32 %v8507_v55, %v7683_v27  ;;  %2910 = vmatpush.bf16.msrb.mxu3 %v7748_v1 }
 0x1f6   : > { %2189 = vmatmul.bf16.vlgmr.msra.gmra.mxu3 %v9620_v16  ;;  %v9860_v17 = vpack.c.bf16 %v1807_v32, %v1805_v4  ;;  %v1413_v46 = vpop.f32.mrf.mxu2 }
 0x1f7   : > { %v1414_v21 = vadd.f32 %v1413_v46, %v9595_v63  ;;  %2806 = vmatpush.bf16.msrb.mxu2 %v7684_v20 }
 0x1f8   : > { %v1618_v15 = vpop.f32.mrf.mxu0 }
 0x1f9   : > { %v1517_v36 = vpop.f32.mrf.mxu3  ;;  %v1619_v54 = vadd.f32 %v1618_v15, %v9606_v39  ;;  %v1722_v53 = vpop.f32.mrf.mxu1 }
 0x1fa   : > { %v1518_v33 = vadd.f32 %v1517_v36, %v1414_v21 }
 0x1fb   : > { %v1723_v42 = vadd.f32 %v1722_v53, %v1619_v54 }
 0x1fc   : > { %v1809_v21 = vmax.f32 %v1518_v33, 0.0 }
 0x1fd   : > { %v1808_v12 = vmax.f32 %v1723_v42, 0.0 }
 0x1fe   : > { %v1415_v14 = vpop.f32.mrf.mxu2 }
 0x1ff   : > { %v1416_v37 = vadd.f32 %v1415_v14, %v9595_v63  ;;  %v9877_v56 = vpack.c.bf16 %v1808_v12, %v1806_v9 }
 0x200   : > { %v1621_v4 = vpop.f32.mrf.mxu0 }
 0x201   : > { %v1519_v0 = vpop.f32.mrf.mxu3  ;;  %v1622_v52 = vadd.f32 %v1621_v4, %v9606_v39  ;;  %v1725_v46 = vpop.f32.mrf.mxu1 }
 0x202   : > { %v1520_v32 = vadd.f32 %v1519_v0, %v1416_v37 }
 0x203   : > { %v1726_v15 = vadd.f32 %v1725_v46, %v1622_v52  ;;  %2090 = vmatmul.bf16.gmra.mxu2 %v9638_v38  ;;  %2293 = vmatmul.bf16.vlgmr.msra.gmra.mxu0 %v9610_v61 }
 0x204   : > { %v1811_v36 = vmax.f32 %v1520_v32, 0.0  ;;  %2397 = vmatmul.bf16.vlgmr.msra.gmra.mxu1 %v9620_v16 }
 0x205   : > { %v1810_v20 = vmax.f32 %v1726_v15, 0.0 }
 0x206   : > { %2194 = vmatmul.bf16.gmra.mxu3 %v9649_v48  ;;  %v9884_v54 = vpack.c.bf16 %v1811_v36, %v1809_v21  ;;  %v1418_v53 = vpop.f32.mrf.mxu2 }
 0x207   : > { %v1419_v42 = vadd.f32 %v1418_v53, %v9595_v63 }
 0x208   : > { %v1623_v12 = vpop.f32.mrf.mxu0 }
 0x209   : > { %v1522_v9 = vpop.f32.mrf.mxu3  ;;  %v1624_v33 = vadd.f32 %v1623_v12, %v9606_v39  ;;  %v1727_v55 = vpop.f32.mrf.mxu1 }
 0x20a   : > { %v1523_v27 = vadd.f32 %v1522_v9, %v1419_v42 }
 0x20b   : > { %v1728_v14 = vadd.f32 %v1727_v55, %v1624_v33 }
 0x20c   : > { %v1813_v52 = vmax.f32 %v1523_v27, 0.0 }
 0x20d   : > { %v1812_v10 = vmax.f32 %v1728_v14, 0.0 }
 0x20e   : > { %v1420_v23 = vpop.f32.mrf.mxu2 }
 0x20f   : > { %v1421_v61 = vadd.f32 %v1420_v23, %v9595_v63  ;;  %v9889_v0 = vpack.c.bf16 %v1812_v10, %v1810_v20 }
 0x210   : > { %v1626_v16 = vpop.f32.mrf.mxu0 }
 0x211   : > { %v1524_v37 = vpop.f32.mrf.mxu3  ;;  %v1627_v4 = vadd.f32 %v1626_v16, %v9606_v39  ;;  %v1730_v32 = vpop.f32.mrf.mxu1 }
 0x212   : > { %v1525_v1 = vadd.f32 %v1524_v37, %v1421_v61 }
 0x213   : > { %v1731_v21 = vadd.f32 %v1730_v32, %v1627_v4  ;;  %2095 = vmatmul.bf16.gmra.mxu2 %v9656_v62  ;;  %2298 = vmatmul.bf16.gmra.mxu0 %v9638_v38 }
 0x214   : > { %v1815_v46 = vmax.f32 %v1525_v1, 0.0  ;;  %2402 = vmatmul.bf16.gmra.mxu1 %v9649_v48 }
 0x215   : > { %v1814_v14 = vmax.f32 %v1731_v21, 0.0  ;;  %v8505_v21 = vld [vmem:[%s12987_s7 + $0x54] sm:$0xf0] }
 0x216   : > { %2199 = vmatmul.bf16.gmra.mxu3 %v9661_v29  ;;  %v9896_v36 = vpack.c.bf16 %v1815_v46, %v1813_v52  ;;  %v1423_v15 = vpop.f32.mrf.mxu2  ;;  %v7675_v46 = vld [vmem:[%s12987_s7 + $0x50] sm:$0xf] }
 0x217   : > { %v1424_v53 = vadd.f32 %v1423_v15, %v9595_v63  ;;  %v7676_v15 = vor.u32 %v8505_v21, %v7675_v46 }
 0x218   : > { %v1628_v9 = vpop.f32.mrf.mxu0 }
 0x219   : > { %v1527_v42 = vpop.f32.mrf.mxu3  ;;  %v1629_v27 = vadd.f32 %v1628_v9, %v9606_v39  ;;  %v1732_v33 = vpop.f32.mrf.mxu1  ;;  %2807 = vmatpush.bf16.msrb.mxu2 %v7676_v15 }
 0x21a   : > { %v1528_v12 = vadd.f32 %v1527_v42, %v1424_v53  ;;  %v7739_v53 = vld [vmem:[%s12987_s7 + $0xd0] sm:$0xf] }
 0x21b   : > { %v1733_v55 = vadd.f32 %v1732_v33, %v1629_v27 }
 0x21c   : > { %v1817_v4 = vmax.f32 %v1528_v12, 0.0 }
 0x21d   : > { %v1816_v20 = vmax.f32 %v1733_v55, 0.0 }
 0x21e   : > { %v1425_v10 = vpop.f32.mrf.mxu2 }
 0x21f   : > { %v1426_v38 = vadd.f32 %v1425_v10, %v9595_v63  ;;  %v9901_v61 = vpack.c.bf16 %v1816_v20, %v1814_v14 }
 0x220   : > { %v1631_v48 = vpop.f32.mrf.mxu0 }
 0x221   : > { %v1529_v23 = vpop.f32.mrf.mxu3  ;;  %v1632_v16 = vadd.f32 %v1631_v48, %v9606_v39  ;;  %v1735_v1 = vpop.f32.mrf.mxu1 }
 0x222   : > { %v1530_v37 = vadd.f32 %v1529_v23, %v1426_v38 }
 0x223   : > { %v1736_v52 = vadd.f32 %v1735_v1, %v1632_v16  ;;  %2100 = vmatmul.bf16.gmra.mxu2 %v9674_v47  ;;  %2303 = vmatmul.bf16.gmra.mxu0 %v9656_v62  ;;  %v8521_v62 = vld [vmem:[%s12987_s7 + $0xd4] sm:$0xf0] }
 0x224   : > { %v1819_v32 = vmax.f32 %v1530_v37, 0.0  ;;  %2407 = vmatmul.bf16.gmra.mxu1 %v9661_v29  ;;  %v7740_v12 = vor.u32 %v8521_v62, %v7739_v53 }
 0x225   : > { %v1818_v38 = vmax.f32 %v1736_v52, 0.0 }
 0x226   : > { %2204 = vmatmul.bf16.gmra.mxu3 %v9697_v25  ;;  %v9920_v42 = vpack.c.bf16 %v1819_v32, %v1817_v4  ;;  %v1428_v9 = vpop.f32.mrf.mxu2 }
 0x227   : > { %v1429_v27 = vadd.f32 %v1428_v9, %v9595_v63  ;;  %2911 = vmatpush.bf16.msrb.mxu3 %v7740_v12 }
 0x228   : > { %v1633_v55 = vpop.f32.mrf.mxu0 }
 0x229   : > { %v1532_v33 = vpop.f32.mrf.mxu3  ;;  %v1634_v14 = vadd.f32 %v1633_v55, %v9606_v39  ;;  %v1737_v20 = vpop.f32.mrf.mxu1 }
 0x22a   : > { %v1533_v29 = vadd.f32 %v1532_v33, %v1429_v27 }
 0x22b   : > { %v1738_v10 = vadd.f32 %v1737_v20, %v1634_v14 }
 0x22c   : > { %v1821_v15 = vmax.f32 %v1533_v29, 0.0 }
 0x22d   : > { %v1820_v23 = vmax.f32 %v1738_v10, 0.0 }
 0x22e   : > { %v1430_v48 = vpop.f32.mrf.mxu2 }
 0x22f   : > { %v1431_v37 = vadd.f32 %v1430_v48, %v9595_v63  ;;  %v9925_v1 = vpack.c.bf16 %v1820_v23, %v1818_v38 }
 0x230   : > { %v1636_v4 = vpop.f32.mrf.mxu0 }
 0x231   : > { %v1534_v16 = vpop.f32.mrf.mxu3  ;;  %v1637_v46 = vadd.f32 %v1636_v4, %v9606_v39  ;;  %v1740_v21 = vpop.f32.mrf.mxu1 }
 0x232   : > { %v1535_v32 = vadd.f32 %v1534_v16, %v1431_v37 }
 0x233   : > { %v1741_v62 = vadd.f32 %v1740_v21, %v1637_v46  ;;  %2105 = vmatmul.bf16.gmra.mxu2 %v9704_v3  ;;  %2308 = vmatmul.bf16.gmra.mxu0 %v9674_v47 }
 0x234   : > { %v1823_v53 = vmax.f32 %v1535_v32, 0.0  ;;  %2412 = vmatmul.bf16.gmra.mxu1 %v9697_v25 }
 0x235   : > { %v1822_v10 = vmax.f32 %v1741_v62, 0.0  ;;  %v8503_v62 = vld [vmem:[%s12987_s7 + $0x44] sm:$0xf0] }
 0x236   : > { %2209 = vmatmul.bf16.gmra.mxu3 %v9709_v13  ;;  %v9932_v52 = vpack.c.bf16 %v1823_v53, %v1821_v15  ;;  %v1433_v9 = vpop.f32.mrf.mxu2  ;;  %v7667_v53 = vld [vmem:[%s12987_s7 + $0x40] sm:$0xf] }
 0x237   : > { %v1434_v12 = vadd.f32 %v1433_v9, %v9595_v63 }
 0x238   : > { %v1638_v33 = vpop.f32.mrf.mxu0 }
 0x239   : > { %v1537_v27 = vpop.f32.mrf.mxu3  ;;  %v1639_v29 = vadd.f32 %v1638_v33, %v9606_v39  ;;  %v1742_v14 = vpop.f32.mrf.mxu1 }
 0x23a   : > { %v1538_v55 = vadd.f32 %v1537_v27, %v1434_v12  ;;  %v7668_v27 = vor.u32 %v8503_v62, %v7667_v53 }
 0x23b   : > { %v1743_v20 = vadd.f32 %v1742_v14, %v1639_v29 }
 0x23c   : > { %v1825_v46 = vmax.f32 %v1538_v55, 0.0  ;;  %2808 = vmatpush.bf16.msrb.mxu2 %v7668_v27 }
 0x23d   : > { %v1824_v38 = vmax.f32 %v1743_v20, 0.0 }
 0x23e   : > { %v1435_v23 = vpop.f32.mrf.mxu2 }
 0x23f   : > { %v1436_v47 = vadd.f32 %v1435_v23, %v9595_v63  ;;  %v9937_v37 = vpack.c.bf16 %v1824_v38, %v1822_v10  ;;  %v7731_v10 = vld [vmem:[%s12987_s7 + $0xc0] sm:$0xf]  ;;  %v8519_v38 = vld [vmem:[%s12987_s7 + $0xc4] sm:$0xf0] }
 0x240   : > { %v1641_v25 = vpop.f32.mrf.mxu0  ;;  %v7732_v23 = vor.u32 %v8519_v38, %v7731_v10 }
 0x241   : > { %v1539_v48 = vpop.f32.mrf.mxu3  ;;  %v1642_v4 = vadd.f32 %v1641_v25, %v9606_v39  ;;  %v1745_v32 = vpop.f32.mrf.mxu1 }
 0x242   : > { %v1540_v16 = vadd.f32 %v1539_v48, %v1436_v47  ;;  %2912 = vmatpush.bf16.msrb.mxu3 %v7732_v23 }
 0x243   : > { %v1746_v15 = vadd.f32 %v1745_v32, %v1642_v4  ;;  %2110 = vmatmul.bf16.gmra.mxu2 %v9716_v34  ;;  %2313 = vmatmul.bf16.gmra.mxu0 %v9704_v3 }
 0x244   : > { %v1827_v21 = vmax.f32 %v1540_v16, 0.0  ;;  %2417 = vmatmul.bf16.gmra.mxu1 %v9709_v13 }
 0x245   : > { %v1826_v47 = vmax.f32 %v1746_v15, 0.0 }
 0x246   : > { %2214 = vmatmul.bf16.gmra.mxu3 %v9739_v60  ;;  %v9950_v9 = vpack.c.bf16 %v1827_v21, %v1825_v46  ;;  %v1438_v12 = vpop.f32.mrf.mxu2 }
 0x247   : > { %v1439_v33 = vadd.f32 %v1438_v12, %v9595_v63 }
 0x248   : > { %v1643_v3 = vpop.f32.mrf.mxu0 }
 0x249   : > { %v1542_v55 = vpop.f32.mrf.mxu3  ;;  %v1644_v13 = vadd.f32 %v1643_v3, %v9606_v39  ;;  %v1747_v14 = vpop.f32.mrf.mxu1 }
 0x24a   : > { %v1543_v29 = vadd.f32 %v1542_v55, %v1439_v33 }
 0x24b   : > { %v1748_v20 = vadd.f32 %v1747_v14, %v1644_v13 }
 0x24c   : > { %v1829_v12 = vmax.f32 %v1543_v29, 0.0 }
 0x24d   : > { %v1828_v48 = vmax.f32 %v1748_v20, 0.0 }
 0x24e   : > { %v1440_v25 = vpop.f32.mrf.mxu2 }
 0x24f   : > { %v1441_v16 = vadd.f32 %v1440_v25, %v9595_v63  ;;  %v9961_v32 = vpack.c.bf16 %v1828_v48, %v1826_v47 }
 0x250   : > { %v1646_v46 = vpop.f32.mrf.mxu0 }
 0x251   : > { %v1544_v4 = vpop.f32.mrf.mxu3  ;;  %v1647_v53 = vadd.f32 %v1646_v46, %v9606_v39  ;;  %v1750_v62 = vpop.f32.mrf.mxu1 }
 0x252   : > { %v1545_v21 = vadd.f32 %v1544_v4, %v1441_v16 }
 0x253   : > { %v1751_v33 = vadd.f32 %v1750_v62, %v1647_v53  ;;  %2115 = vmatmul.bf16.gmra.mxu2 %v9752_v22  ;;  %2318 = vmatmul.bf16.gmra.mxu0 %v9716_v34 }
 0x254   : > { %v1831_v27 = vmax.f32 %v1545_v21, 0.0  ;;  %2422 = vmatmul.bf16.gmra.mxu1 %v9739_v60 }
 0x255   : > { %v1830_v23 = vmax.f32 %v1751_v33, 0.0 }
 0x256   : > { %2219 = vmatmul.bf16.gmra.mxu3 %v9757_v7  ;;  %v9968_v15 = vpack.c.bf16 %v1831_v27, %v1829_v12  ;;  %v1443_v55 = vpop.f32.mrf.mxu2 }
 0x257   : > { %v1444_v3 = vadd.f32 %v1443_v55, %v9595_v63 }
 0x258   : > { %v1648_v14 = vpop.f32.mrf.mxu0 }
 0x259   : > { %v1547_v13 = vpop.f32.mrf.mxu3  ;;  %v1649_v29 = vadd.f32 %v1648_v14, %v9606_v39  ;;  %v1752_v10 = vpop.f32.mrf.mxu1 }
 0x25a   : > { %v1548_v20 = vadd.f32 %v1547_v13, %v1444_v3 }
 0x25b   : > { %v1753_v38 = vadd.f32 %v1752_v10, %v1649_v29 }
 0x25c   : > { %v1833_v53 = vmax.f32 %v1548_v20, 0.0 }
 0x25d   : > { %v1832_v47 = vmax.f32 %v1753_v38, 0.0 }
 0x25e   : > { %v1445_v48 = vpop.f32.mrf.mxu2 }
 0x25f   : > { %v1446_v34 = vadd.f32 %v1445_v48, %v9595_v63  ;;  %v9973_v16 = vpack.c.bf16 %v1832_v47, %v1830_v23 }
 0x260   : > { %v1651_v60 = vpop.f32.mrf.mxu0 }
 0x261   : > { %v1549_v25 = vpop.f32.mrf.mxu3  ;;  %v1652_v46 = vadd.f32 %v1651_v60, %v9606_v39  ;;  %v1755_v21 = vpop.f32.mrf.mxu1 }
 0x262   : > { %v1550_v4 = vadd.f32 %v1549_v25, %v1446_v34  ;;  %v1911_v34 = vld [vmem:[%s12986_s6] sm:$0x3] }
 0x263   : > { %v1756_v12 = vadd.f32 %v1755_v21, %v1652_v46  ;;  %2120 = vmatmul.bf16.gmra.mxu2 %v9764_v24  ;;  %2323 = vmatmul.bf16.gmra.mxu0 %v9752_v22  ;;  %v8508_v22 = vld [vmem:[%s12987_s7 + $0x74] sm:$0xf]  ;;  %v7757_v46 = vld [vmem:[%s12987_s7 + $0xf8] sm:$0xf0]  ;;  %v7659_v21 = vld [vmem:[%s12987_s7 + $0x30] sm:$0xf] }
 0x264   : > { %v1835_v62 = vmax.f32 %v1550_v4, 0.0  ;;  %2427 = vmatmul.bf16.gmra.mxu1 %v9757_v7  ;;  %v7693_v7 = vld [vmem:[%s12987_s7 + $0x78] sm:$0xf0]  ;;  %v8524_v4 = vld [vmem:[%s12987_s7 + $0xf4] sm:$0xf] }
 0x265   : > { %v7696_v38 = vor.u32 %v8508_v22, %v7693_v7  ;;  %v1834_v23 = vmax.f32 %v1756_v12, 0.0  ;;  %v7760_v12 = vor.u32 %v8524_v4, %v7757_v46 }
 0x266   : > { %2224 = vmatmul.bf16.gmra.mxu3 %v9769_v2  ;;  %v9980_v27 = vpack.c.bf16 %v1835_v62, %v1833_v53  ;;  %v1448_v33 = vpop.f32.mrf.mxu2 }
 0x267   : > { %v1449_v55 = vadd.f32 %v1448_v33, %v9595_v63  ;;  %3013 = vmatpush.bf16.msrb.mxu0 %v7696_v38  ;;  %v7723_v33 = vld [vmem:[%s12987_s7 + $0xb0] sm:$0xf]  ;;  %3117 = vmatpush.bf16.msrb.mxu1 %v7760_v12 }
 0x268   : > { %v1653_v13 = vpop.f32.mrf.mxu0 }
 0x269   : > { %v1552_v3 = vpop.f32.mrf.mxu3  ;;  %v1654_v20 = vadd.f32 %v1653_v13, %v9606_v39  ;;  %v1757_v29 = vpop.f32.mrf.mxu1 }
 0x26a   : > { %v1553_v14 = vadd.f32 %v1552_v3, %v1449_v55  ;;  %v8517_v55 = vld [vmem:[%s12987_s7 + $0xb4] sm:$0xf0] }
 0x26b   : > { %v1758_v10 = vadd.f32 %v1757_v29, %v1654_v20 }
 0x26c   : > { %v1837_v22 = vmax.f32 %v1553_v14, 0.0 }
 0x26d   : > { %v1836_v47 = vmax.f32 %v1758_v10, 0.0  ;;  %v7724_v10 = vor.u32 %v8517_v55, %v7723_v33 }
 0x26e   : > { %v1450_v48 = vpop.f32.mrf.mxu2 }
 0x26f   : > { %v1451_v25 = vadd.f32 %v1450_v48, %v9595_v63  ;;  %v10003_v53 = vpack.c.bf16 %v1836_v47, %v1834_v23  ;;  %v8501_v63 = vld [vmem:[%s12987_s7 + $0x34] sm:$0xf0]  ;;  %v10017_v23 = vperm.slane %v1911_v34, 0  ;;  %2913 = vmatpush.bf16.msrb.mxu3 %v7724_v10 }
 0x270   : > { %v1656_v62 = vpop.f32.mrf.mxu0  ;;  %v7660_v29 = vor.u32 %v8501_v63, %v7659_v21  ;;  %v10025_v63 = vperm.slane %v1911_v34, 1 }
 0x271   : > { %v1554_v60 = vpop.f32.mrf.mxu3  ;;  %v1657_v13 = vadd.f32 %v1656_v62, %v9606_v39  ;;  %v1760_v20 = vpop.f32.mrf.mxu1 }
 0x272   : > { %v1555_v3 = vadd.f32 %v1554_v60, %v1451_v25  ;;  %2809 = vmatpush.bf16.msrb.mxu2 %v7660_v29 }
 0x273   : > { %v1761_v38 = vadd.f32 %v1760_v20, %v1657_v13  ;;  %2125 = vmatmul.bf16.gmra.mxu2 %v9794_v28  ;;  %2328 = vmatmul.bf16.gmra.mxu0 %v9764_v24 }
 0x274   : > { %v1839_v7 = vmax.f32 %v1555_v3, 0.0  ;;  %2432 = vmatmul.bf16.gmra.mxu1 %v9769_v2 }
 0x275   : > { %v1838_v62 = vmax.f32 %v1761_v38, 0.0 }
 0x276   : > { %2229 = vmatmul.bf16.gmra.mxu3 %v9841_v43  ;;  %v10021_v47 = vpack.c.bf16 %v1839_v7, %v1837_v22  ;;  %v2086_v48 = vpop.f32.mrf.mxu2 }
 0x277   : > { %v2087_v25 = vadd.f32 %v2086_v48, %v10017_v23 }
 0x278   : > { %v1658_v60 = vpop.f32.mrf.mxu0 }
 0x279   : > { %v2190_v14 = vpop.f32.mrf.mxu3  ;;  %v1659_v46 = vadd.f32 %v1658_v60, %v9606_v39  ;;  %v1762_v21 = vpop.f32.mrf.mxu1 }
 0x27a   : > { %v2191_v4 = vadd.f32 %v2190_v14, %v2087_v25 }
 0x27b   : > { %v1763_v24 = vadd.f32 %v1762_v21, %v1659_v46 }
 0x27c   : > { %v2493_v22 = vmax.f32 %v2191_v4, 0.0 }
 0x27d   : > { %v1840_v12 = vmax.f32 %v1763_v24, 0.0 }
 0x27e   : > { %v2088_v33 = vpop.f32.mrf.mxu2 }
 0x27f   : > { %v2089_v2 = vadd.f32 %v2088_v33, %v10017_v23  ;;  %v10028_v3 = vpack.c.bf16 %v1840_v12, %v1838_v62 }
 0x280   : > { %v2294_v13 = vpop.f32.mrf.mxu0 }
 0x281   : > { %v2192_v55 = vpop.f32.mrf.mxu3  ;;  %v2295_v29 = vadd.f32 %v2294_v13, %v10025_v63  ;;  %v2398_v10 = vpop.f32.mrf.mxu1 }
 0x282   : > { %v2193_v20 = vadd.f32 %v2192_v55, %v2089_v2 }
 0x283   : > { %v2399_v39 = vadd.f32 %v2398_v10, %v2295_v29  ;;  %2130 = vmatmul.bf16.gmra.mxu2 %v9848_v35  ;;  %2333 = vmatmul.bf16.gmra.mxu0 %v9794_v28  ;;  %v8506_v28 = vld [vmem:[%s12987_s7 + $0x64] sm:$0xf] }
 0x284   : > { %v2495_v7 = vmax.f32 %v2193_v20, 0.0  ;;  %2437 = vmatmul.bf16.gmra.mxu1 %v9841_v43  ;;  %v7685_v43 = vld [vmem:[%s12987_s7 + $0x68] sm:$0xf0] }
 0x285   : > { %v2494_v24 = vmax.f32 %v2399_v39, 0.0  ;;  %v7688_v33 = vor.u32 %v8506_v28, %v7685_v43 }
 0x286   : > { %2234 = vmatmul.bf16.gmra.mxu3 %v9853_v59  ;;  %v10035_v34 = vpack.c.bf16 %v2495_v7, %v2493_v22  ;;  %v2091_v38 = vpop.f32.mrf.mxu2 }
 0x287   : > { %v2092_v48 = vadd.f32 %v2091_v38, %v10017_v23  ;;  %3014 = vmatpush.bf16.msrb.mxu0 %v7688_v33 }
 0x288   : > { %v2296_v14 = vpop.f32.mrf.mxu0 }
 0x289   : > { %v2195_v25 = vpop.f32.mrf.mxu3  ;;  %v2297_v4 = vadd.f32 %v2296_v14, %v10025_v63  ;;  %v2400_v46 = vpop.f32.mrf.mxu1 }
 0x28a   : > { %v2196_v60 = vadd.f32 %v2195_v25, %v2092_v48  ;;  %v8522_v48 = vld [vmem:[%s12987_s7 + $0xe4] sm:$0xf]  ;;  %v7749_v25 = vld [vmem:[%s12987_s7 + $0xe8] sm:$0xf0] }
 0x28b   : > { %v2401_v21 = vadd.f32 %v2400_v46, %v2297_v4  ;;  %v7752_v14 = vor.u32 %v8522_v48, %v7749_v25 }
 0x28c   : > { %v2497_v7 = vmax.f32 %v2196_v60, 0.0  ;;  %v7651_v60 = vld [vmem:[%s12987_s7 + $0x20] sm:$0xf] }
 0x28d   : > { %v2496_v62 = vmax.f32 %v2401_v21, 0.0  ;;  %3118 = vmatpush.bf16.msrb.mxu1 %v7752_v14 }
 0x28e   : > { %v2093_v12 = vpop.f32.mrf.mxu2 }
 0x28f   : > { %v10045_v2 = vpack.c.bf16 %v2496_v62, %v2494_v24  ;;  %v2094_v55 = vadd.f32 %v2093_v12, %v10017_v23  ;;  %v7715_v24 = vld [vmem:[%s12987_s7 + $0xa0] sm:$0xf] }
 0x290   : > { %v2299_v20 = vpop.f32.mrf.mxu0 }
 0x291   : > { %v2197_v13 = vpop.f32.mrf.mxu3  ;;  %v2300_v10 = vadd.f32 %v2299_v20, %v10025_v63  ;;  %v2403_v22 = vpop.f32.mrf.mxu1 }
 0x292   : > { %v2198_v29 = vadd.f32 %v2197_v13, %v2094_v55 }
 0x293   : > { %v2404_v38 = vadd.f32 %v2403_v22, %v2300_v10  ;;  %2135 = vmatmul.bf16.gmra.mxu2 %v9860_v17  ;;  %2338 = vmatmul.bf16.gmra.mxu0 %v9848_v35  ;;  %v8499_v35 = vld [vmem:[%s12987_s7 + $0x24] sm:$0xf0] }
 0x294   : > { %v2499_v39 = vmax.f32 %v2198_v29, 0.0  ;;  %2442 = vmatmul.bf16.gmra.mxu1 %v9853_v59  ;;  %v7652_v21 = vor.u32 %v8499_v35, %v7651_v60  ;;  %v8515_v59 = vld [vmem:[%s12987_s7 + $0xa4] sm:$0xf0] }
 0x295   : > { %v7716_v43 = vor.u32 %v8515_v59, %v7715_v24  ;;  %v2498_v29 = vmax.f32 %v2404_v38, 0.0 }
 0x296   : > { %2239 = vmatmul.bf16.gmra.mxu3 %v9877_v56  ;;  %v10065_v4 = vpack.c.bf16 %v2499_v39, %v2497_v7  ;;  %v2096_v46 = vpop.f32.mrf.mxu2  ;;  %2810 = vmatpush.bf16.msrb.mxu2 %v7652_v21 }
 0x297   : > { %v2097_v62 = vadd.f32 %v2096_v46, %v10017_v23  ;;  %2914 = vmatpush.bf16.msrb.mxu3 %v7716_v43 }
 0x298   : > { %v2301_v12 = vpop.f32.mrf.mxu0 }
 0x299   : > { %v2200_v28 = vpop.f32.mrf.mxu3  ;;  %v2302_v55 = vadd.f32 %v2301_v12, %v10025_v63  ;;  %v2405_v13 = vpop.f32.mrf.mxu1 }
 0x29a   : > { %v2201_v33 = vadd.f32 %v2200_v28, %v2097_v62 }
 0x29b   : > { %v2406_v20 = vadd.f32 %v2405_v13, %v2302_v55 }
 0x29c   : > { %v2501_v46 = vmax.f32 %v2201_v33, 0.0 }
 0x29d   : > { %v2500_v10 = vmax.f32 %v2406_v20, 0.0 }
 0x29e   : > { %v2098_v22 = vpop.f32.mrf.mxu2 }
 0x29f   : > { %v2099_v7 = vadd.f32 %v2098_v22, %v10017_v23  ;;  %v10076_v48 = vpack.c.bf16 %v2500_v10, %v2498_v29 }
 0x2a0   : > { %v2304_v25 = vpop.f32.mrf.mxu0 }
 0x2a1   : > { %v2202_v39 = vpop.f32.mrf.mxu3  ;;  %v2305_v60 = vadd.f32 %v2304_v25, %v10025_v63  ;;  %v2408_v35 = vpop.f32.mrf.mxu1 }
 0x2a2   : > { %v2203_v14 = vadd.f32 %v2202_v39, %v2099_v7 }
 0x2a3   : > { %v2409_v24 = vadd.f32 %v2408_v35, %v2305_v60  ;;  %2140 = vmatmul.bf16.gmra.mxu2 %v9884_v54  ;;  %2343 = vmatmul.bf16.gmra.mxu0 %v9860_v17 }
 0x2a4   : > { %v2503_v21 = vmax.f32 %v2203_v14, 0.0  ;;  %2447 = vmatmul.bf16.gmra.mxu1 %v9877_v56 }
 0x2a5   : > { %v2502_v20 = vmax.f32 %v2409_v24, 0.0  ;;  %v7677_v24 = vld [vmem:[%s12987_s7 + $0x58] sm:$0xf0] }
 0x2a6   : > { %2244 = vmatmul.bf16.gmra.mxu3 %v9889_v0  ;;  %v10083_v38 = vpack.c.bf16 %v2503_v21, %v2501_v46  ;;  %v2101_v59 = vpop.f32.mrf.mxu2  ;;  %v8504_v21 = vld [vmem:[%s12987_s7 + $0x54] sm:$0xf] }
 0x2a7   : > { %v2102_v62 = vadd.f32 %v2101_v59, %v10017_v23 }
 0x2a8   : > { %v2306_v43 = vpop.f32.mrf.mxu0 }
 0x2a9   : > { %v2205_v28 = vpop.f32.mrf.mxu3  ;;  %v2307_v33 = vadd.f32 %v2306_v43, %v10025_v63  ;;  %v2410_v55 = vpop.f32.mrf.mxu1 }
 0x2aa   : > { %v2206_v12 = vadd.f32 %v2205_v28, %v2102_v62  ;;  %v7680_v28 = vor.u32 %v8504_v21, %v7677_v24 }
 0x2ab   : > { %v2411_v13 = vadd.f32 %v2410_v55, %v2307_v33 }
 0x2ac   : > { %v2505_v60 = vmax.f32 %v2206_v12, 0.0  ;;  %3015 = vmatpush.bf16.msrb.mxu0 %v7680_v28 }
 0x2ad   : > { %v2504_v29 = vmax.f32 %v2411_v13, 0.0 }
 0x2ae   : > { %v2103_v10 = vpop.f32.mrf.mxu2 }
 0x2af   : > { %v2104_v17 = vadd.f32 %v2103_v10, %v10017_v23  ;;  %v10088_v7 = vpack.c.bf16 %v2504_v29, %v2502_v20 }
 0x2b0   : > { %v2309_v56 = vpop.f32.mrf.mxu0 }
 0x2b1   : > { %v2207_v22 = vpop.f32.mrf.mxu3  ;;  %v2310_v25 = vadd.f32 %v2309_v56, %v10025_v63  ;;  %v2413_v14 = vpop.f32.mrf.mxu1 }
 0x2b2   : > { %v2208_v39 = vadd.f32 %v2207_v22, %v2104_v17  ;;  %v7643_v17 = vld [vmem:[%s12987_s7 + $0x10] sm:$0xf]  ;;  %v8497_v22 = vld [vmem:[%s12987_s7 + $0x14] sm:$0xf0] }
 0x2b3   : > { %v2414_v46 = vadd.f32 %v2413_v14, %v2310_v25  ;;  %2145 = vmatmul.bf16.gmra.mxu2 %v9896_v36  ;;  %2348 = vmatmul.bf16.gmra.mxu0 %v9884_v54  ;;  %v8520_v54 = vld [vmem:[%s12987_s7 + $0xd4] sm:$0xf]  ;;  %v7644_v56 = vor.u32 %v8497_v22, %v7643_v17  ;;  %v7707_v14 = vld [vmem:[%s12987_s7 + $0x90] sm:$0xf] }
 0x2b4   : > { %v2507_v35 = vmax.f32 %v2208_v39, 0.0  ;;  %2452 = vmatmul.bf16.gmra.mxu1 %v9889_v0  ;;  %v7741_v0 = vld [vmem:[%s12987_s7 + $0xd8] sm:$0xf0] }
 0x2b5   : > { %v7744_v33 = vor.u32 %v8520_v54, %v7741_v0  ;;  %v2506_v39 = vmax.f32 %v2414_v46, 0.0  ;;  %2811 = vmatpush.bf16.msrb.mxu2 %v7644_v56 }
 0x2b6   : > { %2249 = vmatmul.bf16.gmra.mxu3 %v9901_v61  ;;  %v10101_v59 = vpack.c.bf16 %v2507_v35, %v2505_v60  ;;  %v2106_v62 = vpop.f32.mrf.mxu2  ;;  %v8513_v60 = vld [vmem:[%s12987_s7 + $0x94] sm:$0xf0] }
 0x2b7   : > { %v2107_v43 = vadd.f32 %v2106_v62, %v10017_v23  ;;  %3119 = vmatpush.bf16.msrb.mxu1 %v7744_v33  ;;  %v7708_v21 = vor.u32 %v8513_v60, %v7707_v14 }
 0x2b8   : > { %v2311_v55 = vpop.f32.mrf.mxu0 }
 0x2b9   : > { %v2210_v12 = vpop.f32.mrf.mxu3  ;;  %v2312_v20 = vadd.f32 %v2311_v55, %v10025_v63  ;;  %v2415_v29 = vpop.f32.mrf.mxu1  ;;  %2915 = vmatpush.bf16.msrb.mxu3 %v7708_v21 }
 0x2ba   : > { %v2211_v13 = vadd.f32 %v2210_v12, %v2107_v43 }
 0x2bb   : > { %v2416_v10 = vadd.f32 %v2415_v29, %v2312_v20 }
 0x2bc   : > { %v2509_v12 = vmax.f32 %v2211_v13, 0.0 }
 0x2bd   : > { %v2508_v25 = vmax.f32 %v2416_v10, 0.0 }
 0x2be   : > { %v2108_v35 = vpop.f32.mrf.mxu2 }
 0x2bf   : > { %v2109_v24 = vadd.f32 %v2108_v35, %v10017_v23  ;;  %v10124_v28 = vpack.c.bf16 %v2508_v25, %v2506_v39 }
 0x2c0   : > { %v2314_v54 = vpop.f32.mrf.mxu0 }
 0x2c1   : > { %v2212_v62 = vpop.f32.mrf.mxu3  ;;  %v2315_v0 = vadd.f32 %v2314_v54, %v10025_v63  ;;  %v2418_v43 = vpop.f32.mrf.mxu1 }
 0x2c2   : > { %v2213_v46 = vadd.f32 %v2212_v62, %v2109_v24 }
 0x2c3   : > { %v2419_v55 = vadd.f32 %v2418_v43, %v2315_v0  ;;  %2150 = vmatmul.bf16.gmra.mxu2 %v9920_v42  ;;  %2353 = vmatmul.bf16.gmra.mxu0 %v9896_v36 }
 0x2c4   : > { %v2511_v33 = vmax.f32 %v2213_v46, 0.0  ;;  %2457 = vmatmul.bf16.gmra.mxu1 %v9901_v61 }
 0x2c5   : > { %v2510_v14 = vmax.f32 %v2419_v55, 0.0 }
 0x2c6   : > { %2254 = vmatmul.bf16.gmra.mxu3 %v9925_v1  ;;  %v10131_v20 = vpack.c.bf16 %v2511_v33, %v2509_v12  ;;  %v2111_v29 = vpop.f32.mrf.mxu2 }
 0x2c7   : > { %v2112_v10 = vadd.f32 %v2111_v29, %v10017_v23 }
 0x2c8   : > { %v2316_v22 = vpop.f32.mrf.mxu0 }
 0x2c9   : > { %v2215_v17 = vpop.f32.mrf.mxu3  ;;  %v2317_v13 = vadd.f32 %v2316_v22, %v10025_v63  ;;  %v2420_v39 = vpop.f32.mrf.mxu1 }
 0x2ca   : > { %v2216_v56 = vadd.f32 %v2215_v17, %v2112_v10 }
 0x2cb   : > { %v2421_v25 = vadd.f32 %v2420_v39, %v2317_v13 }
 0x2cc   : > { %v2513_v0 = vmax.f32 %v2216_v56, 0.0 }
 0x2cd   : > { %v2512_v60 = vmax.f32 %v2421_v25, 0.0 }
 0x2ce   : > { %v2113_v35 = vpop.f32.mrf.mxu2 }
 0x2cf   : > { %v2114_v36 = vadd.f32 %v2113_v35, %v10017_v23  ;;  %v10136_v24 = vpack.c.bf16 %v2512_v60, %v2510_v14 }
 0x2d0   : > { %v2319_v61 = vpop.f32.mrf.mxu0 }
 0x2d1   : > { %v2217_v21 = vpop.f32.mrf.mxu3  ;;  %v2320_v54 = vadd.f32 %v2319_v61, %v10025_v63  ;;  %v2423_v46 = vpop.f32.mrf.mxu1  ;;  %v7635_v61 = vld [vmem:[%s12987_s7] sm:$0xf] }
 0x2d2   : > { %v2218_v62 = vadd.f32 %v2217_v21, %v2114_v36  ;;  %v8518_v36 = vld [vmem:[%s12987_s7 + $0xc4] sm:$0xf]  ;;  %v7733_v21 = vld [vmem:[%s12987_s7 + $0xc8] sm:$0xf0] }
 0x2d3   : > { %v2424_v12 = vadd.f32 %v2423_v46, %v2320_v54  ;;  %2155 = vmatmul.bf16.gmra.mxu2 %v9932_v52  ;;  %2358 = vmatmul.bf16.gmra.mxu0 %v9920_v42  ;;  %v8502_v42 = vld [vmem:[%s12987_s7 + $0x44] sm:$0xf]  ;;  %v7736_v46 = vor.u32 %v8518_v36, %v7733_v21 }
 0x2d4   : > { %v2515_v43 = vmax.f32 %v2218_v62, 0.0  ;;  %2462 = vmatmul.bf16.gmra.mxu1 %v9925_v1  ;;  %v7669_v1 = vld [vmem:[%s12987_s7 + $0x48] sm:$0xf0] }
 0x2d5   : > { %v2514_v25 = vmax.f32 %v2424_v12, 0.0  ;;  %v7672_v35 = vor.u32 %v8502_v42, %v7669_v1  ;;  %3120 = vmatpush.bf16.msrb.mxu1 %v7736_v46 }
 0x2d6   : > { %2259 = vmatmul.bf16.gmra.mxu3 %v9937_v37  ;;  %v10143_v33 = vpack.c.bf16 %v2515_v43, %v2513_v0  ;;  %v2116_v55 = vpop.f32.mrf.mxu2  ;;  %v8495_v0 = vld [vmem:[%s12987_s7 + $0x4] sm:$0xf0] }
 0x2d7   : > { %v2117_v29 = vadd.f32 %v2116_v55, %v10017_v23  ;;  %3016 = vmatpush.bf16.msrb.mxu0 %v7672_v35  ;;  %v7636_v55 = vor.u32 %v8495_v0, %v7635_v61 }
 0x2d8   : > { %v2321_v17 = vpop.f32.mrf.mxu0 }
 0x2d9   : > { %v2220_v10 = vpop.f32.mrf.mxu3  ;;  %v2322_v56 = vadd.f32 %v2321_v17, %v10025_v63  ;;  %v2425_v13 = vpop.f32.mrf.mxu1  ;;  %2812 = vmatpush.bf16.msrb.mxu2 %v7636_v55 }
 0x2da   : > { %v2221_v22 = vadd.f32 %v2220_v10, %v2117_v29 }
 0x2db   : > { %v2426_v39 = vadd.f32 %v2425_v13, %v2322_v56 }
 0x2dc   : > { %v2517_v56 = vmax.f32 %v2221_v22, 0.0 }
 0x2dd   : > { %v2516_v14 = vmax.f32 %v2426_v39, 0.0 }
 0x2de   : > { %v2118_v60 = vpop.f32.mrf.mxu2 }
 0x2df   : > { %v2119_v62 = vadd.f32 %v2118_v60, %v10017_v23  ;;  %v10166_v43 = vpack.c.bf16 %v2516_v14, %v2514_v25  ;;  %v7699_v25 = vld [vmem:[%s12987_s7 + $0x80] sm:$0xf]  ;;  %v8511_v14 = vld [vmem:[%s12987_s7 + $0x84] sm:$0xf0] }
 0x2e0   : > { %v2324_v12 = vpop.f32.mrf.mxu0  ;;  %v7700_v42 = vor.u32 %v8511_v14, %v7699_v25 }
 0x2e1   : > { %v2222_v54 = vpop.f32.mrf.mxu3  ;;  %v2325_v10 = vadd.f32 %v2324_v12, %v10025_v63  ;;  %v2428_v17 = vpop.f32.mrf.mxu1 }
 0x2e2   : > { %v2223_v29 = vadd.f32 %v2222_v54, %v2119_v62  ;;  %2916 = vmatpush.bf16.msrb.mxu3 %v7700_v42 }
 0x2e3   : > { %v2429_v39 = vadd.f32 %v2428_v17, %v2325_v10  ;;  %2160 = vmatmul.bf16.gmra.mxu2 %v9950_v9  ;;  %2363 = vmatmul.bf16.gmra.mxu0 %v9932_v52 }
 0x2e4   : > { %v2519_v13 = vmax.f32 %v2223_v29, 0.0  ;;  %2467 = vmatmul.bf16.gmra.mxu1 %v9937_v37 }
 0x2e5   : > { %v2518_v54 = vmax.f32 %v2429_v39, 0.0 }
 0x2e6   : > { %2264 = vmatmul.bf16.gmra.mxu3 %v9961_v32  ;;  %v10179_v22 = vpack.c.bf16 %v2519_v13, %v2517_v56  ;;  %v2121_v1 = vpop.f32.mrf.mxu2 }
 0x2e7   : > { %v2122_v60 = vadd.f32 %v2121_v1, %v10017_v23 }
 0x2e8   : > { %v2326_v35 = vpop.f32.mrf.mxu0 }
 0x2e9   : > { %v2225_v52 = vpop.f32.mrf.mxu3  ;;  %v2327_v21 = vadd.f32 %v2326_v35, %v10025_v63  ;;  %v2430_v61 = vpop.f32.mrf.mxu1 }
 0x2ea   : > { %v2226_v36 = vadd.f32 %v2225_v52, %v2122_v60 }
 0x2eb   : > { %v2431_v62 = vadd.f32 %v2430_v61, %v2327_v21 }
 0x2ec   : > { %v2521_v13 = vmax.f32 %v2226_v36, 0.0 }
 0x2ed   : > { %v2520_v46 = vmax.f32 %v2431_v62, 0.0 }
 0x2ee   : > { %v2123_v0 = vpop.f32.mrf.mxu2 }
 0x2ef   : > { %v2124_v12 = vadd.f32 %v2123_v0, %v10017_v23  ;;  %v10184_v55 = vpack.c.bf16 %v2520_v46, %v2518_v54 }
 0x2f0   : > { %v2329_v29 = vpop.f32.mrf.mxu0 }
 0x2f1   : > { %v2227_v37 = vpop.f32.mrf.mxu3  ;;  %v2330_v17 = vadd.f32 %v2329_v29, %v10025_v63  ;;  %v2433_v56 = vpop.f32.mrf.mxu1 }
 0x2f2   : > { %v2228_v10 = vadd.f32 %v2227_v37, %v2124_v12 }
 0x2f3   : > { %v2434_v14 = vadd.f32 %v2433_v56, %v2330_v17  ;;  %2165 = vmatmul.bf16.gmra.mxu2 %v9968_v15  ;;  %2368 = vmatmul.bf16.gmra.mxu0 %v9950_v9  ;;  %v8500_v17 = vld [vmem:[%s12987_s7 + $0x34] sm:$0xf]  ;;  %v7661_v56 = vld [vmem:[%s12987_s7 + $0x38] sm:$0xf0] }
 0x2f4   : > { %v2523_v25 = vmax.f32 %v2228_v10, 0.0  ;;  %2472 = vmatmul.bf16.gmra.mxu1 %v9961_v32 }
 0x2f5   : > { %v2522_v62 = vmax.f32 %v2434_v14, 0.0 }
 0x2f6   : > { %2269 = vmatmul.bf16.gmra.mxu3 %v9973_v16  ;;  %v10191_v39 = vpack.c.bf16 %v2523_v25, %v2521_v13  ;;  %v2126_v42 = vpop.f32.mrf.mxu2  ;;  %v8516_v13 = vld [vmem:[%s12987_s7 + $0xb4] sm:$0xf] }
 0x2f7   : > { %v2127_v1 = vadd.f32 %v2126_v42, %v10017_v23 }
 0x2f8   : > { %v2331_v52 = vpop.f32.mrf.mxu0 }
 0x2f9   : > { %v2230_v60 = vpop.f32.mrf.mxu3  ;;  %v2332_v36 = vadd.f32 %v2331_v52, %v10025_v63  ;;  %v2435_v21 = vpop.f32.mrf.mxu1 }
 0x2fa   : > { %v2231_v35 = vadd.f32 %v2230_v60, %v2127_v1  ;;  %v7664_v1 = vor.u32 %v8500_v17, %v7661_v56  ;;  %v7725_v60 = vld [vmem:[%s12987_s7 + $0xb8] sm:$0xf0] }
 0x2fb   : > { %v2436_v61 = vadd.f32 %v2435_v21, %v2332_v36  ;;  %v7728_v52 = vor.u32 %v8516_v13, %v7725_v60  ;;  %v8549_v36 = vld [vmem:[%s12990_s10 + $0x74] sm:$0xf0]  ;;  %v7645_v60 = vld [vmem:[%s12987_s7 + $0x18] sm:$0xf0] }
 0x2fc   : > { %v2525_v25 = vmax.f32 %v2231_v35, 0.0  ;;  %3017 = vmatpush.bf16.msrb.mxu0 %v7664_v1  ;;  %v7819_v35 = vld [vmem:[%s12990_s10 + $0x70] sm:$0xf]  ;;  %v8496_v1 = vld [vmem:[%s12987_s7 + $0x14] sm:$0xf] }
 0x2fd   : > { %v2524_v54 = vmax.f32 %v2436_v61, 0.0  ;;  %3121 = vmatpush.bf16.msrb.mxu1 %v7728_v52  ;;  %v7820_v61 = vor.u32 %v8549_v36, %v7819_v35  ;;  %v8512_v52 = vld [vmem:[%s12987_s7 + $0x94] sm:$0xf]  ;;  %v7648_v36 = vor.u32 %v8496_v1, %v7645_v60 }
 0x2fe   : > { %v2128_v46 = vpop.f32.mrf.mxu2 }
 0x2ff   : > { %v2129_v9 = vadd.f32 %v2128_v46, %v10017_v23  ;;  %v10196_v12 = vpack.c.bf16 %v2524_v54, %v2522_v62  ;;  %v7883_v62 = vld [vmem:[%s12990_s10 + $0xf0] sm:$0xf]  ;;  %v8498_v54 = vld [vmem:[%s12987_s7 + $0x24] sm:$0xf]  ;;  %3535 = vmatpush.bf16.msra.mxu2 %v7820_v61 }
 0x300   : > { %v2334_v32 = vpop.f32.mrf.mxu0 }
 0x301   : > { %v2232_v0 = vpop.f32.mrf.mxu3  ;;  %v2335_v29 = vadd.f32 %v2334_v32, %v10025_v63  ;;  %v2438_v10 = vpop.f32.mrf.mxu1  ;;  %v7653_v32 = vld [vmem:[%s12987_s7 + $0x28] sm:$0xf0] }
 0x302   : > { %v2233_v37 = vadd.f32 %v2232_v0, %v2129_v9  ;;  %v7656_v17 = vor.u32 %v8498_v54, %v7653_v32 }
 0x303   : > { %v2439_v42 = vadd.f32 %v2438_v10, %v2335_v29  ;;  %2170 = vmatmul.bf16.gmra.mxu2 %v9980_v27  ;;  %2373 = vmatmul.bf16.gmra.mxu0 %v9968_v15  ;;  %v7717_v29 = vld [vmem:[%s12987_s7 + $0xa8] sm:$0xf0] }
 0x304   : > { %v2527_v14 = vmax.f32 %v2233_v37, 0.0  ;;  %2477 = vmatmul.bf16.gmra.mxu1 %v9973_v16  ;;  %v8565_v16 = vld [vmem:[%s12990_s10 + $0xf4] sm:$0xf0]  ;;  %v8514_v37 = vld [vmem:[%s12987_s7 + $0xa4] sm:$0xf]  ;;  %3018 = vmatpush.bf16.msrb.mxu0 %v7656_v17 }
 0x305   : > { %v7884_v0 = vor.u32 %v8565_v16, %v7883_v62  ;;  %v7720_v56 = vor.u32 %v8514_v37, %v7717_v29  ;;  %v2526_v62 = vmax.f32 %v2439_v42, 0.0  ;;  %v7701_v29 = vld [vmem:[%s12987_s7 + $0x88] sm:$0xf0] }
 0x306   : > { %2274 = vmatmul.bf16.gmra.mxu3 %v10003_v53  ;;  %v10221_v15 = vpack.c.bf16 %v2527_v14, %v2525_v25  ;;  %v2131_v21 = vpop.f32.mrf.mxu2 }
 0x307   : > { %v2132_v46 = vadd.f32 %v2131_v21, %v10017_v23  ;;  %3639 = vmatpush.bf16.msra.mxu3 %v7884_v0  ;;  %3122 = vmatpush.bf16.msrb.mxu1 %v7720_v56  ;;  %v7709_v21 = vld [vmem:[%s12987_s7 + $0x98] sm:$0xf0]  ;;  %v8510_v0 = vld [vmem:[%s12987_s7 + $0x84] sm:$0xf] }
 0x308   : > { %v2336_v10 = vpop.f32.mrf.mxu0  ;;  %v7712_v61 = vor.u32 %v8512_v52, %v7709_v21  ;;  %3019 = vmatpush.bf16.msrb.mxu0 %v7648_v36  ;;  %v7704_v56 = vor.u32 %v8510_v0, %v7701_v29 }
 0x309   : > { %v2235_v9 = vpop.f32.mrf.mxu3  ;;  %v2337_v25 = vadd.f32 %v2336_v10, %v10025_v63  ;;  %v2440_v14 = vpop.f32.mrf.mxu1 }
 0x30a   : > { %v2236_v13 = vadd.f32 %v2235_v9, %v2132_v46  ;;  %v8494_v46 = vld [vmem:[%s12987_s7 + $0x4] sm:$0xf]  ;;  %v7637_v9 = vld [vmem:[%s12987_s7 + $0x8] sm:$0xf0] }
 0x30b   : > { %v2441_v35 = vadd.f32 %v2440_v14, %v2337_v25  ;;  %3123 = vmatpush.bf16.msrb.mxu1 %v7712_v61  ;;  %v7640_v42 = vor.u32 %v8494_v46, %v7637_v9 }
 0x30c   : > { %v2529_v60 = vmax.f32 %v2236_v13, 0.0 }
 0x30d   : > { %v2528_v16 = vmax.f32 %v2441_v35, 0.0  ;;  %3020 = vmatpush.bf16.msrb.mxu0 %v7640_v42 }
 0x30e   : > { %v2133_v54 = vpop.f32.mrf.mxu2 }
 0x30f   : > { %v2134_v32 = vadd.f32 %v2133_v54, %v10017_v23  ;;  %v10268_v10 = vpack.c.bf16 %v2528_v16, %v2526_v62  ;;  %3124 = vmatpush.bf16.msrb.mxu1 %v7704_v56 }
 0x310   : > { %v2339_v17 = vpop.f32.mrf.mxu0 }
 0x311   : > { %v2237_v37 = vpop.f32.mrf.mxu3  ;;  %v2340_v14 = vadd.f32 %v2339_v17, %v10025_v63  ;;  %v2443_v1 = vpop.f32.mrf.mxu1 }
 0x312   : > { %v2238_v25 = vadd.f32 %v2237_v37, %v2134_v32 }
 0x313   : > { %v2444_v35 = vadd.f32 %v2443_v1, %v2340_v14  ;;  %2175 = vmatmul.bf16.gmra.mxu2 %v10021_v47  ;;  %2378 = vmatmul.bf16.gmra.mxu0 %v9980_v27 }
 0x314   : > { %v2531_v52 = vmax.f32 %v2238_v25, 0.0  ;;  %2482 = vmatmul.bf16.gmra.mxu1 %v10003_v53 }
 0x315   : > { %v2530_v0 = vmax.f32 %v2444_v35, 0.0 }
 0x316   : > { %2279 = vmatmul.bf16.gmra.mxu3 %v10028_v3  ;;  %v10275_v36 = vpack.c.bf16 %v2531_v52, %v2529_v60  ;;  %v2136_v21 = vpop.f32.mrf.mxu2 }
 0x317   : > { %v2137_v61 = vadd.f32 %v2136_v21, %v10017_v23 }
 0x318   : > { %v2341_v16 = vpop.f32.mrf.mxu0 }
 0x319   : > { %v2240_v62 = vpop.f32.mrf.mxu3  ;;  %v2342_v13 = vadd.f32 %v2341_v16, %v10025_v63  ;;  %v2445_v46 = vpop.f32.mrf.mxu1 }
 0x31a   : > { %v2241_v54 = vadd.f32 %v2240_v62, %v2137_v61 }
 0x31b   : > { %v2446_v9 = vadd.f32 %v2445_v46, %v2342_v13 }
 0x31c   : > { %v2533_v14 = vmax.f32 %v2241_v54, 0.0 }
 0x31d   : > { %v2532_v32 = vmax.f32 %v2446_v9, 0.0 }
 0x31e   : > { %v2138_v37 = vpop.f32.mrf.mxu2 }
 0x31f   : > { %v2139_v27 = vadd.f32 %v2138_v37, %v10017_v23  ;;  %v10280_v29 = vpack.c.bf16 %v2532_v32, %v2530_v0  ;;  %v8547_v0 = vld [vmem:[%s12990_s10 + $0x64] sm:$0xf0] }
 0x320   : > { %v2344_v53 = vpop.f32.mrf.mxu0 }
 0x321   : > { %v2242_v42 = vpop.f32.mrf.mxu3  ;;  %v2345_v56 = vadd.f32 %v2344_v53, %v10025_v63  ;;  %v2448_v25 = vpop.f32.mrf.mxu1 }
 0x322   : > { %v2243_v17 = vadd.f32 %v2242_v42, %v2139_v27  ;;  %v7875_v27 = vld [vmem:[%s12990_s10 + $0xe0] sm:$0xf]  ;;  %v8563_v42 = vld [vmem:[%s12990_s10 + $0xe4] sm:$0xf0] }
 0x323   : > { %v2449_v60 = vadd.f32 %v2448_v25, %v2345_v56  ;;  %2383 = vmatmul.bf16.gmra.mxu0 %v10021_v47  ;;  %2813 = vmatmul.bf16.vlgmr.msrb.gmra.mxu2 %v10035_v34  ;;  %v7876_v56 = vor.u32 %v8563_v42, %v7875_v27 }
 0x324   : > { %v2535_v1 = vmax.f32 %v2243_v17, 0.0  ;;  %2487 = vmatmul.bf16.gmra.mxu1 %v10028_v3  ;;  %v7811_v3 = vld [vmem:[%s12990_s10 + $0x60] sm:$0xf] }
 0x325   : > { %v2534_v9 = vmax.f32 %v2449_v60, 0.0  ;;  %v7812_v37 = vor.u32 %v8547_v0, %v7811_v3  ;;  %3640 = vmatpush.bf16.msra.mxu3 %v7876_v56 }
 0x326   : > { %2917 = vmatmul.bf16.vlgmr.msrb.gmra.mxu3 %v10045_v2  ;;  %v10287_v52 = vpack.c.bf16 %v2535_v1, %v2533_v14  ;;  %v2141_v35 = vpop.f32.mrf.mxu2 }
 0x327   : > { %v2142_v21 = vadd.f32 %v2141_v35, %v10017_v23  ;;  %3536 = vmatpush.bf16.msra.mxu2 %v7812_v37 }
 0x328   : > { %v2346_v62 = vpop.f32.mrf.mxu0 }
 0x329   : > { %v2245_v61 = vpop.f32.mrf.mxu3  ;;  %v2347_v54 = vadd.f32 %v2346_v62, %v10025_v63  ;;  %v2450_v13 = vpop.f32.mrf.mxu1 }
 0x32a   : > { %v2246_v16 = vadd.f32 %v2245_v61, %v2142_v21 }
 0x32b   : > { %v2451_v46 = vadd.f32 %v2450_v13, %v2347_v54 }
 0x32c   : > { %v2537_v21 = vmax.f32 %v2246_v16, 0.0 }
 0x32d   : > { %v2536_v47 = vmax.f32 %v2451_v46, 0.0 }
 0x32e   : > { %v2143_v32 = vpop.f32.mrf.mxu2 }
 0x32f   : > { %v2144_v53 = vadd.f32 %v2143_v32, %v10017_v23  ;;  %v10304_v25 = vpack.c.bf16 %v2536_v47, %v2534_v9 }
 0x330   : > { %v2349_v14 = vpop.f32.mrf.mxu0 }
 0x331   : > { %v2247_v17 = vpop.f32.mrf.mxu3  ;;  %v2350_v60 = vadd.f32 %v2349_v14, %v10025_v63  ;;  %v2453_v35 = vpop.f32.mrf.mxu1 }
 0x332   : > { %v2248_v1 = vadd.f32 %v2247_v17, %v2144_v53 }
 0x333   : > { %v2454_v62 = vadd.f32 %v2453_v35, %v2350_v60  ;;  %2818 = vmatmul.bf16.gmra.mxu2 %v10065_v4  ;;  %3021 = vmatmul.bf16.vlgmr.msrb.gmra.mxu0 %v10035_v34 }
 0x334   : > { %v2539_v61 = vmax.f32 %v2248_v1, 0.0  ;;  %3125 = vmatmul.bf16.vlgmr.msrb.gmra.mxu1 %v10045_v2 }
 0x335   : > { %v2538_v37 = vmax.f32 %v2454_v62, 0.0 }
 0x336   : > { %2922 = vmatmul.bf16.gmra.mxu3 %v10076_v48  ;;  %v10311_v54 = vpack.c.bf16 %v2539_v61, %v2537_v21  ;;  %v2146_v13 = vpop.f32.mrf.mxu2 }
 0x337   : > { %v2147_v46 = vadd.f32 %v2146_v13, %v10017_v23 }
 0x338   : > { %v2351_v47 = vpop.f32.mrf.mxu0 }
 0x339   : > { %v2250_v9 = vpop.f32.mrf.mxu3  ;;  %v2352_v16 = vadd.f32 %v2351_v47, %v10025_v63  ;;  %v2455_v0 = vpop.f32.mrf.mxu1 }
 0x33a   : > { %v2251_v3 = vadd.f32 %v2250_v9, %v2147_v46 }
 0x33b   : > { %v2456_v32 = vadd.f32 %v2455_v0, %v2352_v16 }
 0x33c   : > { %v2541_v60 = vmax.f32 %v2251_v3, 0.0 }
 0x33d   : > { %v2540_v27 = vmax.f32 %v2456_v32, 0.0 }
 0x33e   : > { %v2148_v42 = vpop.f32.mrf.mxu2 }
 0x33f   : > { %v2149_v34 = vadd.f32 %v2148_v42, %v10017_v23  ;;  %v10316_v17 = vpack.c.bf16 %v2540_v27, %v2538_v37 }
 0x340   : > { %v2354_v2 = vpop.f32.mrf.mxu0 }
 0x341   : > { %v2252_v53 = vpop.f32.mrf.mxu3  ;;  %v2355_v14 = vadd.f32 %v2354_v2, %v10025_v63  ;;  %v2458_v1 = vpop.f32.mrf.mxu1 }
 0x342   : > { %v2253_v56 = vadd.f32 %v2252_v53, %v2149_v34 }
 0x343   : > { %v2459_v21 = vadd.f32 %v2458_v1, %v2355_v14  ;;  %2823 = vmatmul.bf16.gmra.mxu2 %v10083_v38  ;;  %3026 = vmatmul.bf16.gmra.mxu0 %v10065_v4 }
 0x344   : > { %v2543_v35 = vmax.f32 %v2253_v56, 0.0  ;;  %3130 = vmatmul.bf16.gmra.mxu1 %v10076_v48 }
 0x345   : > { %v2542_v32 = vmax.f32 %v2459_v21, 0.0  ;;  %v8545_v21 = vld [vmem:[%s12990_s10 + $0x54] sm:$0xf0] }
 0x346   : > { %2927 = vmatmul.bf16.gmra.mxu3 %v10088_v7  ;;  %v10323_v61 = vpack.c.bf16 %v2543_v35, %v2541_v60  ;;  %v2151_v62 = vpop.f32.mrf.mxu2  ;;  %v7803_v35 = vld [vmem:[%s12990_s10 + $0x50] sm:$0xf] }
 0x347   : > { %v2152_v13 = vadd.f32 %v2151_v62, %v10017_v23  ;;  %v7804_v62 = vor.u32 %v8545_v21, %v7803_v35 }
 0x348   : > { %v2356_v9 = vpop.f32.mrf.mxu0 }
 0x349   : > { %v2255_v46 = vpop.f32.mrf.mxu3  ;;  %v2357_v3 = vadd.f32 %v2356_v9, %v10025_v63  ;;  %v2460_v16 = vpop.f32.mrf.mxu1  ;;  %3537 = vmatpush.bf16.msra.mxu2 %v7804_v62 }
 0x34a   : > { %v2256_v47 = vadd.f32 %v2255_v46, %v2152_v13  ;;  %v7867_v13 = vld [vmem:[%s12990_s10 + $0xd0] sm:$0xf] }
 0x34b   : > { %v2461_v0 = vadd.f32 %v2460_v16, %v2357_v3 }
 0x34c   : > { %v2545_v14 = vmax.f32 %v2256_v47, 0.0 }
 0x34d   : > { %v2544_v37 = vmax.f32 %v2461_v0, 0.0 }
 0x34e   : > { %v2153_v27 = vpop.f32.mrf.mxu2 }
 0x34f   : > { %v2154_v4 = vadd.f32 %v2153_v27, %v10017_v23  ;;  %v10328_v34 = vpack.c.bf16 %v2544_v37, %v2542_v32 }
 0x350   : > { %v2359_v48 = vpop.f32.mrf.mxu0 }
 0x351   : > { %v2257_v42 = vpop.f32.mrf.mxu3  ;;  %v2360_v2 = vadd.f32 %v2359_v48, %v10025_v63  ;;  %v2463_v56 = vpop.f32.mrf.mxu1 }
 0x352   : > { %v2258_v53 = vadd.f32 %v2257_v42, %v2154_v4 }
 0x353   : > { %v2464_v60 = vadd.f32 %v2463_v56, %v2360_v2  ;;  %2828 = vmatmul.bf16.gmra.mxu2 %v10101_v59  ;;  %3031 = vmatmul.bf16.gmra.mxu0 %v10083_v38  ;;  %v8561_v38 = vld [vmem:[%s12990_s10 + $0xd4] sm:$0xf0] }
 0x354   : > { %v2547_v1 = vmax.f32 %v2258_v53, 0.0  ;;  %3135 = vmatmul.bf16.gmra.mxu1 %v10088_v7  ;;  %v7868_v47 = vor.u32 %v8561_v38, %v7867_v13 }
 0x355   : > { %v2546_v4 = vmax.f32 %v2464_v60, 0.0 }
 0x356   : > { %2932 = vmatmul.bf16.gmra.mxu3 %v10124_v28  ;;  %v10347_v46 = vpack.c.bf16 %v2547_v1, %v2545_v14  ;;  %v2156_v9 = vpop.f32.mrf.mxu2 }
 0x357   : > { %v2157_v3 = vadd.f32 %v2156_v9, %v10017_v23  ;;  %3641 = vmatpush.bf16.msra.mxu3 %v7868_v47 }
 0x358   : > { %v2361_v0 = vpop.f32.mrf.mxu0 }
 0x359   : > { %v2260_v16 = vpop.f32.mrf.mxu3  ;;  %v2362_v32 = vadd.f32 %v2361_v0, %v10025_v63  ;;  %v2465_v37 = vpop.f32.mrf.mxu1 }
 0x35a   : > { %v2261_v7 = vadd.f32 %v2260_v16, %v2157_v3 }
 0x35b   : > { %v2466_v27 = vadd.f32 %v2465_v37, %v2362_v32 }
 0x35c   : > { %v2549_v62 = vmax.f32 %v2261_v7, 0.0 }
 0x35d   : > { %v2548_v42 = vmax.f32 %v2466_v27, 0.0 }
 0x35e   : > { %v2158_v48 = vpop.f32.mrf.mxu2 }
 0x35f   : > { %v2159_v53 = vadd.f32 %v2158_v48, %v10017_v23  ;;  %v10352_v56 = vpack.c.bf16 %v2548_v42, %v2546_v4 }
 0x360   : > { %v2364_v14 = vpop.f32.mrf.mxu0 }
 0x361   : > { %v2262_v2 = vpop.f32.mrf.mxu3  ;;  %v2365_v35 = vadd.f32 %v2364_v14, %v10025_v63  ;;  %v2468_v21 = vpop.f32.mrf.mxu1 }
 0x362   : > { %v2263_v1 = vadd.f32 %v2262_v2, %v2159_v53 }
 0x363   : > { %v2469_v38 = vadd.f32 %v2468_v21, %v2365_v35  ;;  %2833 = vmatmul.bf16.gmra.mxu2 %v10131_v20  ;;  %3036 = vmatmul.bf16.gmra.mxu0 %v10101_v59 }
 0x364   : > { %v2551_v13 = vmax.f32 %v2263_v1, 0.0  ;;  %3140 = vmatmul.bf16.gmra.mxu1 %v10124_v28 }
 0x365   : > { %v2550_v27 = vmax.f32 %v2469_v38, 0.0  ;;  %v8543_v38 = vld [vmem:[%s12990_s10 + $0x44] sm:$0xf0] }
 0x366   : > { %2937 = vmatmul.bf16.gmra.mxu3 %v10136_v24  ;;  %v10359_v60 = vpack.c.bf16 %v2551_v13, %v2549_v62  ;;  %v2161_v9 = vpop.f32.mrf.mxu2  ;;  %v7795_v13 = vld [vmem:[%s12990_s10 + $0x40] sm:$0xf] }
 0x367   : > { %v2162_v47 = vadd.f32 %v2161_v9, %v10017_v23 }
 0x368   : > { %v2366_v16 = vpop.f32.mrf.mxu0 }
 0x369   : > { %v2265_v3 = vpop.f32.mrf.mxu3  ;;  %v2367_v7 = vadd.f32 %v2366_v16, %v10025_v63  ;;  %v2470_v32 = vpop.f32.mrf.mxu1 }
 0x36a   : > { %v2266_v0 = vadd.f32 %v2265_v3, %v2162_v47  ;;  %v7796_v3 = vor.u32 %v8543_v38, %v7795_v13 }
 0x36b   : > { %v2471_v37 = vadd.f32 %v2470_v32, %v2367_v7 }
 0x36c   : > { %v2553_v35 = vmax.f32 %v2266_v0, 0.0  ;;  %3538 = vmatpush.bf16.msra.mxu2 %v7796_v3 }
 0x36d   : > { %v2552_v4 = vmax.f32 %v2471_v37, 0.0 }
 0x36e   : > { %v2163_v42 = vpop.f32.mrf.mxu2 }
 0x36f   : > { %v2164_v59 = vadd.f32 %v2163_v42, %v10017_v23  ;;  %v10364_v53 = vpack.c.bf16 %v2552_v4, %v2550_v27  ;;  %v7859_v27 = vld [vmem:[%s12990_s10 + $0xc0] sm:$0xf]  ;;  %v8559_v4 = vld [vmem:[%s12990_s10 + $0xc4] sm:$0xf0] }
 0x370   : > { %v2369_v28 = vpop.f32.mrf.mxu0  ;;  %v7860_v42 = vor.u32 %v8559_v4, %v7859_v27 }
 0x371   : > { %v2267_v48 = vpop.f32.mrf.mxu3  ;;  %v2370_v14 = vadd.f32 %v2369_v28, %v10025_v63  ;;  %v2473_v1 = vpop.f32.mrf.mxu1 }
 0x372   : > { %v2268_v2 = vadd.f32 %v2267_v48, %v2164_v59  ;;  %3642 = vmatpush.bf16.msra.mxu3 %v7860_v42 }
 0x373   : > { %v2474_v62 = vadd.f32 %v2473_v1, %v2370_v14  ;;  %2838 = vmatmul.bf16.gmra.mxu2 %v10143_v33  ;;  %3041 = vmatmul.bf16.gmra.mxu0 %v10131_v20 }
 0x374   : > { %v2555_v21 = vmax.f32 %v2268_v2, 0.0  ;;  %3145 = vmatmul.bf16.gmra.mxu1 %v10136_v24 }
 0x375   : > { %v2554_v59 = vmax.f32 %v2474_v62, 0.0 }
 0x376   : > { %2942 = vmatmul.bf16.gmra.mxu3 %v10166_v43  ;;  %v10377_v9 = vpack.c.bf16 %v2555_v21, %v2553_v35  ;;  %v2166_v47 = vpop.f32.mrf.mxu2 }
 0x377   : > { %v2167_v16 = vadd.f32 %v2166_v47, %v10017_v23 }
 0x378   : > { %v2371_v20 = vpop.f32.mrf.mxu0 }
 0x379   : > { %v2270_v0 = vpop.f32.mrf.mxu3  ;;  %v2372_v24 = vadd.f32 %v2371_v20, %v10025_v63  ;;  %v2475_v32 = vpop.f32.mrf.mxu1 }
 0x37a   : > { %v2271_v7 = vadd.f32 %v2270_v0, %v2167_v16 }
 0x37b   : > { %v2476_v37 = vadd.f32 %v2475_v32, %v2372_v24 }
 0x37c   : > { %v2557_v47 = vmax.f32 %v2271_v7, 0.0 }
 0x37d   : > { %v2556_v48 = vmax.f32 %v2476_v37, 0.0 }
 0x37e   : > { %v2168_v28 = vpop.f32.mrf.mxu2 }
 0x37f   : > { %v2169_v2 = vadd.f32 %v2168_v28, %v10017_v23  ;;  %v10388_v1 = vpack.c.bf16 %v2556_v48, %v2554_v59 }
 0x380   : > { %v2374_v35 = vpop.f32.mrf.mxu0 }
 0x381   : > { %v2272_v14 = vpop.f32.mrf.mxu3  ;;  %v2375_v13 = vadd.f32 %v2374_v35, %v10025_v63  ;;  %v2478_v38 = vpop.f32.mrf.mxu1 }
 0x382   : > { %v2273_v21 = vadd.f32 %v2272_v14, %v2169_v2 }
 0x383   : > { %v2479_v16 = vadd.f32 %v2478_v38, %v2375_v13  ;;  %2843 = vmatmul.bf16.gmra.mxu2 %v10179_v22  ;;  %3046 = vmatmul.bf16.gmra.mxu0 %v10143_v33 }
 0x384   : > { %v2559_v3 = vmax.f32 %v2273_v21, 0.0  ;;  %3150 = vmatmul.bf16.gmra.mxu1 %v10166_v43 }
 0x385   : > { %v2558_v42 = vmax.f32 %v2479_v16, 0.0 }
 0x386   : > { %2947 = vmatmul.bf16.gmra.mxu3 %v10184_v55  ;;  %v10395_v62 = vpack.c.bf16 %v2559_v3, %v2557_v47  ;;  %v2171_v0 = vpop.f32.mrf.mxu2 }
 0x387   : > { %v2172_v20 = vadd.f32 %v2171_v0, %v10017_v23 }
 0x388   : > { %v2376_v32 = vpop.f32.mrf.mxu0 }
 0x389   : > { %v2275_v24 = vpop.f32.mrf.mxu3  ;;  %v2377_v7 = vadd.f32 %v2376_v32, %v10025_v63  ;;  %v2480_v27 = vpop.f32.mrf.mxu1 }
 0x38a   : > { %v2276_v37 = vadd.f32 %v2275_v24, %v2172_v20 }
 0x38b   : > { %v2481_v4 = vadd.f32 %v2480_v27, %v2377_v7 }
 0x38c   : > { %v2561_v13 = vmax.f32 %v2276_v37, 0.0 }
 0x38d   : > { %v2560_v59 = vmax.f32 %v2481_v4, 0.0 }
 0x38e   : > { %v2173_v48 = vpop.f32.mrf.mxu2 }
 0x38f   : > { %v2174_v33 = vadd.f32 %v2173_v48, %v10017_v23  ;;  %v10400_v2 = vpack.c.bf16 %v2560_v59, %v2558_v42 }
 0x390   : > { %v2379_v43 = vpop.f32.mrf.mxu0 }
 0x391   : > { %v2277_v28 = vpop.f32.mrf.mxu3  ;;  %v2380_v35 = vadd.f32 %v2379_v43, %v10025_v63  ;;  %v2483_v21 = vpop.f32.mrf.mxu1 }
 0x392   : > { %v2278_v14 = vadd.f32 %v2277_v28, %v2174_v33  ;;  %v2639_v33 = vld [vmem:[%s12988_s8] sm:$0x3] }
 0x393   : > { %v2484_v47 = vadd.f32 %v2483_v21, %v2380_v35  ;;  %2848 = vmatmul.bf16.gmra.mxu2 %v10191_v39  ;;  %3051 = vmatmul.bf16.gmra.mxu0 %v10179_v22  ;;  %v8548_v22 = vld [vmem:[%s12990_s10 + $0x74] sm:$0xf]  ;;  %v7885_v35 = vld [vmem:[%s12990_s10 + $0xf8] sm:$0xf0]  ;;  %v7787_v21 = vld [vmem:[%s12990_s10 + $0x30] sm:$0xf] }
 0x394   : > { %v2563_v38 = vmax.f32 %v2278_v14, 0.0  ;;  %3155 = vmatmul.bf16.gmra.mxu1 %v10184_v55  ;;  %v7821_v55 = vld [vmem:[%s12990_s10 + $0x78] sm:$0xf0]  ;;  %v8564_v14 = vld [vmem:[%s12990_s10 + $0xf4] sm:$0xf] }
 0x395   : > { %v7824_v4 = vor.u32 %v8548_v22, %v7821_v55  ;;  %v2562_v42 = vmax.f32 %v2484_v47, 0.0  ;;  %v7888_v47 = vor.u32 %v8564_v14, %v7885_v35 }
 0x396   : > { %2952 = vmatmul.bf16.gmra.mxu3 %v10196_v12  ;;  %v10407_v3 = vpack.c.bf16 %v2563_v38, %v2561_v13  ;;  %v2176_v16 = vpop.f32.mrf.mxu2 }
 0x397   : > { %v2177_v0 = vadd.f32 %v2176_v16, %v10017_v23  ;;  %3743 = vmatpush.bf16.msra.mxu0 %v7824_v4  ;;  %v7851_v16 = vld [vmem:[%s12990_s10 + $0xb0] sm:$0xf]  ;;  %3847 = vmatpush.bf16.msra.mxu1 %v7888_v47 }
 0x398   : > { %v2381_v24 = vpop.f32.mrf.mxu0 }
 0x399   : > { %v2280_v20 = vpop.f32.mrf.mxu3  ;;  %v2382_v37 = vadd.f32 %v2381_v24, %v10025_v63  ;;  %v2485_v7 = vpop.f32.mrf.mxu1 }
 0x39a   : > { %v2281_v32 = vadd.f32 %v2280_v20, %v2177_v0  ;;  %v8557_v0 = vld [vmem:[%s12990_s10 + $0xb4] sm:$0xf0] }
 0x39b   : > { %v2486_v27 = vadd.f32 %v2485_v7, %v2382_v37 }
 0x39c   : > { %v2565_v22 = vmax.f32 %v2281_v32, 0.0 }
 0x39d   : > { %v2564_v59 = vmax.f32 %v2486_v27, 0.0  ;;  %v7852_v27 = vor.u32 %v8557_v0, %v7851_v16 }
 0x39e   : > { %v2178_v48 = vpop.f32.mrf.mxu2 }
 0x39f   : > { %v2179_v28 = vadd.f32 %v2178_v48, %v10017_v23  ;;  %v10430_v13 = vpack.c.bf16 %v2564_v59, %v2562_v42  ;;  %v8541_v23 = vld [vmem:[%s12990_s10 + $0x34] sm:$0xf0]  ;;  %v10444_v42 = vperm.slane %v2639_v33, 0  ;;  %3643 = vmatpush.bf16.msra.mxu3 %v7852_v27 }
 0x3a0   : > { %v2384_v38 = vpop.f32.mrf.mxu0  ;;  %v7788_v7 = vor.u32 %v8541_v23, %v7787_v21  ;;  %v10452_v23 = vperm.slane %v2639_v33, 1 }
 0x3a1   : > { %v2282_v43 = vpop.f32.mrf.mxu3  ;;  %v2385_v24 = vadd.f32 %v2384_v38, %v10025_v63  ;;  %v2488_v37 = vpop.f32.mrf.mxu1 }
 0x3a2   : > { %v2283_v20 = vadd.f32 %v2282_v43, %v2179_v28  ;;  %3539 = vmatpush.bf16.msra.mxu2 %v7788_v7 }
 0x3a3   : > { %v2489_v4 = vadd.f32 %v2488_v37, %v2385_v24  ;;  %2853 = vmatmul.bf16.gmra.mxu2 %v10221_v15  ;;  %3056 = vmatmul.bf16.gmra.mxu0 %v10191_v39 }
 0x3a4   : > { %v2567_v55 = vmax.f32 %v2283_v20, 0.0  ;;  %3160 = vmatmul.bf16.gmra.mxu1 %v10196_v12 }
 0x3a5   : > { %v2566_v38 = vmax.f32 %v2489_v4, 0.0 }
 0x3a6   : > { %2957 = vmatmul.bf16.gmra.mxu3 %v10268_v10  ;;  %v10448_v59 = vpack.c.bf16 %v2567_v55, %v2565_v22  ;;  %v2814_v48 = vpop.f32.mrf.mxu2 }
 0x3a7   : > { %v2815_v28 = vadd.f32 %v2814_v48, %v10444_v42 }
 0x3a8   : > { %v2386_v43 = vpop.f32.mrf.mxu0 }
 0x3a9   : > { %v2918_v32 = vpop.f32.mrf.mxu3  ;;  %v2387_v35 = vadd.f32 %v2386_v43, %v10025_v63  ;;  %v2490_v21 = vpop.f32.mrf.mxu1 }
 0x3aa   : > { %v2919_v14 = vadd.f32 %v2918_v32, %v2815_v28 }
 0x3ab   : > { %v2491_v39 = vadd.f32 %v2490_v21, %v2387_v35 }
 0x3ac   : > { %v3221_v22 = vmax.f32 %v2919_v14, 0.0 }
 0x3ad   : > { %v2568_v47 = vmax.f32 %v2491_v39, 0.0 }
 0x3ae   : > { %v2816_v16 = vpop.f32.mrf.mxu2 }
 0x3af   : > { %v2817_v12 = vadd.f32 %v2816_v16, %v10444_v42  ;;  %v10455_v20 = vpack.c.bf16 %v2568_v47, %v2566_v38 }
 0x3b0   : > { %v3022_v24 = vpop.f32.mrf.mxu0 }
 0x3b1   : > { %v2920_v0 = vpop.f32.mrf.mxu3  ;;  %v3023_v7 = vadd.f32 %v3022_v24, %v10452_v23  ;;  %v3126_v27 = vpop.f32.mrf.mxu1 }
 0x3b2   : > { %v2921_v37 = vadd.f32 %v2920_v0, %v2817_v12 }
 0x3b3   : > { %v3127_v63 = vadd.f32 %v3126_v27, %v3023_v7  ;;  %2858 = vmatmul.bf16.gmra.mxu2 %v10275_v36  ;;  %3061 = vmatmul.bf16.gmra.mxu0 %v10221_v15  ;;  %v8546_v15 = vld [vmem:[%s12990_s10 + $0x64] sm:$0xf] }
 0x3b4   : > { %v3223_v55 = vmax.f32 %v2921_v37, 0.0  ;;  %3165 = vmatmul.bf16.gmra.mxu1 %v10268_v10  ;;  %v7813_v10 = vld [vmem:[%s12990_s10 + $0x68] sm:$0xf0] }
 0x3b5   : > { %v3222_v39 = vmax.f32 %v3127_v63, 0.0  ;;  %v7816_v16 = vor.u32 %v8546_v15, %v7813_v10 }
 0x3b6   : > { %2962 = vmatmul.bf16.gmra.mxu3 %v10280_v29  ;;  %v10462_v33 = vpack.c.bf16 %v3223_v55, %v3221_v22  ;;  %v2819_v4 = vpop.f32.mrf.mxu2 }
 0x3b7   : > { %v2820_v48 = vadd.f32 %v2819_v4, %v10444_v42  ;;  %3744 = vmatpush.bf16.msra.mxu0 %v7816_v16 }
 0x3b8   : > { %v3024_v32 = vpop.f32.mrf.mxu0 }
 0x3b9   : > { %v2923_v28 = vpop.f32.mrf.mxu3  ;;  %v3025_v14 = vadd.f32 %v3024_v32, %v10452_v23  ;;  %v3128_v35 = vpop.f32.mrf.mxu1 }
 0x3ba   : > { %v2924_v43 = vadd.f32 %v2923_v28, %v2820_v48  ;;  %v8562_v48 = vld [vmem:[%s12990_s10 + $0xe4] sm:$0xf]  ;;  %v7877_v28 = vld [vmem:[%s12990_s10 + $0xe8] sm:$0xf0] }
 0x3bb   : > { %v3129_v21 = vadd.f32 %v3128_v35, %v3025_v14  ;;  %v7880_v32 = vor.u32 %v8562_v48, %v7877_v28 }
 0x3bc   : > { %v3225_v55 = vmax.f32 %v2924_v43, 0.0  ;;  %v7779_v43 = vld [vmem:[%s12990_s10 + $0x20] sm:$0xf] }
 0x3bd   : > { %v3224_v38 = vmax.f32 %v3129_v21, 0.0  ;;  %3848 = vmatpush.bf16.msra.mxu1 %v7880_v32 }
 0x3be   : > { %v2821_v47 = vpop.f32.mrf.mxu2 }
 0x3bf   : > { %v10472_v12 = vpack.c.bf16 %v3224_v38, %v3222_v39  ;;  %v2822_v0 = vadd.f32 %v2821_v47, %v10444_v42  ;;  %v7843_v39 = vld [vmem:[%s12990_s10 + $0xa0] sm:$0xf] }
 0x3c0   : > { %v3027_v37 = vpop.f32.mrf.mxu0 }
 0x3c1   : > { %v2925_v24 = vpop.f32.mrf.mxu3  ;;  %v3028_v27 = vadd.f32 %v3027_v37, %v10452_v23  ;;  %v3131_v22 = vpop.f32.mrf.mxu1 }
 0x3c2   : > { %v2926_v7 = vadd.f32 %v2925_v24, %v2822_v0 }
 0x3c3   : > { %v3132_v4 = vadd.f32 %v3131_v22, %v3028_v27  ;;  %2863 = vmatmul.bf16.gmra.mxu2 %v10287_v52  ;;  %3066 = vmatmul.bf16.gmra.mxu0 %v10275_v36  ;;  %v8539_v36 = vld [vmem:[%s12990_s10 + $0x24] sm:$0xf0] }
 0x3c4   : > { %v3227_v63 = vmax.f32 %v2926_v7, 0.0  ;;  %3170 = vmatmul.bf16.gmra.mxu1 %v10280_v29  ;;  %v7780_v21 = vor.u32 %v8539_v36, %v7779_v43  ;;  %v8555_v29 = vld [vmem:[%s12990_s10 + $0xa4] sm:$0xf0] }
 0x3c5   : > { %v7844_v10 = vor.u32 %v8555_v29, %v7843_v39  ;;  %v3226_v7 = vmax.f32 %v3132_v4, 0.0 }
 0x3c6   : > { %2967 = vmatmul.bf16.gmra.mxu3 %v10304_v25  ;;  %v10492_v14 = vpack.c.bf16 %v3227_v63, %v3225_v55  ;;  %v2824_v35 = vpop.f32.mrf.mxu2  ;;  %3540 = vmatpush.bf16.msra.mxu2 %v7780_v21 }
 0x3c7   : > { %v2825_v38 = vadd.f32 %v2824_v35, %v10444_v42  ;;  %3644 = vmatpush.bf16.msra.mxu3 %v7844_v10 }
 0x3c8   : > { %v3029_v47 = vpop.f32.mrf.mxu0 }
 0x3c9   : > { %v2928_v15 = vpop.f32.mrf.mxu3  ;;  %v3030_v0 = vadd.f32 %v3029_v47, %v10452_v23  ;;  %v3133_v24 = vpop.f32.mrf.mxu1 }
 0x3ca   : > { %v2929_v16 = vadd.f32 %v2928_v15, %v2825_v38 }
 0x3cb   : > { %v3134_v37 = vadd.f32 %v3133_v24, %v3030_v0 }
 0x3cc   : > { %v3229_v35 = vmax.f32 %v2929_v16, 0.0 }
 0x3cd   : > { %v3228_v27 = vmax.f32 %v3134_v37, 0.0 }
 0x3ce   : > { %v2826_v22 = vpop.f32.mrf.mxu2 }
 0x3cf   : > { %v2827_v55 = vadd.f32 %v2826_v22, %v10444_v42  ;;  %v10503_v48 = vpack.c.bf16 %v3228_v27, %v3226_v7 }
 0x3d0   : > { %v3032_v28 = vpop.f32.mrf.mxu0 }
 0x3d1   : > { %v2930_v63 = vpop.f32.mrf.mxu3  ;;  %v3033_v43 = vadd.f32 %v3032_v28, %v10452_v23  ;;  %v3136_v36 = vpop.f32.mrf.mxu1 }
 0x3d2   : > { %v2931_v32 = vadd.f32 %v2930_v63, %v2827_v55 }
 0x3d3   : > { %v3137_v39 = vadd.f32 %v3136_v36, %v3033_v43  ;;  %2868 = vmatmul.bf16.gmra.mxu2 %v10311_v54  ;;  %3071 = vmatmul.bf16.gmra.mxu0 %v10287_v52 }
 0x3d4   : > { %v3231_v21 = vmax.f32 %v2931_v32, 0.0  ;;  %3175 = vmatmul.bf16.gmra.mxu1 %v10304_v25 }
 0x3d5   : > { %v3230_v37 = vmax.f32 %v3137_v39, 0.0  ;;  %v7805_v39 = vld [vmem:[%s12990_s10 + $0x58] sm:$0xf0] }
 0x3d6   : > { %2972 = vmatmul.bf16.gmra.mxu3 %v10316_v17  ;;  %v10510_v4 = vpack.c.bf16 %v3231_v21, %v3229_v35  ;;  %v2829_v29 = vpop.f32.mrf.mxu2  ;;  %v8544_v21 = vld [vmem:[%s12990_s10 + $0x54] sm:$0xf] }
 0x3d7   : > { %v2830_v38 = vadd.f32 %v2829_v29, %v10444_v42 }
 0x3d8   : > { %v3034_v10 = vpop.f32.mrf.mxu0 }
 0x3d9   : > { %v2933_v15 = vpop.f32.mrf.mxu3  ;;  %v3035_v16 = vadd.f32 %v3034_v10, %v10452_v23  ;;  %v3138_v0 = vpop.f32.mrf.mxu1 }
 0x3da   : > { %v2934_v47 = vadd.f32 %v2933_v15, %v2830_v38  ;;  %v7808_v15 = vor.u32 %v8544_v21, %v7805_v39 }
 0x3db   : > { %v3139_v24 = vadd.f32 %v3138_v0, %v3035_v16 }
 0x3dc   : > { %v3233_v43 = vmax.f32 %v2934_v47, 0.0  ;;  %3745 = vmatpush.bf16.msra.mxu0 %v7808_v15 }
 0x3dd   : > { %v3232_v7 = vmax.f32 %v3139_v24, 0.0 }
 0x3de   : > { %v2831_v27 = vpop.f32.mrf.mxu2 }
 0x3df   : > { %v2832_v52 = vadd.f32 %v2831_v27, %v10444_v42  ;;  %v10515_v55 = vpack.c.bf16 %v3232_v7, %v3230_v37 }
 0x3e0   : > { %v3037_v25 = vpop.f32.mrf.mxu0 }
 0x3e1   : > { %v2935_v22 = vpop.f32.mrf.mxu3  ;;  %v3038_v28 = vadd.f32 %v3037_v25, %v10452_v23  ;;  %v3141_v32 = vpop.f32.mrf.mxu1 }
 0x3e2   : > { %v2936_v63 = vadd.f32 %v2935_v22, %v2832_v52  ;;  %v7771_v52 = vld [vmem:[%s12990_s10 + $0x10] sm:$0xf]  ;;  %v8537_v22 = vld [vmem:[%s12990_s10 + $0x14] sm:$0xf0] }
 0x3e3   : > { %v3142_v35 = vadd.f32 %v3141_v32, %v3038_v28  ;;  %2873 = vmatmul.bf16.gmra.mxu2 %v10323_v61  ;;  %3076 = vmatmul.bf16.gmra.mxu0 %v10311_v54  ;;  %v8560_v54 = vld [vmem:[%s12990_s10 + $0xd4] sm:$0xf]  ;;  %v7772_v25 = vor.u32 %v8537_v22, %v7771_v52  ;;  %v7835_v32 = vld [vmem:[%s12990_s10 + $0x90] sm:$0xf] }
 0x3e4   : > { %v3235_v36 = vmax.f32 %v2936_v63, 0.0  ;;  %3180 = vmatmul.bf16.gmra.mxu1 %v10316_v17  ;;  %v7869_v17 = vld [vmem:[%s12990_s10 + $0xd8] sm:$0xf0] }
 0x3e5   : > { %v7872_v16 = vor.u32 %v8560_v54, %v7869_v17  ;;  %v3234_v63 = vmax.f32 %v3142_v35, 0.0  ;;  %3541 = vmatpush.bf16.msra.mxu2 %v7772_v25 }
 0x3e6   : > { %2977 = vmatmul.bf16.gmra.mxu3 %v10328_v34  ;;  %v10528_v29 = vpack.c.bf16 %v3235_v36, %v3233_v43  ;;  %v2834_v38 = vpop.f32.mrf.mxu2  ;;  %v8553_v43 = vld [vmem:[%s12990_s10 + $0x94] sm:$0xf0] }
 0x3e7   : > { %v2835_v10 = vadd.f32 %v2834_v38, %v10444_v42  ;;  %3849 = vmatpush.bf16.msra.mxu1 %v7872_v16  ;;  %v7836_v21 = vor.u32 %v8553_v43, %v7835_v32 }
 0x3e8   : > { %v3039_v0 = vpop.f32.mrf.mxu0 }
 0x3e9   : > { %v2938_v47 = vpop.f32.mrf.mxu3  ;;  %v3040_v37 = vadd.f32 %v3039_v0, %v10452_v23  ;;  %v3143_v7 = vpop.f32.mrf.mxu1  ;;  %3645 = vmatpush.bf16.msra.mxu3 %v7836_v21 }
 0x3ea   : > { %v2939_v24 = vadd.f32 %v2938_v47, %v2835_v10 }
 0x3eb   : > { %v3144_v27 = vadd.f32 %v3143_v7, %v3040_v37 }
 0x3ec   : > { %v3237_v47 = vmax.f32 %v2939_v24, 0.0 }
 0x3ed   : > { %v3236_v28 = vmax.f32 %v3144_v27, 0.0 }
 0x3ee   : > { %v2836_v36 = vpop.f32.mrf.mxu2 }
 0x3ef   : > { %v2837_v39 = vadd.f32 %v2836_v36, %v10444_v42  ;;  %v10551_v15 = vpack.c.bf16 %v3236_v28, %v3234_v63 }
 0x3f0   : > { %v3042_v54 = vpop.f32.mrf.mxu0 }
 0x3f1   : > { %v2940_v38 = vpop.f32.mrf.mxu3  ;;  %v3043_v17 = vadd.f32 %v3042_v54, %v10452_v23  ;;  %v3146_v10 = vpop.f32.mrf.mxu1 }
 0x3f2   : > { %v2941_v35 = vadd.f32 %v2940_v38, %v2837_v39 }
 0x3f3   : > { %v3147_v0 = vadd.f32 %v3146_v10, %v3043_v17  ;;  %2878 = vmatmul.bf16.gmra.mxu2 %v10347_v46  ;;  %3081 = vmatmul.bf16.gmra.mxu0 %v10323_v61 }
 0x3f4   : > { %v3239_v16 = vmax.f32 %v2941_v35, 0.0  ;;  %3185 = vmatmul.bf16.gmra.mxu1 %v10328_v34 }
 0x3f5   : > { %v3238_v32 = vmax.f32 %v3147_v0, 0.0 }
 0x3f6   : > { %2982 = vmatmul.bf16.gmra.mxu3 %v10352_v56  ;;  %v10558_v37 = vpack.c.bf16 %v3239_v16, %v3237_v47  ;;  %v2839_v7 = vpop.f32.mrf.mxu2 }
 0x3f7   : > { %v2840_v27 = vadd.f32 %v2839_v7, %v10444_v42 }
 0x3f8   : > { %v3044_v22 = vpop.f32.mrf.mxu0 }
 0x3f9   : > { %v2943_v52 = vpop.f32.mrf.mxu3  ;;  %v3045_v24 = vadd.f32 %v3044_v22, %v10452_v23  ;;  %v3148_v63 = vpop.f32.mrf.mxu1 }
 0x3fa   : > { %v2944_v25 = vadd.f32 %v2943_v52, %v2840_v27 }
 0x3fb   : > { %v3149_v28 = vadd.f32 %v3148_v63, %v3045_v24 }
 0x3fc   : > { %v3241_v17 = vmax.f32 %v2944_v25, 0.0 }
 0x3fd   : > { %v3240_v43 = vmax.f32 %v3149_v28, 0.0 }
 0x3fe   : > { %v2841_v36 = vpop.f32.mrf.mxu2 }
 0x3ff   : > { %v2842_v61 = vadd.f32 %v2841_v36, %v10444_v42  ;;  %v10563_v39 = vpack.c.bf16 %v3240_v43, %v3238_v32 }
 0x400   : > { %v3047_v34 = vpop.f32.mrf.mxu0 }
 0x401   : > { %v2945_v21 = vpop.f32.mrf.mxu3  ;;  %v3048_v54 = vadd.f32 %v3047_v34, %v10452_v23  ;;  %v3151_v35 = vpop.f32.mrf.mxu1  ;;  %v7763_v34 = vld [vmem:[%s12990_s10] sm:$0xf] }
 0x402   : > { %v2946_v38 = vadd.f32 %v2945_v21, %v2842_v61  ;;  %v8558_v61 = vld [vmem:[%s12990_s10 + $0xc4] sm:$0xf]  ;;  %v7861_v21 = vld [vmem:[%s12990_s10 + $0xc8] sm:$0xf0] }
 0x403   : > { %v3152_v47 = vadd.f32 %v3151_v35, %v3048_v54  ;;  %2883 = vmatmul.bf16.gmra.mxu2 %v10359_v60  ;;  %3086 = vmatmul.bf16.gmra.mxu0 %v10347_v46  ;;  %v8542_v46 = vld [vmem:[%s12990_s10 + $0x44] sm:$0xf]  ;;  %v7864_v35 = vor.u32 %v8558_v61, %v7861_v21 }
 0x404   : > { %v3243_v10 = vmax.f32 %v2946_v38, 0.0  ;;  %3190 = vmatmul.bf16.gmra.mxu1 %v10352_v56  ;;  %v7797_v56 = vld [vmem:[%s12990_s10 + $0x48] sm:$0xf0] }
 0x405   : > { %v3242_v28 = vmax.f32 %v3152_v47, 0.0  ;;  %v7800_v36 = vor.u32 %v8542_v46, %v7797_v56  ;;  %3850 = vmatpush.bf16.msra.mxu1 %v7864_v35 }
 0x406   : > { %2987 = vmatmul.bf16.gmra.mxu3 %v10364_v53  ;;  %v10570_v16 = vpack.c.bf16 %v3243_v10, %v3241_v17  ;;  %v2844_v0 = vpop.f32.mrf.mxu2  ;;  %v8535_v17 = vld [vmem:[%s12990_s10 + $0x4] sm:$0xf0] }
 0x407   : > { %v2845_v7 = vadd.f32 %v2844_v0, %v10444_v42  ;;  %3746 = vmatpush.bf16.msra.mxu0 %v7800_v36  ;;  %v7764_v0 = vor.u32 %v8535_v17, %v7763_v34 }
 0x408   : > { %v3049_v52 = vpop.f32.mrf.mxu0 }
 0x409   : > { %v2948_v27 = vpop.f32.mrf.mxu3  ;;  %v3050_v25 = vadd.f32 %v3049_v52, %v10452_v23  ;;  %v3153_v24 = vpop.f32.mrf.mxu1  ;;  %3542 = vmatpush.bf16.msra.mxu2 %v7764_v0 }
 0x40a   : > { %v2949_v22 = vadd.f32 %v2948_v27, %v2845_v7 }
 0x40b   : > { %v3154_v63 = vadd.f32 %v3153_v24, %v3050_v25 }
 0x40c   : > { %v3245_v25 = vmax.f32 %v2949_v22, 0.0 }
 0x40d   : > { %v3244_v32 = vmax.f32 %v3154_v63, 0.0 }
 0x40e   : > { %v2846_v43 = vpop.f32.mrf.mxu2 }
 0x40f   : > { %v2847_v38 = vadd.f32 %v2846_v43, %v10444_v42  ;;  %v10593_v10 = vpack.c.bf16 %v3244_v32, %v3242_v28  ;;  %v7827_v28 = vld [vmem:[%s12990_s10 + $0x80] sm:$0xf]  ;;  %v8551_v32 = vld [vmem:[%s12990_s10 + $0x84] sm:$0xf0] }
 0x410   : > { %v3052_v47 = vpop.f32.mrf.mxu0  ;;  %v7828_v46 = vor.u32 %v8551_v32, %v7827_v28 }
 0x411   : > { %v2950_v54 = vpop.f32.mrf.mxu3  ;;  %v3053_v27 = vadd.f32 %v3052_v47, %v10452_v23  ;;  %v3156_v52 = vpop.f32.mrf.mxu1 }
 0x412   : > { %v2951_v7 = vadd.f32 %v2950_v54, %v2847_v38  ;;  %3646 = vmatpush.bf16.msra.mxu3 %v7828_v46 }
 0x413   : > { %v3157_v63 = vadd.f32 %v3156_v52, %v3053_v27  ;;  %2888 = vmatmul.bf16.gmra.mxu2 %v10377_v9  ;;  %3091 = vmatmul.bf16.gmra.mxu0 %v10359_v60 }
 0x414   : > { %v3247_v24 = vmax.f32 %v2951_v7, 0.0  ;;  %3195 = vmatmul.bf16.gmra.mxu1 %v10364_v53 }
 0x415   : > { %v3246_v54 = vmax.f32 %v3157_v63, 0.0 }
 0x416   : > { %2992 = vmatmul.bf16.gmra.mxu3 %v10388_v1  ;;  %v10606_v22 = vpack.c.bf16 %v3247_v24, %v3245_v25  ;;  %v2849_v56 = vpop.f32.mrf.mxu2 }
 0x417   : > { %v2850_v43 = vadd.f32 %v2849_v56, %v10444_v42 }
 0x418   : > { %v3054_v36 = vpop.f32.mrf.mxu0 }
 0x419   : > { %v2953_v60 = vpop.f32.mrf.mxu3  ;;  %v3055_v21 = vadd.f32 %v3054_v36, %v10452_v23  ;;  %v3158_v34 = vpop.f32.mrf.mxu1 }
 0x41a   : > { %v2954_v61 = vadd.f32 %v2953_v60, %v2850_v43 }
 0x41b   : > { %v3159_v38 = vadd.f32 %v3158_v34, %v3055_v21 }
 0x41c   : > { %v3249_v24 = vmax.f32 %v2954_v61, 0.0 }
 0x41d   : > { %v3248_v35 = vmax.f32 %v3159_v38, 0.0 }
 0x41e   : > { %v2851_v17 = vpop.f32.mrf.mxu2 }
 0x41f   : > { %v2852_v47 = vadd.f32 %v2851_v17, %v10444_v42  ;;  %v10611_v0 = vpack.c.bf16 %v3248_v35, %v3246_v54 }
 0x420   : > { %v3057_v7 = vpop.f32.mrf.mxu0 }
 0x421   : > { %v2955_v53 = vpop.f32.mrf.mxu3  ;;  %v3058_v52 = vadd.f32 %v3057_v7, %v10452_v23  ;;  %v3161_v25 = vpop.f32.mrf.mxu1 }
 0x422   : > { %v2956_v27 = vadd.f32 %v2955_v53, %v2852_v47 }
 0x423   : > { %v3162_v32 = vadd.f32 %v3161_v25, %v3058_v52  ;;  %2893 = vmatmul.bf16.gmra.mxu2 %v10395_v62  ;;  %3096 = vmatmul.bf16.gmra.mxu0 %v10377_v9  ;;  %v8540_v52 = vld [vmem:[%s12990_s10 + $0x34] sm:$0xf]  ;;  %v7789_v25 = vld [vmem:[%s12990_s10 + $0x38] sm:$0xf0] }
 0x424   : > { %v3251_v28 = vmax.f32 %v2956_v27, 0.0  ;;  %3200 = vmatmul.bf16.gmra.mxu1 %v10388_v1 }
 0x425   : > { %v3250_v38 = vmax.f32 %v3162_v32, 0.0 }
 0x426   : > { %2997 = vmatmul.bf16.gmra.mxu3 %v10400_v2  ;;  %v10618_v63 = vpack.c.bf16 %v3251_v28, %v3249_v24  ;;  %v2854_v46 = vpop.f32.mrf.mxu2  ;;  %v8556_v24 = vld [vmem:[%s12990_s10 + $0xb4] sm:$0xf] }
 0x427   : > { %v2855_v56 = vadd.f32 %v2854_v46, %v10444_v42 }
 0x428   : > { %v3059_v60 = vpop.f32.mrf.mxu0 }
 0x429   : > { %v2958_v43 = vpop.f32.mrf.mxu3  ;;  %v3060_v61 = vadd.f32 %v3059_v60, %v10452_v23  ;;  %v3163_v21 = vpop.f32.mrf.mxu1 }
 0x42a   : > { %v2959_v36 = vadd.f32 %v2958_v43, %v2855_v56  ;;  %v7792_v56 = vor.u32 %v8540_v52, %v7789_v25  ;;  %v7853_v43 = vld [vmem:[%s12990_s10 + $0xb8] sm:$0xf0] }
 0x42b   : > { %v3164_v34 = vadd.f32 %v3163_v21, %v3060_v61  ;;  %v7856_v60 = vor.u32 %v8556_v24, %v7853_v43  ;;  %v8533_v61 = vld [vmem:[%s12989_s9 + $0x34] sm:$0xf0] }
 0x42c   : > { %v3253_v28 = vmax.f32 %v2959_v36, 0.0  ;;  %3747 = vmatpush.bf16.msra.mxu0 %v7792_v56  ;;  %v7915_v36 = vld [vmem:[%s12989_s9 + $0x30] sm:$0xf] }
 0x42d   : > { %v3252_v54 = vmax.f32 %v3164_v34, 0.0  ;;  %3851 = vmatpush.bf16.msra.mxu1 %v7856_v60  ;;  %v7916_v34 = vor.u32 %v8533_v61, %v7915_v36  ;;  %v8536_v60 = vld [vmem:[%s12990_s10 + $0x14] sm:$0xf]  ;;  %v7773_v36 = vld [vmem:[%s12990_s10 + $0x18] sm:$0xf0] }
 0x42e   : > { %v2856_v35 = vpop.f32.mrf.mxu2  ;;  %v8552_v61 = vld [vmem:[%s12990_s10 + $0x94] sm:$0xf] }
 0x42f   : > { %v2857_v9 = vadd.f32 %v2856_v35, %v10444_v42  ;;  %v10623_v47 = vpack.c.bf16 %v3252_v54, %v3250_v38  ;;  %v8532_v38 = vld [vmem:[%s12989_s9 + $0x34] sm:$0xf]  ;;  %v8538_v54 = vld [vmem:[%s12990_s10 + $0x24] sm:$0xf]  ;;  %v3990_v52 = vand.u32 %v7916_v34, %v9018_v8  ;;  %v7776_v34 = vor.u32 %v8536_v60, %v7773_v36 }
 0x430   : > { %v3062_v1 = vpop.f32.mrf.mxu0 }
 0x431   : > { %v2960_v17 = vpop.f32.mrf.mxu3  ;;  %v3063_v7 = vadd.f32 %v3062_v1, %v10452_v23  ;;  %v3166_v27 = vpop.f32.mrf.mxu1  ;;  %v7781_v1 = vld [vmem:[%s12990_s10 + $0x28] sm:$0xf0]  ;;  %3999 = vmatpush.bf16.msrb.mxu2 %v3990_v52 }
 0x432   : > { %v2961_v53 = vadd.f32 %v2960_v17, %v2857_v9  ;;  %v7784_v25 = vor.u32 %v8538_v54, %v7781_v1  ;;  %v8550_v1 = vld [vmem:[%s12990_s10 + $0x84] sm:$0xf] }
 0x433   : > { %v3167_v46 = vadd.f32 %v3166_v27, %v3063_v7  ;;  %2898 = vmatmul.bf16.gmra.mxu2 %v10407_v3  ;;  %3101 = vmatmul.bf16.gmra.mxu0 %v10395_v62  ;;  %v7845_v7 = vld [vmem:[%s12990_s10 + $0xa8] sm:$0xf0] }
 0x434   : > { %v3255_v32 = vmax.f32 %v2961_v53, 0.0  ;;  %3205 = vmatmul.bf16.gmra.mxu1 %v10400_v2  ;;  %v7917_v2 = vld [vmem:[%s12989_s9 + $0x38] sm:$0xf0]  ;;  %v8554_v53 = vld [vmem:[%s12990_s10 + $0xa4] sm:$0xf]  ;;  %3748 = vmatpush.bf16.msra.mxu0 %v7784_v25 }
 0x435   : > { %v7920_v17 = vor.u32 %v8532_v38, %v7917_v2  ;;  %v7848_v24 = vor.u32 %v8554_v53, %v7845_v7  ;;  %v3254_v2 = vmax.f32 %v3167_v46, 0.0 }
 0x436   : > { %3002 = vmatmul.bf16.gmra.mxu3 %v10430_v13  ;;  %v10648_v62 = vpack.c.bf16 %v3255_v32, %v3253_v28  ;;  %v2859_v21 = vpop.f32.mrf.mxu2 }
 0x437   : > { %v2860_v35 = vadd.f32 %v2859_v21, %v10444_v42  ;;  %v3993_v43 = vand.u32 %v7920_v17, %v9018_v8  ;;  %3852 = vmatpush.bf16.msra.mxu1 %v7848_v24  ;;  %v7837_v8 = vld [vmem:[%s12990_s10 + $0x98] sm:$0xf0]  ;;  %v7765_v17 = vld [vmem:[%s12990_s10 + $0x8] sm:$0xf0] }
 0x438   : > { %v3064_v27 = vpop.f32.mrf.mxu0  ;;  %v7840_v38 = vor.u32 %v8552_v61, %v7837_v8  ;;  %3749 = vmatpush.bf16.msra.mxu0 %v7776_v34 }
 0x439   : > { %v2963_v9 = vpop.f32.mrf.mxu3  ;;  %v3065_v32 = vadd.f32 %v3064_v27, %v10452_v23  ;;  %v3168_v56 = vpop.f32.mrf.mxu1  ;;  %4103 = vmatpush.bf16.msrb.mxu3 %v3993_v43  ;;  %v7829_v27 = vld [vmem:[%s12990_s10 + $0x88] sm:$0xf0] }
 0x43a   : > { %v2964_v28 = vadd.f32 %v2963_v9, %v2860_v35  ;;  %v8534_v9 = vld [vmem:[%s12990_s10 + $0x4] sm:$0xf]  ;;  %v7832_v43 = vor.u32 %v8550_v1, %v7829_v27 }
 0x43b   : > { %v3169_v21 = vadd.f32 %v3168_v56, %v3065_v32  ;;  %3853 = vmatpush.bf16.msra.mxu1 %v7840_v38  ;;  %v7768_v46 = vor.u32 %v8534_v9, %v7765_v17 }
 0x43c   : > { %v3257_v60 = vmax.f32 %v2964_v28, 0.0 }
 0x43d   : > { %v3256_v54 = vmax.f32 %v3169_v21, 0.0  ;;  %3750 = vmatpush.bf16.msra.mxu0 %v7768_v46 }
 0x43e   : > { %v2861_v35 = vpop.f32.mrf.mxu2 }
 0x43f   : > { %v2862_v53 = vadd.f32 %v2861_v35, %v10444_v42  ;;  %v10697_v52 = vpack.c.bf16 %v3256_v54, %v3254_v2  ;;  %3854 = vmatpush.bf16.msra.mxu1 %v7832_v43 }
 0x440   : > { %v3067_v25 = vpop.f32.mrf.mxu0 }
 0x441   : > { %v2965_v7 = vpop.f32.mrf.mxu3  ;;  %v3068_v32 = vadd.f32 %v3067_v25, %v10452_v23  ;;  %v3171_v56 = vpop.f32.mrf.mxu1 }
 0x442   : > { %v2966_v24 = vadd.f32 %v2965_v7, %v2862_v53 }
 0x443   : > { %v3172_v61 = vadd.f32 %v3171_v56, %v3068_v32  ;;  %2903 = vmatmul.bf16.gmra.mxu2 %v10448_v59  ;;  %3106 = vmatmul.bf16.gmra.mxu0 %v10407_v3 }
 0x444   : > { %v3259_v36 = vmax.f32 %v2966_v24, 0.0  ;;  %3210 = vmatmul.bf16.gmra.mxu1 %v10430_v13 }
 0x445   : > { %v3258_v17 = vmax.f32 %v3172_v61, 0.0 }
 0x446   : > { %3007 = vmatmul.bf16.gmra.mxu3 %v10455_v20  ;;  %v10704_v21 = vpack.c.bf16 %v3259_v36, %v3257_v60  ;;  %v2864_v34 = vpop.f32.mrf.mxu2 }
 0x447   : > { %v2865_v8 = vadd.f32 %v2864_v34, %v10444_v42 }
 0x448   : > { %v3069_v2 = vpop.f32.mrf.mxu0 }
 0x449   : > { %v2968_v38 = vpop.f32.mrf.mxu3  ;;  %v3070_v28 = vadd.f32 %v3069_v2, %v10452_v23  ;;  %v3173_v35 = vpop.f32.mrf.mxu1 }
 0x44a   : > { %v2969_v54 = vadd.f32 %v2968_v38, %v2865_v8 }
 0x44b   : > { %v3174_v9 = vadd.f32 %v3173_v35, %v3070_v28 }
 0x44c   : > { %v3261_v32 = vmax.f32 %v2969_v54, 0.0 }
 0x44d   : > { %v3260_v1 = vmax.f32 %v3174_v9, 0.0 }
 0x44e   : > { %v2866_v3 = vpop.f32.mrf.mxu2 }
 0x44f   : > { %v2867_v53 = vadd.f32 %v2866_v3, %v10444_v42  ;;  %v10709_v13 = vpack.c.bf16 %v3260_v1, %v3258_v17 }
 0x450   : > { %v3072_v46 = vpop.f32.mrf.mxu0 }
 0x451   : > { %v2970_v7 = vpop.f32.mrf.mxu3  ;;  %v3073_v25 = vadd.f32 %v3072_v46, %v10452_v23  ;;  %v3176_v24 = vpop.f32.mrf.mxu1 }
 0x452   : > { %v2971_v27 = vadd.f32 %v2970_v7, %v2867_v53 }
 0x453   : > { %v3177_v43 = vadd.f32 %v3176_v24, %v3073_v25  ;;  %3111 = vmatmul.bf16.gmra.mxu0 %v10448_v59  ;;  %3543 = vmatmul.bf16.vlgmr.msra.gmra.mxu2 %v10462_v33 }
 0x454   : > { %v3263_v56 = vmax.f32 %v2971_v27, 0.0  ;;  %3215 = vmatmul.bf16.gmra.mxu1 %v10455_v20 }
 0x455   : > { %v3262_v35 = vmax.f32 %v3177_v43, 0.0 }
 0x456   : > { %3647 = vmatmul.bf16.vlgmr.msra.gmra.mxu3 %v10472_v12  ;;  %v10716_v60 = vpack.c.bf16 %v3263_v56, %v3261_v32  ;;  %v2869_v36 = vpop.f32.mrf.mxu2 }
 0x457   : > { %v2870_v61 = vadd.f32 %v2869_v36, %v10444_v42 }
 0x458   : > { %v3074_v8 = vpop.f32.mrf.mxu0 }
 0x459   : > { %v2973_v34 = vpop.f32.mrf.mxu3  ;;  %v3075_v2 = vadd.f32 %v3074_v8, %v10452_v23  ;;  %v3178_v54 = vpop.f32.mrf.mxu1 }
 0x45a   : > { %v2974_v38 = vadd.f32 %v2973_v34, %v2870_v61 }
 0x45b   : > { %v3179_v28 = vadd.f32 %v3178_v54, %v3075_v2 }
 0x45c   : > { %v3265_v27 = vmax.f32 %v2974_v38, 0.0 }
 0x45d   : > { %v3264_v59 = vmax.f32 %v3179_v28, 0.0 }
 0x45e   : > { %v2871_v9 = vpop.f32.mrf.mxu2 }
 0x45f   : > { %v2872_v17 = vadd.f32 %v2871_v9, %v10444_v42  ;;  %v10721_v1 = vpack.c.bf16 %v3264_v59, %v3262_v35 }
 0x460   : > { %v3077_v3 = vpop.f32.mrf.mxu0 }
 0x461   : > { %v2975_v20 = vpop.f32.mrf.mxu3  ;;  %v3078_v7 = vadd.f32 %v3077_v3, %v10452_v23  ;;  %v3181_v46 = vpop.f32.mrf.mxu1 }
 0x462   : > { %v2976_v53 = vadd.f32 %v2975_v20, %v2872_v17 }
 0x463   : > { %v3182_v24 = vadd.f32 %v3181_v46, %v3078_v7  ;;  %3548 = vmatmul.bf16.gmra.mxu2 %v10492_v14  ;;  %3751 = vmatmul.bf16.vlgmr.msra.gmra.mxu0 %v10462_v33 }
 0x464   : > { %v3267_v25 = vmax.f32 %v2976_v53, 0.0  ;;  %3855 = vmatmul.bf16.vlgmr.msra.gmra.mxu1 %v10472_v12 }
 0x465   : > { %v3266_v54 = vmax.f32 %v3182_v24, 0.0 }
 0x466   : > { %3652 = vmatmul.bf16.gmra.mxu3 %v10503_v48  ;;  %v10728_v32 = vpack.c.bf16 %v3267_v25, %v3265_v27  ;;  %v2874_v56 = vpop.f32.mrf.mxu2 }
 0x467   : > { %v2875_v43 = vadd.f32 %v2874_v56, %v10444_v42 }
 0x468   : > { %v3079_v61 = vpop.f32.mrf.mxu0 }
 0x469   : > { %v2978_v36 = vpop.f32.mrf.mxu3  ;;  %v3080_v8 = vadd.f32 %v3079_v61, %v10452_v23  ;;  %v3183_v38 = vpop.f32.mrf.mxu1 }
 0x46a   : > { %v2979_v34 = vadd.f32 %v2978_v36, %v2875_v43 }
 0x46b   : > { %v3184_v2 = vadd.f32 %v3183_v38, %v3080_v8 }
 0x46c   : > { %v3269_v53 = vmax.f32 %v2979_v34, 0.0 }
 0x46d   : > { %v3268_v28 = vmax.f32 %v3184_v2, 0.0 }
 0x46e   : > { %v2876_v35 = vpop.f32.mrf.mxu2 }
 0x46f   : > { %v2877_v33 = vadd.f32 %v2876_v35, %v10444_v42  ;;  %v10733_v9 = vpack.c.bf16 %v3268_v28, %v3266_v54 }
 0x470   : > { %v3082_v12 = vpop.f32.mrf.mxu0 }
 0x471   : > { %v2980_v59 = vpop.f32.mrf.mxu3  ;;  %v3083_v20 = vadd.f32 %v3082_v12, %v10452_v23  ;;  %v3186_v3 = vpop.f32.mrf.mxu1 }
 0x472   : > { %v2981_v17 = vadd.f32 %v2980_v59, %v2877_v33 }
 0x473   : > { %v3187_v46 = vadd.f32 %v3186_v3, %v3083_v20  ;;  %3553 = vmatmul.bf16.gmra.mxu2 %v10510_v4  ;;  %3756 = vmatmul.bf16.gmra.mxu0 %v10492_v14 }
 0x474   : > { %v3271_v7 = vmax.f32 %v2981_v17, 0.0  ;;  %3860 = vmatmul.bf16.gmra.mxu1 %v10503_v48 }
 0x475   : > { %v3270_v38 = vmax.f32 %v3187_v46, 0.0 }
 0x476   : > { %3657 = vmatmul.bf16.gmra.mxu3 %v10515_v55  ;;  %v10740_v27 = vpack.c.bf16 %v3271_v7, %v3269_v53  ;;  %v2879_v25 = vpop.f32.mrf.mxu2  ;;  %v7907_v53 = vld [vmem:[%s12989_s9 + $0x20] sm:$0xf]  ;;  %v8531_v7 = vld [vmem:[%s12989_s9 + $0x24] sm:$0xf0] }
 0x477   : > { %v2880_v24 = vadd.f32 %v2879_v25, %v10444_v42  ;;  %v7908_v46 = vor.u32 %v8531_v7, %v7907_v53  ;;  %v8530_v25 = vld [vmem:[%s12989_s9 + $0x24] sm:$0xf] }
 0x478   : > { %v3084_v43 = vpop.f32.mrf.mxu0 }
 0x479   : > { %v2983_v56 = vpop.f32.mrf.mxu3  ;;  %v3085_v61 = vadd.f32 %v3084_v43, %v10452_v23  ;;  %v3188_v34 = vpop.f32.mrf.mxu1  ;;  %4000 = vmatpush.bf16.msrb.mxu2 %v7908_v46 }
 0x47a   : > { %v2984_v36 = vadd.f32 %v2983_v56, %v2880_v24 }
 0x47b   : > { %v3189_v8 = vadd.f32 %v3188_v34, %v3085_v61 }
 0x47c   : > { %v3273_v17 = vmax.f32 %v2984_v36, 0.0 }
 0x47d   : > { %v3272_v2 = vmax.f32 %v3189_v8, 0.0 }
 0x47e   : > { %v2881_v54 = vpop.f32.mrf.mxu2 }
 0x47f   : > { %v2882_v14 = vadd.f32 %v2881_v54, %v10444_v42  ;;  %v10745_v35 = vpack.c.bf16 %v3272_v2, %v3270_v38 }
 0x480   : > { %v3087_v48 = vpop.f32.mrf.mxu0 }
 0x481   : > { %v2985_v28 = vpop.f32.mrf.mxu3  ;;  %v3088_v59 = vadd.f32 %v3087_v48, %v10452_v23  ;;  %v3191_v12 = vpop.f32.mrf.mxu1 }
 0x482   : > { %v2986_v33 = vadd.f32 %v2985_v28, %v2882_v14 }
 0x483   : > { %v3192_v3 = vadd.f32 %v3191_v12, %v3088_v59  ;;  %3558 = vmatmul.bf16.gmra.mxu2 %v10528_v29  ;;  %3761 = vmatmul.bf16.gmra.mxu0 %v10510_v4  ;;  %v7909_v4 = vld [vmem:[%s12989_s9 + $0x28] sm:$0xf0] }
 0x484   : > { %v3275_v20 = vmax.f32 %v2986_v33, 0.0  ;;  %3865 = vmatmul.bf16.gmra.mxu1 %v10515_v55  ;;  %v7912_v43 = vor.u32 %v8530_v25, %v7909_v4 }
 0x485   : > { %v3274_v54 = vmax.f32 %v3192_v3, 0.0 }
 0x486   : > { %3662 = vmatmul.bf16.gmra.mxu3 %v10551_v15  ;;  %v10764_v24 = vpack.c.bf16 %v3275_v20, %v3273_v17  ;;  %v2884_v56 = vpop.f32.mrf.mxu2 }
 0x487   : > { %v2885_v36 = vadd.f32 %v2884_v56, %v10444_v42  ;;  %4104 = vmatpush.bf16.msrb.mxu3 %v7912_v43 }
 0x488   : > { %v3089_v34 = vpop.f32.mrf.mxu0 }
 0x489   : > { %v2988_v61 = vpop.f32.mrf.mxu3  ;;  %v3090_v8 = vadd.f32 %v3089_v34, %v10452_v23  ;;  %v3193_v38 = vpop.f32.mrf.mxu1 }
 0x48a   : > { %v2989_v55 = vadd.f32 %v2988_v61, %v2885_v36 }
 0x48b   : > { %v3194_v2 = vadd.f32 %v3193_v38, %v3090_v8 }
 0x48c   : > { %v3277_v7 = vmax.f32 %v2989_v55, 0.0 }
 0x48d   : > { %v3276_v14 = vmax.f32 %v3194_v2, 0.0 }
 0x48e   : > { %v2886_v28 = vpop.f32.mrf.mxu2 }
 0x48f   : > { %v2887_v48 = vadd.f32 %v2886_v28, %v10444_v42  ;;  %v10769_v59 = vpack.c.bf16 %v3276_v14, %v3274_v54 }
 0x490   : > { %v3092_v12 = vpop.f32.mrf.mxu0 }
 0x491   : > { %v2990_v33 = vpop.f32.mrf.mxu3  ;;  %v3093_v20 = vadd.f32 %v3092_v12, %v10452_v23  ;;  %v3196_v53 = vpop.f32.mrf.mxu1 }
 0x492   : > { %v2991_v17 = vadd.f32 %v2990_v33, %v2887_v48 }
 0x493   : > { %v3197_v25 = vadd.f32 %v3196_v53, %v3093_v20  ;;  %3563 = vmatmul.bf16.gmra.mxu2 %v10558_v37  ;;  %3766 = vmatmul.bf16.gmra.mxu0 %v10528_v29 }
 0x494   : > { %v3279_v46 = vmax.f32 %v2991_v17, 0.0  ;;  %3870 = vmatmul.bf16.gmra.mxu1 %v10551_v15 }
 0x495   : > { %v3278_v38 = vmax.f32 %v3197_v25, 0.0 }
 0x496   : > { %3667 = vmatmul.bf16.gmra.mxu3 %v10563_v39  ;;  %v10776_v3 = vpack.c.bf16 %v3279_v46, %v3277_v7  ;;  %v2889_v4 = vpop.f32.mrf.mxu2 }
 0x497   : > { %v2890_v56 = vadd.f32 %v2889_v4, %v10444_v42 }
 0x498   : > { %v3094_v36 = vpop.f32.mrf.mxu0 }
 0x499   : > { %v2993_v43 = vpop.f32.mrf.mxu3  ;;  %v3095_v34 = vadd.f32 %v3094_v36, %v10452_v23  ;;  %v3198_v55 = vpop.f32.mrf.mxu1 }
 0x49a   : > { %v2994_v61 = vadd.f32 %v2993_v43, %v2890_v56 }
 0x49b   : > { %v3199_v8 = vadd.f32 %v3198_v55, %v3095_v34 }
 0x49c   : > { %v3281_v17 = vmax.f32 %v2994_v61, 0.0 }
 0x49d   : > { %v3280_v2 = vmax.f32 %v3199_v8, 0.0 }
 0x49e   : > { %v2891_v54 = vpop.f32.mrf.mxu2 }
 0x49f   : > { %v2892_v29 = vadd.f32 %v2891_v54, %v10444_v42  ;;  %v10781_v28 = vpack.c.bf16 %v3280_v2, %v3278_v38 }
 0x4a0   : > { %v3097_v15 = vpop.f32.mrf.mxu0 }
 0x4a1   : > { %v2995_v14 = vpop.f32.mrf.mxu3  ;;  %v3098_v33 = vadd.f32 %v3097_v15, %v10452_v23  ;;  %v3201_v12 = vpop.f32.mrf.mxu1 }
 0x4a2   : > { %v2996_v48 = vadd.f32 %v2995_v14, %v2892_v29 }
 0x4a3   : > { %v3202_v53 = vadd.f32 %v3201_v12, %v3098_v33  ;;  %3568 = vmatmul.bf16.gmra.mxu2 %v10570_v16  ;;  %3771 = vmatmul.bf16.gmra.mxu0 %v10558_v37 }
 0x4a4   : > { %v3283_v20 = vmax.f32 %v2996_v48, 0.0  ;;  %3875 = vmatmul.bf16.gmra.mxu1 %v10563_v39 }
 0x4a5   : > { %v3282_v55 = vmax.f32 %v3202_v53, 0.0 }
 0x4a6   : > { %3672 = vmatmul.bf16.gmra.mxu3 %v10593_v10  ;;  %v10788_v7 = vpack.c.bf16 %v3283_v20, %v3281_v17  ;;  %v2894_v46 = vpop.f32.mrf.mxu2 }
 0x4a7   : > { %v2895_v25 = vadd.f32 %v2894_v46, %v10444_v42 }
 0x4a8   : > { %v3099_v56 = vpop.f32.mrf.mxu0 }
 0x4a9   : > { %v2998_v4 = vpop.f32.mrf.mxu3  ;;  %v3100_v36 = vadd.f32 %v3099_v56, %v10452_v23  ;;  %v3203_v61 = vpop.f32.mrf.mxu1 }
 0x4aa   : > { %v2999_v43 = vadd.f32 %v2998_v4, %v2895_v25 }
 0x4ab   : > { %v3204_v34 = vadd.f32 %v3203_v61, %v3100_v36 }
 0x4ac   : > { %v3285_v48 = vmax.f32 %v2999_v43, 0.0 }
 0x4ad   : > { %v3284_v8 = vmax.f32 %v3204_v34, 0.0 }
 0x4ae   : > { %v2896_v38 = vpop.f32.mrf.mxu2 }
 0x4af   : > { %v2897_v37 = vadd.f32 %v2896_v38, %v10444_v42  ;;  %v10793_v54 = vpack.c.bf16 %v3284_v8, %v3282_v55 }
 0x4b0   : > { %v3102_v39 = vpop.f32.mrf.mxu0 }
 0x4b1   : > { %v3000_v2 = vpop.f32.mrf.mxu3  ;;  %v3103_v14 = vadd.f32 %v3102_v39, %v10452_v23  ;;  %v3206_v15 = vpop.f32.mrf.mxu1 }
 0x4b2   : > { %v3001_v29 = vadd.f32 %v3000_v2, %v2897_v37 }
 0x4b3   : > { %v3207_v12 = vadd.f32 %v3206_v15, %v3103_v14  ;;  %3573 = vmatmul.bf16.gmra.mxu2 %v10606_v22  ;;  %3776 = vmatmul.bf16.gmra.mxu0 %v10570_v16 }
 0x4b4   : > { %v3287_v33 = vmax.f32 %v3001_v29, 0.0  ;;  %3880 = vmatmul.bf16.gmra.mxu1 %v10593_v10 }
 0x4b5   : > { %v3286_v61 = vmax.f32 %v3207_v12, 0.0 }
 0x4b6   : > { %3677 = vmatmul.bf16.gmra.mxu3 %v10611_v0  ;;  %v10800_v17 = vpack.c.bf16 %v3287_v33, %v3285_v48  ;;  %v2899_v20 = vpop.f32.mrf.mxu2 }
 0x4b7   : > { %v2900_v53 = vadd.f32 %v2899_v20, %v10444_v42 }
 0x4b8   : > { %v3104_v25 = vpop.f32.mrf.mxu0 }
 0x4b9   : > { %v3003_v46 = vpop.f32.mrf.mxu3  ;;  %v3105_v56 = vadd.f32 %v3104_v25, %v10452_v23  ;;  %v3208_v43 = vpop.f32.mrf.mxu1  ;;  %v8581_v25 = vld [vmem:[%s12992_s12 + $0x74] sm:$0xf0] }
 0x4ba   : > { %v3004_v4 = vadd.f32 %v3003_v46, %v2900_v53  ;;  %v8017_v46 = vld [vmem:[%s12992_s12 + $0x70] sm:$0xf] }
 0x4bb   : > { %v3209_v36 = vadd.f32 %v3208_v43, %v3105_v56  ;;  %v8081_v43 = vld [vmem:[%s12992_s12 + $0xf0] sm:$0xf] }
 0x4bc   : > { %v3289_v29 = vmax.f32 %v3004_v4, 0.0 }
 0x4bd   : > { %v3288_v34 = vmax.f32 %v3209_v36, 0.0  ;;  %v8597_v36 = vld [vmem:[%s12992_s12 + $0xf4] sm:$0xf0] }
 0x4be   : > { %v2901_v55 = vpop.f32.mrf.mxu2 }
 0x4bf   : > { %v2902_v16 = vadd.f32 %v2901_v55, %v10444_v42  ;;  %v10805_v38 = vpack.c.bf16 %v3288_v34, %v3286_v61  ;;  %v7899_v61 = vld [vmem:[%s12989_s9 + $0x10] sm:$0xf]  ;;  %v8082_v55 = vor.u32 %v8597_v36, %v8081_v43 }
 0x4c0   : > { %v3107_v10 = vpop.f32.mrf.mxu0 }
 0x4c1   : > { %v3005_v8 = vpop.f32.mrf.mxu3  ;;  %v3108_v2 = vadd.f32 %v3107_v10, %v10452_v23  ;;  %v3211_v39 = vpop.f32.mrf.mxu1  ;;  %4701 = vmatpush.bf16.msrb.mxu1 %v8082_v55 }
 0x4c2   : > { %v3006_v37 = vadd.f32 %v3005_v8, %v2902_v16  ;;  %v8529_v16 = vld [vmem:[%s12989_s9 + $0x14] sm:$0xf0]  ;;  %v8528_v8 = vld [vmem:[%s12989_s9 + $0x14] sm:$0xf] }
 0x4c3   : > { %v3212_v15 = vadd.f32 %v3211_v39, %v3108_v2  ;;  %3578 = vmatmul.bf16.gmra.mxu2 %v10618_v63  ;;  %3781 = vmatmul.bf16.gmra.mxu0 %v10606_v22  ;;  %v7900_v10 = vor.u32 %v8529_v16, %v7899_v61 }
 0x4c4   : > { %v3291_v14 = vmax.f32 %v3006_v37, 0.0  ;;  %3885 = vmatmul.bf16.gmra.mxu1 %v10611_v0  ;;  %v8018_v0 = vor.u32 %v8581_v25, %v8017_v46  ;;  %v7901_v37 = vld [vmem:[%s12989_s9 + $0x18] sm:$0xf0] }
 0x4c5   : > { %v3290_v2 = vmax.f32 %v3212_v15, 0.0  ;;  %4001 = vmatpush.bf16.msrb.mxu2 %v7900_v10 }
 0x4c6   : > { %3682 = vmatmul.bf16.gmra.mxu3 %v10623_v47  ;;  %v10812_v48 = vpack.c.bf16 %v3291_v14, %v3289_v29  ;;  %v2904_v33 = vpop.f32.mrf.mxu2  ;;  %4597 = vmatpush.bf16.msrb.mxu0 %v8018_v0  ;;  %v7904_v29 = vor.u32 %v8528_v8, %v7901_v37 }
 0x4c7   : > { %v2905_v12 = vadd.f32 %v2904_v33, %v10444_v42 }
 0x4c8   : > { %v3109_v53 = vpop.f32.mrf.mxu0  ;;  %4105 = vmatpush.bf16.msrb.mxu3 %v7904_v29 }
 0x4c9   : > { %v3008_v20 = vpop.f32.mrf.mxu3  ;;  %v3110_v4 = vadd.f32 %v3109_v53, %v10452_v23  ;;  %v3213_v56 = vpop.f32.mrf.mxu1 }
 0x4ca   : > { %v3009_v22 = vadd.f32 %v3008_v20, %v2905_v12 }
 0x4cb   : > { %v3214_v34 = vadd.f32 %v3213_v56, %v3110_v4 }
 0x4cc   : > { %v3293_v56 = vmax.f32 %v3009_v22, 0.0 }
 0x4cd   : > { %v3292_v39 = vmax.f32 %v3214_v34, 0.0 }
 0x4ce   : > { %v2906_v14 = vpop.f32.mrf.mxu2 }
 0x4cf   : > { %v2907_v33 = vadd.f32 %v2906_v14, %v10444_v42  ;;  %v10841_v20 = vpack.c.bf16 %v3292_v39, %v3290_v2 }
 0x4d0   : > { %v3112_v53 = vpop.f32.mrf.mxu0 }
 0x4d1   : > { %v3010_v12 = vpop.f32.mrf.mxu3  ;;  %v3113_v25 = vadd.f32 %v3112_v53, %v10452_v23  ;;  %v3216_v4 = vpop.f32.mrf.mxu1 }
 0x4d2   : > { %v3011_v46 = vadd.f32 %v3010_v12, %v2907_v33 }
 0x4d3   : > { %v3217_v43 = vadd.f32 %v3216_v4, %v3113_v25  ;;  %3583 = vmatmul.bf16.gmra.mxu2 %v10648_v62  ;;  %3786 = vmatmul.bf16.gmra.mxu0 %v10618_v63  ;;  %v8009_v4 = vld [vmem:[%s12992_s12 + $0x60] sm:$0xf] }
 0x4d4   : > { %v3295_v0 = vmax.f32 %v3011_v46, 0.0  ;;  %3890 = vmatmul.bf16.gmra.mxu1 %v10623_v47 }
 0x4d5   : > { %v3294_v8 = vmax.f32 %v3217_v43, 0.0 }
 0x4d6   : > { %3687 = vmatmul.bf16.gmra.mxu3 %v10697_v52  ;;  %v10848_v42 = vpack.c.bf16 %v3295_v0, %v3293_v56  ;;  %v3544_v15 = vpop.f32.mrf.mxu2 }
 0x4d8   : > { %v3114_v34 = vpop.f32.mrf.mxu0 }
 0x4d9   : > { %v3648_v36 = vpop.f32.mrf.mxu3  ;;  %v3115_v55 = vadd.f32 %v3114_v34, %v10452_v23  ;;  %v3218_v22 = vpop.f32.mrf.mxu1  ;;  %v8595_v34 = vld [vmem:[%s12992_s12 + $0xe4] sm:$0xf0] }
 0x4da   : > { %v10850_v61 = vadd.f32 %v3648_v36, %v3544_v15  ;;  %v8073_v36 = vld [vmem:[%s12992_s12 + $0xe0] sm:$0xf] }
 0x4db   : > { %v3219_v16 = vadd.f32 %v3218_v22, %v3115_v55  ;;  %v8074_v22 = vor.u32 %v8595_v34, %v8073_v36 }
 0x4dd   : > { %v3296_v10 = vmax.f32 %v3219_v16, 0.0  ;;  %4702 = vmatpush.bf16.msrb.mxu1 %v8074_v22 }
 0x4de   : > { %v3546_v37 = vpop.f32.mrf.mxu2 }
 0x4df   : > { %v10853_v63 = vpack.c.bf16 %v3296_v10, %v3294_v8 }
 0x4e0   : > { %v3752_v47 = vpop.f32.mrf.mxu0 }
 0x4e1   : > { %v3650_v2 = vpop.f32.mrf.mxu3  ;;  %v3856_v29 = vpop.f32.mrf.mxu1 }
 0x4e2   : > { %v10855_v39 = vadd.f32 %v3650_v2, %v3546_v37  ;;  %v10857_v14 = vadd.f32 %v3856_v29, %v3752_v47 }
 0x4e3   : > { %3588 = vmatmul.bf16.gmra.mxu2 %v10704_v21  ;;  %3791 = vmatmul.bf16.gmra.mxu0 %v10648_v62  ;;  %v8579_v62 = vld [vmem:[%s12992_s12 + $0x64] sm:$0xf0] }
 0x4e4   : > { %3895 = vmatmul.bf16.gmra.mxu1 %v10697_v52  ;;  %v8010_v56 = vor.u32 %v8579_v62, %v8009_v4 }
 0x4e6   : > { %3692 = vmatmul.bf16.gmra.mxu3 %v10709_v13  ;;  %v3549_v23 = vpop.f32.mrf.mxu2  ;;  %4598 = vmatpush.bf16.msrb.mxu0 %v8010_v56 }
 0x4e8   : > { %v3754_v53 = vpop.f32.mrf.mxu0 }
 0x4e9   : > { %v3653_v33 = vpop.f32.mrf.mxu3  ;;  %v3858_v46 = vpop.f32.mrf.mxu1 }
 0x4ea   : > { %v10863_v12 = vadd.f32 %v3653_v33, %v3549_v23  ;;  %v10865_v25 = vadd.f32 %v3858_v46, %v3754_v53 }
 0x4ee   : > { %v3551_v0 = vpop.f32.mrf.mxu2 }
 0x4f0   : > { %v3757_v15 = vpop.f32.mrf.mxu0 }
 0x4f1   : > { %v3655_v52 = vpop.f32.mrf.mxu3  ;;  %v3861_v55 = vpop.f32.mrf.mxu1 }
 0x4f2   : > { %v10873_v43 = vadd.f32 %v3655_v52, %v3551_v0  ;;  %v10881_v16 = vadd.f32 %v3861_v55, %v3757_v15 }
 0x4f3   : > { %3593 = vmatmul.bf16.gmra.mxu2 %v10716_v60  ;;  %3796 = vmatmul.bf16.gmra.mxu0 %v10704_v21 }
 0x4f4   : > { %3900 = vmatmul.bf16.gmra.mxu1 %v10709_v13 }
 0x4f6   : > { %3697 = vmatmul.bf16.gmra.mxu3 %v10721_v1  ;;  %v3554_v8 = vpop.f32.mrf.mxu2 }
 0x4f8   : > { %v3759_v2 = vpop.f32.mrf.mxu0 }
 0x4f9   : > { %v3658_v10 = vpop.f32.mrf.mxu3  ;;  %v3863_v47 = vpop.f32.mrf.mxu1 }
 0x4fa   : > { %v10887_v37 = vadd.f32 %v3658_v10, %v3554_v8  ;;  %v10889_v29 = vadd.f32 %v3863_v47, %v3759_v2  ;;  %v8065_v2 = vld [vmem:[%s12992_s12 + $0xd0] sm:$0xf] }
 0x4fe   : > { %v3556_v23 = vpop.f32.mrf.mxu2 }
 0x500   : > { %v3762_v46 = vpop.f32.mrf.mxu0 }
 0x501   : > { %v3660_v33 = vpop.f32.mrf.mxu3  ;;  %v3866_v4 = vpop.f32.mrf.mxu1 }
 0x502   : > { %v10891_v53 = vadd.f32 %v3660_v33, %v3556_v23  ;;  %v10893_v21 = vadd.f32 %v3866_v4, %v3762_v46 }
 0x503   : > { %3598 = vmatmul.bf16.gmra.mxu2 %v10728_v32  ;;  %3801 = vmatmul.bf16.gmra.mxu0 %v10716_v60  ;;  %v8001_v60 = vld [vmem:[%s12992_s12 + $0x50] sm:$0xf] }
 0x504   : > { %3905 = vmatmul.bf16.gmra.mxu1 %v10721_v1  ;;  %v8577_v1 = vld [vmem:[%s12992_s12 + $0x54] sm:$0xf0] }
 0x505   : > { %v8002_v47 = vor.u32 %v8577_v1, %v8001_v60 }
 0x506   : > { %3702 = vmatmul.bf16.gmra.mxu3 %v10733_v9  ;;  %v3559_v13 = vpop.f32.mrf.mxu2 }
 0x507   : > { %4599 = vmatpush.bf16.msrb.mxu0 %v8002_v47 }
 0x508   : > { %v3764_v0 = vpop.f32.mrf.mxu0 }
 0x509   : > { %v3663_v62 = vpop.f32.mrf.mxu3  ;;  %v3868_v52 = vpop.f32.mrf.mxu1 }
 0x50a   : > { %v10899_v56 = vadd.f32 %v3663_v62, %v3559_v13  ;;  %v10901_v15 = vadd.f32 %v3868_v52, %v3764_v0  ;;  %v7891_v13 = vld [vmem:[%s12989_s9] sm:$0xf]  ;;  %v8527_v62 = vld [vmem:[%s12989_s9 + $0x4] sm:$0xf0] }
 0x50b   : > { %v7892_v52 = vor.u32 %v8527_v62, %v7891_v13 }
 0x50d   : > { %4002 = vmatpush.bf16.msrb.mxu2 %v7892_v52 }
 0x50e   : > { %v3561_v36 = vpop.f32.mrf.mxu2 }
 0x510   : > { %v3767_v22 = vpop.f32.mrf.mxu0 }
 0x511   : > { %v3665_v34 = vpop.f32.mrf.mxu3  ;;  %v3871_v8 = vpop.f32.mrf.mxu1 }
 0x512   : > { %v10903_v55 = vadd.f32 %v3665_v34, %v3561_v36  ;;  %v10905_v10 = vadd.f32 %v3871_v8, %v3767_v22  ;;  %v8526_v34 = vld [vmem:[%s12989_s9 + $0x4] sm:$0xf]  ;;  %v7893_v22 = vld [vmem:[%s12989_s9 + $0x8] sm:$0xf0] }
 0x513   : > { %3603 = vmatmul.bf16.gmra.mxu2 %v10740_v27  ;;  %3806 = vmatmul.bf16.gmra.mxu0 %v10728_v32  ;;  %v8593_v32 = vld [vmem:[%s12992_s12 + $0xd4] sm:$0xf0]  ;;  %v7896_v8 = vor.u32 %v8526_v34, %v7893_v22 }
 0x514   : > { %3910 = vmatmul.bf16.gmra.mxu1 %v10733_v9  ;;  %v8066_v33 = vor.u32 %v8593_v32, %v8065_v2 }
 0x515   : > { %4106 = vmatpush.bf16.msrb.mxu3 %v7896_v8 }
 0x516   : > { %3707 = vmatmul.bf16.gmra.mxu3 %v10745_v35  ;;  %v3564_v23 = vpop.f32.mrf.mxu2  ;;  %4703 = vmatpush.bf16.msrb.mxu1 %v8066_v33 }
 0x518   : > { %v3769_v4 = vpop.f32.mrf.mxu0 }
 0x519   : > { %v3668_v9 = vpop.f32.mrf.mxu3  ;;  %v3873_v0 = vpop.f32.mrf.mxu1 }
 0x51a   : > { %v10923_v46 = vadd.f32 %v3668_v9, %v3564_v23  ;;  %v10931_v36 = vadd.f32 %v3873_v0, %v3769_v4 }
 0x51e   : > { %v3566_v60 = vpop.f32.mrf.mxu2 }
 0x520   : > { %v3772_v47 = vpop.f32.mrf.mxu0 }
 0x521   : > { %v3670_v1 = vpop.f32.mrf.mxu3  ;;  %v3876_v32 = vpop.f32.mrf.mxu1 }
 0x522   : > { %v10939_v2 = vadd.f32 %v3670_v1, %v3566_v60  ;;  %v10941_v23 = vadd.f32 %v3876_v32, %v3772_v47 }
 0x523   : > { %3608 = vmatmul.bf16.gmra.mxu2 %v10764_v24  ;;  %3811 = vmatmul.bf16.gmra.mxu0 %v10740_v27 }
 0x524   : > { %3915 = vmatmul.bf16.gmra.mxu1 %v10745_v35 }
 0x526   : > { %3712 = vmatmul.bf16.gmra.mxu3 %v10769_v59  ;;  %v3569_v33 = vpop.f32.mrf.mxu2 }
 0x528   : > { %v3774_v13 = vpop.f32.mrf.mxu0 }
 0x529   : > { %v3673_v9 = vpop.f32.mrf.mxu3  ;;  %v3878_v62 = vpop.f32.mrf.mxu1 }
 0x52a   : > { %v10947_v4 = vadd.f32 %v3673_v9, %v3569_v33  ;;  %v10949_v0 = vadd.f32 %v3878_v62, %v3774_v13  ;;  %v7993_v13 = vld [vmem:[%s12992_s12 + $0x40] sm:$0xf] }
 0x52e   : > { %v3571_v52 = vpop.f32.mrf.mxu2 }
 0x530   : > { %v3777_v8 = vpop.f32.mrf.mxu0 }
 0x531   : > { %v3675_v34 = vpop.f32.mrf.mxu3  ;;  %v3881_v60 = vpop.f32.mrf.mxu1 }
 0x532   : > { %v10951_v22 = vadd.f32 %v3675_v34, %v3571_v52  ;;  %v10953_v1 = vadd.f32 %v3881_v60, %v3777_v8  ;;  %v8591_v52 = vld [vmem:[%s12992_s12 + $0xc4] sm:$0xf0] }
 0x533   : > { %3613 = vmatmul.bf16.gmra.mxu2 %v10776_v3  ;;  %3816 = vmatmul.bf16.gmra.mxu0 %v10764_v24  ;;  %v8575_v24 = vld [vmem:[%s12992_s12 + $0x44] sm:$0xf0] }
 0x534   : > { %3920 = vmatmul.bf16.gmra.mxu1 %v10769_v59  ;;  %v8057_v59 = vld [vmem:[%s12992_s12 + $0xc0] sm:$0xf]  ;;  %v7994_v62 = vor.u32 %v8575_v24, %v7993_v13 }
 0x535   : > { %v8058_v34 = vor.u32 %v8591_v52, %v8057_v59 }
 0x536   : > { %3717 = vmatmul.bf16.gmra.mxu3 %v10781_v28  ;;  %v3574_v27 = vpop.f32.mrf.mxu2  ;;  %4600 = vmatpush.bf16.msrb.mxu0 %v7994_v62 }
 0x537   : > { %4704 = vmatpush.bf16.msrb.mxu1 %v8058_v34 }
 0x538   : > { %v3779_v32 = vpop.f32.mrf.mxu0 }
 0x539   : > { %v3678_v35 = vpop.f32.mrf.mxu3  ;;  %v3883_v33 = vpop.f32.mrf.mxu1 }
 0x53a   : > { %v10959_v47 = vadd.f32 %v3678_v35, %v3574_v27  ;;  %v10961_v9 = vadd.f32 %v3883_v33, %v3779_v32 }
 0x53e   : > { %v3576_v8 = vpop.f32.mrf.mxu2 }
 0x540   : > { %v3782_v35 = vpop.f32.mrf.mxu0 }
 0x541   : > { %v3680_v60 = vpop.f32.mrf.mxu3  ;;  %v3886_v32 = vpop.f32.mrf.mxu1 }
 0x542   : > { %v10975_v27 = vadd.f32 %v3680_v60, %v3576_v8  ;;  %v10977_v33 = vadd.f32 %v3886_v32, %v3782_v35 }
 0x543   : > { %3618 = vmatmul.bf16.gmra.mxu2 %v10788_v7  ;;  %3821 = vmatmul.bf16.gmra.mxu0 %v10776_v3 }
 0x544   : > { %3925 = vmatmul.bf16.gmra.mxu1 %v10781_v28 }
 0x546   : > { %3722 = vmatmul.bf16.gmra.mxu3 %v10793_v54  ;;  %v3579_v13 = vpop.f32.mrf.mxu2 }
 0x548   : > { %v3784_v62 = vpop.f32.mrf.mxu0 }
 0x549   : > { %v3683_v24 = vpop.f32.mrf.mxu3  ;;  %v3888_v52 = vpop.f32.mrf.mxu1 }
 0x54a   : > { %v10983_v59 = vadd.f32 %v3683_v24, %v3579_v13  ;;  %v10985_v34 = vadd.f32 %v3888_v52, %v3784_v62 }
 0x54e   : > { %v3581_v8 = vpop.f32.mrf.mxu2 }
 0x550   : > { %v3787_v32 = vpop.f32.mrf.mxu0 }
 0x551   : > { %v3685_v60 = vpop.f32.mrf.mxu3  ;;  %v3891_v51 = vpop.f32.mrf.mxu1 }
 0x552   : > { %v10987_v35 = vadd.f32 %v3685_v60, %v3581_v8  ;;  %v10989_v45 = vadd.f32 %v3891_v51, %v3787_v32 }
 0x553   : > { %3623 = vmatmul.bf16.gmra.mxu2 %v10800_v17  ;;  %3826 = vmatmul.bf16.gmra.mxu0 %v10788_v7  ;;  %v7985_v7 = vld [vmem:[%s12992_s12 + $0x30] sm:$0xf] }
 0x554   : > { %3930 = vmatmul.bf16.gmra.mxu1 %v10793_v54  ;;  %v8573_v54 = vld [vmem:[%s12992_s12 + $0x34] sm:$0xf0] }
 0x556   : > { %3727 = vmatmul.bf16.gmra.mxu3 %v10805_v38  ;;  %v3584_v3 = vpop.f32.mrf.mxu2 }
 0x558   : > { %v10997_v24 = vpop.f32.mrf.mxu0 }
 0x559   : > { %v3688_v28 = vpop.f32.mrf.mxu3  ;;  %v10999_v62 = vpop.f32.mrf.mxu1 }
 0x55a   : > { %v10995_v13 = vadd.f32 %v3688_v28, %v3584_v3  ;;  %v7986_v3 = vor.u32 %v8573_v54, %v7985_v7  ;;  %v8019_v7 = vld [vmem:[%s12992_s12 + $0x78] sm:$0xf0] }
 0x55c   : > { %13042 = vst [vmem:[#allocation13_spill] sm:$0xff] %v10995_v13  ;;  %v8049_v13 = vld [vmem:[%s12992_s12 + $0xb0] sm:$0xf]  ;;  %4601 = vmatpush.bf16.msrb.mxu0 %v7986_v3 }
 0x55e   : > { %v3586_v52 = vpop.f32.mrf.mxu2 }
 0x560   : > { %v3792_v60 = vpop.f32.mrf.mxu0 }
 0x561   : > { %v3690_v8 = vpop.f32.mrf.mxu3  ;;  %v3896_v32 = vpop.f32.mrf.mxu1 }
 0x562   : > { %v11001_v51 = vadd.f32 %v3690_v8, %v3586_v52  ;;  %v11009_v28 = vadd.f32 %v3896_v32, %v3792_v60  ;;  %v8589_v52 = vld [vmem:[%s12992_s12 + $0xb4] sm:$0xf0]  ;;  %v8580_v60 = vld [vmem:[%s12992_s12 + $0x74] sm:$0xf] }
 0x563   : > { %3628 = vmatmul.bf16.gmra.mxu2 %v10812_v48  ;;  %3831 = vmatmul.bf16.gmra.mxu0 %v10800_v17  ;;  %v8050_v8 = vor.u32 %v8589_v52, %v8049_v13  ;;  %v8022_v54 = vor.u32 %v8580_v60, %v8019_v7  ;;  %v8083_v52 = vld [vmem:[%s12992_s12 + $0xf8] sm:$0xf0] }
 0x564   : > { %13043 = vst [vmem:[#allocation14_spill] sm:$0xff] %v11001_v51  ;;  %3935 = vmatmul.bf16.gmra.mxu1 %v10805_v38  ;;  %v8596_v38 = vld [vmem:[%s12992_s12 + $0xf4] sm:$0xf] }
 0x565   : > { %13044 = vst [vmem:[#allocation15_spill] sm:$0xff] %v11009_v28  ;;  %4705 = vmatpush.bf16.msrb.mxu1 %v8050_v8  ;;  %4805 = vmatpush.bf16.msra.mxu2 %v8022_v54  ;;  %v8086_v3 = vor.u32 %v8596_v38, %v8083_v52 }
 0x566   : > { %3732 = vmatmul.bf16.gmra.mxu3 %v10841_v20  ;;  %v3589_v32 = vpop.f32.mrf.mxu2 }
 0x567   : > { %4909 = vmatpush.bf16.msra.mxu3 %v8086_v3 }
 0x568   : > { %v11029_v13 = vpop.f32.mrf.mxu0 }
 0x569   : > { %v3693_v51 = vpop.f32.mrf.mxu3  ;;  %v11037_v28 = vpop.f32.mrf.mxu1 }
 0x56a   : > { %v11027_v17 = vadd.f32 %v3693_v51, %v3589_v32  ;;  %13046 = vst [vmem:[#allocation17_spill] sm:$0xff] %v11037_v28 }
 0x56c   : > { %13045 = vst [vmem:[#allocation16_spill] sm:$0xff] %v11027_v17 }
 0x56e   : > { %v3591_v8 = vpop.f32.mrf.mxu2 }
 0x570   : > { %v3797_v51 = vpop.f32.mrf.mxu0 }
 0x571   : > { %v3695_v60 = vpop.f32.mrf.mxu3  ;;  %v3901_v54 = vpop.f32.mrf.mxu1 }
 0x572   : > { %v11039_v7 = vadd.f32 %v3695_v60, %v3591_v8  ;;  %v11041_v32 = vadd.f32 %v3901_v54, %v3797_v51 }
 0x573   : > { %3633 = vmatmul.bf16.gmra.mxu2 %v10848_v42  ;;  %3836 = vmatmul.bf16.gmra.mxu0 %v10812_v48  ;;  %v7977_v48 = vld [vmem:[%s12992_s12 + $0x20] sm:$0xf] }
 0x574   : > { %13047 = vst [vmem:[#allocation18_spill] sm:$0xff] %v11039_v7  ;;  %3940 = vmatmul.bf16.gmra.mxu1 %v10841_v20  ;;  %v8571_v20 = vld [vmem:[%s12992_s12 + $0x24] sm:$0xf0] }
 0x575   : > { %13048 = vst [vmem:[#allocation19_spill] sm:$0xff] %v11041_v32 }
 0x576   : > { %3737 = vmatmul.bf16.gmra.mxu3 %v10853_v63  ;;  %v3594_v17 = vpop.f32.mrf.mxu2 }
 0x578   : > { %v11049_v52 = vpop.f32.mrf.mxu0 }
 0x579   : > { %v3698_v28 = vpop.f32.mrf.mxu3  ;;  %v11051_v3 = vpop.f32.mrf.mxu1 }
 0x57a   : > { %v11047_v38 = vadd.f32 %v3698_v28, %v3594_v17  ;;  %v7978_v28 = vor.u32 %v8571_v20, %v7977_v48  ;;  %v8578_v48 = vld [vmem:[%s12992_s12 + $0x64] sm:$0xf]  ;;  %v8011_v20 = vld [vmem:[%s12992_s12 + $0x68] sm:$0xf0] }
 0x57c   : > { %4602 = vmatpush.bf16.msrb.mxu0 %v7978_v28  ;;  %v8594_v28 = vld [vmem:[%s12992_s12 + $0xe4] sm:$0xf] }
 0x57e   : > { %v3596_v8 = vpop.f32.mrf.mxu2 }
 0x580   : > { %v3802_v54 = vpop.f32.mrf.mxu0 }
 0x581   : > { %v3700_v60 = vpop.f32.mrf.mxu3  ;;  %v3906_v7 = vpop.f32.mrf.mxu1 }
 0x582   : > { %v11053_v51 = vadd.f32 %v3700_v60, %v3596_v8  ;;  %v11055_v32 = vadd.f32 %v3906_v7, %v3802_v54 }
 0x583   : > { %3841 = vmatmul.bf16.gmra.mxu0 %v10848_v42  ;;  %7921 = vmatmul.msk.bf16.vlgmr.msrb.gmra.mxu2 %vm761_vm2, %v9084_v40 }
 0x584   : > { %13049 = vst [vmem:[#allocation20_spill] sm:$0xff] %v11053_v51  ;;  %3945 = vmatmul.bf16.gmra.mxu1 %v10853_v63  ;;  %v8587_v63 = vld [vmem:[%s12992_s12 + $0xa4] sm:$0xf0] }
 0x585   : > { %13050 = vst [vmem:[#allocation21_spill] sm:$0xff] %v11055_v32 }
 0x586   : > { %7940 = vmatmul.msk.bf16.vlgmr.msrb.gmra.mxu3 %vm761_vm2, %v9084_v40  ;;  %v3599_v17 = vpop.f32.mrf.mxu2  ;;  %v8041_v40 = vld [vmem:[%s12992_s12 + $0xa0] sm:$0xf] }
 0x587   : > { %v8042_v54 = vor.u32 %v8587_v63, %v8041_v40 }
 0x588   : > { %v11071_v8 = vpop.f32.mrf.mxu0 }
 0x589   : > { %v3703_v7 = vpop.f32.mrf.mxu3  ;;  %13052 = vst [vmem:[#allocation23_spill] sm:$0xff] %v11071_v8  ;;  %v11079_v60 = vpop.f32.mrf.mxu1  ;;  %4706 = vmatpush.bf16.msrb.mxu1 %v8042_v54 }
 0x58a   : > { %v11069_v42 = vadd.f32 %v3703_v7, %v3599_v17  ;;  %13053 = vst [vmem:[#allocation24_spill] sm:$0xff] %v11079_v60  ;;  %v8014_v17 = vor.u32 %v8578_v48, %v8011_v20  ;;  %v8075_v7 = vld [vmem:[%s12992_s12 + $0xe8] sm:$0xf0] }
 0x58c   : > { %13051 = vst [vmem:[#allocation22_spill] sm:$0xff] %v11069_v42  ;;  %v8078_v42 = vor.u32 %v8594_v28, %v8075_v7  ;;  %4806 = vmatpush.bf16.msra.mxu2 %v8014_v17 }
 0x58e   : > { %v3601_v40 = vpop.f32.mrf.mxu2  ;;  %4910 = vmatpush.bf16.msra.mxu3 %v8078_v42 }
 0x590   : > { %v3807_v60 = vpop.f32.mrf.mxu0 }
 0x591   : > { %v3705_v63 = vpop.f32.mrf.mxu3  ;;  %v3911_v8 = vpop.f32.mrf.mxu1 }
 0x592   : > { %v11093_v51 = vadd.f32 %v3705_v63, %v3601_v40  ;;  %v11095_v32 = vadd.f32 %v3911_v8, %v3807_v60 }
 0x593   : > { %7922 = vmatmul.msk.bf16.gmra.mxu2 %vm761_vm2, %v9121_v57 }
 0x594   : > { %13054 = vst [vmem:[#allocation25_spill] sm:$0xff] %v11093_v51 }
 0x596   : > { %7941 = vmatmul.msk.bf16.gmra.mxu3 %vm761_vm2, %v9121_v57  ;;  %v3604_v54 = vpop.f32.mrf.mxu2 }
 0x598   : > { %v11103_v28 = vpop.f32.mrf.mxu0 }
 0x599   : > { %v3708_v48 = vpop.f32.mrf.mxu3  ;;  %13056 = vst [vmem:[#allocation27_spill] sm:$0xff] %v11103_v28  ;;  %v11105_v42 = vpop.f32.mrf.mxu1 }
 0x59a   : > { %v11101_v20 = vadd.f32 %v3708_v48, %v3604_v54  ;;  %13057 = vst [vmem:[#allocation28_spill] sm:$0xff] %v11105_v42  ;;  %v8576_v42 = vld [vmem:[%s12992_s12 + $0x54] sm:$0xf] }
 0x59c   : > { %13055 = vst [vmem:[#allocation26_spill] sm:$0xff] %v11101_v20 }
 0x59e   : > { %v3606_v17 = vpop.f32.mrf.mxu2 }
 0x5a0   : > { %v3812_v8 = vpop.f32.mrf.mxu0 }
 0x5a1   : > { %v3710_v7 = vpop.f32.mrf.mxu3  ;;  %v3916_v60 = vpop.f32.mrf.mxu1 }
 0x5a2   : > { %v11107_v40 = vadd.f32 %v3710_v7, %v3606_v17  ;;  %v11109_v63 = vadd.f32 %v3916_v60, %v3812_v8  ;;  %v7969_v17 = vld [vmem:[%s12992_s12 + $0x10] sm:$0xf]  ;;  %v8569_v7 = vld [vmem:[%s12992_s12 + $0x14] sm:$0xf0] }
 0x5a3   : > { %7923 = vmatmul.msk.bf16.gmra.mxu2 %vm761_vm2, %v9149_v5  ;;  %v7970_v8 = vor.u32 %v8569_v7, %v7969_v17  ;;  %v8585_v60 = vld [vmem:[%s12992_s12 + $0x94] sm:$0xf0]  ;;  %v8003_v17 = vld [vmem:[%s12992_s12 + $0x58] sm:$0xf0] }
 0x5a4   : > { %13058 = vst [vmem:[#allocation29_spill] sm:$0xff] %v11107_v40  ;;  %v8006_v7 = vor.u32 %v8576_v42, %v8003_v17 }
 0x5a5   : > { %13059 = vst [vmem:[#allocation30_spill] sm:$0xff] %v11109_v63  ;;  %4603 = vmatpush.bf16.msrb.mxu0 %v7970_v8 }
 0x5a6   : > { %7942 = vmatmul.msk.bf16.gmra.mxu3 %vm761_vm2, %v9149_v5  ;;  %v3609_v57 = vpop.f32.mrf.mxu2  ;;  %v8033_v5 = vld [vmem:[%s12992_s12 + $0x90] sm:$0xf]  ;;  %4807 = vmatpush.bf16.msra.mxu2 %v8006_v7 }
 0x5a8   : > { %v11117_v20 = vpop.f32.mrf.mxu0 }
 0x5a9   : > { %v3713_v54 = vpop.f32.mrf.mxu3  ;;  %13061 = vst [vmem:[#allocation32_spill] sm:$0xff] %v11117_v20  ;;  %v11119_v51 = vpop.f32.mrf.mxu1 }
 0x5aa   : > { %v11115_v48 = vadd.f32 %v3713_v54, %v3609_v57  ;;  %13062 = vst [vmem:[#allocation33_spill] sm:$0xff] %v11119_v51  ;;  %v8034_v57 = vor.u32 %v8585_v60, %v8033_v5 }
 0x5ac   : > { %13060 = vst [vmem:[#allocation31_spill] sm:$0xff] %v11115_v48  ;;  %4707 = vmatpush.bf16.msrb.mxu1 %v8034_v57 }
 0x5ae   : > { %v3611_v54 = vpop.f32.mrf.mxu2 }
 0x5b0   : > { %v3817_v51 = vpop.f32.mrf.mxu0 }
 0x5b1   : > { %v3715_v48 = vpop.f32.mrf.mxu3  ;;  %v3921_v20 = vpop.f32.mrf.mxu1 }
 0x5b2   : > { %v11133_v40 = vadd.f32 %v3715_v48, %v3611_v54  ;;  %v11135_v63 = vadd.f32 %v3921_v20, %v3817_v51  ;;  %v8592_v51 = vld [vmem:[%s12992_s12 + $0xd4] sm:$0xf]  ;;  %v8067_v20 = vld [vmem:[%s12992_s12 + $0xd8] sm:$0xf0] }
 0x5b3   : > { %7924 = vmatmul.msk.bf16.gmra.mxu2 %vm761_vm2, %v9177_v18  ;;  %v8070_v48 = vor.u32 %v8592_v51, %v8067_v20 }
 0x5b4   : > { %13063 = vst [vmem:[#allocation34_spill] sm:$0xff] %v11133_v40 }
 0x5b5   : > { %13064 = vst [vmem:[#allocation35_spill] sm:$0xff] %v11135_v63  ;;  %4911 = vmatpush.bf16.msra.mxu3 %v8070_v48 }
 0x5b6   : > { %7943 = vmatmul.msk.bf16.gmra.mxu3 %vm761_vm2, %v9177_v18  ;;  %v3614_v5 = vpop.f32.mrf.mxu2 }
 0x5b8   : > { %v11155_v57 = vpop.f32.mrf.mxu0 }
 0x5b9   : > { %v3718_v8 = vpop.f32.mrf.mxu3  ;;  %v11157_v42 = vpop.f32.mrf.mxu1 }
 0x5ba   : > { %v11153_v60 = vadd.f32 %v3718_v8, %v3614_v5 }
 0x5be   : > { %v3616_v18 = vpop.f32.mrf.mxu2 }
 0x5c0   : > { %v3822_v40 = vpop.f32.mrf.mxu0 }
 0x5c1   : > { %v3720_v54 = vpop.f32.mrf.mxu3  ;;  %v3926_v63 = vpop.f32.mrf.mxu1 }
 0x5c2   : > { %v11159_v17 = vadd.f32 %v3720_v54, %v3616_v18  ;;  %v11161_v28 = vadd.f32 %v3926_v63, %v3822_v40 }
 0x5c3   : > { %7925 = vmatmul.msk.bf16.gmra.mxu2 %vm761_vm2, %v9205_v30 }
 0x5c4   : > { %13065 = vst [vmem:[#allocation36_spill] sm:$0xff] %v11159_v17 }
 0x5c6   : > { %7944 = vmatmul.msk.bf16.gmra.mxu3 %vm761_vm2, %v9205_v30  ;;  %v3619_v7 = vpop.f32.mrf.mxu2  ;;  %v7961_v30 = vld [vmem:[%s12992_s12] sm:$0xf] }
 0x5c8   : > { %v11169_v48 = vpop.f32.mrf.mxu0 }
 0x5c9   : > { %v3723_v51 = vpop.f32.mrf.mxu3  ;;  %13067 = vst [vmem:[#allocation38_spill] sm:$0xff] %v11169_v48  ;;  %v11171_v5 = vpop.f32.mrf.mxu1 }
 0x5ca   : > { %v11167_v20 = vadd.f32 %v3723_v51, %v3619_v7  ;;  %13068 = vst [vmem:[#allocation39_spill] sm:$0xff] %v11171_v5  ;;  %v8567_v7 = vld [vmem:[%s12992_s12 + $0x4] sm:$0xf0] }
 0x5cb   : > { %v7962_v51 = vor.u32 %v8567_v7, %v7961_v30  ;;  %v7995_v30 = vld [vmem:[%s12992_s12 + $0x48] sm:$0xf0] }
 0x5cc   : > { %13066 = vst [vmem:[#allocation37_spill] sm:$0xff] %v11167_v20 }
 0x5cd   : > { %4604 = vmatpush.bf16.msrb.mxu0 %v7962_v51  ;;  %v8590_v51 = vld [vmem:[%s12992_s12 + $0xc4] sm:$0xf] }
 0x5ce   : > { %v3621_v8 = vpop.f32.mrf.mxu2 }
 0x5d0   : > { %v3827_v40 = vpop.f32.mrf.mxu0 }
 0x5d1   : > { %v3725_v18 = vpop.f32.mrf.mxu3  ;;  %v3931_v63 = vpop.f32.mrf.mxu1 }
 0x5d2   : > { %v11173_v54 = vadd.f32 %v3725_v18, %v3621_v8  ;;  %v11175_v17 = vadd.f32 %v3931_v63, %v3827_v40  ;;  %v8025_v8 = vld [vmem:[%s12992_s12 + $0x80] sm:$0xf]  ;;  %v8583_v18 = vld [vmem:[%s12992_s12 + $0x84] sm:$0xf0] }
 0x5d3   : > { %7926 = vmatmul.msk.bf16.gmra.mxu2 %vm761_vm2, %v9233_v44  ;;  %v8026_v40 = vor.u32 %v8583_v18, %v8025_v8 }
 0x5d4   : > { %13069 = vst [vmem:[#allocation40_spill] sm:$0xff] %v11173_v54 }
 0x5d5   : > { %13070 = vst [vmem:[#allocation41_spill] sm:$0xff] %v11175_v17  ;;  %4708 = vmatpush.bf16.msrb.mxu1 %v8026_v40 }
 0x5d6   : > { %7945 = vmatmul.msk.bf16.gmra.mxu3 %vm761_vm2, %v9233_v44  ;;  %v3624_v63 = vpop.f32.mrf.mxu2  ;;  %v8574_v44 = vld [vmem:[%s12992_s12 + $0x44] sm:$0xf] }
 0x5d7   : > { %v7998_v5 = vor.u32 %v8574_v44, %v7995_v30 }
 0x5d8   : > { %v11195_v20 = vpop.f32.mrf.mxu0 }
 0x5d9   : > { %v3728_v54 = vpop.f32.mrf.mxu3  ;;  %13072 = vst [vmem:[#allocation43_spill] sm:$0xff] %v11195_v20  ;;  %v11203_v7 = vpop.f32.mrf.mxu1  ;;  %4808 = vmatpush.bf16.msra.mxu2 %v7998_v5 }
 0x5da   : > { %v11193_v17 = vadd.f32 %v3728_v54, %v3624_v63  ;;  %13073 = vst [vmem:[#allocation44_spill] sm:$0xff] %v11203_v7  ;;  %v8059_v54 = vld [vmem:[%s12992_s12 + $0xc8] sm:$0xf0] }
 0x5db   : > { %v8062_v8 = vor.u32 %v8590_v51, %v8059_v54 }
 0x5dc   : > { %13071 = vst [vmem:[#allocation42_spill] sm:$0xff] %v11193_v17 }
 0x5dd   : > { %4912 = vmatpush.bf16.msra.mxu3 %v8062_v8 }
 0x5de   : > { %v3626_v18 = vpop.f32.mrf.mxu2 }
 0x5e0   : > { %v3832_v17 = vpop.f32.mrf.mxu0 }
 0x5e1   : > { %v3730_v40 = vpop.f32.mrf.mxu3  ;;  %v3936_v20 = vpop.f32.mrf.mxu1 }
 0x5e2   : > { %v11211_v63 = vadd.f32 %v3730_v40, %v3626_v18  ;;  %v11213_v48 = vadd.f32 %v3936_v20, %v3832_v17 }
 0x5e3   : > { %7927 = vmatmul.msk.bf16.gmra.mxu2 %vm761_vm2, %v9249_v50 }
 0x5e4   : > { %13074 = vst [vmem:[#allocation45_spill] sm:$0xff] %v11211_v63 }
 0x5e6   : > { %7946 = vmatmul.msk.bf16.gmra.mxu3 %vm761_vm2, %v9249_v50  ;;  %v3629_v44 = vpop.f32.mrf.mxu2 }
 0x5e8   : > { %v11221_v5 = vpop.f32.mrf.mxu0 }
 0x5e9   : > { %v3733_v30 = vpop.f32.mrf.mxu3  ;;  %13076 = vst [vmem:[#allocation47_spill] sm:$0xff] %v11221_v5  ;;  %v11223_v51 = vpop.f32.mrf.mxu1 }
 0x5ea   : > { %v11219_v7 = vadd.f32 %v3733_v30, %v3629_v44  ;;  %13077 = vst [vmem:[#allocation48_spill] sm:$0xff] %v11223_v51 }
 0x5ec   : > { %13075 = vst [vmem:[#allocation46_spill] sm:$0xff] %v11219_v7 }
 0x5ee   : > { %v3631_v54 = vpop.f32.mrf.mxu2 }
 0x5f0   : > { %v3837_v17 = vpop.f32.mrf.mxu0 }
 0x5f1   : > { %v3735_v8 = vpop.f32.mrf.mxu3  ;;  %v3941_v20 = vpop.f32.mrf.mxu1 }
 0x5f2   : > { %v11225_v18 = vadd.f32 %v3735_v8, %v3631_v54  ;;  %v11227_v40 = vadd.f32 %v3941_v20, %v3837_v17  ;;  %v8145_v54 = vld [vmem:[%s12994_s14 + $0x70] sm:$0xf]  ;;  %v8613_v8 = vld [vmem:[%s12994_s14 + $0x74] sm:$0xf0] }
 0x5f3   : > { %7928 = vmatmul.msk.bf16.gmra.mxu2 %vm761_vm2, %v9322_v26  ;;  %v8146_v17 = vor.u32 %v8613_v8, %v8145_v54  ;;  %v8629_v20 = vld [vmem:[%s12994_s14 + $0xf4] sm:$0xf0] }
 0x5f4   : > { %13078 = vst [vmem:[#allocation49_spill] sm:$0xff] %v11225_v18 }
 0x5f5   : > { %13079 = vst [vmem:[#allocation50_spill] sm:$0xff] %v11227_v40  ;;  %5325 = vmatpush.bf16.msra.mxu0 %v8146_v17  ;;  %v4203_v17 = vld [vmem:[%s12991_s11] sm:$0x3] }
 0x5f6   : > { %7947 = vmatmul.msk.bf16.gmra.mxu3 %vm761_vm2, %v9322_v26  ;;  %v3634_v50 = vpop.f32.mrf.mxu2  ;;  %v8209_v26 = vld [vmem:[%s12994_s14 + $0xf0] sm:$0xf] }
 0x5f7   : > { %v8210_v18 = vor.u32 %v8629_v20, %v8209_v26  ;;  %v8588_v26 = vld [vmem:[%s12992_s12 + $0xb4] sm:$0xf] }
 0x5f8   : > { %v11235_v7 = vpop.f32.mrf.mxu0 }
 0x5f9   : > { %v3738_v44 = vpop.f32.mrf.mxu3  ;;  %13081 = vst [vmem:[#allocation52_spill] sm:$0xff] %v11235_v7  ;;  %v11237_v63 = vpop.f32.mrf.mxu1  ;;  %5429 = vmatpush.bf16.msra.mxu1 %v8210_v18 }
 0x5fa   : > { %v11233_v30 = vadd.f32 %v3738_v44, %v3634_v50  ;;  %13082 = vst [vmem:[#allocation53_spill] sm:$0xff] %v11237_v63  ;;  %v8572_v50 = vld [vmem:[%s12992_s12 + $0x34] sm:$0xf]  ;;  %v7987_v44 = vld [vmem:[%s12992_s12 + $0x38] sm:$0xf0] }
 0x5fb   : > { %v7990_v63 = vor.u32 %v8572_v50, %v7987_v44  ;;  %v11275_v50 = vperm.slane %v4203_v17, 0  ;;  %v11278_v44 = vperm.slane %v4203_v17, 1 }
 0x5fc   : > { %13080 = vst [vmem:[#allocation51_spill] sm:$0xff] %v11233_v30 }
 0x5fd   : > { %4809 = vmatpush.bf16.msra.mxu2 %v7990_v63 }
 0x5fe   : > { %v3636_v30 = vpop.f32.mrf.mxu2 }
 0x600   : > { %v3842_v54 = vpop.f32.mrf.mxu0 }
 0x601   : > { %v3740_v7 = vpop.f32.mrf.mxu3  ;;  %v3946_v8 = vpop.f32.mrf.mxu1 }
 0x602   : > { %v11257_v40 = vadd.f32 %v3740_v7, %v3636_v30  ;;  %v11259_v51 = vadd.f32 %v3946_v8, %v3842_v54  ;;  %v8051_v7 = vld [vmem:[%s12992_s12 + $0xb8] sm:$0xf0] }
 0x603   : > { %7929 = vmatmul.msk.bf16.gmra.mxu2 %vm761_vm2, %v9398_v11  ;;  %v8054_v30 = vor.u32 %v8588_v26, %v8051_v7 }
 0x604   : > { %13083 = vst [vmem:[#allocation54_spill] sm:$0xff] %v11257_v40 }
 0x605   : > { %13084 = vst [vmem:[#allocation55_spill] sm:$0xff] %v11259_v51  ;;  %4913 = vmatpush.bf16.msra.mxu3 %v8054_v30 }
 0x606   : > { %7948 = vmatmul.msk.bf16.gmra.mxu3 %vm761_vm2, %v9398_v11  ;;  %v4004_v18 = vpop.f32.mrf.mxu2 }
 0x607   : > { %v4005_v20 = vadd.f32 %v4004_v18, %v10850_v61 }
 0x609   : > { %v4108_v63 = vpop.f32.mrf.mxu3  ;;  %v4209_v8 = vadd.f32 %v11275_v50, %v4005_v20 }
 0x60a   : > { %v4109_v11 = vadd.f32 %v4108_v63, %v10857_v14 }
 0x60b   : > { %v4285_v18 = vmax.f32 %v4209_v8, 0.0 }
 0x60c   : > { %v4210_v30 = vadd.f32 %v11278_v44, %v4109_v11  ;;  %v8137_v11 = vld [vmem:[%s12994_s14 + $0x60] sm:$0xf] }
 0x60e   : > { %v4006_v54 = vpop.f32.mrf.mxu2  ;;  %v4286_v14 = vmax.f32 %v4210_v30, 0.0 }
 0x60f   : > { %v4007_v26 = vadd.f32 %v4006_v54, %v10855_v39 }
 0x611   : > { %v4110_v7 = vpop.f32.mrf.mxu3  ;;  %v4211_v51 = vadd.f32 %v11275_v50, %v4007_v26 }
 0x612   : > { %v4111_v40 = vadd.f32 %v4110_v7, %v10865_v25 }
 0x613   : > { %v4287_v5 = vmax.f32 %v4211_v51, 0.0  ;;  %7930 = vmatmul.msk.bf16.gmra.mxu2 %vm761_vm2, %v9429_v49 }
 0x614   : > { %v4212_v61 = vadd.f32 %v11278_v44, %v4111_v40 }
 0x615   : > { %v11290_v39 = vpack.c.bf16 %v4287_v5, %v4285_v18 }
 0x616   : > { %v4288_v63 = vmax.f32 %v4212_v61, 0.0  ;;  %7949 = vmatmul.msk.bf16.gmra.mxu3 %vm761_vm2, %v9429_v49  ;;  %v4009_v20 = vpop.f32.mrf.mxu2  ;;  %v8611_v49 = vld [vmem:[%s12994_s14 + $0x64] sm:$0xf0] }
 0x617   : > { %4605 = vmatmul.bf16.vlgmr.msrb.gmra.mxu0 %v11290_v39  ;;  %v4010_v51 = vadd.f32 %v4009_v20, %v10863_v12  ;;  %v8138_v5 = vor.u32 %v8611_v49, %v8137_v11  ;;  %v7979_v11 = vld [vmem:[%s12992_s12 + $0x28] sm:$0xf0] }
 0x618   : > { %v11292_v17 = vpack.c.bf16 %v4288_v63, %v4286_v14 }
 0x619   : > { %v4113_v25 = vpop.f32.mrf.mxu3  ;;  %v4213_v8 = vadd.f32 %v11275_v50, %v4010_v51  ;;  %5326 = vmatpush.bf16.msra.mxu0 %v8138_v5 }
 0x61a   : > { %4709 = vmatmul.bf16.vlgmr.msrb.gmra.mxu1 %v11292_v17  ;;  %v4114_v40 = vadd.f32 %v4113_v25, %v10881_v16 }
 0x61b   : > { %v4289_v18 = vmax.f32 %v4213_v8, 0.0  ;;  %v8043_v8 = vld [vmem:[%s12992_s12 + $0xa8] sm:$0xf0] }
 0x61c   : > { %v4214_v12 = vadd.f32 %v11278_v44, %v4114_v40  ;;  %v8570_v40 = vld [vmem:[%s12992_s12 + $0x24] sm:$0xf] }
 0x61e   : > { %v4011_v54 = vpop.f32.mrf.mxu2  ;;  %v4290_v63 = vmax.f32 %v4214_v12, 0.0 }
 0x61f   : > { %v4012_v26 = vadd.f32 %v4011_v54, %v10873_v43  ;;  %v8201_v43 = vld [vmem:[%s12994_s14 + $0xe0] sm:$0xf]  ;;  %v7982_v54 = vor.u32 %v8570_v40, %v7979_v11 }
 0x621   : > { %v4115_v7 = vpop.f32.mrf.mxu3  ;;  %v4215_v30 = vadd.f32 %v11275_v50, %v4012_v26  ;;  %4810 = vmatpush.bf16.msra.mxu2 %v7982_v54 }
 0x622   : > { %v4116_v16 = vadd.f32 %v4115_v7, %v10889_v29  ;;  %v8627_v29 = vld [vmem:[%s12994_s14 + $0xe4] sm:$0xf0] }
 0x623   : > { %v4291_v14 = vmax.f32 %v4215_v30, 0.0  ;;  %7931 = vmatmul.msk.bf16.gmra.mxu2 %vm761_vm2, %v9086_v41  ;;  %v8202_v51 = vor.u32 %v8627_v29, %v8201_v43 }
 0x624   : > { %v4216_v61 = vadd.f32 %v11278_v44, %v4116_v16 }
 0x625   : > { %v11320_v25 = vpack.c.bf16 %v4291_v14, %v4289_v18  ;;  %5430 = vmatpush.bf16.msra.mxu1 %v8202_v51 }
 0x626   : > { %v4292_v20 = vmax.f32 %v4216_v61, 0.0  ;;  %7950 = vmatmul.msk.bf16.gmra.mxu3 %vm761_vm2, %v9086_v41  ;;  %v8586_v41 = vld [vmem:[%s12992_s12 + $0xa4] sm:$0xf]  ;;  %v4014_v49 = vpop.f32.mrf.mxu2 }
 0x627   : > { %4610 = vmatmul.bf16.gmra.mxu0 %v11320_v25  ;;  %v8046_v7 = vor.u32 %v8586_v41, %v8043_v8  ;;  %v4015_v12 = vadd.f32 %v4014_v49, %v10887_v37 }
 0x628   : > { %v11331_v5 = vpack.c.bf16 %v4292_v20, %v4290_v63 }
 0x629   : > { %v4118_v26 = vpop.f32.mrf.mxu3  ;;  %4914 = vmatpush.bf16.msra.mxu3 %v8046_v7  ;;  %v4217_v61 = vadd.f32 %v11275_v50, %v4015_v12 }
 0x62a   : > { %4714 = vmatmul.bf16.gmra.mxu1 %v11331_v5  ;;  %v4119_v16 = vadd.f32 %v4118_v26, %v10893_v21 }
 0x62b   : > { %v4293_v51 = vmax.f32 %v4217_v61, 0.0 }
 0x62c   : > { %v4218_v63 = vadd.f32 %v11278_v44, %v4119_v16 }
 0x62e   : > { %v4016_v30 = vpop.f32.mrf.mxu2  ;;  %v4294_v37 = vmax.f32 %v4218_v63, 0.0 }
 0x62f   : > { %v4017_v18 = vadd.f32 %v4016_v30, %v10891_v53 }
 0x631   : > { %v4120_v14 = vpop.f32.mrf.mxu3  ;;  %v4219_v43 = vadd.f32 %v11275_v50, %v4017_v18 }
 0x632   : > { %v4121_v20 = vadd.f32 %v4120_v14, %v10901_v15 }
 0x633   : > { %v4295_v40 = vmax.f32 %v4219_v43, 0.0  ;;  %7932 = vmatmul.msk.bf16.gmra.mxu2 %vm761_vm2, %v9123_v58  ;;  %v8193_v43 = vld [vmem:[%s12994_s14 + $0xd0] sm:$0xf] }
 0x634   : > { %v4220_v29 = vadd.f32 %v11278_v44, %v4121_v20 }
 0x635   : > { %v11350_v53 = vpack.c.bf16 %v4295_v40, %v4293_v51 }
 0x636   : > { %v4296_v21 = vmax.f32 %v4220_v29, 0.0  ;;  %7951 = vmatmul.msk.bf16.gmra.mxu3 %vm761_vm2, %v9123_v58  ;;  %v4019_v11 = vpop.f32.mrf.mxu2  ;;  %v8625_v29 = vld [vmem:[%s12994_s14 + $0xd4] sm:$0xf0] }
 0x637   : > { %4615 = vmatmul.bf16.gmra.mxu0 %v11350_v53  ;;  %v4020_v49 = vadd.f32 %v4019_v11, %v10899_v56  ;;  %v8194_v40 = vor.u32 %v8625_v29, %v8193_v43 }
 0x638   : > { %v11352_v41 = vpack.c.bf16 %v4296_v21, %v4294_v37 }
 0x639   : > { %v4123_v15 = vpop.f32.mrf.mxu3  ;;  %v4221_v26 = vadd.f32 %v11275_v50, %v4020_v49  ;;  %5431 = vmatpush.bf16.msra.mxu1 %v8194_v40  ;;  %v7971_v49 = vld [vmem:[%s12992_s12 + $0x18] sm:$0xf0] }
 0x63a   : > { %4719 = vmatmul.bf16.gmra.mxu1 %v11352_v41  ;;  %v4124_v54 = vadd.f32 %v4123_v15, %v10905_v10  ;;  %v8568_v15 = vld [vmem:[%s12992_s12 + $0x14] sm:$0xf] }
 0x63b   : > { %v4297_v18 = vmax.f32 %v4221_v26, 0.0  ;;  %v8035_v26 = vld [vmem:[%s12992_s12 + $0x98] sm:$0xf0] }
 0x63c   : > { %v4222_v12 = vadd.f32 %v11278_v44, %v4124_v54  ;;  %v7974_v54 = vor.u32 %v8568_v15, %v7971_v49 }
 0x63e   : > { %v4021_v8 = vpop.f32.mrf.mxu2  ;;  %v4298_v56 = vmax.f32 %v4222_v12, 0.0  ;;  %4811 = vmatpush.bf16.msra.mxu2 %v7974_v54 }
 0x63f   : > { %v4022_v7 = vadd.f32 %v4021_v8, %v10903_v55  ;;  %v8129_v55 = vld [vmem:[%s12994_s14 + $0x50] sm:$0xf]  ;;  %v8584_v8 = vld [vmem:[%s12992_s12 + $0x94] sm:$0xf] }
 0x641   : > { %v4125_v58 = vpop.f32.mrf.mxu3  ;;  %v4223_v30 = vadd.f32 %v11275_v50, %v4022_v7  ;;  %v8038_v7 = vor.u32 %v8584_v8, %v8035_v26 }
 0x642   : > { %v4126_v16 = vadd.f32 %v4125_v58, %v10931_v36  ;;  %v8609_v36 = vld [vmem:[%s12994_s14 + $0x54] sm:$0xf0] }
 0x643   : > { %v4299_v14 = vmax.f32 %v4223_v30, 0.0  ;;  %7933 = vmatmul.msk.bf16.gmra.mxu2 %vm761_vm2, %v9151_v6  ;;  %v8130_v20 = vor.u32 %v8609_v36, %v8129_v55  ;;  %4915 = vmatpush.bf16.msra.mxu3 %v8038_v7 }
 0x644   : > { %v4224_v61 = vadd.f32 %v11278_v44, %v4126_v16 }
 0x645   : > { %v11374_v63 = vpack.c.bf16 %v4299_v14, %v4297_v18  ;;  %5327 = vmatpush.bf16.msra.mxu0 %v8130_v20 }
 0x646   : > { %v4300_v10 = vmax.f32 %v4224_v61, 0.0  ;;  %7952 = vmatmul.msk.bf16.gmra.mxu3 %vm761_vm2, %v9151_v6  ;;  %v4024_v6 = vpop.f32.mrf.mxu2 }
 0x647   : > { %4620 = vmatmul.bf16.gmra.mxu0 %v11374_v63  ;;  %v4025_v21 = vadd.f32 %v4024_v6, %v10923_v46 }
 0x648   : > { %v11382_v51 = vpack.c.bf16 %v4300_v10, %v4298_v56 }
 0x649   : > { %v4128_v37 = vpop.f32.mrf.mxu3 }
 0x64a   : > { %4724 = vmatmul.bf16.gmra.mxu1 %v11382_v51  ;;  %v4129_v11 = vadd.f32 %v4128_v37, %v10941_v23  ;;  %v4225_v23 = vadd.f32 %v11275_v50, %v4025_v21 }
 0x64c   : > { %v4226_v16 = vadd.f32 %v11278_v44, %v4129_v11  ;;  %v4301_v14 = vmax.f32 %v4225_v23, 0.0 }
 0x64e   : > { %v4026_v46 = vpop.f32.mrf.mxu2  ;;  %v4302_v10 = vmax.f32 %v4226_v16, 0.0  ;;  %v8185_v16 = vld [vmem:[%s12994_s14 + $0xc0] sm:$0xf] }
 0x64f   : > { %v4027_v58 = vadd.f32 %v4026_v46, %v10939_v2 }
 0x651   : > { %v4130_v12 = vpop.f32.mrf.mxu3  ;;  %v4227_v61 = vadd.f32 %v11275_v50, %v4027_v58  ;;  %v8121_v58 = vld [vmem:[%s12994_s14 + $0x40] sm:$0xf] }
 0x652   : > { %v4131_v30 = vadd.f32 %v4130_v12, %v10949_v0 }
 0x653   : > { %v4303_v56 = vmax.f32 %v4227_v61, 0.0  ;;  %7934 = vmatmul.msk.bf16.gmra.mxu2 %vm761_vm2, %v9179_v19 }
 0x654   : > { %v4228_v18 = vadd.f32 %v11278_v44, %v4131_v30  ;;  %v8623_v30 = vld [vmem:[%s12994_s14 + $0xc4] sm:$0xf0] }
 0x655   : > { %v11410_v2 = vpack.c.bf16 %v4303_v56, %v4301_v14  ;;  %v8186_v61 = vor.u32 %v8623_v30, %v8185_v16 }
 0x656   : > { %v4304_v55 = vmax.f32 %v4228_v18, 0.0  ;;  %7953 = vmatmul.msk.bf16.gmra.mxu3 %vm761_vm2, %v9179_v19  ;;  %v4029_v36 = vpop.f32.mrf.mxu2 }
 0x657   : > { %4625 = vmatmul.bf16.gmra.mxu0 %v11410_v2  ;;  %v4030_v43 = vadd.f32 %v4029_v36, %v10947_v4  ;;  %5432 = vmatpush.bf16.msra.mxu1 %v8186_v61  ;;  %v13086_v61 = vld [vmem:[#allocation10_spill] sm:$0xff] }
 0x658   : > { %v11412_v20 = vpack.c.bf16 %v4304_v55, %v4302_v10 }
 0x659   : > { %v4133_v0 = vpop.f32.mrf.mxu3  ;;  %v4229_v40 = vadd.f32 %v11275_v50, %v4030_v43 }
 0x65a   : > { %4729 = vmatmul.bf16.gmra.mxu1 %v11412_v20  ;;  %v4134_v29 = vadd.f32 %v4133_v0, %v10953_v1 }
 0x65b   : > { %v4305_v54 = vmax.f32 %v4229_v40, 0.0 }
 0x65c   : > { %v4230_v21 = vadd.f32 %v11278_v44, %v4134_v29  ;;  %v13085_v29 = vld [vmem:[#allocation9_spill] sm:$0xff] }
 0x65e   : > { %v4031_v6 = vpop.f32.mrf.mxu2  ;;  %v4306_v4 = vmax.f32 %v4230_v21, 0.0  ;;  %v8582_v21 = vld [vmem:[%s12992_s12 + $0x84] sm:$0xf] }
 0x65f   : > { %v4032_v37 = vadd.f32 %v4031_v6, %v10951_v22 }
 0x661   : > { %v4135_v19 = vpop.f32.mrf.mxu3  ;;  %v4231_v15 = vadd.f32 %v11275_v50, %v4032_v37 }
 0x662   : > { %v4136_v11 = vadd.f32 %v4135_v19, %v10961_v9 }
 0x663   : > { %v4307_v8 = vmax.f32 %v4231_v15, 0.0  ;;  %7935 = vmatmul.msk.bf16.gmra.mxu2 %vm761_vm2, %v9207_v31 }
 0x664   : > { %v4232_v49 = vadd.f32 %v11278_v44, %v4136_v11  ;;  %v8027_v11 = vld [vmem:[%s12992_s12 + $0x88] sm:$0xf0] }
 0x665   : > { %v11428_v22 = vpack.c.bf16 %v4307_v8, %v4305_v54  ;;  %v8030_v54 = vor.u32 %v8582_v21, %v8027_v11 }
 0x666   : > { %v4308_v1 = vmax.f32 %v4232_v49, 0.0  ;;  %7954 = vmatmul.msk.bf16.gmra.mxu3 %vm761_vm2, %v9207_v31  ;;  %v4034_v26 = vpop.f32.mrf.mxu2  ;;  %v8607_v31 = vld [vmem:[%s12994_s14 + $0x44] sm:$0xf0] }
 0x667   : > { %4630 = vmatmul.bf16.gmra.mxu0 %v11428_v22  ;;  %v4035_v7 = vadd.f32 %v4034_v26, %v10959_v47  ;;  %v8122_v12 = vor.u32 %v8607_v31, %v8121_v58  ;;  %4916 = vmatpush.bf16.msra.mxu3 %v8030_v54  ;;  %v3894_v26 = vadd.f32 %v10999_v62, %v10997_v24 }
 0x668   : > { %v11430_v46 = vpack.c.bf16 %v4308_v1, %v4306_v4 }
 0x669   : > { %v4138_v9 = vpop.f32.mrf.mxu3  ;;  %5328 = vmatpush.bf16.msra.mxu0 %v8122_v12 }
 0x66a   : > { %4734 = vmatmul.bf16.gmra.mxu1 %v11430_v46  ;;  %v4139_v23 = vadd.f32 %v4138_v9, %v10977_v33  ;;  %v4233_v33 = vadd.f32 %v11275_v50, %v4035_v7 }
 0x66c   : > { %v4234_v56 = vadd.f32 %v11278_v44, %v4139_v23  ;;  %v4309_v0 = vmax.f32 %v4233_v33, 0.0 }
 0x66e   : > { %v4036_v47 = vpop.f32.mrf.mxu2  ;;  %v4310_v6 = vmax.f32 %v4234_v56, 0.0 }
 0x66f   : > { %v4037_v18 = vadd.f32 %v4036_v47, %v10975_v27  ;;  %v8566_v27 = vld [vmem:[%s12992_s12 + $0x4] sm:$0xf] }
 0x671   : > { %v4140_v14 = vpop.f32.mrf.mxu3  ;;  %v4235_v55 = vadd.f32 %v11275_v50, %v4037_v18 }
 0x672   : > { %v4141_v10 = vadd.f32 %v4140_v14, %v10985_v34  ;;  %v7963_v34 = vld [vmem:[%s12992_s12 + $0x8] sm:$0xf0]  ;;  %v13087_v14 = vld [vmem:[#allocation13_spill] sm:$0xff] }
 0x673   : > { %v4311_v43 = vmax.f32 %v4235_v55, 0.0  ;;  %7936 = vmatmul.msk.bf16.gmra.mxu2 %vm761_vm2, %v13085_v29  ;;  %v7966_v19 = vor.u32 %v8566_v27, %v7963_v34  ;;  %v13088_v55 = vld [vmem:[#allocation15_spill] sm:$0xff]  ;;  %v13090_v34 = vld [vmem:[#allocation14_spill] sm:$0xff] }
 0x674   : > { %v4236_v36 = vadd.f32 %v11278_v44, %v4141_v10  ;;  %v11496_v10 = vpop.f32.mrf.mxu0 }
 0x675   : > { %v11464_v37 = vpack.c.bf16 %v4311_v43, %v4309_v0  ;;  %4812 = vmatpush.bf16.msra.mxu2 %v7966_v19  ;;  %v11499_v0 = vpop.f32.mrf.mxu1  ;;  %v13089_v43 = vld [vmem:[#allocation17_spill] sm:$0xff] }
 0x676   : > { %v4312_v40 = vmax.f32 %v4236_v36, 0.0  ;;  %7955 = vmatmul.msk.bf16.gmra.mxu3 %vm761_vm2, %v13085_v29  ;;  %v4039_v15 = vpop.f32.mrf.mxu2  ;;  %v3899_v29 = vadd.f32 %v13089_v43, %v11029_v13  ;;  %v13092_v43 = vld [vmem:[#allocation16_spill] sm:$0xff] }
 0x677   : > { %4635 = vmatmul.bf16.gmra.mxu0 %v11464_v37  ;;  %v4040_v4 = vadd.f32 %v4039_v15, %v10983_v59 }
 0x678   : > { %v11472_v49 = vpack.c.bf16 %v4312_v40, %v4310_v6  ;;  %v11506_v40 = vld [vmem:[%s12993_s13] sm:$0x3] }
 0x679   : > { %v4143_v8 = vpop.f32.mrf.mxu3  ;;  %v4237_v7 = vadd.f32 %v11275_v50, %v4040_v4 }
 0x67a   : > { %4739 = vmatmul.bf16.gmra.mxu1 %v11472_v49  ;;  %v4144_v1 = vadd.f32 %v4143_v8, %v10989_v45  ;;  %v11513_v8 = vperm.slane %v11506_v40, 0 }
 0x67b   : > { %v4313_v47 = vmax.f32 %v4237_v7, 0.0 }
 0x67c   : > { %v4238_v31 = vadd.f32 %v11278_v44, %v4144_v1 }
 0x67e   : > { %v4041_v9 = vpop.f32.mrf.mxu2  ;;  %v4314_v45 = vmax.f32 %v4238_v31, 0.0  ;;  %v8605_v31 = vld [vmem:[%s12994_s14 + $0x34] sm:$0xf0] }
 0x67f   : > { %v4042_v23 = vadd.f32 %v4041_v9, %v10987_v35 }
 0x681   : > { %v4145_v58 = vpop.f32.mrf.mxu3  ;;  %v4239_v16 = vadd.f32 %v11275_v50, %v4042_v23 }
 0x682   : > { %v4146_v12 = vadd.f32 %v4145_v58, %v3894_v26  ;;  %v13091_v26 = vld [vmem:[#allocation11_spill] sm:$0xff] }
 0x683   : > { %v4315_v59 = vmax.f32 %v4239_v16, 0.0  ;;  %7937 = vmatmul.msk.bf16.gmra.mxu2 %vm761_vm2, %v13086_v61  ;;  %v8113_v58 = vld [vmem:[%s12994_s14 + $0x30] sm:$0xf] }
 0x684   : > { %v4240_v30 = vadd.f32 %v11278_v44, %v4146_v12 }
 0x685   : > { %v11489_v62 = vpack.c.bf16 %v4315_v59, %v4313_v47  ;;  %v8114_v47 = vor.u32 %v8605_v31, %v8113_v58  ;;  %v8177_v59 = vld [vmem:[%s12994_s14 + $0xb0] sm:$0xf] }
 0x686   : > { %v4316_v24 = vmax.f32 %v4240_v30, 0.0  ;;  %7956 = vmatmul.msk.bf16.gmra.mxu3 %vm761_vm2, %v13086_v61  ;;  %v4044_v35 = vpop.f32.mrf.mxu2  ;;  %v8621_v61 = vld [vmem:[%s12994_s14 + $0xb4] sm:$0xf0] }
 0x687   : > { %4640 = vmatmul.bf16.gmra.mxu0 %v11489_v62  ;;  %v4045_v56 = vadd.f32 %v4044_v35, %v13087_v14  ;;  %v8178_v35 = vor.u32 %v8621_v61, %v8177_v59 }
 0x688   : > { %v11491_v33 = vpack.c.bf16 %v4316_v24, %v4314_v45  ;;  %5329 = vmatpush.bf16.msra.mxu0 %v8114_v47 }
 0x689   : > { %v4148_v18 = vpop.f32.mrf.mxu3  ;;  %v4241_v27 = vadd.f32 %v11275_v50, %v4045_v56  ;;  %5433 = vmatpush.bf16.msra.mxu1 %v8178_v35  ;;  %v8612_v56 = vld [vmem:[%s12994_s14 + $0x74] sm:$0xf] }
 0x68a   : > { %4744 = vmatmul.bf16.gmra.mxu1 %v11491_v33  ;;  %v4149_v36 = vadd.f32 %v4148_v18, %v13088_v55  ;;  %v8147_v55 = vld [vmem:[%s12994_s14 + $0x78] sm:$0xf0] }
 0x68b   : > { %v4317_v4 = vmax.f32 %v4241_v27, 0.0 }
 0x68c   : > { %v4242_v11 = vadd.f32 %v11278_v44, %v4149_v36  ;;  %v8150_v36 = vor.u32 %v8612_v56, %v8147_v55 }
 0x68e   : > { %v4046_v6 = vpop.f32.mrf.mxu2  ;;  %v4318_v9 = vmax.f32 %v4242_v11, 0.0  ;;  %5533 = vmatpush.bf16.msrb.mxu2 %v8150_v36 }
 0x68f   : > { %v4047_v19 = vadd.f32 %v4046_v6, %v13090_v34  ;;  %v13093_v6 = vld [vmem:[#allocation19_spill] sm:$0xff] }
 0x691   : > { %v4150_v21 = vpop.f32.mrf.mxu3  ;;  %v4243_v54 = vadd.f32 %v11275_v50, %v4047_v19  ;;  %v8628_v19 = vld [vmem:[%s12994_s14 + $0xf4] sm:$0xf] }
 0x692   : > { %v4151_v15 = vadd.f32 %v4150_v21, %v3899_v29  ;;  %v8211_v21 = vld [vmem:[%s12994_s14 + $0xf8] sm:$0xf0] }
 0x693   : > { %v4319_v1 = vmax.f32 %v4243_v54, 0.0  ;;  %7938 = vmatmul.msk.bf16.gmra.mxu2 %vm761_vm2, %v13091_v26  ;;  %v8214_v54 = vor.u32 %v8628_v19, %v8211_v21  ;;  %v13096_v19 = vld [vmem:[#allocation21_spill] sm:$0xff] }
 0x694   : > { %v4244_v13 = vadd.f32 %v11278_v44, %v4151_v15  ;;  %v4606_v23 = vpop.f32.mrf.mxu0 }
 0x695   : > { %v4607_v12 = vadd.f32 %v4606_v23, %v11513_v8  ;;  %v11527_v30 = vpack.c.bf16 %v4319_v1, %v4317_v4  ;;  %5637 = vmatpush.bf16.msrb.mxu3 %v8214_v54 }
 0x696   : > { %v4320_v7 = vmax.f32 %v4244_v13, 0.0  ;;  %7957 = vmatmul.msk.bf16.gmra.mxu3 %vm761_vm2, %v13091_v26  ;;  %v4049_v45 = vpop.f32.mrf.mxu2  ;;  %v3904_v13 = vadd.f32 %v11051_v3, %v11049_v52  ;;  %v13095_v3 = vld [vmem:[#allocation12_spill] sm:$0xff] }
 0x697   : > { %v4710_v16 = vpop.f32.mrf.mxu1  ;;  %4645 = vmatmul.bf16.gmra.mxu0 %v11527_v30  ;;  %v4050_v29 = vadd.f32 %v4049_v45, %v13092_v43 }
 0x698   : > { %v11535_v24 = vpack.c.bf16 %v4320_v7, %v4318_v9  ;;  %v4711_v18 = vadd.f32 %v4710_v16, %v4607_v12  ;;  %v13094_v9 = vld [vmem:[#allocation18_spill] sm:$0xff] }
 0x699   : > { %v4153_v14 = vpop.f32.mrf.mxu3  ;;  %v4245_v1 = vadd.f32 %v11275_v50, %v4050_v29 }
 0x69a   : > { %4749 = vmatmul.bf16.gmra.mxu1 %v11535_v24  ;;  %v4154_v27 = vadd.f32 %v4153_v14, %v13093_v6  ;;  %v5013_v12 = vmax.f32 %v4711_v18, 0.0 }
 0x69b   : > { %v4321_v61 = vmax.f32 %v4245_v1, 0.0 }
 0x69c   : > { %v4608_v34 = vpop.f32.mrf.mxu0  ;;  %v4246_v58 = vadd.f32 %v11278_v44, %v4154_v27 }
 0x69d   : > { %v4609_v11 = vadd.f32 %v4608_v34, %v11513_v8 }
 0x69e   : > { %v4051_v4 = vpop.f32.mrf.mxu2  ;;  %v4322_v35 = vmax.f32 %v4246_v58, 0.0 }
 0x69f   : > { %v4712_v15 = vpop.f32.mrf.mxu1  ;;  %v4052_v7 = vadd.f32 %v4051_v4, %v13094_v9  ;;  %v13098_v4 = vld [vmem:[#allocation24_spill] sm:$0xff] }
 0x6a0   : > { %v4713_v26 = vadd.f32 %v4712_v15, %v4609_v11 }
 0x6a1   : > { %v4155_v23 = vpop.f32.mrf.mxu3  ;;  %v4247_v47 = vadd.f32 %v11275_v50, %v4052_v7 }
 0x6a2   : > { %v4156_v31 = vadd.f32 %v4155_v23, %v3904_v13  ;;  %v5015_v16 = vmax.f32 %v4713_v26, 0.0  ;;  %v13097_v13 = vld [vmem:[#allocation23_spill] sm:$0xff]  ;;  %v13099_v23 = vld [vmem:[#allocation20_spill] sm:$0xff] }
 0x6a3   : > { %v4323_v52 = vmax.f32 %v4247_v47, 0.0  ;;  %7939 = vmatmul.msk.bf16.gmra.mxu2 %vm761_vm2, %v13095_v3  ;;  %v3909_v1 = vadd.f32 %v13098_v4, %v13097_v13 }
 0x6a4   : > { %v4248_v59 = vadd.f32 %v11278_v44, %v4156_v31  ;;  %v11561_v45 = vpack.c.bf16 %v5015_v16, %v5013_v12  ;;  %v4611_v56 = vpop.f32.mrf.mxu0 }
 0x6a5   : > { %v4612_v18 = vadd.f32 %v4611_v56, %v11513_v8  ;;  %v11568_v36 = vpack.c.bf16 %v4323_v52, %v4321_v61 }
 0x6a6   : > { %v4324_v14 = vmax.f32 %v4248_v59, 0.0  ;;  %7958 = vmatmul.msk.bf16.gmra.mxu3 %vm761_vm2, %v13095_v3  ;;  %v4054_v43 = vpop.f32.mrf.mxu2 }
 0x6a7   : > { %v4715_v55 = vpop.f32.mrf.mxu1  ;;  %4650 = vmatmul.bf16.gmra.mxu0 %v11568_v36  ;;  %v4055_v34 = vadd.f32 %v4054_v43, %v11047_v38 }
 0x6a8   : > { %v11570_v29 = vpack.c.bf16 %v4324_v14, %v4322_v35  ;;  %v4716_v6 = vadd.f32 %v4715_v55, %v4612_v18 }
 0x6a9   : > { %v4158_v27 = vpop.f32.mrf.mxu3  ;;  %v4249_v9 = vadd.f32 %v11275_v50, %v4055_v34 }
 0x6aa   : > { %4754 = vmatmul.bf16.gmra.mxu1 %v11570_v29  ;;  %v4159_v21 = vadd.f32 %v4158_v27, %v13096_v19  ;;  %v5017_v38 = vmax.f32 %v4716_v6, 0.0 }
 0x6ab   : > { %v4325_v52 = vmax.f32 %v4249_v9, 0.0 }
 0x6ac   : > { %v4613_v11 = vpop.f32.mrf.mxu0  ;;  %v4250_v12 = vadd.f32 %v11278_v44, %v4159_v21 }
 0x6ad   : > { %v4614_v15 = vadd.f32 %v4613_v11, %v11513_v8 }
 0x6ae   : > { %v4056_v26 = vpop.f32.mrf.mxu2  ;;  %v4326_v14 = vmax.f32 %v4250_v12, 0.0  ;;  %v13102_v12 = vld [vmem:[#allocation28_spill] sm:$0xff] }
 0x6af   : > { %v4717_v54 = vpop.f32.mrf.mxu1  ;;  %v4057_v58 = vadd.f32 %v4056_v26, %v13099_v23  ;;  %v8619_v26 = vld [vmem:[%s12994_s14 + $0xa4] sm:$0xf0] }
 0x6b0   : > { %v4718_v7 = vadd.f32 %v4717_v54, %v4614_v15  ;;  %v13100_v15 = vld [vmem:[#allocation22_spill] sm:$0xff] }
 0x6b1   : > { %v4160_v31 = vpop.f32.mrf.mxu3  ;;  %v4251_v59 = vadd.f32 %v11275_v50, %v4057_v58  ;;  %v8610_v58 = vld [vmem:[%s12994_s14 + $0x64] sm:$0xf] }
 0x6b2   : > { %v4161_v16 = vadd.f32 %v4160_v31, %v3909_v1  ;;  %v5019_v47 = vmax.f32 %v4718_v7, 0.0  ;;  %v8169_v1 = vld [vmem:[%s12994_s14 + $0xa0] sm:$0xf]  ;;  %v13101_v31 = vld [vmem:[#allocation27_spill] sm:$0xff] }
 0x6b3   : > { %v4327_v3 = vmax.f32 %v4251_v59, 0.0  ;;  %4813 = vmatmul.bf16.vlgmr.msra.gmra.mxu2 %v11290_v39  ;;  %v8105_v39 = vld [vmem:[%s12994_s14 + $0x20] sm:$0xf]  ;;  %v8170_v23 = vor.u32 %v8619_v26, %v8169_v1 }
 0x6b4   : > { %v4252_v61 = vadd.f32 %v11278_v44, %v4161_v16  ;;  %v11585_v35 = vpack.c.bf16 %v5019_v47, %v5017_v38  ;;  %v4616_v18 = vpop.f32.mrf.mxu0  ;;  %v3914_v16 = vadd.f32 %v13102_v12, %v13101_v31 }
 0x6b5   : > { %v4617_v55 = vadd.f32 %v4616_v18, %v11513_v8  ;;  %v11589_v6 = vpack.c.bf16 %v4327_v3, %v4325_v52  ;;  %v13103_v52 = vld [vmem:[#allocation25_spill] sm:$0xff]  ;;  %5434 = vmatpush.bf16.msra.mxu1 %v8170_v23 }
 0x6b6   : > { %v4328_v56 = vmax.f32 %v4252_v61, 0.0  ;;  %4917 = vmatmul.bf16.vlgmr.msra.gmra.mxu3 %v11292_v17  ;;  %v4059_v27 = vpop.f32.mrf.mxu2  ;;  %v8603_v17 = vld [vmem:[%s12994_s14 + $0x24] sm:$0xf0] }
 0x6b7   : > { %v4720_v43 = vpop.f32.mrf.mxu1  ;;  %4655 = vmatmul.bf16.gmra.mxu0 %v11589_v6  ;;  %v8106_v11 = vor.u32 %v8603_v17, %v8105_v39  ;;  %v4060_v54 = vadd.f32 %v4059_v27, %v13100_v15  ;;  %v8203_v39 = vld [vmem:[%s12994_s14 + $0xe8] sm:$0xf0] }
 0x6b8   : > { %v11591_v34 = vpack.c.bf16 %v4328_v56, %v4326_v14  ;;  %v4721_v19 = vadd.f32 %v4720_v43, %v4617_v55 }
 0x6b9   : > { %v4163_v21 = vpop.f32.mrf.mxu3  ;;  %5330 = vmatpush.bf16.msra.mxu0 %v8106_v11  ;;  %v4253_v59 = vadd.f32 %v11275_v50, %v4060_v54 }
 0x6ba   : > { %4759 = vmatmul.bf16.gmra.mxu1 %v11591_v34  ;;  %v4164_v13 = vadd.f32 %v4163_v21, %v11095_v32  ;;  %v8139_v32 = vld [vmem:[%s12994_s14 + $0x68] sm:$0xf0]  ;;  %v5021_v55 = vmax.f32 %v4721_v19, 0.0  ;;  %v8626_v21 = vld [vmem:[%s12994_s14 + $0xe4] sm:$0xf] }
 0x6bb   : > { %v8142_v47 = vor.u32 %v8610_v58, %v8139_v32  ;;  %v8206_v11 = vor.u32 %v8626_v21, %v8203_v39  ;;  %v4329_v15 = vmax.f32 %v4253_v59, 0.0 }
 0x6bc   : > { %v4618_v4 = vpop.f32.mrf.mxu0  ;;  %v4254_v56 = vadd.f32 %v11278_v44, %v4164_v13 }
 0x6bd   : > { %v4619_v9 = vadd.f32 %v4618_v4, %v11513_v8  ;;  %5534 = vmatpush.bf16.msrb.mxu2 %v8142_v47  ;;  %5638 = vmatpush.bf16.msrb.mxu3 %v8206_v11 }
 0x6be   : > { %v4061_v38 = vpop.f32.mrf.mxu2  ;;  %v4330_v19 = vmax.f32 %v4254_v56, 0.0 }
 0x6bf   : > { %v4722_v7 = vpop.f32.mrf.mxu1  ;;  %v4062_v3 = vadd.f32 %v4061_v38, %v13103_v52  ;;  %v13107_v52 = vld [vmem:[#allocation33_spill] sm:$0xff] }
 0x6c0   : > { %v4723_v61 = vadd.f32 %v4722_v7, %v4619_v9 }
 0x6c1   : > { %v4165_v14 = vpop.f32.mrf.mxu3  ;;  %v4255_v27 = vadd.f32 %v11275_v50, %v4062_v3 }
 0x6c2   : > { %v4166_v18 = vadd.f32 %v4165_v14, %v3914_v16  ;;  %v5023_v43 = vmax.f32 %v4723_v61, 0.0  ;;  %v13105_v16 = vld [vmem:[#allocation30_spill] sm:$0xff]  ;;  %v13106_v61 = vld [vmem:[#allocation32_spill] sm:$0xff] }
 0x6c3   : > { %v4331_v54 = vmax.f32 %v4255_v27, 0.0  ;;  %4818 = vmatmul.bf16.gmra.mxu2 %v11320_v25  ;;  %v13104_v25 = vld [vmem:[#allocation26_spill] sm:$0xff]  ;;  %v3919_v3 = vadd.f32 %v13107_v52, %v13106_v61  ;;  %v8097_v52 = vld [vmem:[%s12994_s14 + $0x10] sm:$0xf] }
 0x6c4   : > { %v4256_v17 = vadd.f32 %v11278_v44, %v4166_v18  ;;  %v11630_v13 = vpack.c.bf16 %v5023_v43, %v5021_v55  ;;  %v4621_v1 = vpop.f32.mrf.mxu0  ;;  %v13108_v55 = vld [vmem:[#allocation29_spill] sm:$0xff] }
 0x6c5   : > { %v4622_v26 = vadd.f32 %v4621_v1, %v11513_v8  ;;  %v11634_v7 = vpack.c.bf16 %v4331_v54, %v4329_v15 }
 0x6c6   : > { %v4332_v4 = vmax.f32 %v4256_v17, 0.0  ;;  %4922 = vmatmul.bf16.gmra.mxu3 %v11331_v5  ;;  %v4064_v23 = vpop.f32.mrf.mxu2 }
 0x6c7   : > { %v4725_v9 = vpop.f32.mrf.mxu1  ;;  %4660 = vmatmul.bf16.gmra.mxu0 %v11634_v7  ;;  %v4065_v12 = vadd.f32 %v4064_v23, %v13104_v25 }
 0x6c8   : > { %v11636_v58 = vpack.c.bf16 %v4332_v4, %v4330_v19  ;;  %v4726_v32 = vadd.f32 %v4725_v9, %v4622_v26 }
 0x6c9   : > { %v4168_v31 = vpop.f32.mrf.mxu3  ;;  %v4257_v56 = vadd.f32 %v11275_v50, %v4065_v12 }
 0x6ca   : > { %4764 = vmatmul.bf16.gmra.mxu1 %v11636_v58  ;;  %v4169_v5 = vadd.f32 %v4168_v31, %v13105_v16  ;;  %v5025_v17 = vmax.f32 %v4726_v32, 0.0 }
 0x6cb   : > { %v4333_v19 = vmax.f32 %v4257_v56, 0.0 }
 0x6cc   : > { %v4623_v38 = vpop.f32.mrf.mxu0  ;;  %v4258_v21 = vadd.f32 %v11278_v44, %v4169_v5 }
 0x6cd   : > { %v4624_v47 = vadd.f32 %v4623_v38, %v11513_v8 }
 0x6ce   : > { %v4066_v14 = vpop.f32.mrf.mxu2  ;;  %v4334_v26 = vmax.f32 %v4258_v21, 0.0 }
 0x6cf   : > { %v4727_v59 = vpop.f32.mrf.mxu1  ;;  %v4067_v43 = vadd.f32 %v4066_v14, %v13108_v55  ;;  %v3924_v55 = vadd.f32 %v11157_v42, %v11155_v57  ;;  %v8617_v57 = vld [vmem:[%s12994_s14 + $0x94] sm:$0xf0] }
 0x6d0   : > { %v4728_v18 = vadd.f32 %v4727_v59, %v4624_v47  ;;  %v13110_v59 = vld [vmem:[#allocation35_spill] sm:$0xff] }
 0x6d1   : > { %v4170_v27 = vpop.f32.mrf.mxu3  ;;  %v4259_v15 = vadd.f32 %v11275_v50, %v4067_v43 }
 0x6d2   : > { %v4171_v39 = vadd.f32 %v4170_v27, %v3919_v3  ;;  %v5027_v11 = vmax.f32 %v4728_v18, 0.0  ;;  %v8601_v3 = vld [vmem:[%s12994_s14 + $0x14] sm:$0xf0] }
 0x6d3   : > { %v4335_v4 = vmax.f32 %v4259_v15, 0.0  ;;  %4823 = vmatmul.bf16.gmra.mxu2 %v11350_v53  ;;  %v13109_v53 = vld [vmem:[#allocation31_spill] sm:$0xff]  ;;  %v8098_v18 = vor.u32 %v8601_v3, %v8097_v52  ;;  %v8195_v3 = vld [vmem:[%s12994_s14 + $0xd8] sm:$0xf0] }
 0x6d4   : > { %v4260_v54 = vadd.f32 %v11278_v44, %v4171_v39  ;;  %v11651_v1 = vpack.c.bf16 %v5027_v11, %v5025_v17  ;;  %v4626_v23 = vpop.f32.mrf.mxu0  ;;  %v13111_v39 = vld [vmem:[#allocation34_spill] sm:$0xff] }
 0x6d5   : > { %v4627_v31 = vadd.f32 %v4626_v23, %v11513_v8  ;;  %v11655_v32 = vpack.c.bf16 %v4335_v4, %v4333_v19  ;;  %5331 = vmatpush.bf16.msra.mxu0 %v8098_v18 }
 0x6d6   : > { %v4336_v9 = vmax.f32 %v4260_v54, 0.0  ;;  %4927 = vmatmul.bf16.gmra.mxu3 %v11352_v41  ;;  %v4069_v12 = vpop.f32.mrf.mxu2 }
 0x6d7   : > { %v4730_v25 = vpop.f32.mrf.mxu1  ;;  %4665 = vmatmul.bf16.gmra.mxu0 %v11655_v32  ;;  %v4070_v47 = vadd.f32 %v4069_v12, %v13109_v53 }
 0x6d8   : > { %v11657_v16 = vpack.c.bf16 %v4336_v9, %v4334_v26  ;;  %v4731_v5 = vadd.f32 %v4730_v25, %v4627_v31  ;;  %v8161_v9 = vld [vmem:[%s12994_s14 + $0x90] sm:$0xf] }
 0x6d9   : > { %v4173_v38 = vpop.f32.mrf.mxu3  ;;  %v4261_v27 = vadd.f32 %v11275_v50, %v4070_v47  ;;  %v8162_v23 = vor.u32 %v8617_v57, %v8161_v9  ;;  %v8608_v47 = vld [vmem:[%s12994_s14 + $0x54] sm:$0xf]  ;;  %v13114_v57 = vld [vmem:[#allocation36_spill] sm:$0xff] }
 0x6da   : > { %4769 = vmatmul.bf16.gmra.mxu1 %v11657_v16  ;;  %v4174_v61 = vadd.f32 %v4173_v38, %v13110_v59  ;;  %v5029_v19 = vmax.f32 %v4731_v5, 0.0  ;;  %v8131_v59 = vld [vmem:[%s12994_s14 + $0x58] sm:$0xf0] }
 0x6db   : > { %v4337_v31 = vmax.f32 %v4261_v27, 0.0  ;;  %5435 = vmatpush.bf16.msra.mxu1 %v8162_v23  ;;  %v8134_v52 = vor.u32 %v8608_v47, %v8131_v59 }
 0x6dc   : > { %v4628_v41 = vpop.f32.mrf.mxu0  ;;  %v4262_v15 = vadd.f32 %v11278_v44, %v4174_v61 }
 0x6dd   : > { %v4629_v14 = vadd.f32 %v4628_v41, %v11513_v8  ;;  %5535 = vmatpush.bf16.msrb.mxu2 %v8134_v52 }
 0x6de   : > { %v4071_v43 = vpop.f32.mrf.mxu2  ;;  %v4338_v5 = vmax.f32 %v4262_v15, 0.0  ;;  %v13112_v15 = vld [vmem:[#allocation38_spill] sm:$0xff] }
 0x6df   : > { %v4732_v56 = vpop.f32.mrf.mxu1  ;;  %v4072_v17 = vadd.f32 %v4071_v43, %v13111_v39 }
 0x6e0   : > { %v4733_v21 = vadd.f32 %v4732_v56, %v4629_v14 }
 0x6e1   : > { %v4175_v11 = vpop.f32.mrf.mxu3  ;;  %v4263_v26 = vadd.f32 %v11275_v50, %v4072_v17 }
 0x6e2   : > { %v4176_v54 = vadd.f32 %v4175_v11, %v3924_v55  ;;  %v5031_v4 = vmax.f32 %v4733_v21, 0.0 }
 0x6e3   : > { %v4339_v25 = vmax.f32 %v4263_v26, 0.0  ;;  %4828 = vmatmul.bf16.gmra.mxu2 %v11374_v63 }
 0x6e4   : > { %v4264_v42 = vadd.f32 %v11278_v44, %v4176_v54  ;;  %v11684_v12 = vpack.c.bf16 %v5031_v4, %v5029_v19  ;;  %v4631_v53 = vpop.f32.mrf.mxu0  ;;  %v13113_v54 = vld [vmem:[#allocation39_spill] sm:$0xff] }
 0x6e5   : > { %v4632_v61 = vadd.f32 %v4631_v53, %v11513_v8  ;;  %v11694_v63 = vpack.c.bf16 %v4339_v25, %v4337_v31  ;;  %v3929_v19 = vadd.f32 %v13113_v54, %v13112_v15  ;;  %v13117_v54 = vld [vmem:[#allocation43_spill] sm:$0xff] }
 0x6e6   : > { %v4340_v38 = vmax.f32 %v4264_v42, 0.0  ;;  %4932 = vmatmul.bf16.gmra.mxu3 %v11382_v51  ;;  %v8624_v51 = vld [vmem:[%s12994_s14 + $0xd4] sm:$0xf]  ;;  %v4074_v14 = vpop.f32.mrf.mxu2 }
 0x6e7   : > { %v4735_v41 = vpop.f32.mrf.mxu1  ;;  %v8198_v18 = vor.u32 %v8624_v51, %v8195_v3  ;;  %4670 = vmatmul.bf16.gmra.mxu0 %v11694_v63  ;;  %v4075_v27 = vadd.f32 %v4074_v14, %v11153_v60 }
 0x6e8   : > { %v11702_v56 = vpack.c.bf16 %v4340_v38, %v4338_v5  ;;  %v4736_v55 = vadd.f32 %v4735_v41, %v4632_v61 }
 0x6e9   : > { %v4178_v43 = vpop.f32.mrf.mxu3  ;;  %5639 = vmatpush.bf16.msrb.mxu3 %v8198_v18  ;;  %v4265_v26 = vadd.f32 %v11275_v50, %v4075_v27 }
 0x6ea   : > { %4774 = vmatmul.bf16.gmra.mxu1 %v11702_v56  ;;  %v4179_v21 = vadd.f32 %v4178_v43, %v11161_v28  ;;  %v5033_v60 = vmax.f32 %v4736_v55, 0.0 }
 0x6eb   : > { %v4341_v53 = vmax.f32 %v4265_v26, 0.0 }
 0x6ec   : > { %v4633_v39 = vpop.f32.mrf.mxu0  ;;  %v4266_v31 = vadd.f32 %v11278_v44, %v4179_v21 }
 0x6ed   : > { %v4634_v17 = vadd.f32 %v4633_v39, %v11513_v8  ;;  %v13116_v39 = vld [vmem:[#allocation41_spill] sm:$0xff] }
 0x6ee   : > { %v4076_v4 = vpop.f32.mrf.mxu2  ;;  %v4342_v61 = vmax.f32 %v4266_v31, 0.0 }
 0x6ef   : > { %v4737_v11 = vpop.f32.mrf.mxu1  ;;  %v4077_v42 = vadd.f32 %v4076_v4, %v13114_v57 }
 0x6f0   : > { %v4738_v9 = vadd.f32 %v4737_v11, %v4634_v17 }
 0x6f1   : > { %v4180_v23 = vpop.f32.mrf.mxu3  ;;  %v4267_v28 = vadd.f32 %v11275_v50, %v4077_v42  ;;  %v13119_v42 = vld [vmem:[#allocation40_spill] sm:$0xff] }
 0x6f2   : > { %v4181_v25 = vadd.f32 %v4180_v23, %v3929_v19  ;;  %v5035_v5 = vmax.f32 %v4738_v9, 0.0  ;;  %v13118_v19 = vld [vmem:[#allocation44_spill] sm:$0xff] }
 0x6f3   : > { %v4343_v47 = vmax.f32 %v4267_v28, 0.0  ;;  %4833 = vmatmul.bf16.gmra.mxu2 %v11410_v2  ;;  %v13115_v2 = vld [vmem:[#allocation37_spill] sm:$0xff]  ;;  %v3934_v4 = vadd.f32 %v13118_v19, %v13117_v54  ;;  %v13120_v19 = vld [vmem:[#allocation42_spill] sm:$0xff] }
 0x6f4   : > { %v4268_v38 = vadd.f32 %v11278_v44, %v4181_v25  ;;  %v11717_v59 = vpack.c.bf16 %v5035_v5, %v5033_v60  ;;  %v4636_v52 = vpop.f32.mrf.mxu0 }
 0x6f5   : > { %v4637_v51 = vadd.f32 %v4636_v52, %v11513_v8  ;;  %v11721_v14 = vpack.c.bf16 %v4343_v47, %v4341_v53 }
 0x6f6   : > { %v4344_v41 = vmax.f32 %v4268_v38, 0.0  ;;  %4937 = vmatmul.bf16.gmra.mxu3 %v11412_v20  ;;  %v4079_v18 = vpop.f32.mrf.mxu2 }
 0x6f7   : > { %v4740_v3 = vpop.f32.mrf.mxu1  ;;  %4675 = vmatmul.bf16.gmra.mxu0 %v11721_v14  ;;  %v4080_v21 = vadd.f32 %v4079_v18, %v13115_v2  ;;  %v8089_v18 = vld [vmem:[%s12994_s14] sm:$0xf] }
 0x6f8   : > { %v11723_v55 = vpack.c.bf16 %v4344_v41, %v4342_v61  ;;  %v4741_v43 = vadd.f32 %v4740_v3, %v4637_v51 }
 0x6f9   : > { %v4183_v27 = vpop.f32.mrf.mxu3  ;;  %v4269_v9 = vadd.f32 %v11275_v50, %v4080_v21 }
 0x6fa   : > { %4779 = vmatmul.bf16.gmra.mxu1 %v11723_v55  ;;  %v4184_v17 = vadd.f32 %v4183_v27, %v13116_v39  ;;  %v5037_v5 = vmax.f32 %v4741_v43, 0.0  ;;  %v8599_v43 = vld [vmem:[%s12994_s14 + $0x4] sm:$0xf0]  ;;  %v8153_v39 = vld [vmem:[%s12994_s14 + $0x80] sm:$0xf] }
 0x6fb   : > { %v4345_v47 = vmax.f32 %v4269_v9, 0.0 }
 0x6fc   : > { %v4638_v20 = vpop.f32.mrf.mxu0  ;;  %v4270_v25 = vadd.f32 %v11278_v44, %v4184_v17 }
 0x6fd   : > { %v4639_v11 = vadd.f32 %v4638_v20, %v11513_v8 }
 0x6fe   : > { %v4081_v26 = vpop.f32.mrf.mxu2  ;;  %v4346_v52 = vmax.f32 %v4270_v25, 0.0 }
 0x6ff   : > { %v4742_v15 = vpop.f32.mrf.mxu1  ;;  %v4082_v23 = vadd.f32 %v4081_v26, %v13119_v42  ;;  %v8123_v42 = vld [vmem:[%s12994_s14 + $0x48] sm:$0xf0] }
 0x700   : > { %v4743_v57 = vadd.f32 %v4742_v15, %v4639_v11 }
 0x701   : > { %v4185_v31 = vpop.f32.mrf.mxu3  ;;  %v4271_v38 = vadd.f32 %v11275_v50, %v4082_v23 }
 0x702   : > { %v4186_v60 = vadd.f32 %v4185_v31, %v3934_v4  ;;  %v5039_v28 = vmax.f32 %v4743_v57, 0.0  ;;  %v8606_v57 = vld [vmem:[%s12994_s14 + $0x44] sm:$0xf] }
 0x703   : > { %v4347_v61 = vmax.f32 %v4271_v38, 0.0  ;;  %4838 = vmatmul.bf16.gmra.mxu2 %v11428_v22  ;;  %v8090_v22 = vor.u32 %v8599_v43, %v8089_v18  ;;  %v8126_v25 = vor.u32 %v8606_v57, %v8123_v42 }
 0x704   : > { %v4272_v53 = vadd.f32 %v11278_v44, %v4186_v60  ;;  %v11738_v41 = vpack.c.bf16 %v5039_v28, %v5037_v5  ;;  %v4641_v3 = vpop.f32.mrf.mxu0  ;;  %v8622_v60 = vld [vmem:[%s12994_s14 + $0xc4] sm:$0xf]  ;;  %v13121_v5 = vld [vmem:[#allocation47_spill] sm:$0xff]  ;;  %v13122_v28 = vld [vmem:[#allocation48_spill] sm:$0xff] }
 0x705   : > { %v4642_v27 = vadd.f32 %v4641_v3, %v11513_v8  ;;  %v11748_v21 = vpack.c.bf16 %v4347_v61, %v4345_v47  ;;  %5332 = vmatpush.bf16.msra.mxu0 %v8090_v22  ;;  %v3939_v38 = vadd.f32 %v13122_v28, %v13121_v5  ;;  %5536 = vmatpush.bf16.msrb.mxu2 %v8126_v25 }
 0x706   : > { %v4348_v51 = vmax.f32 %v4272_v53, 0.0  ;;  %4942 = vmatmul.bf16.gmra.mxu3 %v11430_v46  ;;  %v8615_v46 = vld [vmem:[%s12994_s14 + $0x84] sm:$0xf0]  ;;  %v4084_v17 = vpop.f32.mrf.mxu2 }
 0x707   : > { %v4745_v2 = vpop.f32.mrf.mxu1  ;;  %v8154_v11 = vor.u32 %v8615_v46, %v8153_v39  ;;  %4680 = vmatmul.bf16.gmra.mxu0 %v11748_v21  ;;  %v4085_v4 = vadd.f32 %v4084_v17, %v13120_v19 }
 0x708   : > { %v11756_v20 = vpack.c.bf16 %v4348_v51, %v4346_v52  ;;  %v4746_v15 = vadd.f32 %v4745_v2, %v4642_v27  ;;  %v13123_v51 = vld [vmem:[#allocation45_spill] sm:$0xff] }
 0x709   : > { %v4188_v54 = vpop.f32.mrf.mxu3  ;;  %5436 = vmatpush.bf16.msra.mxu1 %v8154_v11  ;;  %v4273_v61 = vadd.f32 %v11275_v50, %v4085_v4 }
 0x70a   : > { %4784 = vmatmul.bf16.gmra.mxu1 %v11756_v20  ;;  %v4189_v26 = vadd.f32 %v4188_v54, %v11213_v48  ;;  %v8187_v48 = vld [vmem:[%s12994_s14 + $0xc8] sm:$0xf0]  ;;  %v5041_v2 = vmax.f32 %v4746_v15, 0.0 }
 0x70b   : > { %v8190_v47 = vor.u32 %v8622_v60, %v8187_v48  ;;  %v4349_v17 = vmax.f32 %v4273_v61, 0.0  ;;  %v13125_v48 = vld [vmem:[#allocation50_spill] sm:$0xff] }
 0x70c   : > { %v4643_v9 = vpop.f32.mrf.mxu0  ;;  %v4274_v43 = vadd.f32 %v11278_v44, %v4189_v26 }
 0x70d   : > { %v4644_v23 = vadd.f32 %v4643_v9, %v11513_v8  ;;  %5640 = vmatpush.bf16.msrb.mxu3 %v8190_v47  ;;  %v13127_v47 = vld [vmem:[#allocation53_spill] sm:$0xff] }
 0x70e   : > { %v4086_v53 = vpop.f32.mrf.mxu2  ;;  %v4350_v19 = vmax.f32 %v4274_v43, 0.0 }
 0x70f   : > { %v4747_v31 = vpop.f32.mrf.mxu1  ;;  %v4087_v3 = vadd.f32 %v4086_v53, %v13123_v51  ;;  %v13126_v53 = vld [vmem:[#allocation52_spill] sm:$0xff] }
 0x710   : > { %v4748_v52 = vadd.f32 %v4747_v31, %v4644_v23  ;;  %v3944_v61 = vadd.f32 %v13127_v47, %v13126_v53  ;;  %v13130_v53 = vld [vmem:[#allocation55_spill] sm:$0xff] }
 0x711   : > { %v4190_v18 = vpop.f32.mrf.mxu3  ;;  %v4275_v39 = vadd.f32 %v11275_v50, %v4087_v3 }
 0x712   : > { %v4191_v27 = vadd.f32 %v4190_v18, %v3939_v38  ;;  %v5043_v22 = vmax.f32 %v4748_v52, 0.0  ;;  %v13128_v18 = vld [vmem:[#allocation49_spill] sm:$0xff] }
 0x713   : > { %v4351_v11 = vmax.f32 %v4275_v39, 0.0  ;;  %4843 = vmatmul.bf16.gmra.mxu2 %v11464_v37  ;;  %v13124_v37 = vld [vmem:[#allocation46_spill] sm:$0xff] }
 0x714   : > { %v4276_v46 = vadd.f32 %v11278_v44, %v4191_v27  ;;  %v11783_v54 = vpack.c.bf16 %v5043_v22, %v5041_v2  ;;  %v4646_v9 = vpop.f32.mrf.mxu0 }
 0x715   : > { %v4647_v26 = vadd.f32 %v4646_v9, %v11513_v8  ;;  %v11787_v15 = vpack.c.bf16 %v4351_v11, %v4349_v17 }
 0x716   : > { %v4352_v4 = vmax.f32 %v4276_v46, 0.0  ;;  %4947 = vmatmul.bf16.gmra.mxu3 %v11472_v49  ;;  %v4089_v42 = vpop.f32.mrf.mxu2 }
 0x717   : > { %v4750_v57 = vpop.f32.mrf.mxu1  ;;  %4685 = vmatmul.bf16.gmra.mxu0 %v11787_v15  ;;  %v4090_v60 = vadd.f32 %v4089_v42, %v13124_v37 }
 0x718   : > { %v11789_v23 = vpack.c.bf16 %v4352_v4, %v4350_v19  ;;  %v4751_v31 = vadd.f32 %v4750_v57, %v4647_v26 }
 0x719   : > { %v4193_v25 = vpop.f32.mrf.mxu3  ;;  %v4277_v51 = vadd.f32 %v11275_v50, %v4090_v60 }
 0x71a   : > { %4789 = vmatmul.bf16.gmra.mxu1 %v11789_v23  ;;  %v4194_v5 = vadd.f32 %v4193_v25, %v13125_v48  ;;  %v5045_v39 = vmax.f32 %v4751_v31, 0.0 }
 0x71b   : > { %v4353_v19 = vmax.f32 %v4277_v51, 0.0  ;;  %v8337_v51 = vld [vmem:[%s12996_s16 + $0xf0] sm:$0xf] }
 0x71c   : > { %v4648_v49 = vpop.f32.mrf.mxu0  ;;  %v4278_v2 = vadd.f32 %v11278_v44, %v4194_v5 }
 0x71d   : > { %v4649_v28 = vadd.f32 %v4648_v49, %v11513_v8 }
 0x71e   : > { %v4091_v52 = vpop.f32.mrf.mxu2  ;;  %v4354_v26 = vmax.f32 %v4278_v2, 0.0  ;;  %v3949_v2 = vadd.f32 %v11499_v0, %v11496_v10  ;;  %v8604_v10 = vld [vmem:[%s12994_s14 + $0x34] sm:$0xf]  ;;  %v8115_v0 = vld [vmem:[%s12994_s14 + $0x38] sm:$0xf0] }
 0x71f   : > { %v4752_v38 = vpop.f32.mrf.mxu1  ;;  %v4092_v43 = vadd.f32 %v4091_v52, %v13128_v18 }
 0x720   : > { %v4753_v3 = vadd.f32 %v4752_v38, %v4649_v28  ;;  %v8645_v38 = vld [vmem:[%s12996_s16 + $0x74] sm:$0xf0] }
 0x721   : > { %v4195_v27 = vpop.f32.mrf.mxu3  ;;  %v4279_v17 = vadd.f32 %v11275_v50, %v4092_v43 }
 0x722   : > { %v4196_v22 = vadd.f32 %v4195_v27, %v3944_v61  ;;  %v5047_v46 = vmax.f32 %v4753_v3, 0.0  ;;  %v8661_v3 = vld [vmem:[%s12996_s16 + $0xf4] sm:$0xf0] }
 0x723   : > { %v4355_v4 = vmax.f32 %v4279_v17, 0.0  ;;  %4848 = vmatmul.bf16.gmra.mxu2 %v11489_v62  ;;  %v13129_v62 = vld [vmem:[#allocation51_spill] sm:$0xff]  ;;  %v8338_v27 = vor.u32 %v8661_v3, %v8337_v51  ;;  %v13131_v17 = vld [vmem:[#allocation54_spill] sm:$0xff] }
 0x724   : > { %v4280_v11 = vadd.f32 %v11278_v44, %v4196_v22  ;;  %v11804_v9 = vpack.c.bf16 %v5047_v46, %v5045_v39  ;;  %v4651_v42 = vpop.f32.mrf.mxu0 }
 0x725   : > { %v4652_v25 = vadd.f32 %v4651_v42, %v11513_v8  ;;  %v11808_v31 = vpack.c.bf16 %v4355_v4, %v4353_v19  ;;  %6157 = vmatpush.bf16.msrb.mxu1 %v8338_v27 }
 0x726   : > { %v4356_v57 = vmax.f32 %v4280_v11, 0.0  ;;  %4952 = vmatmul.bf16.gmra.mxu3 %v11491_v33  ;;  %v4094_v60 = vpop.f32.mrf.mxu2  ;;  %v8273_v33 = vld [vmem:[%s12996_s16 + $0x70] sm:$0xf] }
 0x727   : > { %v4755_v37 = vpop.f32.mrf.mxu1  ;;  %4690 = vmatmul.bf16.gmra.mxu0 %v11808_v31  ;;  %v4095_v28 = vadd.f32 %v4094_v60, %v13129_v62  ;;  %v8274_v52 = vor.u32 %v8645_v38, %v8273_v33  ;;  %v8118_v60 = vor.u32 %v8604_v10, %v8115_v0 }
 0x728   : > { %v11810_v48 = vpack.c.bf16 %v4356_v57, %v4354_v26  ;;  %v4756_v5 = vadd.f32 %v4755_v37, %v4652_v25 }
 0x729   : > { %v4198_v49 = vpop.f32.mrf.mxu3  ;;  %6053 = vmatpush.bf16.msrb.mxu0 %v8274_v52  ;;  %v4281_v39 = vadd.f32 %v11275_v50, %v4095_v28  ;;  %5537 = vmatpush.bf16.msrb.mxu2 %v8118_v60 }
 0x72a   : > { %4794 = vmatmul.bf16.gmra.mxu1 %v11810_v48  ;;  %v4199_v47 = vadd.f32 %v4198_v49, %v13130_v53  ;;  %v5049_v57 = vmax.f32 %v4756_v5, 0.0  ;;  %v8620_v5 = vld [vmem:[%s12994_s14 + $0xb4] sm:$0xf] }
 0x72b   : > { %v4357_v49 = vmax.f32 %v4281_v39, 0.0 }
 0x72c   : > { %v4653_v61 = vpop.f32.mrf.mxu0  ;;  %v4282_v4 = vadd.f32 %v11278_v44, %v4199_v47 }
 0x72d   : > { %v4654_v18 = vadd.f32 %v4653_v61, %v11513_v8 }
 0x72e   : > { %v4096_v22 = vpop.f32.mrf.mxu2  ;;  %v4358_v33 = vmax.f32 %v4282_v4, 0.0 }
 0x72f   : > { %v4757_v43 = vpop.f32.mrf.mxu1  ;;  %v4097_v11 = vadd.f32 %v4096_v22, %v13131_v17 }
 0x730   : > { %v4758_v46 = vadd.f32 %v4757_v43, %v4654_v18  ;;  %v11858_v18 = vperm.slane %v11506_v40, 1 }
 0x731   : > { %v4200_v19 = vpop.f32.mrf.mxu3  ;;  %v4283_v25 = vadd.f32 %v11275_v50, %v4097_v11  ;;  %v8179_v50 = vld [vmem:[%s12994_s14 + $0xb8] sm:$0xf0] }
 0x732   : > { %v4201_v26 = vadd.f32 %v4200_v19, %v3949_v2  ;;  %v5051_v42 = vmax.f32 %v4758_v46, 0.0  ;;  %v8182_v53 = vor.u32 %v8620_v5, %v8179_v50 }
 0x733   : > { %v4359_v62 = vmax.f32 %v4283_v25, 0.0  ;;  %4853 = vmatmul.bf16.gmra.mxu2 %v11527_v30 }
 0x734   : > { %v4284_v37 = vadd.f32 %v11278_v44, %v4201_v26  ;;  %v11849_v28 = vpack.c.bf16 %v5051_v42, %v5049_v57  ;;  %v4656_v44 = vpop.f32.mrf.mxu0  ;;  %5641 = vmatpush.bf16.msrb.mxu3 %v8182_v53 }
 0x735   : > { %v4657_v47 = vadd.f32 %v4656_v44, %v11513_v8  ;;  %v11853_v61 = vpack.c.bf16 %v4359_v62, %v4357_v49 }
 0x736   : > { %v4360_v38 = vmax.f32 %v4284_v37, 0.0  ;;  %4957 = vmatmul.bf16.gmra.mxu3 %v11535_v24  ;;  %v4814_v52 = vpop.f32.mrf.mxu2 }
 0x737   : > { %v4760_v30 = vpop.f32.mrf.mxu1  ;;  %4695 = vmatmul.bf16.gmra.mxu0 %v11853_v61  ;;  %v4815_v24 = vadd.f32 %v4814_v52, %v11858_v18 }
 0x738   : > { %v11855_v51 = vpack.c.bf16 %v4360_v38, %v4358_v33  ;;  %v4761_v3 = vadd.f32 %v4760_v30, %v4657_v47 }
 0x739   : > { %v4918_v43 = vpop.f32.mrf.mxu3 }
 0x73a   : > { %4799 = vmatmul.bf16.gmra.mxu1 %v11855_v51  ;;  %v4919_v46 = vadd.f32 %v4918_v43, %v4815_v24  ;;  %v5053_v4 = vmax.f32 %v4761_v3, 0.0  ;;  %v8265_v24 = vld [vmem:[%s12996_s16 + $0x60] sm:$0xf] }
 0x73c   : > { %v4658_v27 = vpop.f32.mrf.mxu0  ;;  %v5014_v57 = vmax.f32 %v4919_v46, 0.0  ;;  %v8329_v46 = vld [vmem:[%s12996_s16 + $0xe0] sm:$0xf] }
 0x73d   : > { %v4659_v2 = vadd.f32 %v4658_v27, %v11513_v8  ;;  %v8643_v27 = vld [vmem:[%s12996_s16 + $0x64] sm:$0xf0] }
 0x73e   : > { %v4816_v39 = vpop.f32.mrf.mxu2 }
 0x73f   : > { %v4762_v22 = vpop.f32.mrf.mxu1  ;;  %v4817_v11 = vadd.f32 %v4816_v39, %v11858_v18 }
 0x740   : > { %v4763_v17 = vadd.f32 %v4762_v22, %v4659_v2  ;;  %v8266_v2 = vor.u32 %v8643_v27, %v8265_v24 }
 0x741   : > { %v4920_v19 = vpop.f32.mrf.mxu3 }
 0x742   : > { %v5055_v40 = vmax.f32 %v4763_v17, 0.0  ;;  %v4921_v26 = vadd.f32 %v4920_v19, %v4817_v11  ;;  %v8659_v17 = vld [vmem:[%s12996_s16 + $0xe4] sm:$0xf0]  ;;  %6054 = vmatpush.bf16.msrb.mxu0 %v8266_v2 }
 0x743   : > { %4858 = vmatmul.bf16.gmra.mxu2 %v11568_v36 }
 0x744   : > { %v5016_v42 = vmax.f32 %v4921_v26, 0.0  ;;  %v11866_v25 = vpack.c.bf16 %v5055_v40, %v5053_v4  ;;  %v4661_v10 = vpop.f32.mrf.mxu0  ;;  %v8330_v4 = vor.u32 %v8659_v17, %v8329_v46  ;;  %v8602_v40 = vld [vmem:[%s12994_s14 + $0x24] sm:$0xf] }
 0x745   : > { %v4662_v37 = vadd.f32 %v4661_v10, %v11513_v8 }
 0x746   : > { %4962 = vmatmul.bf16.gmra.mxu3 %v11570_v29  ;;  %v11869_v0 = vpack.c.bf16 %v5016_v42, %v5014_v57  ;;  %v4819_v49 = vpop.f32.mrf.mxu2  ;;  %6158 = vmatpush.bf16.msrb.mxu1 %v8330_v4 }
 0x747   : > { %v4765_v60 = vpop.f32.mrf.mxu1  ;;  %5333 = vmatmul.bf16.vlgmr.msra.gmra.mxu0 %v11561_v45  ;;  %v4820_v50 = vadd.f32 %v4819_v49, %v11858_v18  ;;  %v8618_v49 = vld [vmem:[%s12994_s14 + $0xa4] sm:$0xf] }
 0x748   : > { %v4766_v62 = vadd.f32 %v4765_v60, %v4662_v37 }
 0x749   : > { %v4923_v5 = vpop.f32.mrf.mxu3 }
 0x74a   : > { %5437 = vmatmul.bf16.vlgmr.msra.gmra.mxu1 %v11869_v0  ;;  %v4924_v44 = vadd.f32 %v4923_v5, %v4820_v50  ;;  %v5057_v52 = vmax.f32 %v4766_v62, 0.0  ;;  %v8171_v62 = vld [vmem:[%s12994_s14 + $0xa8] sm:$0xf0] }
 0x74b   : > { %v8174_v5 = vor.u32 %v8618_v49, %v8171_v62 }
 0x74c   : > { %v4663_v36 = vpop.f32.mrf.mxu0  ;;  %v5018_v22 = vmax.f32 %v4924_v44, 0.0 }
 0x74d   : > { %v4664_v33 = vadd.f32 %v4663_v36, %v11513_v8  ;;  %5642 = vmatpush.bf16.msrb.mxu3 %v8174_v5 }
 0x74e   : > { %v4821_v29 = vpop.f32.mrf.mxu2 }
 0x74f   : > { %v4767_v38 = vpop.f32.mrf.mxu1  ;;  %v4822_v47 = vadd.f32 %v4821_v29, %v11858_v18 }
 0x750   : > { %v4768_v53 = vadd.f32 %v4767_v38, %v4664_v33 }
 0x751   : > { %v4925_v30 = vpop.f32.mrf.mxu3 }
 0x752   : > { %v5059_v3 = vmax.f32 %v4768_v53, 0.0  ;;  %v4926_v43 = vadd.f32 %v4925_v30, %v4822_v47 }
 0x753   : > { %4863 = vmatmul.bf16.gmra.mxu2 %v11589_v6  ;;  %v8107_v6 = vld [vmem:[%s12994_s14 + $0x28] sm:$0xf0] }
 0x754   : > { %v5020_v39 = vmax.f32 %v4926_v43, 0.0  ;;  %v11890_v11 = vpack.c.bf16 %v5059_v3, %v5057_v52  ;;  %v4666_v19 = vpop.f32.mrf.mxu0  ;;  %v8110_v10 = vor.u32 %v8602_v40, %v8107_v6 }
 0x755   : > { %v4667_v26 = vadd.f32 %v4666_v19, %v11513_v8 }
 0x756   : > { %4967 = vmatmul.bf16.gmra.mxu3 %v11591_v34  ;;  %v11900_v42 = vpack.c.bf16 %v5020_v39, %v5018_v22  ;;  %v4824_v37 = vpop.f32.mrf.mxu2  ;;  %5538 = vmatpush.bf16.msrb.mxu2 %v8110_v10 }
 0x757   : > { %v4770_v57 = vpop.f32.mrf.mxu1  ;;  %5338 = vmatmul.bf16.gmra.mxu0 %v11585_v35  ;;  %v4825_v50 = vadd.f32 %v4824_v37, %v11858_v18 }
 0x758   : > { %v4771_v34 = vadd.f32 %v4770_v57, %v4667_v26 }
 0x759   : > { %v4928_v60 = vpop.f32.mrf.mxu3 }
 0x75a   : > { %5442 = vmatmul.bf16.gmra.mxu1 %v11900_v42  ;;  %v4929_v44 = vadd.f32 %v4928_v60, %v4825_v50  ;;  %v5061_v52 = vmax.f32 %v4771_v34, 0.0 }
 0x75c   : > { %v4668_v36 = vpop.f32.mrf.mxu0  ;;  %v5022_v24 = vmax.f32 %v4929_v44, 0.0  ;;  %v8641_v44 = vld [vmem:[%s12996_s16 + $0x54] sm:$0xf0] }
 0x75d   : > { %v4669_v33 = vadd.f32 %v4668_v36, %v11513_v8 }
 0x75e   : > { %v4826_v29 = vpop.f32.mrf.mxu2 }
 0x75f   : > { %v4772_v38 = vpop.f32.mrf.mxu1  ;;  %v4827_v47 = vadd.f32 %v4826_v29, %v11858_v18  ;;  %v8257_v29 = vld [vmem:[%s12996_s16 + $0x50] sm:$0xf] }
 0x760   : > { %v4773_v53 = vadd.f32 %v4772_v38, %v4669_v33 }
 0x761   : > { %v4930_v30 = vpop.f32.mrf.mxu3 }
 0x762   : > { %v5063_v3 = vmax.f32 %v4773_v53, 0.0  ;;  %v4931_v43 = vadd.f32 %v4930_v30, %v4827_v47 }
 0x763   : > { %4868 = vmatmul.bf16.gmra.mxu2 %v11634_v7 }
 0x764   : > { %v5024_v27 = vmax.f32 %v4931_v43, 0.0  ;;  %v11914_v2 = vpack.c.bf16 %v5063_v3, %v5061_v52  ;;  %v4671_v22 = vpop.f32.mrf.mxu0  ;;  %v8258_v52 = vor.u32 %v8641_v44, %v8257_v29 }
 0x765   : > { %v4672_v39 = vadd.f32 %v4671_v22, %v11513_v8 }
 0x766   : > { %4972 = vmatmul.bf16.gmra.mxu3 %v11636_v58  ;;  %v11918_v17 = vpack.c.bf16 %v5024_v27, %v5022_v24  ;;  %v4829_v19 = vpop.f32.mrf.mxu2  ;;  %6055 = vmatpush.bf16.msrb.mxu0 %v8258_v52  ;;  %v8657_v24 = vld [vmem:[%s12996_s16 + $0xd4] sm:$0xf0] }
 0x767   : > { %v4775_v46 = vpop.f32.mrf.mxu1  ;;  %5343 = vmatmul.bf16.gmra.mxu0 %v11630_v13  ;;  %v4830_v6 = vadd.f32 %v4829_v19, %v11858_v18 }
 0x768   : > { %v4776_v4 = vadd.f32 %v4775_v46, %v4672_v39  ;;  %v8600_v39 = vld [vmem:[%s12994_s14 + $0x14] sm:$0xf]  ;;  %v8099_v46 = vld [vmem:[%s12994_s14 + $0x18] sm:$0xf0] }
 0x769   : > { %v4933_v40 = vpop.f32.mrf.mxu3 }
 0x76a   : > { %5447 = vmatmul.bf16.gmra.mxu1 %v11918_v17  ;;  %v4934_v10 = vadd.f32 %v4933_v40, %v4830_v6  ;;  %v5065_v49 = vmax.f32 %v4776_v4, 0.0  ;;  %v8102_v4 = vor.u32 %v8600_v39, %v8099_v46  ;;  %v8616_v40 = vld [vmem:[%s12994_s14 + $0x94] sm:$0xf]  ;;  %v8163_v6 = vld [vmem:[%s12994_s14 + $0x98] sm:$0xf0] }
 0x76c   : > { %v4673_v7 = vpop.f32.mrf.mxu0  ;;  %v5026_v50 = vmax.f32 %v4934_v10, 0.0  ;;  %5539 = vmatpush.bf16.msrb.mxu2 %v8102_v4 }
 0x76d   : > { %v4674_v26 = vadd.f32 %v4673_v7, %v11513_v8 }
 0x76e   : > { %v4831_v58 = vpop.f32.mrf.mxu2 }
 0x76f   : > { %v4777_v57 = vpop.f32.mrf.mxu1  ;;  %v4832_v34 = vadd.f32 %v4831_v58, %v11858_v18 }
 0x770   : > { %v4778_v37 = vadd.f32 %v4777_v57, %v4674_v26  ;;  %v8166_v57 = vor.u32 %v8616_v40, %v8163_v6 }
 0x771   : > { %v4935_v60 = vpop.f32.mrf.mxu3 }
 0x772   : > { %v5067_v62 = vmax.f32 %v4778_v37, 0.0  ;;  %v4936_v5 = vadd.f32 %v4935_v60, %v4832_v34  ;;  %5643 = vmatpush.bf16.msrb.mxu3 %v8166_v57 }
 0x773   : > { %4873 = vmatmul.bf16.gmra.mxu2 %v11655_v32 }
 0x774   : > { %v5028_v36 = vmax.f32 %v4936_v5, 0.0  ;;  %v11926_v33 = vpack.c.bf16 %v5067_v62, %v5065_v49  ;;  %v4676_v38 = vpop.f32.mrf.mxu0 }
 0x775   : > { %v4677_v53 = vadd.f32 %v4676_v38, %v11513_v8 }
 0x776   : > { %4977 = vmatmul.bf16.gmra.mxu3 %v11657_v16  ;;  %v11936_v30 = vpack.c.bf16 %v5028_v36, %v5026_v50  ;;  %v4834_v32 = vpop.f32.mrf.mxu2  ;;  %v8321_v16 = vld [vmem:[%s12996_s16 + $0xd0] sm:$0xf] }
 0x777   : > { %v4780_v47 = vpop.f32.mrf.mxu1  ;;  %5348 = vmatmul.bf16.gmra.mxu0 %v11651_v1  ;;  %v8322_v27 = vor.u32 %v8657_v24, %v8321_v16  ;;  %v4835_v22 = vadd.f32 %v4834_v32, %v11858_v18 }
 0x778   : > { %v4781_v3 = vadd.f32 %v4780_v47, %v4677_v53 }
 0x779   : > { %v4938_v43 = vpop.f32.mrf.mxu3  ;;  %6159 = vmatpush.bf16.msrb.mxu1 %v8322_v27 }
 0x77a   : > { %5452 = vmatmul.bf16.gmra.mxu1 %v11936_v30  ;;  %v4939_v10 = vadd.f32 %v4938_v43, %v4835_v22  ;;  %v5069_v49 = vmax.f32 %v4781_v3, 0.0 }
 0x77c   : > { %v4678_v19 = vpop.f32.mrf.mxu0  ;;  %v5030_v50 = vmax.f32 %v4939_v10, 0.0 }
 0x77d   : > { %v4679_v7 = vadd.f32 %v4678_v19, %v11513_v8 }
 0x77e   : > { %v4836_v58 = vpop.f32.mrf.mxu2 }
 0x77f   : > { %v4782_v26 = vpop.f32.mrf.mxu1  ;;  %v4837_v34 = vadd.f32 %v4836_v58, %v11858_v18 }
 0x780   : > { %v4783_v37 = vadd.f32 %v4782_v26, %v4679_v7 }
 0x781   : > { %v4940_v60 = vpop.f32.mrf.mxu3 }
 0x782   : > { %v5071_v62 = vmax.f32 %v4783_v37, 0.0  ;;  %v4941_v5 = vadd.f32 %v4940_v60, %v4837_v34 }
 0x783   : > { %4878 = vmatmul.bf16.gmra.mxu2 %v11694_v63 }
 0x784   : > { %v5032_v36 = vmax.f32 %v4941_v5, 0.0  ;;  %v11962_v38 = vpack.c.bf16 %v5071_v62, %v5069_v49  ;;  %v4681_v29 = vpop.f32.mrf.mxu0 }
 0x785   : > { %v4682_v44 = vadd.f32 %v4681_v29, %v11513_v8  ;;  %v8655_v29 = vld [vmem:[%s12996_s16 + $0xc4] sm:$0xf0] }
 0x786   : > { %4982 = vmatmul.bf16.gmra.mxu3 %v11702_v56  ;;  %v11966_v47 = vpack.c.bf16 %v5032_v36, %v5030_v50  ;;  %v4839_v52 = vpop.f32.mrf.mxu2  ;;  %v8313_v36 = vld [vmem:[%s12996_s16 + $0xc0] sm:$0xf] }
 0x787   : > { %v4785_v53 = vpop.f32.mrf.mxu1  ;;  %5353 = vmatmul.bf16.gmra.mxu0 %v11684_v12  ;;  %v4840_v3 = vadd.f32 %v4839_v52, %v11858_v18  ;;  %v8314_v52 = vor.u32 %v8655_v29, %v8313_v36 }
 0x788   : > { %v4786_v32 = vadd.f32 %v4785_v53, %v4682_v44 }
 0x789   : > { %v4943_v43 = vpop.f32.mrf.mxu3  ;;  %6160 = vmatpush.bf16.msrb.mxu1 %v8314_v52 }
 0x78a   : > { %5457 = vmatmul.bf16.gmra.mxu1 %v11966_v47  ;;  %v4944_v27 = vadd.f32 %v4943_v43, %v4840_v3  ;;  %v5073_v19 = vmax.f32 %v4786_v32, 0.0 }
 0x78c   : > { %v4683_v63 = vpop.f32.mrf.mxu0  ;;  %v5034_v6 = vmax.f32 %v4944_v27, 0.0 }
 0x78d   : > { %v4684_v16 = vadd.f32 %v4683_v63, %v11513_v8 }
 0x78e   : > { %v4841_v56 = vpop.f32.mrf.mxu2 }
 0x78f   : > { %v4787_v24 = vpop.f32.mrf.mxu1  ;;  %v4842_v39 = vadd.f32 %v4841_v56, %v11858_v18 }
 0x790   : > { %v4788_v22 = vadd.f32 %v4787_v24, %v4684_v16 }
 0x791   : > { %v4945_v46 = vpop.f32.mrf.mxu3 }
 0x792   : > { %v5075_v4 = vmax.f32 %v4788_v22, 0.0  ;;  %v4946_v40 = vadd.f32 %v4945_v46, %v4842_v39  ;;  %v8598_v46 = vld [vmem:[%s12994_s14 + $0x4] sm:$0xf] }
 0x793   : > { %4883 = vmatmul.bf16.gmra.mxu2 %v11721_v14  ;;  %v8249_v14 = vld [vmem:[%s12996_s16 + $0x40] sm:$0xf] }
 0x794   : > { %v5036_v7 = vmax.f32 %v4946_v40, 0.0  ;;  %v11974_v26 = vpack.c.bf16 %v5075_v4, %v5073_v19  ;;  %v4686_v57 = vpop.f32.mrf.mxu0  ;;  %v8091_v19 = vld [vmem:[%s12994_s14 + $0x8] sm:$0xf0] }
 0x795   : > { %v4687_v58 = vadd.f32 %v4686_v57, %v11513_v8 }
 0x796   : > { %4987 = vmatmul.bf16.gmra.mxu3 %v11723_v55  ;;  %v11978_v37 = vpack.c.bf16 %v5036_v7, %v5034_v6  ;;  %v4844_v34 = vpop.f32.mrf.mxu2  ;;  %v8639_v55 = vld [vmem:[%s12996_s16 + $0x44] sm:$0xf0]  ;;  %v8094_v6 = vor.u32 %v8598_v46, %v8091_v19  ;;  %v8614_v7 = vld [vmem:[%s12994_s14 + $0x84] sm:$0xf] }
 0x797   : > { %v4790_v10 = vpop.f32.mrf.mxu1  ;;  %5358 = vmatmul.bf16.gmra.mxu0 %v11717_v59  ;;  %v4845_v62 = vadd.f32 %v4844_v34, %v11858_v18  ;;  %v8250_v50 = vor.u32 %v8639_v55, %v8249_v14 }
 0x798   : > { %v4791_v60 = vadd.f32 %v4790_v10, %v4687_v58  ;;  %5540 = vmatpush.bf16.msrb.mxu2 %v8094_v6 }
 0x799   : > { %v4948_v49 = vpop.f32.mrf.mxu3  ;;  %6056 = vmatpush.bf16.msrb.mxu0 %v8250_v50 }
 0x79a   : > { %5462 = vmatmul.bf16.gmra.mxu1 %v11978_v37  ;;  %v4949_v43 = vadd.f32 %v4948_v49, %v4845_v62  ;;  %v5077_v24 = vmax.f32 %v4791_v60, 0.0 }
 0x79c   : > { %v4688_v5 = vpop.f32.mrf.mxu0  ;;  %v5038_v22 = vmax.f32 %v4949_v43, 0.0 }
 0x79d   : > { %v4689_v44 = vadd.f32 %v4688_v5, %v11513_v8 }
 0x79e   : > { %v4846_v32 = vpop.f32.mrf.mxu2 }
 0x79f   : > { %v4792_v53 = vpop.f32.mrf.mxu1  ;;  %v4847_v63 = vadd.f32 %v4846_v32, %v11858_v18 }
 0x7a0   : > { %v4793_v3 = vadd.f32 %v4792_v53, %v4689_v44 }
 0x7a1   : > { %v4950_v16 = vpop.f32.mrf.mxu3 }
 0x7a2   : > { %v5079_v56 = vmax.f32 %v4793_v3, 0.0  ;;  %v4951_v27 = vadd.f32 %v4950_v16, %v4847_v63 }
 0x7a3   : > { %4888 = vmatmul.bf16.gmra.mxu2 %v11748_v21  ;;  %v8155_v21 = vld [vmem:[%s12994_s14 + $0x88] sm:$0xf0] }
 0x7a4   : > { %v5040_v39 = vmax.f32 %v4951_v27, 0.0  ;;  %v12004_v4 = vpack.c.bf16 %v5079_v56, %v5077_v24  ;;  %v4691_v40 = vpop.f32.mrf.mxu0  ;;  %v8158_v34 = vor.u32 %v8614_v7, %v8155_v21  ;;  %v12035_v21 = vld [vmem:[%s12995_s15] sm:$0x3] }
 0x7a5   : > { %v4692_v57 = vadd.f32 %v4691_v40, %v11513_v8 }
 0x7a6   : > { %4992 = vmatmul.bf16.gmra.mxu3 %v11756_v20  ;;  %v12014_v10 = vpack.c.bf16 %v5040_v39, %v5038_v22  ;;  %v4849_v60 = vpop.f32.mrf.mxu2 }
 0x7a7   : > { %v4795_v58 = vpop.f32.mrf.mxu1  ;;  %5363 = vmatmul.bf16.gmra.mxu0 %v11738_v41  ;;  %5644 = vmatpush.bf16.msrb.mxu3 %v8158_v34  ;;  %v4850_v62 = vadd.f32 %v4849_v60, %v11858_v18 }
 0x7a8   : > { %v4796_v49 = vadd.f32 %v4795_v58, %v4692_v57 }
 0x7a9   : > { %v4953_v20 = vpop.f32.mrf.mxu3 }
 0x7aa   : > { %5467 = vmatmul.bf16.gmra.mxu1 %v12014_v10  ;;  %v4954_v36 = vadd.f32 %v4953_v20, %v4850_v62  ;;  %v5081_v52 = vmax.f32 %v4796_v49, 0.0 }
 0x7ac   : > { %v4693_v14 = vpop.f32.mrf.mxu0  ;;  %v5042_v3 = vmax.f32 %v4954_v36, 0.0 }
 0x7ad   : > { %v4694_v55 = vadd.f32 %v4693_v14, %v11513_v8  ;;  %v12039_v14 = vperm.slane %v12035_v21, 0 }
 0x7ae   : > { %v4851_v50 = vpop.f32.mrf.mxu2 }
 0x7af   : > { %v4797_v5 = vpop.f32.mrf.mxu1  ;;  %v4852_v44 = vadd.f32 %v4851_v50, %v11858_v18  ;;  %v8637_v50 = vld [vmem:[%s12996_s16 + $0x34] sm:$0xf0] }
 0x7b0   : > { %v4798_v29 = vadd.f32 %v4797_v5, %v4694_v55  ;;  %v8241_v5 = vld [vmem:[%s12996_s16 + $0x30] sm:$0xf] }
 0x7b1   : > { %v4955_v53 = vpop.f32.mrf.mxu3 }
 0x7b2   : > { %v5083_v32 = vmax.f32 %v4798_v29, 0.0  ;;  %v4956_v43 = vadd.f32 %v4955_v53, %v4852_v44  ;;  %v8242_v44 = vor.u32 %v8637_v50, %v8241_v5  ;;  %v8305_v53 = vld [vmem:[%s12996_s16 + $0xb0] sm:$0xf] }
 0x7b3   : > { %4893 = vmatmul.bf16.gmra.mxu2 %v11787_v15 }
 0x7b4   : > { %v5044_v63 = vmax.f32 %v4956_v43, 0.0  ;;  %v12022_v16 = vpack.c.bf16 %v5083_v32, %v5081_v52  ;;  %v4696_v24 = vpop.f32.mrf.mxu0  ;;  %6057 = vmatpush.bf16.msrb.mxu0 %v8242_v44 }
 0x7b5   : > { %v4697_v56 = vadd.f32 %v4696_v24, %v11513_v8 }
 0x7b6   : > { %4997 = vmatmul.bf16.gmra.mxu3 %v11789_v23  ;;  %v12026_v22 = vpack.c.bf16 %v5044_v63, %v5042_v3  ;;  %v4854_v39 = vpop.f32.mrf.mxu2 }
 0x7b7   : > { %v4800_v27 = vpop.f32.mrf.mxu1  ;;  %5368 = vmatmul.bf16.gmra.mxu0 %v11783_v54  ;;  %v4855_v40 = vadd.f32 %v4854_v39, %v11858_v18 }
 0x7b8   : > { %v4801_v46 = vadd.f32 %v4800_v27, %v4697_v56  ;;  %v8644_v56 = vld [vmem:[%s12996_s16 + $0x74] sm:$0xf]  ;;  %v8275_v27 = vld [vmem:[%s12996_s16 + $0x78] sm:$0xf0] }
 0x7b9   : > { %v4958_v19 = vpop.f32.mrf.mxu3  ;;  %v8278_v39 = vor.u32 %v8644_v56, %v8275_v27 }
 0x7ba   : > { %5472 = vmatmul.bf16.gmra.mxu1 %v12026_v22  ;;  %v4959_v57 = vadd.f32 %v4958_v19, %v4855_v40  ;;  %v5085_v49 = vmax.f32 %v4801_v46, 0.0  ;;  %v8660_v19 = vld [vmem:[%s12996_s16 + $0xf4] sm:$0xf]  ;;  %v8339_v40 = vld [vmem:[%s12996_s16 + $0xf8] sm:$0xf0] }
 0x7bb   : > { %6261 = vmatpush.bf16.msra.mxu2 %v8278_v39 }
 0x7bc   : > { %v4698_v15 = vpop.f32.mrf.mxu0  ;;  %v5046_v55 = vmax.f32 %v4959_v57, 0.0 }
 0x7bd   : > { %v4699_v6 = vadd.f32 %v4698_v15, %v11513_v8 }
 0x7be   : > { %v4856_v23 = vpop.f32.mrf.mxu2 }
 0x7bf   : > { %v4802_v7 = vpop.f32.mrf.mxu1  ;;  %v4857_v34 = vadd.f32 %v4856_v23, %v11858_v18 }
 0x7c0   : > { %v4803_v58 = vadd.f32 %v4802_v7, %v4699_v6  ;;  %v8342_v6 = vor.u32 %v8660_v19, %v8339_v40 }
 0x7c1   : > { %v4960_v60 = vpop.f32.mrf.mxu3 }
 0x7c2   : > { %v5087_v20 = vmax.f32 %v4803_v58, 0.0  ;;  %v4961_v62 = vadd.f32 %v4960_v60, %v4857_v34  ;;  %6365 = vmatpush.bf16.msra.mxu3 %v8342_v6 }
 0x7c3   : > { %4898 = vmatmul.bf16.gmra.mxu2 %v11808_v31  ;;  %v8653_v31 = vld [vmem:[%s12996_s16 + $0xb4] sm:$0xf0] }
 0x7c4   : > { %v5048_v8 = vmax.f32 %v4961_v62, 0.0  ;;  %v12048_v36 = vpack.c.bf16 %v5087_v20, %v5085_v49  ;;  %v5334_v29 = vpop.f32.mrf.mxu0  ;;  %v8306_v3 = vor.u32 %v8653_v31, %v8305_v53 }
 0x7c5   : > { %v5335_v52 = vadd.f32 %v5334_v29, %v12039_v14 }
 0x7c6   : > { %5002 = vmatmul.bf16.gmra.mxu3 %v11810_v48  ;;  %v12058_v43 = vpack.c.bf16 %v5048_v8, %v5046_v55  ;;  %v4859_v63 = vpop.f32.mrf.mxu2  ;;  %6161 = vmatpush.bf16.msrb.mxu1 %v8306_v3 }
 0x7c7   : > { %v5438_v32 = vpop.f32.mrf.mxu1  ;;  %5373 = vmatmul.bf16.gmra.mxu0 %v11804_v9  ;;  %v4860_v46 = vadd.f32 %v4859_v63, %v11858_v18 }
 0x7c8   : > { %v5439_v24 = vadd.f32 %v5438_v32, %v5335_v52 }
 0x7c9   : > { %v4963_v48 = vpop.f32.mrf.mxu3 }
 0x7ca   : > { %5477 = vmatmul.bf16.gmra.mxu1 %v12058_v43  ;;  %v4964_v58 = vadd.f32 %v4963_v48, %v4860_v46  ;;  %v5741_v20 = vmax.f32 %v5439_v24, 0.0 }
 0x7cc   : > { %v5336_v15 = vpop.f32.mrf.mxu0  ;;  %v5050_v8 = vmax.f32 %v4964_v58, 0.0 }
 0x7cd   : > { %v5337_v7 = vadd.f32 %v5336_v15, %v12039_v14 }
 0x7ce   : > { %v4861_v57 = vpop.f32.mrf.mxu2 }
 0x7cf   : > { %v5440_v23 = vpop.f32.mrf.mxu1  ;;  %v4862_v60 = vadd.f32 %v4861_v57, %v11858_v18 }
 0x7d0   : > { %v5441_v34 = vadd.f32 %v5440_v23, %v5337_v7 }
 0x7d1   : > { %v4965_v49 = vpop.f32.mrf.mxu3 }
 0x7d2   : > { %v5743_v62 = vmax.f32 %v5441_v34, 0.0  ;;  %v4966_v55 = vadd.f32 %v4965_v49, %v4862_v60 }
 0x7d3   : > { %4903 = vmatmul.bf16.gmra.mxu2 %v11853_v61 }
 0x7d4   : > { %v12077_v5 = vpack.c.bf16 %v5743_v62, %v5741_v20  ;;  %v5052_v50 = vmax.f32 %v4966_v55, 0.0  ;;  %v5339_v29 = vpop.f32.mrf.mxu0 }
 0x7d5   : > { %v5340_v44 = vadd.f32 %v5339_v29, %v12039_v14  ;;  %v8651_v29 = vld [vmem:[%s12996_s16 + $0xa4] sm:$0xf0] }
 0x7d6   : > { %5007 = vmatmul.bf16.gmra.mxu3 %v11855_v51  ;;  %v12082_v31 = vpack.c.bf16 %v5052_v50, %v5050_v8  ;;  %v4864_v52 = vpop.f32.mrf.mxu2  ;;  %v8297_v50 = vld [vmem:[%s12996_s16 + $0xa0] sm:$0xf] }
 0x7d7   : > { %v5443_v53 = vpop.f32.mrf.mxu1  ;;  %5378 = vmatmul.bf16.gmra.mxu0 %v11849_v28  ;;  %v4865_v63 = vadd.f32 %v4864_v52, %v11858_v18  ;;  %v8642_v52 = vld [vmem:[%s12996_s16 + $0x64] sm:$0xf] }
 0x7d8   : > { %v5444_v32 = vadd.f32 %v5443_v53, %v5340_v44  ;;  %v8298_v53 = vor.u32 %v8651_v29, %v8297_v50 }
 0x7d9   : > { %v4968_v3 = vpop.f32.mrf.mxu3 }
 0x7da   : > { %5482 = vmatmul.bf16.gmra.mxu1 %v12082_v31  ;;  %v4969_v56 = vadd.f32 %v4968_v3, %v4865_v63  ;;  %v5745_v19 = vmax.f32 %v5444_v32, 0.0  ;;  %v8267_v32 = vld [vmem:[%s12996_s16 + $0x68] sm:$0xf0] }
 0x7db   : > { %6162 = vmatpush.bf16.msrb.mxu1 %v8298_v53 }
 0x7dc   : > { %v5341_v24 = vpop.f32.mrf.mxu0  ;;  %v5054_v6 = vmax.f32 %v4969_v56, 0.0 }
 0x7dd   : > { %v5342_v61 = vadd.f32 %v5341_v24, %v12039_v14  ;;  %v8270_v24 = vor.u32 %v8642_v52, %v8267_v32 }
 0x7de   : > { %v4866_v51 = vpop.f32.mrf.mxu2 }
 0x7df   : > { %v5445_v48 = vpop.f32.mrf.mxu1  ;;  %v4867_v39 = vadd.f32 %v4866_v51, %v11858_v18  ;;  %6262 = vmatpush.bf16.msra.mxu2 %v8270_v24 }
 0x7e0   : > { %v5446_v27 = vadd.f32 %v5445_v48, %v5342_v61 }
 0x7e1   : > { %v4970_v46 = vpop.f32.mrf.mxu3 }
 0x7e2   : > { %v5747_v40 = vmax.f32 %v5446_v27, 0.0  ;;  %v4971_v15 = vadd.f32 %v4970_v46, %v4867_v39 }
 0x7e3   : > { %5541 = vmatmul.bf16.vlgmr.msrb.gmra.mxu2 %v11561_v45  ;;  %v8233_v45 = vld [vmem:[%s12996_s16 + $0x20] sm:$0xf] }
 0x7e4   : > { %v5056_v7 = vmax.f32 %v4971_v15, 0.0  ;;  %v12090_v23 = vpack.c.bf16 %v5747_v40, %v5745_v19  ;;  %v5344_v57 = vpop.f32.mrf.mxu0  ;;  %v8658_v40 = vld [vmem:[%s12996_s16 + $0xe4] sm:$0xf]  ;;  %v8331_v15 = vld [vmem:[%s12996_s16 + $0xe8] sm:$0xf0] }
 0x7e5   : > { %v5345_v58 = vadd.f32 %v5344_v57, %v12039_v14 }
 0x7e6   : > { %5645 = vmatmul.bf16.vlgmr.msrb.gmra.mxu3 %v11869_v0  ;;  %v12094_v60 = vpack.c.bf16 %v5056_v7, %v5054_v6  ;;  %v4869_v49 = vpop.f32.mrf.mxu2  ;;  %v8635_v0 = vld [vmem:[%s12996_s16 + $0x24] sm:$0xf0]  ;;  %v8334_v6 = vor.u32 %v8658_v40, %v8331_v15 }
 0x7e7   : > { %v5448_v34 = vpop.f32.mrf.mxu1  ;;  %5383 = vmatmul.bf16.gmra.mxu0 %v11866_v25  ;;  %v8234_v55 = vor.u32 %v8635_v0, %v8233_v45  ;;  %v4870_v8 = vadd.f32 %v4869_v49, %v11858_v18 }
 0x7e8   : > { %v5449_v20 = vadd.f32 %v5448_v34, %v5345_v58  ;;  %6366 = vmatpush.bf16.msra.mxu3 %v8334_v6 }
 0x7e9   : > { %v4973_v62 = vpop.f32.mrf.mxu3  ;;  %6058 = vmatpush.bf16.msrb.mxu0 %v8234_v55 }
 0x7ea   : > { %5487 = vmatmul.bf16.gmra.mxu1 %v12094_v60  ;;  %v4974_v48 = vadd.f32 %v4973_v62, %v4870_v8  ;;  %v5749_v39 = vmax.f32 %v5449_v20, 0.0 }
 0x7ec   : > { %v5346_v44 = vpop.f32.mrf.mxu0  ;;  %v5058_v7 = vmax.f32 %v4974_v48, 0.0 }
 0x7ed   : > { %v5347_v3 = vadd.f32 %v5346_v44, %v12039_v14 }
 0x7ee   : > { %v4871_v61 = vpop.f32.mrf.mxu2 }
 0x7ef   : > { %v5450_v63 = vpop.f32.mrf.mxu1  ;;  %v4872_v56 = vadd.f32 %v4871_v61, %v11858_v18 }
 0x7f0   : > { %v5451_v51 = vadd.f32 %v5450_v63, %v5347_v3 }
 0x7f1   : > { %v4975_v27 = vpop.f32.mrf.mxu3 }
 0x7f2   : > { %v5751_v46 = vmax.f32 %v5451_v51, 0.0  ;;  %v4976_v19 = vadd.f32 %v4975_v27, %v4872_v56 }
 0x7f3   : > { %5546 = vmatmul.bf16.gmra.mxu2 %v11585_v35 }
 0x7f4   : > { %v5060_v57 = vmax.f32 %v4976_v19, 0.0  ;;  %v12126_v58 = vpack.c.bf16 %v5751_v46, %v5749_v39  ;;  %v5349_v34 = vpop.f32.mrf.mxu0 }
 0x7f5   : > { %v5350_v49 = vadd.f32 %v5349_v34, %v12039_v14 }
 0x7f6   : > { %5650 = vmatmul.bf16.gmra.mxu3 %v11900_v42  ;;  %v12130_v62 = vpack.c.bf16 %v5060_v57, %v5058_v7  ;;  %v4874_v45 = vpop.f32.mrf.mxu2 }
 0x7f7   : > { %v5453_v20 = vpop.f32.mrf.mxu1  ;;  %5388 = vmatmul.bf16.gmra.mxu0 %v11890_v11  ;;  %v4875_v35 = vadd.f32 %v4874_v45, %v11858_v18 }
 0x7f8   : > { %v5454_v0 = vadd.f32 %v5453_v20, %v5350_v49 }
 0x7f9   : > { %v4978_v55 = vpop.f32.mrf.mxu3 }
 0x7fa   : > { %5492 = vmatmul.bf16.gmra.mxu1 %v12130_v62  ;;  %v4979_v44 = vadd.f32 %v4978_v55, %v4875_v35  ;;  %v5753_v3 = vmax.f32 %v5454_v0, 0.0 }
 0x7fc   : > { %v5351_v8 = vpop.f32.mrf.mxu0  ;;  %v5062_v61 = vmax.f32 %v4979_v44, 0.0  ;;  %v8649_v44 = vld [vmem:[%s12996_s16 + $0x94] sm:$0xf0] }
 0x7fd   : > { %v5352_v50 = vadd.f32 %v5351_v8, %v12039_v14 }
 0x7fe   : > { %v4876_v29 = vpop.f32.mrf.mxu2 }
 0x7ff   : > { %v5455_v42 = vpop.f32.mrf.mxu1  ;;  %v4877_v52 = vadd.f32 %v4876_v29, %v11858_v18  ;;  %v8289_v29 = vld [vmem:[%s12996_s16 + $0x90] sm:$0xf] }
 0x800   : > { %v5456_v53 = vadd.f32 %v5455_v42, %v5352_v50 }
 0x801   : > { %v4980_v32 = vpop.f32.mrf.mxu3 }
 0x802   : > { %v5755_v63 = vmax.f32 %v5456_v53, 0.0  ;;  %v4981_v24 = vadd.f32 %v4980_v32, %v4877_v52  ;;  %v8290_v53 = vor.u32 %v8649_v44, %v8289_v29 }
 0x803   : > { %5551 = vmatmul.bf16.gmra.mxu2 %v11630_v13  ;;  %v8225_v13 = vld [vmem:[%s12996_s16 + $0x10] sm:$0xf] }
 0x804   : > { %v5064_v48 = vmax.f32 %v4981_v24, 0.0  ;;  %v12138_v51 = vpack.c.bf16 %v5755_v63, %v5753_v3  ;;  %v5354_v56 = vpop.f32.mrf.mxu0  ;;  %v8640_v3 = vld [vmem:[%s12996_s16 + $0x54] sm:$0xf]  ;;  %v8259_v63 = vld [vmem:[%s12996_s16 + $0x58] sm:$0xf0]  ;;  %6163 = vmatpush.bf16.msrb.mxu1 %v8290_v53 }
 0x805   : > { %v5355_v27 = vadd.f32 %v5354_v56, %v12039_v14  ;;  %v8656_v56 = vld [vmem:[%s12996_s16 + $0xd4] sm:$0xf] }
 0x806   : > { %5655 = vmatmul.bf16.gmra.mxu3 %v11918_v17  ;;  %v12142_v46 = vpack.c.bf16 %v5064_v48, %v5062_v61  ;;  %v4879_v19 = vpop.f32.mrf.mxu2  ;;  %v8633_v17 = vld [vmem:[%s12996_s16 + $0x14] sm:$0xf0]  ;;  %v8262_v48 = vor.u32 %v8640_v3, %v8259_v63 }
 0x807   : > { %v5458_v39 = vpop.f32.mrf.mxu1  ;;  %5393 = vmatmul.bf16.gmra.mxu0 %v11914_v2  ;;  %v4880_v6 = vadd.f32 %v4879_v19, %v11858_v18  ;;  %v8226_v57 = vor.u32 %v8633_v17, %v8225_v13 }
 0x808   : > { %v5459_v40 = vadd.f32 %v5458_v39, %v5355_v27  ;;  %6263 = vmatpush.bf16.msra.mxu2 %v8262_v48 }
 0x809   : > { %v4983_v15 = vpop.f32.mrf.mxu3  ;;  %6059 = vmatpush.bf16.msrb.mxu0 %v8226_v57 }
 0x80a   : > { %5497 = vmatmul.bf16.gmra.mxu1 %v12142_v46  ;;  %v4984_v45 = vadd.f32 %v4983_v15, %v4880_v6  ;;  %v5757_v8 = vmax.f32 %v5459_v40, 0.0 }
 0x80c   : > { %v5356_v7 = vpop.f32.mrf.mxu0  ;;  %v5066_v52 = vmax.f32 %v4984_v45, 0.0 }
 0x80d   : > { %v5357_v34 = vadd.f32 %v5356_v7, %v12039_v14 }
 0x80e   : > { %v4881_v20 = vpop.f32.mrf.mxu2 }
 0x80f   : > { %v5460_v49 = vpop.f32.mrf.mxu1  ;;  %v4882_v55 = vadd.f32 %v4881_v20, %v11858_v18 }
 0x810   : > { %v5461_v0 = vadd.f32 %v5460_v49, %v5357_v34 }
 0x811   : > { %v4985_v35 = vpop.f32.mrf.mxu3 }
 0x812   : > { %v5759_v50 = vmax.f32 %v5461_v0, 0.0  ;;  %v4986_v42 = vadd.f32 %v4985_v35, %v4882_v55 }
 0x813   : > { %5556 = vmatmul.bf16.gmra.mxu2 %v11651_v1  ;;  %v8323_v1 = vld [vmem:[%s12996_s16 + $0xd8] sm:$0xf0] }
 0x814   : > { %v5068_v32 = vmax.f32 %v4986_v42, 0.0  ;;  %v12168_v24 = vpack.c.bf16 %v5759_v50, %v5757_v8  ;;  %v5359_v61 = vpop.f32.mrf.mxu0  ;;  %v8326_v40 = vor.u32 %v8656_v56, %v8323_v1 }
 0x815   : > { %v5360_v27 = vadd.f32 %v5359_v61, %v12039_v14 }
 0x816   : > { %5660 = vmatmul.bf16.gmra.mxu3 %v11936_v30  ;;  %v12178_v19 = vpack.c.bf16 %v5068_v32, %v5066_v52  ;;  %v4884_v15 = vpop.f32.mrf.mxu2 }
 0x817   : > { %v5463_v39 = vpop.f32.mrf.mxu1  ;;  %5398 = vmatmul.bf16.gmra.mxu0 %v11926_v33  ;;  %6367 = vmatpush.bf16.msra.mxu3 %v8326_v40  ;;  %v4885_v13 = vadd.f32 %v4884_v15, %v11858_v18 }
 0x818   : > { %v5464_v30 = vadd.f32 %v5463_v39, %v5360_v27 }
 0x819   : > { %v4988_v6 = vpop.f32.mrf.mxu3 }
 0x81a   : > { %5502 = vmatmul.bf16.gmra.mxu1 %v12178_v19  ;;  %v4989_v49 = vadd.f32 %v4988_v6, %v4885_v13  ;;  %v5761_v55 = vmax.f32 %v5464_v30, 0.0 }
 0x81c   : > { %v5361_v17 = vpop.f32.mrf.mxu0  ;;  %v5070_v50 = vmax.f32 %v4989_v49, 0.0 }
 0x81d   : > { %v5362_v7 = vadd.f32 %v5361_v17, %v12039_v14 }
 0x81e   : > { %v4886_v34 = vpop.f32.mrf.mxu2 }
 0x81f   : > { %v5465_v57 = vpop.f32.mrf.mxu1  ;;  %v4887_v45 = vadd.f32 %v4886_v34, %v11858_v18  ;;  %v8631_v34 = vld [vmem:[%s12996_s16 + $0x4] sm:$0xf0] }
 0x820   : > { %v5466_v20 = vadd.f32 %v5465_v57, %v5362_v7  ;;  %v8217_v57 = vld [vmem:[%s12996_s16] sm:$0xf] }
 0x821   : > { %v4990_v0 = vpop.f32.mrf.mxu3 }
 0x822   : > { %v5763_v35 = vmax.f32 %v5466_v20, 0.0  ;;  %v4991_v8 = vadd.f32 %v4990_v0, %v4887_v45  ;;  %v8218_v45 = vor.u32 %v8631_v34, %v8217_v57  ;;  %v8281_v0 = vld [vmem:[%s12996_s16 + $0x80] sm:$0xf] }
 0x823   : > { %5561 = vmatmul.bf16.gmra.mxu2 %v11684_v12 }
 0x824   : > { %v5072_v42 = vmax.f32 %v4991_v8, 0.0  ;;  %v12186_v29 = vpack.c.bf16 %v5763_v35, %v5761_v55  ;;  %v5364_v44 = vpop.f32.mrf.mxu0  ;;  %6060 = vmatpush.bf16.msrb.mxu0 %v8218_v45 }
 0x825   : > { %v5365_v53 = vadd.f32 %v5364_v44, %v12039_v14 }
 0x826   : > { %5665 = vmatmul.bf16.gmra.mxu3 %v11966_v47  ;;  %v12190_v32 = vpack.c.bf16 %v5072_v42, %v5070_v50  ;;  %v4889_v3 = vpop.f32.mrf.mxu2 }
 0x827   : > { %v5468_v52 = vpop.f32.mrf.mxu1  ;;  %5403 = vmatmul.bf16.gmra.mxu0 %v11962_v38  ;;  %v4890_v48 = vadd.f32 %v4889_v3, %v11858_v18  ;;  %v8251_v3 = vld [vmem:[%s12996_s16 + $0x48] sm:$0xf0] }
 0x828   : > { %v5469_v63 = vadd.f32 %v5468_v52, %v5365_v53  ;;  %v8638_v52 = vld [vmem:[%s12996_s16 + $0x44] sm:$0xf] }
 0x829   : > { %v4993_v61 = vpop.f32.mrf.mxu3 }
 0x82a   : > { %5507 = vmatmul.bf16.gmra.mxu1 %v12190_v32  ;;  %v4994_v27 = vadd.f32 %v4993_v61, %v4890_v48  ;;  %v5765_v30 = vmax.f32 %v5469_v63, 0.0  ;;  %v8254_v61 = vor.u32 %v8638_v52, %v8251_v3  ;;  %v8654_v48 = vld [vmem:[%s12996_s16 + $0xc4] sm:$0xf] }
 0x82c   : > { %v5366_v12 = vpop.f32.mrf.mxu0  ;;  %v5074_v17 = vmax.f32 %v4994_v27, 0.0  ;;  %6264 = vmatpush.bf16.msra.mxu2 %v8254_v61 }
 0x82d   : > { %v5367_v56 = vadd.f32 %v5366_v12, %v12039_v14  ;;  %v8315_v12 = vld [vmem:[%s12996_s16 + $0xc8] sm:$0xf0] }
 0x82e   : > { %v4891_v47 = vpop.f32.mrf.mxu2 }
 0x82f   : > { %v5470_v1 = vpop.f32.mrf.mxu1  ;;  %v4892_v40 = vadd.f32 %v4891_v47, %v11858_v18  ;;  %v8318_v47 = vor.u32 %v8654_v48, %v8315_v12 }
 0x830   : > { %v5471_v39 = vadd.f32 %v5470_v1, %v5367_v56 }
 0x831   : > { %v4995_v15 = vpop.f32.mrf.mxu3  ;;  %6368 = vmatpush.bf16.msra.mxu3 %v8318_v47 }
 0x832   : > { %v5767_v6 = vmax.f32 %v5471_v39, 0.0  ;;  %v4996_v13 = vadd.f32 %v4995_v15, %v4892_v40 }
 0x833   : > { %5566 = vmatmul.bf16.gmra.mxu2 %v11717_v59  ;;  %v8647_v59 = vld [vmem:[%s12996_s16 + $0x84] sm:$0xf0] }
 0x834   : > { %v5076_v7 = vmax.f32 %v4996_v13, 0.0  ;;  %v12204_v49 = vpack.c.bf16 %v5767_v6, %v5765_v30  ;;  %v5369_v20 = vpop.f32.mrf.mxu0  ;;  %v8282_v50 = vor.u32 %v8647_v59, %v8281_v0 }
 0x835   : > { %v5370_v55 = vadd.f32 %v5369_v20, %v12039_v14 }
 0x836   : > { %5670 = vmatmul.bf16.gmra.mxu3 %v11978_v37  ;;  %v12214_v8 = vpack.c.bf16 %v5076_v7, %v5074_v17  ;;  %v4894_v42 = vpop.f32.mrf.mxu2  ;;  %6164 = vmatpush.bf16.msrb.mxu1 %v8282_v50 }
 0x837   : > { %v5473_v35 = vpop.f32.mrf.mxu1  ;;  %5408 = vmatmul.bf16.gmra.mxu0 %v11974_v26  ;;  %v4895_v53 = vadd.f32 %v4894_v42, %v11858_v18 }
 0x838   : > { %v5474_v44 = vadd.f32 %v5473_v35, %v5370_v55 }
 0x839   : > { %v4998_v37 = vpop.f32.mrf.mxu3 }
 0x83a   : > { %5512 = vmatmul.bf16.gmra.mxu1 %v12214_v8  ;;  %v4999_v39 = vadd.f32 %v4998_v37, %v4895_v53  ;;  %v5769_v6 = vmax.f32 %v5474_v44, 0.0 }
 0x83c   : > { %v5371_v63 = vpop.f32.mrf.mxu0  ;;  %v5078_v7 = vmax.f32 %v4999_v39, 0.0 }
 0x83d   : > { %v5372_v56 = vadd.f32 %v5371_v63, %v12039_v14 }
 0x83e   : > { %v4896_v27 = vpop.f32.mrf.mxu2 }
 0x83f   : > { %v5475_v1 = vpop.f32.mrf.mxu1  ;;  %v4897_v15 = vadd.f32 %v4896_v27, %v11858_v18 }
 0x840   : > { %v5476_v40 = vadd.f32 %v5475_v1, %v5372_v56 }
 0x841   : > { %v5000_v30 = vpop.f32.mrf.mxu3 }
 0x842   : > { %v5771_v13 = vmax.f32 %v5476_v40, 0.0  ;;  %v5001_v17 = vadd.f32 %v5000_v30, %v4897_v15 }
 0x843   : > { %5571 = vmatmul.bf16.gmra.mxu2 %v11738_v41 }
 0x844   : > { %v5080_v57 = vmax.f32 %v5001_v17, 0.0  ;;  %v12234_v34 = vpack.c.bf16 %v5771_v13, %v5769_v6  ;;  %v5374_v20 = vpop.f32.mrf.mxu0 }
 0x845   : > { %v5375_v45 = vadd.f32 %v5374_v20, %v12039_v14 }
 0x846   : > { %5675 = vmatmul.bf16.gmra.mxu3 %v12014_v10  ;;  %v12238_v59 = vpack.c.bf16 %v5080_v57, %v5078_v7  ;;  %v4899_v55 = vpop.f32.mrf.mxu2 }
 0x847   : > { %v5478_v0 = vpop.f32.mrf.mxu1  ;;  %5413 = vmatmul.bf16.gmra.mxu0 %v12004_v4  ;;  %v4900_v42 = vadd.f32 %v4899_v55, %v11858_v18 }
 0x848   : > { %v5479_v35 = vadd.f32 %v5478_v0, %v5375_v45 }
 0x849   : > { %v5003_v50 = vpop.f32.mrf.mxu3 }
 0x84a   : > { %5517 = vmatmul.bf16.gmra.mxu1 %v12238_v59  ;;  %v5004_v53 = vadd.f32 %v5003_v50, %v4900_v42  ;;  %v5773_v61 = vmax.f32 %v5479_v35, 0.0 }
 0x84c   : > { %v5376_v41 = vpop.f32.mrf.mxu0  ;;  %v5082_v56 = vmax.f32 %v5004_v53, 0.0 }
 0x84d   : > { %v5377_v44 = vadd.f32 %v5376_v41, %v12039_v14 }
 0x84e   : > { %v4901_v10 = vpop.f32.mrf.mxu2 }
 0x84f   : > { %v5480_v37 = vpop.f32.mrf.mxu1  ;;  %v4902_v3 = vadd.f32 %v4901_v10, %v11858_v18  ;;  %v8243_v10 = vld [vmem:[%s12996_s16 + $0x38] sm:$0xf0] }
 0x850   : > { %v5481_v52 = vadd.f32 %v5480_v37, %v5377_v44  ;;  %v8636_v37 = vld [vmem:[%s12996_s16 + $0x34] sm:$0xf] }
 0x851   : > { %v5005_v63 = vpop.f32.mrf.mxu3  ;;  %v8246_v53 = vor.u32 %v8636_v37, %v8243_v10 }
 0x852   : > { %v5775_v48 = vmax.f32 %v5481_v52, 0.0  ;;  %v5006_v12 = vadd.f32 %v5005_v63, %v4902_v3  ;;  %v8307_v63 = vld [vmem:[%s12996_s16 + $0xb8] sm:$0xf0] }
 0x853   : > { %5576 = vmatmul.bf16.gmra.mxu2 %v11783_v54  ;;  %v8669_v54 = vld [vmem:[%s12998_s18 + $0x38] sm:$0xff] }
 0x854   : > { %v5084_v1 = vmax.f32 %v5006_v12, 0.0  ;;  %v12246_v47 = vpack.c.bf16 %v5775_v48, %v5773_v61  ;;  %v5379_v27 = vpop.f32.mrf.mxu0  ;;  %6715 = vmatpush.bf16.msra.mxu0 %v8669_v54  ;;  %6265 = vmatpush.bf16.msra.mxu2 %v8246_v53 }
 0x855   : > { %v5380_v39 = vadd.f32 %v5379_v27, %v12039_v14 }
 0x856   : > { %5680 = vmatmul.bf16.gmra.mxu3 %v12026_v22  ;;  %v12250_v15 = vpack.c.bf16 %v5084_v1, %v5082_v56  ;;  %v4904_v30 = vpop.f32.mrf.mxu2  ;;  %v8677_v22 = vld [vmem:[%s12998_s18 + $0x78] sm:$0xff] }
 0x857   : > { %v5483_v40 = vpop.f32.mrf.mxu1  ;;  %5418 = vmatmul.bf16.gmra.mxu0 %v12022_v16  ;;  %v4905_v17 = vadd.f32 %v4904_v30, %v11858_v18  ;;  %6819 = vmatpush.bf16.msra.mxu1 %v8677_v22 }
 0x858   : > { %v5484_v6 = vadd.f32 %v5483_v40, %v5380_v39  ;;  %v12283_v40 = vperm.slane %v12035_v21, 1 }
 0x859   : > { %v5008_v13 = vpop.f32.mrf.mxu3 }
 0x85a   : > { %5522 = vmatmul.bf16.gmra.mxu1 %v12250_v15  ;;  %v5009_v0 = vadd.f32 %v5008_v13, %v4905_v17  ;;  %v5777_v42 = vmax.f32 %v5484_v6, 0.0 }
 0x85c   : > { %v5381_v7 = vpop.f32.mrf.mxu0  ;;  %v5086_v52 = vmax.f32 %v5009_v0, 0.0 }
 0x85d   : > { %v5382_v57 = vadd.f32 %v5381_v7, %v12039_v14 }
 0x85e   : > { %v4906_v45 = vpop.f32.mrf.mxu2 }
 0x85f   : > { %v5485_v20 = vpop.f32.mrf.mxu1  ;;  %v4907_v35 = vadd.f32 %v4906_v45, %v11858_v18  ;;  %v8652_v18 = vld [vmem:[%s12996_s16 + $0xb4] sm:$0xf] }
 0x860   : > { %v5486_v55 = vadd.f32 %v5485_v20, %v5382_v57  ;;  %v8310_v12 = vor.u32 %v8652_v18, %v8307_v63 }
 0x861   : > { %v5010_v50 = vpop.f32.mrf.mxu3 }
 0x862   : > { %v5779_v41 = vmax.f32 %v5486_v55, 0.0  ;;  %v5011_v44 = vadd.f32 %v5010_v50, %v4907_v35  ;;  %6369 = vmatpush.bf16.msra.mxu3 %v8310_v12 }
 0x863   : > { %5581 = vmatmul.bf16.gmra.mxu2 %v11804_v9 }
 0x864   : > { %v5088_v3 = vmax.f32 %v5011_v44, 0.0  ;;  %v12276_v61 = vpack.c.bf16 %v5779_v41, %v5777_v42  ;;  %v5384_v48 = vpop.f32.mrf.mxu0 }
 0x865   : > { %v5385_v56 = vadd.f32 %v5384_v48, %v12039_v14 }
 0x866   : > { %5685 = vmatmul.bf16.gmra.mxu3 %v12058_v43  ;;  %v12280_v27 = vpack.c.bf16 %v5088_v3, %v5086_v52  ;;  %v5542_v9 = vpop.f32.mrf.mxu2 }
 0x867   : > { %v5488_v1 = vpop.f32.mrf.mxu1  ;;  %5423 = vmatmul.bf16.gmra.mxu0 %v12048_v36  ;;  %v5543_v43 = vadd.f32 %v5542_v9, %v12283_v40 }
 0x868   : > { %v5489_v39 = vadd.f32 %v5488_v1, %v5385_v56 }
 0x869   : > { %v5646_v30 = vpop.f32.mrf.mxu3 }
 0x86a   : > { %5527 = vmatmul.bf16.gmra.mxu1 %v12280_v27  ;;  %v5647_v22 = vadd.f32 %v5646_v30, %v5543_v43  ;;  %v5781_v45 = vmax.f32 %v5489_v39, 0.0  ;;  %v8668_v43 = vld [vmem:[%s12998_s18 + $0x30] sm:$0xff] }
 0x86b   : > { %6716 = vmatpush.bf16.msra.mxu0 %v8668_v43 }
 0x86c   : > { %v5386_v6 = vpop.f32.mrf.mxu0  ;;  %v5742_v55 = vmax.f32 %v5647_v22, 0.0 }
 0x86d   : > { %v5387_v13 = vadd.f32 %v5386_v6, %v12039_v14 }
 0x86e   : > { %v5544_v54 = vpop.f32.mrf.mxu2 }
 0x86f   : > { %v5490_v17 = vpop.f32.mrf.mxu1  ;;  %v5545_v57 = vadd.f32 %v5544_v54, %v12283_v40 }
 0x870   : > { %v5491_v7 = vadd.f32 %v5490_v17, %v5387_v13  ;;  %v8676_v17 = vld [vmem:[%s12998_s18 + $0x70] sm:$0xff] }
 0x871   : > { %v5648_v20 = vpop.f32.mrf.mxu3  ;;  %6820 = vmatpush.bf16.msra.mxu1 %v8676_v17 }
 0x872   : > { %v5783_v21 = vmax.f32 %v5491_v7, 0.0  ;;  %v5649_v0 = vadd.f32 %v5648_v20, %v5545_v57  ;;  %v8634_v7 = vld [vmem:[%s12996_s16 + $0x24] sm:$0xf]  ;;  %v8235_v57 = vld [vmem:[%s12996_s16 + $0x28] sm:$0xf0] }
 0x873   : > { %5586 = vmatmul.bf16.gmra.mxu2 %v11849_v28 }
 0x874   : > { %v5744_v35 = vmax.f32 %v5649_v0, 0.0  ;;  %v12291_v50 = vpack.c.bf16 %v5783_v21, %v5781_v45  ;;  %v5389_v42 = vpop.f32.mrf.mxu0  ;;  %v8238_v21 = vor.u32 %v8634_v7, %v8235_v57 }
 0x875   : > { %v5390_v44 = vadd.f32 %v5389_v42, %v12039_v14  ;;  %v8299_v42 = vld [vmem:[%s12996_s16 + $0xa8] sm:$0xf0] }
 0x876   : > { %5690 = vmatmul.bf16.gmra.mxu3 %v12082_v31  ;;  %v12294_v41 = vpack.c.bf16 %v5744_v35, %v5742_v55  ;;  %v5547_v10 = vpop.f32.mrf.mxu2  ;;  %6266 = vmatpush.bf16.msra.mxu2 %v8238_v21 }
 0x877   : > { %v5493_v37 = vpop.f32.mrf.mxu1  ;;  %6061 = vmatmul.bf16.vlgmr.msrb.gmra.mxu0 %v12077_v5  ;;  %v5548_v3 = vadd.f32 %v5547_v10, %v12283_v40 }
 0x878   : > { %v5494_v53 = vadd.f32 %v5493_v37, %v5390_v44 }
 0x879   : > { %v5651_v52 = vpop.f32.mrf.mxu3 }
 0x87a   : > { %6165 = vmatmul.bf16.vlgmr.msrb.gmra.mxu1 %v12294_v41  ;;  %v5652_v48 = vadd.f32 %v5651_v52, %v5548_v3  ;;  %v5785_v9 = vmax.f32 %v5494_v53, 0.0 }
 0x87c   : > { %v5391_v28 = vpop.f32.mrf.mxu0  ;;  %v5746_v6 = vmax.f32 %v5652_v48, 0.0 }
 0x87d   : > { %v5392_v18 = vadd.f32 %v5391_v28, %v12039_v14 }
 0x87e   : > { %v5549_v31 = vpop.f32.mrf.mxu2 }
 0x87f   : > { %v5495_v63 = vpop.f32.mrf.mxu1  ;;  %v5550_v56 = vadd.f32 %v5549_v31, %v12283_v40 }
 0x880   : > { %v5496_v12 = vadd.f32 %v5495_v63, %v5392_v18 }
 0x881   : > { %v5653_v1 = vpop.f32.mrf.mxu3 }
 0x882   : > { %v5787_v39 = vmax.f32 %v5496_v12, 0.0  ;;  %v5654_v30 = vadd.f32 %v5653_v1, %v5550_v56 }
 0x883   : > { %5591 = vmatmul.bf16.gmra.mxu2 %v11866_v25 }
 0x884   : > { %v5748_v13 = vmax.f32 %v5654_v30, 0.0  ;;  %v12309_v54 = vpack.c.bf16 %v5787_v39, %v5785_v9  ;;  %v5394_v22 = vpop.f32.mrf.mxu0 }
 0x885   : > { %v5395_v25 = vadd.f32 %v5394_v22, %v12039_v14 }
 0x886   : > { %5695 = vmatmul.bf16.gmra.mxu3 %v12094_v60  ;;  %v12319_v45 = vpack.c.bf16 %v5748_v13, %v5746_v6  ;;  %v5552_v0 = vpop.f32.mrf.mxu2  ;;  %v8650_v60 = vld [vmem:[%s12996_s16 + $0xa4] sm:$0xf] }
 0x887   : > { %v5498_v20 = vpop.f32.mrf.mxu1  ;;  %6066 = vmatmul.bf16.gmra.mxu0 %v12090_v23  ;;  %v8302_v44 = vor.u32 %v8650_v60, %v8299_v42  ;;  %v5553_v37 = vadd.f32 %v5552_v0, %v12283_v40 }
 0x888   : > { %v5499_v55 = vadd.f32 %v5498_v20, %v5395_v25 }
 0x889   : > { %v5656_v35 = vpop.f32.mrf.mxu3  ;;  %6370 = vmatpush.bf16.msra.mxu3 %v8302_v44 }
 0x88a   : > { %6170 = vmatmul.bf16.gmra.mxu1 %v12319_v45  ;;  %v5657_v28 = vadd.f32 %v5656_v35, %v5553_v37  ;;  %v5789_v48 = vmax.f32 %v5499_v55, 0.0 }
 0x88c   : > { %v5396_v10 = vpop.f32.mrf.mxu0  ;;  %v5750_v1 = vmax.f32 %v5657_v28, 0.0 }
 0x88d   : > { %v5397_v53 = vadd.f32 %v5396_v10, %v12039_v14 }
 0x88e   : > { %v5554_v3 = vpop.f32.mrf.mxu2 }
 0x88f   : > { %v5500_v52 = vpop.f32.mrf.mxu1  ;;  %v5555_v63 = vadd.f32 %v5554_v3, %v12283_v40  ;;  %v8667_v3 = vld [vmem:[%s12998_s18 + $0x28] sm:$0xff] }
 0x890   : > { %v5501_v18 = vadd.f32 %v5500_v52, %v5397_v53  ;;  %6717 = vmatpush.bf16.msra.mxu0 %v8667_v3 }
 0x891   : > { %v5658_v31 = vpop.f32.mrf.mxu3 }
 0x892   : > { %v5791_v12 = vmax.f32 %v5501_v18, 0.0  ;;  %v5659_v56 = vadd.f32 %v5658_v31, %v5555_v63 }
 0x893   : > { %5596 = vmatmul.bf16.gmra.mxu2 %v11890_v11 }
 0x894   : > { %v5752_v9 = vmax.f32 %v5659_v56, 0.0  ;;  %v12333_v39 = vpack.c.bf16 %v5791_v12, %v5789_v48  ;;  %v5399_v30 = vpop.f32.mrf.mxu0  ;;  %v8632_v56 = vld [vmem:[%s12996_s16 + $0x14] sm:$0xf] }
 0x895   : > { %v5400_v43 = vadd.f32 %v5399_v30, %v12039_v14 }
 0x896   : > { %5700 = vmatmul.bf16.gmra.mxu3 %v12130_v62  ;;  %v12337_v13 = vpack.c.bf16 %v5752_v9, %v5750_v1  ;;  %v5557_v17 = vpop.f32.mrf.mxu2  ;;  %v8227_v1 = vld [vmem:[%s12996_s16 + $0x18] sm:$0xf0] }
 0x897   : > { %v5503_v6 = vpop.f32.mrf.mxu1  ;;  %6071 = vmatmul.bf16.gmra.mxu0 %v12126_v58  ;;  %v5558_v57 = vadd.f32 %v5557_v17, %v12283_v40  ;;  %v8230_v30 = vor.u32 %v8632_v56, %v8227_v1 }
 0x898   : > { %v5504_v22 = vadd.f32 %v5503_v6, %v5400_v43  ;;  %v8648_v43 = vld [vmem:[%s12996_s16 + $0x94] sm:$0xf]  ;;  %v8291_v6 = vld [vmem:[%s12996_s16 + $0x98] sm:$0xf0] }
 0x899   : > { %v5661_v7 = vpop.f32.mrf.mxu3  ;;  %6267 = vmatpush.bf16.msra.mxu2 %v8230_v30 }
 0x89a   : > { %6175 = vmatmul.bf16.gmra.mxu1 %v12337_v13  ;;  %v5662_v21 = vadd.f32 %v5661_v7, %v5558_v57  ;;  %v5793_v60 = vmax.f32 %v5504_v22, 0.0  ;;  %v8294_v7 = vor.u32 %v8648_v43, %v8291_v6 }
 0x89c   : > { %v5401_v11 = vpop.f32.mrf.mxu0  ;;  %v5754_v37 = vmax.f32 %v5662_v21, 0.0  ;;  %6371 = vmatpush.bf16.msra.mxu3 %v8294_v7 }
 0x89d   : > { %v5402_v25 = vadd.f32 %v5401_v11, %v12039_v14 }
 0x89e   : > { %v5559_v62 = vpop.f32.mrf.mxu2 }
 0x89f   : > { %v5505_v20 = vpop.f32.mrf.mxu1  ;;  %v5560_v55 = vadd.f32 %v5559_v62, %v12283_v40 }
 0x8a0   : > { %v5506_v0 = vadd.f32 %v5505_v20, %v5402_v25 }
 0x8a1   : > { %v5663_v35 = vpop.f32.mrf.mxu3 }
 0x8a2   : > { %v5795_v42 = vmax.f32 %v5506_v0, 0.0  ;;  %v5664_v44 = vadd.f32 %v5663_v35, %v5560_v55 }
 0x8a3   : > { %5601 = vmatmul.bf16.gmra.mxu2 %v11914_v2  ;;  %v8675_v2 = vld [vmem:[%s12998_s18 + $0x68] sm:$0xff] }
 0x8a4   : > { %v5756_v10 = vmax.f32 %v5664_v44, 0.0  ;;  %v12345_v53 = vpack.c.bf16 %v5795_v42, %v5793_v60  ;;  %v5404_v52 = vpop.f32.mrf.mxu0  ;;  %6821 = vmatpush.bf16.msra.mxu1 %v8675_v2 }
 0x8a5   : > { %v5405_v28 = vadd.f32 %v5404_v52, %v12039_v14 }
 0x8a6   : > { %5705 = vmatmul.bf16.gmra.mxu3 %v12142_v46  ;;  %v12352_v63 = vpack.c.bf16 %v5756_v10, %v5754_v37  ;;  %v5562_v31 = vpop.f32.mrf.mxu2 }
 0x8a7   : > { %v5508_v18 = vpop.f32.mrf.mxu1  ;;  %6076 = vmatmul.bf16.gmra.mxu0 %v12138_v51  ;;  %v5563_v46 = vadd.f32 %v5562_v31, %v12283_v40 }
 0x8a8   : > { %v5509_v48 = vadd.f32 %v5508_v18, %v5405_v28 }
 0x8a9   : > { %v5666_v12 = vpop.f32.mrf.mxu3 }
 0x8aa   : > { %6180 = vmatmul.bf16.gmra.mxu1 %v12352_v63  ;;  %v5667_v11 = vadd.f32 %v5666_v12, %v5563_v46  ;;  %v5797_v21 = vmax.f32 %v5509_v48, 0.0 }
 0x8ac   : > { %v5406_v9 = vpop.f32.mrf.mxu0  ;;  %v5758_v35 = vmax.f32 %v5667_v11, 0.0 }
 0x8ad   : > { %v5407_v17 = vadd.f32 %v5406_v9, %v12039_v14 }
 0x8ae   : > { %v5564_v57 = vpop.f32.mrf.mxu2 }
 0x8af   : > { %v5510_v22 = vpop.f32.mrf.mxu1  ;;  %v5565_v20 = vadd.f32 %v5564_v57, %v12283_v40 }
 0x8b0   : > { %v5511_v25 = vadd.f32 %v5510_v22, %v5407_v17 }
 0x8b1   : > { %v5668_v62 = vpop.f32.mrf.mxu3 }
 0x8b2   : > { %v5799_v0 = vmax.f32 %v5511_v25, 0.0  ;;  %v5669_v55 = vadd.f32 %v5668_v62, %v5565_v20 }
 0x8b3   : > { %5606 = vmatmul.bf16.gmra.mxu2 %v11926_v33 }
 0x8b4   : > { %v5760_v60 = vmax.f32 %v5669_v55, 0.0  ;;  %v12375_v42 = vpack.c.bf16 %v5799_v0, %v5797_v21  ;;  %v5409_v44 = vpop.f32.mrf.mxu0 }
 0x8b5   : > { %v5410_v37 = vadd.f32 %v5409_v44, %v12039_v14 }
 0x8b6   : > { %5710 = vmatmul.bf16.gmra.mxu3 %v12178_v19  ;;  %v12379_v52 = vpack.c.bf16 %v5760_v60, %v5758_v35  ;;  %v5567_v3 = vpop.f32.mrf.mxu2 }
 0x8b7   : > { %v5513_v10 = vpop.f32.mrf.mxu1  ;;  %6081 = vmatmul.bf16.gmra.mxu0 %v12168_v24  ;;  %v5568_v31 = vadd.f32 %v5567_v3, %v12283_v40 }
 0x8b8   : > { %v5514_v28 = vadd.f32 %v5513_v10, %v5410_v37 }
 0x8b9   : > { %v5671_v18 = vpop.f32.mrf.mxu3 }
 0x8ba   : > { %6185 = vmatmul.bf16.gmra.mxu1 %v12379_v52  ;;  %v5672_v2 = vadd.f32 %v5671_v18, %v5568_v31  ;;  %v5801_v9 = vmax.f32 %v5514_v28, 0.0 }
 0x8bc   : > { %v5411_v33 = vpop.f32.mrf.mxu0  ;;  %v5762_v6 = vmax.f32 %v5672_v2, 0.0  ;;  %v8219_v2 = vld [vmem:[%s12996_s16 + $0x8] sm:$0xf0] }
 0x8bd   : > { %v5412_v48 = vadd.f32 %v5411_v33, %v12039_v14 }
 0x8be   : > { %v5569_v19 = vpop.f32.mrf.mxu2 }
 0x8bf   : > { %v5515_v12 = vpop.f32.mrf.mxu1  ;;  %v5570_v56 = vadd.f32 %v5569_v19, %v12283_v40  ;;  %v8630_v19 = vld [vmem:[%s12996_s16 + $0x4] sm:$0xf] }
 0x8c0   : > { %v5516_v46 = vadd.f32 %v5515_v12, %v5412_v48 }
 0x8c1   : > { %v5673_v1 = vpop.f32.mrf.mxu3 }
 0x8c2   : > { %v5803_v30 = vmax.f32 %v5516_v46, 0.0  ;;  %v5674_v43 = vadd.f32 %v5673_v1, %v5570_v56  ;;  %v8222_v1 = vor.u32 %v8630_v19, %v8219_v2 }
 0x8c3   : > { %5611 = vmatmul.bf16.gmra.mxu2 %v11962_v38  ;;  %v8666_v38 = vld [vmem:[%s12998_s18 + $0x20] sm:$0xff] }
 0x8c4   : > { %v5764_v17 = vmax.f32 %v5674_v43, 0.0  ;;  %v12387_v22 = vpack.c.bf16 %v5803_v30, %v5801_v9  ;;  %v5414_v7 = vpop.f32.mrf.mxu0  ;;  %6718 = vmatpush.bf16.msra.mxu0 %v8666_v38  ;;  %v8646_v9 = vld [vmem:[%s12996_s16 + $0x84] sm:$0xf]  ;;  %6268 = vmatpush.bf16.msra.mxu2 %v8222_v1 }
 0x8c5   : > { %v5415_v57 = vadd.f32 %v5414_v7, %v12039_v14 }
 0x8c6   : > { %5715 = vmatmul.bf16.gmra.mxu3 %v12190_v32  ;;  %v12391_v25 = vpack.c.bf16 %v5764_v17, %v5762_v6  ;;  %v5572_v20 = vpop.f32.mrf.mxu2  ;;  %v8674_v32 = vld [vmem:[%s12998_s18 + $0x60] sm:$0xff] }
 0x8c7   : > { %v5518_v11 = vpop.f32.mrf.mxu1  ;;  %6086 = vmatmul.bf16.gmra.mxu0 %v12186_v29  ;;  %v5573_v0 = vadd.f32 %v5572_v20, %v12283_v40  ;;  %6822 = vmatpush.bf16.msra.mxu1 %v8674_v32 }
 0x8c8   : > { %v5519_v62 = vadd.f32 %v5518_v11, %v5415_v57 }
 0x8c9   : > { %v5676_v21 = vpop.f32.mrf.mxu3 }
 0x8ca   : > { %6190 = vmatmul.bf16.gmra.mxu1 %v12391_v25  ;;  %v5677_v37 = vadd.f32 %v5676_v21, %v5573_v0  ;;  %v5805_v18 = vmax.f32 %v5519_v62, 0.0 }
 0x8cc   : > { %v5416_v55 = vpop.f32.mrf.mxu0  ;;  %v5766_v48 = vmax.f32 %v5677_v37, 0.0 }
 0x8cd   : > { %v5417_v35 = vadd.f32 %v5416_v55, %v12039_v14 }
 0x8ce   : > { %v5574_v44 = vpop.f32.mrf.mxu2 }
 0x8cf   : > { %v5520_v60 = vpop.f32.mrf.mxu1  ;;  %v5575_v3 = vadd.f32 %v5574_v44, %v12283_v40 }
 0x8d0   : > { %v5521_v10 = vadd.f32 %v5520_v60, %v5417_v35 }
 0x8d1   : > { %v5678_v28 = vpop.f32.mrf.mxu3 }
 0x8d2   : > { %v5807_v31 = vmax.f32 %v5521_v10, 0.0  ;;  %v5679_v33 = vadd.f32 %v5678_v28, %v5575_v3 }
 0x8d3   : > { %5616 = vmatmul.bf16.gmra.mxu2 %v11974_v26  ;;  %v8283_v26 = vld [vmem:[%s12996_s16 + $0x88] sm:$0xf0] }
 0x8d4   : > { %v5768_v12 = vmax.f32 %v5679_v33, 0.0  ;;  %v12411_v46 = vpack.c.bf16 %v5807_v31, %v5805_v18  ;;  %v5419_v56 = vpop.f32.mrf.mxu0  ;;  %v8286_v17 = vor.u32 %v8646_v9, %v8283_v26  ;;  %v12442_v26 = vld [vmem:[%s12997_s17] sm:$0x3] }
 0x8d5   : > { %v5420_v30 = vadd.f32 %v5419_v56, %v12039_v14 }
 0x8d6   : > { %5720 = vmatmul.bf16.gmra.mxu3 %v12214_v8  ;;  %v12421_v6 = vpack.c.bf16 %v5768_v12, %v5766_v48  ;;  %v5577_v7 = vpop.f32.mrf.mxu2 }
 0x8d7   : > { %v5523_v43 = vpop.f32.mrf.mxu1  ;;  %6091 = vmatmul.bf16.gmra.mxu0 %v12204_v49  ;;  %6372 = vmatpush.bf16.msra.mxu3 %v8286_v17  ;;  %v5578_v11 = vadd.f32 %v5577_v7, %v12283_v40 }
 0x8d8   : > { %v5524_v57 = vadd.f32 %v5523_v43, %v5420_v30 }
 0x8d9   : > { %v5681_v8 = vpop.f32.mrf.mxu3 }
 0x8da   : > { %6195 = vmatmul.bf16.gmra.mxu1 %v12421_v6  ;;  %v5682_v38 = vadd.f32 %v5681_v8, %v5578_v11  ;;  %v5809_v60 = vmax.f32 %v5524_v57, 0.0 }
 0x8dc   : > { %v5421_v20 = vpop.f32.mrf.mxu0  ;;  %v5770_v10 = vmax.f32 %v5682_v38, 0.0 }
 0x8dd   : > { %v5422_v62 = vadd.f32 %v5421_v20, %v12039_v14  ;;  %v12446_v20 = vperm.slane %v12442_v26, 0 }
 0x8de   : > { %v5579_v0 = vpop.f32.mrf.mxu2 }
 0x8df   : > { %v5525_v21 = vpop.f32.mrf.mxu1  ;;  %v5580_v55 = vadd.f32 %v5579_v0, %v12283_v40  ;;  %v8673_v0 = vld [vmem:[%s12998_s18 + $0x58] sm:$0xff] }
 0x8e0   : > { %v5526_v32 = vadd.f32 %v5525_v21, %v5422_v62  ;;  %v8665_v21 = vld [vmem:[%s12998_s18 + $0x18] sm:$0xff]  ;;  %6823 = vmatpush.bf16.msra.mxu1 %v8673_v0 }
 0x8e1   : > { %v5683_v35 = vpop.f32.mrf.mxu3  ;;  %6719 = vmatpush.bf16.msra.mxu0 %v8665_v21 }
 0x8e2   : > { %v5811_v44 = vmax.f32 %v5526_v32, 0.0  ;;  %v5684_v37 = vadd.f32 %v5683_v35, %v5580_v55 }
 0x8e3   : > { %5621 = vmatmul.bf16.gmra.mxu2 %v12004_v4 }
 0x8e4   : > { %v5772_v3 = vmax.f32 %v5684_v37, 0.0  ;;  %v12429_v28 = vpack.c.bf16 %v5811_v44, %v5809_v60  ;;  %v5424_v18 = vpop.f32.mrf.mxu0 }
 0x8e5   : > { %v5425_v31 = vadd.f32 %v5424_v18, %v12039_v14 }
 0x8e6   : > { %5725 = vmatmul.bf16.gmra.mxu3 %v12238_v59  ;;  %v12433_v48 = vpack.c.bf16 %v5772_v3, %v5770_v10  ;;  %v5582_v12 = vpop.f32.mrf.mxu2 }
 0x8e7   : > { %v5528_v33 = vpop.f32.mrf.mxu1  ;;  %6096 = vmatmul.bf16.gmra.mxu0 %v12234_v34  ;;  %v5583_v56 = vadd.f32 %v5582_v12, %v12283_v40 }
 0x8e8   : > { %v5529_v19 = vadd.f32 %v5528_v33, %v5425_v31 }
 0x8e9   : > { %v5686_v2 = vpop.f32.mrf.mxu3 }
 0x8ea   : > { %6200 = vmatmul.bf16.gmra.mxu1 %v12433_v48  ;;  %v5687_v30 = vadd.f32 %v5686_v2, %v5583_v56  ;;  %v5813_v57 = vmax.f32 %v5529_v19, 0.0 }
 0x8ec   : > { %v5426_v4 = vpop.f32.mrf.mxu0  ;;  %v5774_v62 = vmax.f32 %v5687_v30, 0.0 }
 0x8ed   : > { %v5427_v1 = vadd.f32 %v5426_v4, %v12039_v14 }
 0x8ee   : > { %v5584_v59 = vpop.f32.mrf.mxu2 }
 0x8ef   : > { %v5530_v9 = vpop.f32.mrf.mxu1  ;;  %v5585_v17 = vadd.f32 %v5584_v59, %v12283_v40 }
 0x8f0   : > { %v5531_v43 = vadd.f32 %v5530_v9, %v5427_v1 }
 0x8f1   : > { %v5688_v7 = vpop.f32.mrf.mxu3 }
 0x8f2   : > { %v5815_v8 = vmax.f32 %v5531_v43, 0.0  ;;  %v5689_v11 = vadd.f32 %v5688_v7, %v5585_v17 }
 0x8f3   : > { %5626 = vmatmul.bf16.gmra.mxu2 %v12022_v16 }
 0x8f4   : > { %v5776_v14 = vmax.f32 %v5689_v11, 0.0  ;;  %v12455_v38 = vpack.c.bf16 %v5815_v8, %v5813_v57  ;;  %v6062_v32 = vpop.f32.mrf.mxu0 }
 0x8f5   : > { %v6063_v55 = vadd.f32 %v6062_v32, %v12446_v20 }
 0x8f6   : > { %5730 = vmatmul.bf16.gmra.mxu3 %v12250_v15  ;;  %v12459_v60 = vpack.c.bf16 %v5776_v14, %v5774_v62  ;;  %v5587_v16 = vpop.f32.mrf.mxu2 }
 0x8f7   : > { %v6166_v35 = vpop.f32.mrf.mxu1  ;;  %6101 = vmatmul.bf16.gmra.mxu0 %v12246_v47  ;;  %v5588_v10 = vadd.f32 %v5587_v16, %v12283_v40 }
 0x8f8   : > { %v6167_v44 = vadd.f32 %v6166_v35, %v6063_v55 }
 0x8f9   : > { %v5691_v37 = vpop.f32.mrf.mxu3 }
 0x8fa   : > { %6205 = vmatmul.bf16.gmra.mxu1 %v12459_v60  ;;  %v5692_v33 = vadd.f32 %v5691_v37, %v5588_v10  ;;  %v6469_v56 = vmax.f32 %v6167_v44, 0.0 }
 0x8fc   : > { %v6064_v3 = vpop.f32.mrf.mxu0  ;;  %v5778_v9 = vmax.f32 %v5692_v33, 0.0 }
 0x8fd   : > { %v6065_v15 = vadd.f32 %v6064_v3, %v12446_v20 }
 0x8fe   : > { %v5589_v31 = vpop.f32.mrf.mxu2 }
 0x8ff   : > { %v6168_v18 = vpop.f32.mrf.mxu1  ;;  %v5590_v19 = vadd.f32 %v5589_v31, %v12283_v40 }
 0x900   : > { %v6169_v12 = vadd.f32 %v6168_v18, %v6065_v15 }
 0x901   : > { %v5693_v2 = vpop.f32.mrf.mxu3 }
 0x902   : > { %v6471_v4 = vmax.f32 %v6169_v12, 0.0  ;;  %v5694_v1 = vadd.f32 %v5693_v2, %v5590_v19 }
 0x903   : > { %5631 = vmatmul.bf16.gmra.mxu2 %v12048_v36 }
 0x904   : > { %v12466_v59 = vpack.c.bf16 %v6471_v4, %v6469_v56  ;;  %v5780_v30 = vmax.f32 %v5694_v1, 0.0  ;;  %v6067_v43 = vpop.f32.mrf.mxu0 }
 0x905   : > { %v6068_v17 = vadd.f32 %v6067_v43, %v12446_v20 }
 0x906   : > { %5735 = vmatmul.bf16.gmra.mxu3 %v12280_v27  ;;  %v12471_v57 = vpack.c.bf16 %v5780_v30, %v5778_v9  ;;  %v5592_v8 = vpop.f32.mrf.mxu2 }
 0x907   : > { %v6171_v7 = vpop.f32.mrf.mxu1  ;;  %6106 = vmatmul.bf16.gmra.mxu0 %v12276_v61  ;;  %v5593_v14 = vadd.f32 %v5592_v8, %v12283_v40 }
 0x908   : > { %v6172_v11 = vadd.f32 %v6171_v7, %v6068_v17 }
 0x909   : > { %v5696_v62 = vpop.f32.mrf.mxu3 }
 0x90a   : > { %6210 = vmatmul.bf16.gmra.mxu1 %v12471_v57  ;;  %v5697_v32 = vadd.f32 %v5696_v62, %v5593_v14  ;;  %v6473_v44 = vmax.f32 %v6172_v11, 0.0 }
 0x90c   : > { %v6069_v21 = vpop.f32.mrf.mxu0  ;;  %v5782_v3 = vmax.f32 %v5697_v32, 0.0 }
 0x90d   : > { %v6070_v36 = vadd.f32 %v6069_v21, %v12446_v20 }
 0x90e   : > { %v5594_v27 = vpop.f32.mrf.mxu2 }
 0x90f   : > { %v6173_v0 = vpop.f32.mrf.mxu1  ;;  %v5595_v35 = vadd.f32 %v5594_v27, %v12283_v40 }
 0x910   : > { %v6174_v55 = vadd.f32 %v6173_v0, %v6070_v36 }
 0x911   : > { %v5698_v16 = vpop.f32.mrf.mxu3 }
 0x912   : > { %v6475_v37 = vmax.f32 %v6174_v55, 0.0  ;;  %v5699_v10 = vadd.f32 %v5698_v16, %v5595_v35 }
 0x913   : > { %6269 = vmatmul.bf16.vlgmr.msra.gmra.mxu2 %v12077_v5  ;;  %v8664_v5 = vld [vmem:[%s12998_s18 + $0x10] sm:$0xff] }
 0x914   : > { %v5784_v15 = vmax.f32 %v5699_v10, 0.0  ;;  %v12479_v18 = vpack.c.bf16 %v6475_v37, %v6473_v44  ;;  %v6072_v31 = vpop.f32.mrf.mxu0  ;;  %6720 = vmatpush.bf16.msra.mxu0 %v8664_v5 }
 0x915   : > { %v6073_v33 = vadd.f32 %v6072_v31, %v12446_v20 }
 0x916   : > { %6373 = vmatmul.bf16.vlgmr.msra.gmra.mxu3 %v12294_v41  ;;  %v12483_v19 = vpack.c.bf16 %v5784_v15, %v5782_v3  ;;  %v5597_v2 = vpop.f32.mrf.mxu2  ;;  %v8672_v41 = vld [vmem:[%s12998_s18 + $0x50] sm:$0xff] }
 0x917   : > { %v6176_v12 = vpop.f32.mrf.mxu1  ;;  %6111 = vmatmul.bf16.gmra.mxu0 %v12291_v50  ;;  %v5598_v1 = vadd.f32 %v5597_v2, %v12283_v40  ;;  %6824 = vmatpush.bf16.msra.mxu1 %v8672_v41 }
 0x918   : > { %v6177_v56 = vadd.f32 %v6176_v12, %v6073_v33 }
 0x919   : > { %v5701_v4 = vpop.f32.mrf.mxu3 }
 0x91a   : > { %6215 = vmatmul.bf16.gmra.mxu1 %v12483_v19  ;;  %v5702_v7 = vadd.f32 %v5701_v4, %v5598_v1  ;;  %v6477_v14 = vmax.f32 %v6177_v56, 0.0 }
 0x91c   : > { %v6074_v9 = vpop.f32.mrf.mxu0  ;;  %v5786_v0 = vmax.f32 %v5702_v7, 0.0 }
 0x91d   : > { %v6075_v30 = vadd.f32 %v6074_v9, %v12446_v20 }
 0x91e   : > { %v5599_v17 = vpop.f32.mrf.mxu2 }
 0x91f   : > { %v6178_v43 = vpop.f32.mrf.mxu1  ;;  %v5600_v11 = vadd.f32 %v5599_v17, %v12283_v40 }
 0x920   : > { %v6179_v8 = vadd.f32 %v6178_v43, %v6075_v30 }
 0x921   : > { %v5703_v62 = vpop.f32.mrf.mxu3 }
 0x922   : > { %v6479_v21 = vmax.f32 %v6179_v8, 0.0  ;;  %v5704_v36 = vadd.f32 %v5703_v62, %v5600_v11 }
 0x923   : > { %6274 = vmatmul.bf16.gmra.mxu2 %v12090_v23 }
 0x924   : > { %v5788_v27 = vmax.f32 %v5704_v36, 0.0  ;;  %v12497_v32 = vpack.c.bf16 %v6479_v21, %v6477_v14  ;;  %v6077_v55 = vpop.f32.mrf.mxu0 }
 0x925   : > { %v6078_v35 = vadd.f32 %v6077_v55, %v12446_v20 }
 0x926   : > { %6378 = vmatmul.bf16.gmra.mxu3 %v12319_v45  ;;  %v12501_v44 = vpack.c.bf16 %v5788_v27, %v5786_v0  ;;  %v5602_v37 = vpop.f32.mrf.mxu2 }
 0x927   : > { %v6181_v16 = vpop.f32.mrf.mxu1  ;;  %6116 = vmatmul.bf16.gmra.mxu0 %v12309_v54  ;;  %v5603_v15 = vadd.f32 %v5602_v37, %v12283_v40 }
 0x928   : > { %v6182_v10 = vadd.f32 %v6181_v16, %v6078_v35 }
 0x929   : > { %v5706_v3 = vpop.f32.mrf.mxu3 }
 0x92a   : > { %6220 = vmatmul.bf16.gmra.mxu1 %v12501_v44  ;;  %v5707_v12 = vadd.f32 %v5706_v3, %v5603_v15  ;;  %v6481_v5 = vmax.f32 %v6182_v10, 0.0 }
 0x92c   : > { %v6079_v23 = vpop.f32.mrf.mxu0  ;;  %v5790_v9 = vmax.f32 %v5707_v12, 0.0 }
 0x92d   : > { %v6080_v31 = vadd.f32 %v6079_v23, %v12446_v20 }
 0x92e   : > { %v5604_v45 = vpop.f32.mrf.mxu2 }
 0x92f   : > { %v6183_v33 = vpop.f32.mrf.mxu1  ;;  %v5605_v56 = vadd.f32 %v5604_v45, %v12283_v40 }
 0x930   : > { %v6184_v2 = vadd.f32 %v6183_v33, %v6080_v31  ;;  %v8671_v31 = vld [vmem:[%s12998_s18 + $0x48] sm:$0xff] }
 0x931   : > { %v5708_v4 = vpop.f32.mrf.mxu3  ;;  %6825 = vmatpush.bf16.msra.mxu1 %v8671_v31 }
 0x932   : > { %v6483_v1 = vmax.f32 %v6184_v2, 0.0  ;;  %v5709_v41 = vadd.f32 %v5708_v4, %v5605_v56 }
 0x933   : > { %6279 = vmatmul.bf16.gmra.mxu2 %v12126_v58  ;;  %v8663_v58 = vld [vmem:[%s12998_s18 + $0x8] sm:$0xff] }
 0x934   : > { %v5792_v30 = vmax.f32 %v5709_v41, 0.0  ;;  %v12509_v43 = vpack.c.bf16 %v6483_v1, %v6481_v5  ;;  %v6082_v17 = vpop.f32.mrf.mxu0  ;;  %6721 = vmatpush.bf16.msra.mxu0 %v8663_v58 }
 0x935   : > { %v6083_v7 = vadd.f32 %v6082_v17, %v12446_v20 }
 0x936   : > { %6383 = vmatmul.bf16.gmra.mxu3 %v12337_v13  ;;  %v12513_v11 = vpack.c.bf16 %v5792_v30, %v5790_v9  ;;  %v5607_v62 = vpop.f32.mrf.mxu2 }
 0x937   : > { %v6186_v8 = vpop.f32.mrf.mxu1  ;;  %6121 = vmatmul.bf16.gmra.mxu0 %v12333_v39  ;;  %v5608_v36 = vadd.f32 %v5607_v62, %v12283_v40 }
 0x938   : > { %v6187_v14 = vadd.f32 %v6186_v8, %v6083_v7 }
 0x939   : > { %v5711_v21 = vpop.f32.mrf.mxu3 }
 0x93a   : > { %6225 = vmatmul.bf16.gmra.mxu1 %v12513_v11  ;;  %v5712_v35 = vadd.f32 %v5711_v21, %v5608_v36  ;;  %v6485_v3 = vmax.f32 %v6187_v14, 0.0 }
 0x93c   : > { %v6084_v13 = vpop.f32.mrf.mxu0  ;;  %v5794_v33 = vmax.f32 %v5712_v35, 0.0 }
 0x93d   : > { %v6085_v0 = vadd.f32 %v6084_v13, %v12446_v20 }
 0x93e   : > { %v5609_v55 = vpop.f32.mrf.mxu2 }
 0x93f   : > { %v6188_v27 = vpop.f32.mrf.mxu1  ;;  %v5610_v37 = vadd.f32 %v5609_v55, %v12283_v40 }
 0x940   : > { %v6189_v16 = vadd.f32 %v6188_v27, %v6085_v0 }
 0x941   : > { %v5713_v10 = vpop.f32.mrf.mxu3 }
 0x942   : > { %v6487_v15 = vmax.f32 %v6189_v16, 0.0  ;;  %v5714_v23 = vadd.f32 %v5713_v10, %v5610_v37 }
 0x943   : > { %6284 = vmatmul.bf16.gmra.mxu2 %v12138_v51 }
 0x944   : > { %v5796_v45 = vmax.f32 %v5714_v23, 0.0  ;;  %v12527_v12 = vpack.c.bf16 %v6487_v15, %v6485_v3  ;;  %v6087_v2 = vpop.f32.mrf.mxu0 }
 0x945   : > { %v6088_v56 = vadd.f32 %v6087_v2, %v12446_v20 }
 0x946   : > { %6388 = vmatmul.bf16.gmra.mxu3 %v12352_v63  ;;  %v12531_v5 = vpack.c.bf16 %v5796_v45, %v5794_v33  ;;  %v5612_v1 = vpop.f32.mrf.mxu2 }
 0x947   : > { %v6191_v4 = vpop.f32.mrf.mxu1  ;;  %6126 = vmatmul.bf16.gmra.mxu0 %v12345_v53  ;;  %v5613_v51 = vadd.f32 %v5612_v1, %v12283_v40 }
 0x948   : > { %v6192_v41 = vadd.f32 %v6191_v4, %v6088_v56 }
 0x949   : > { %v5716_v9 = vpop.f32.mrf.mxu3 }
 0x94a   : > { %6230 = vmatmul.bf16.gmra.mxu1 %v12531_v5  ;;  %v5717_v8 = vadd.f32 %v5716_v9, %v5613_v51  ;;  %v6489_v36 = vmax.f32 %v6192_v41, 0.0 }
 0x94c   : > { %v6089_v30 = vpop.f32.mrf.mxu0  ;;  %v5798_v0 = vmax.f32 %v5717_v8, 0.0 }
 0x94d   : > { %v6090_v17 = vadd.f32 %v6089_v30, %v12446_v20 }
 0x94e   : > { %v5614_v63 = vpop.f32.mrf.mxu2 }
 0x94f   : > { %v6193_v7 = vpop.f32.mrf.mxu1  ;;  %v5615_v14 = vadd.f32 %v5614_v63, %v12283_v40 }
 0x950   : > { %v6194_v62 = vadd.f32 %v6193_v7, %v6090_v17  ;;  %v8662_v7 = vld [vmem:[%s12998_s18] sm:$0xff] }
 0x951   : > { %v5718_v21 = vpop.f32.mrf.mxu3  ;;  %6722 = vmatpush.bf16.msra.mxu0 %v8662_v7 }
 0x952   : > { %v6491_v58 = vmax.f32 %v6194_v62, 0.0  ;;  %v5719_v13 = vadd.f32 %v5718_v21, %v5615_v14  ;;  %v8670_v62 = vld [vmem:[%s12998_s18 + $0x40] sm:$0xff] }
 0x953   : > { %6289 = vmatmul.bf16.gmra.mxu2 %v12168_v24  ;;  %6826 = vmatpush.bf16.msra.mxu1 %v8670_v62 }
 0x954   : > { %v5800_v27 = vmax.f32 %v5719_v13, 0.0  ;;  %v12539_v55 = vpack.c.bf16 %v6491_v58, %v6489_v36  ;;  %v6092_v35 = vpop.f32.mrf.mxu0 }
 0x955   : > { %v6093_v16 = vadd.f32 %v6092_v35, %v12446_v20 }
 0x956   : > { %6393 = vmatmul.bf16.gmra.mxu3 %v12379_v52  ;;  %v12543_v10 = vpack.c.bf16 %v5800_v27, %v5798_v0  ;;  %v5617_v3 = vpop.f32.mrf.mxu2 }
 0x957   : > { %v6196_v37 = vpop.f32.mrf.mxu1  ;;  %6131 = vmatmul.bf16.gmra.mxu0 %v12375_v42  ;;  %v5618_v31 = vadd.f32 %v5617_v3, %v12283_v40 }
 0x958   : > { %v6197_v15 = vadd.f32 %v6196_v37, %v6093_v16 }
 0x959   : > { %v5721_v23 = vpop.f32.mrf.mxu3 }
 0x95a   : > { %6235 = vmatmul.bf16.gmra.mxu1 %v12543_v10  ;;  %v5722_v2 = vadd.f32 %v5721_v23, %v5618_v31  ;;  %v6493_v41 = vmax.f32 %v6197_v15, 0.0 }
 0x95c   : > { %v6094_v24 = vpop.f32.mrf.mxu0  ;;  %v5802_v30 = vmax.f32 %v5722_v2, 0.0 }
 0x95d   : > { %v6095_v33 = vadd.f32 %v6094_v24, %v12446_v20 }
 0x95e   : > { %v5619_v52 = vpop.f32.mrf.mxu2 }
 0x95f   : > { %v6198_v45 = vpop.f32.mrf.mxu1  ;;  %v5620_v4 = vadd.f32 %v5619_v52, %v12283_v40 }
 0x960   : > { %v6199_v56 = vadd.f32 %v6198_v45, %v6095_v33 }
 0x961   : > { %v5723_v1 = vpop.f32.mrf.mxu3 }
 0x962   : > { %v6495_v9 = vmax.f32 %v6199_v56, 0.0  ;;  %v5724_v51 = vadd.f32 %v5723_v1, %v5620_v4 }
 0x963   : > { %6294 = vmatmul.bf16.gmra.mxu2 %v12186_v29 }
 0x964   : > { %v5804_v17 = vmax.f32 %v5724_v51, 0.0  ;;  %v12554_v63 = vpack.c.bf16 %v6495_v9, %v6493_v41  ;;  %v6097_v8 = vpop.f32.mrf.mxu0 }
 0x965   : > { %v6098_v14 = vadd.f32 %v6097_v8, %v12446_v20 }
 0x966   : > { %6398 = vmatmul.bf16.gmra.mxu3 %v12391_v25  ;;  %v12561_v36 = vpack.c.bf16 %v5804_v17, %v5802_v30  ;;  %v5622_v29 = vpop.f32.mrf.mxu2 }
 0x967   : > { %v6201_v21 = vpop.f32.mrf.mxu1  ;;  %6136 = vmatmul.bf16.gmra.mxu0 %v12387_v22  ;;  %v5623_v25 = vadd.f32 %v5622_v29, %v12283_v40 }
 0x968   : > { %v6202_v58 = vadd.f32 %v6201_v21, %v6098_v14 }
 0x969   : > { %v5726_v13 = vpop.f32.mrf.mxu3 }
 0x96a   : > { %6240 = vmatmul.bf16.gmra.mxu1 %v12561_v36  ;;  %v5727_v37 = vadd.f32 %v5726_v13, %v5623_v25  ;;  %v6497_v31 = vmax.f32 %v6202_v58, 0.0 }
 0x96c   : > { %v6099_v0 = vpop.f32.mrf.mxu0  ;;  %v5806_v45 = vmax.f32 %v5727_v37, 0.0 }
 0x96d   : > { %v6100_v27 = vadd.f32 %v6099_v0, %v12446_v20 }
 0x96e   : > { %v5624_v16 = vpop.f32.mrf.mxu2 }
 0x96f   : > { %v6203_v35 = vpop.f32.mrf.mxu1  ;;  %v5625_v15 = vadd.f32 %v5624_v16, %v12283_v40 }
 0x970   : > { %v6204_v3 = vadd.f32 %v6203_v35, %v6100_v27 }
 0x971   : > { %v5728_v23 = vpop.f32.mrf.mxu3 }
 0x972   : > { %v6499_v24 = vmax.f32 %v6204_v3, 0.0  ;;  %v5729_v33 = vadd.f32 %v5728_v23, %v5625_v15 }
 0x973   : > { %6299 = vmatmul.bf16.gmra.mxu2 %v12204_v49 }
 0x974   : > { %v5808_v52 = vmax.f32 %v5729_v33, 0.0  ;;  %v12569_v2 = vpack.c.bf16 %v6499_v24, %v6497_v31  ;;  %v6102_v56 = vpop.f32.mrf.mxu0 }
 0x975   : > { %v6103_v4 = vadd.f32 %v6102_v56, %v12446_v20 }
 0x976   : > { %6403 = vmatmul.bf16.gmra.mxu3 %v12421_v6  ;;  %v12573_v41 = vpack.c.bf16 %v5808_v52, %v5806_v45  ;;  %v5627_v9 = vpop.f32.mrf.mxu2 }
 0x977   : > { %v6206_v1 = vpop.f32.mrf.mxu1  ;;  %6141 = vmatmul.bf16.gmra.mxu0 %v12411_v46  ;;  %v5628_v17 = vadd.f32 %v5627_v9, %v12283_v40 }
 0x978   : > { %v6207_v51 = vadd.f32 %v6206_v1, %v6103_v4 }
 0x979   : > { %v5731_v30 = vpop.f32.mrf.mxu3 }
 0x97a   : > { %6245 = vmatmul.bf16.gmra.mxu1 %v12573_v41  ;;  %v5732_v62 = vadd.f32 %v5731_v30, %v5628_v17  ;;  %v6501_v58 = vmax.f32 %v6207_v51, 0.0 }
 0x97c   : > { %v6104_v49 = vpop.f32.mrf.mxu0  ;;  %v5810_v0 = vmax.f32 %v5732_v62, 0.0 }
 0x97d   : > { %v6105_v7 = vadd.f32 %v6104_v49, %v12446_v20 }
 0x97e   : > { %v5629_v6 = vpop.f32.mrf.mxu2 }
 0x97f   : > { %v6208_v8 = vpop.f32.mrf.mxu1  ;;  %v5630_v21 = vadd.f32 %v5629_v6, %v12283_v40 }
 0x980   : > { %v6209_v14 = vadd.f32 %v6208_v8, %v6105_v7 }
 0x981   : > { %v5733_v29 = vpop.f32.mrf.mxu3 }
 0x982   : > { %v6503_v13 = vmax.f32 %v6209_v14, 0.0  ;;  %v5734_v25 = vadd.f32 %v5733_v29, %v5630_v21 }
 0x983   : > { %6304 = vmatmul.bf16.gmra.mxu2 %v12234_v34 }
 0x984   : > { %v5812_v27 = vmax.f32 %v5734_v25, 0.0  ;;  %v12581_v35 = vpack.c.bf16 %v6503_v13, %v6501_v58  ;;  %v6107_v16 = vpop.f32.mrf.mxu0  ;;  %v12600_v58 = vperm.slane %v12442_v26, 1 }
 0x985   : > { %v6108_v37 = vadd.f32 %v6107_v16, %v12446_v20 }
 0x986   : > { %6408 = vmatmul.bf16.gmra.mxu3 %v12433_v48  ;;  %v12585_v15 = vpack.c.bf16 %v5812_v27, %v5810_v0  ;;  %v5632_v23 = vpop.f32.mrf.mxu2 }
 0x987   : > { %v6211_v3 = vpop.f32.mrf.mxu1  ;;  %6146 = vmatmul.bf16.gmra.mxu0 %v12429_v28  ;;  %v5633_v33 = vadd.f32 %v5632_v23, %v12283_v40 }
 0x988   : > { %v6212_v31 = vadd.f32 %v6211_v3, %v6108_v37 }
 0x989   : > { %v5736_v24 = vpop.f32.mrf.mxu3 }
 0x98a   : > { %6250 = vmatmul.bf16.gmra.mxu1 %v12585_v15  ;;  %v5737_v56 = vadd.f32 %v5736_v24, %v5633_v33  ;;  %v6505_v51 = vmax.f32 %v6212_v31, 0.0 }
 0x98c   : > { %v6109_v34 = vpop.f32.mrf.mxu0  ;;  %v5814_v49 = vmax.f32 %v5737_v56, 0.0 }
 0x98d   : > { %v6110_v45 = vadd.f32 %v6109_v34, %v12446_v20 }
 0x98e   : > { %v5634_v48 = vpop.f32.mrf.mxu2 }
 0x98f   : > { %v6213_v52 = vpop.f32.mrf.mxu1  ;;  %v5635_v1 = vadd.f32 %v5634_v48, %v12283_v40 }
 0x990   : > { %v6214_v4 = vadd.f32 %v6213_v52, %v6110_v45 }
 0x991   : > { %v5738_v9 = vpop.f32.mrf.mxu3 }
 0x992   : > { %v6507_v30 = vmax.f32 %v6214_v4, 0.0  ;;  %v5739_v17 = vadd.f32 %v5738_v9, %v5635_v1 }
 0x993   : > { %6309 = vmatmul.bf16.gmra.mxu2 %v12246_v47 }
 0x994   : > { %v5816_v7 = vmax.f32 %v5739_v17, 0.0  ;;  %v12593_v8 = vpack.c.bf16 %v6507_v30, %v6505_v51  ;;  %v6112_v6 = vpop.f32.mrf.mxu0 }
 0x995   : > { %v6113_v62 = vadd.f32 %v6112_v6, %v12446_v20 }
 0x996   : > { %6413 = vmatmul.bf16.gmra.mxu3 %v12459_v60  ;;  %v12597_v21 = vpack.c.bf16 %v5816_v7, %v5814_v49  ;;  %v6270_v29 = vpop.f32.mrf.mxu2 }
 0x997   : > { %v6216_v14 = vpop.f32.mrf.mxu1  ;;  %6151 = vmatmul.bf16.gmra.mxu0 %v12455_v38  ;;  %v6271_v47 = vadd.f32 %v6270_v29, %v12600_v58 }
 0x998   : > { %v6217_v40 = vadd.f32 %v6216_v14, %v6113_v62 }
 0x999   : > { %v6374_v13 = vpop.f32.mrf.mxu3 }
 0x99a   : > { %6255 = vmatmul.bf16.gmra.mxu1 %v12597_v21  ;;  %v6375_v16 = vadd.f32 %v6374_v13, %v6271_v47  ;;  %v6509_v31 = vmax.f32 %v6217_v40, 0.0 }
 0x99c   : > { %v6114_v25 = vpop.f32.mrf.mxu0  ;;  %v6470_v33 = vmax.f32 %v6375_v16, 0.0 }
 0x99d   : > { %v6115_v60 = vadd.f32 %v6114_v25, %v12446_v20 }
 0x99e   : > { %v6272_v27 = vpop.f32.mrf.mxu2 }
 0x99f   : > { %v6218_v0 = vpop.f32.mrf.mxu1  ;;  %v6273_v3 = vadd.f32 %v6272_v27, %v12600_v58 }
 0x9a0   : > { %v6219_v37 = vadd.f32 %v6218_v0, %v6115_v60 }
 0x9a1   : > { %v6376_v23 = vpop.f32.mrf.mxu3 }
 0x9a2   : > { %v6511_v26 = vmax.f32 %v6219_v37, 0.0  ;;  %v6377_v24 = vadd.f32 %v6376_v23, %v6273_v3 }
 0x9a3   : > { %6314 = vmatmul.bf16.gmra.mxu2 %v12276_v61 }
 0x9a4   : > { %v6472_v34 = vmax.f32 %v6377_v24, 0.0  ;;  %v12608_v45 = vpack.c.bf16 %v6511_v26, %v6509_v31  ;;  %v6117_v52 = vpop.f32.mrf.mxu0 }
 0x9a5   : > { %v6118_v56 = vadd.f32 %v6117_v52, %v12446_v20 }
 0x9a6   : > { %6418 = vmatmul.bf16.gmra.mxu3 %v12471_v57  ;;  %v6546_v48 = vpack.c.bf16 %v6472_v34, %v6470_v33  ;;  %v6275_v1 = vpop.f32.mrf.mxu2 }
 0x9a7   : > { %v6221_v4 = vpop.f32.mrf.mxu1  ;;  %6723 = vmatmul.bf16.vlgmr.msra.gmra.mxu0 %v12466_v59  ;;  %v6276_v30 = vadd.f32 %v6275_v1, %v12600_v58 }
 0x9a8   : > { %v6222_v9 = vadd.f32 %v6221_v4, %v6118_v56 }
 0x9a9   : > { %v6379_v51 = vpop.f32.mrf.mxu3 }
 0x9aa   : > { %6827 = vmatmul.bf16.vlgmr.msra.gmra.mxu1 %v6546_v48  ;;  %v6380_v6 = vadd.f32 %v6379_v51, %v6276_v30  ;;  %v6513_v29 = vmax.f32 %v6222_v9, 0.0 }
 0x9ac   : > { %v6119_v17 = vpop.f32.mrf.mxu0  ;;  %v6474_v47 = vmax.f32 %v6380_v6, 0.0 }
 0x9ad   : > { %v6120_v61 = vadd.f32 %v6119_v17, %v12446_v20 }
 0x9ae   : > { %v6277_v7 = vpop.f32.mrf.mxu2 }
 0x9af   : > { %v6223_v49 = vpop.f32.mrf.mxu1  ;;  %v6278_v62 = vadd.f32 %v6277_v7, %v12600_v58 }
 0x9b0   : > { %v6224_v57 = vadd.f32 %v6223_v49, %v6120_v61 }
 0x9b1   : > { %v6381_v14 = vpop.f32.mrf.mxu3 }
 0x9b2   : > { %v6515_v40 = vmax.f32 %v6224_v57, 0.0  ;;  %v6382_v13 = vadd.f32 %v6381_v14, %v6278_v62 }
 0x9b3   : > { %6319 = vmatmul.bf16.gmra.mxu2 %v12291_v50 }
 0x9b4   : > { %v6476_v25 = vmax.f32 %v6382_v13, 0.0  ;;  %v12617_v59 = vpack.c.bf16 %v6515_v40, %v6513_v29  ;;  %v6122_v60 = vpop.f32.mrf.mxu0 }
 0x9b5   : > { %v6123_v0 = vadd.f32 %v6122_v60, %v12446_v20 }
 0x9b6   : > { %6423 = vmatmul.bf16.gmra.mxu3 %v12483_v19  ;;  %v6548_v16 = vpack.c.bf16 %v6476_v25, %v6474_v47  ;;  %v6280_v37 = vpop.f32.mrf.mxu2 }
 0x9b7   : > { %v6226_v27 = vpop.f32.mrf.mxu1  ;;  %6728 = vmatmul.bf16.gmra.mxu0 %v12479_v18  ;;  %v6281_v31 = vadd.f32 %v6280_v37, %v12600_v58 }
 0x9b8   : > { %v6227_v3 = vadd.f32 %v6226_v27, %v6123_v0 }
 0x9b9   : > { %v6384_v23 = vpop.f32.mrf.mxu3 }
 0x9ba   : > { %6832 = vmatmul.bf16.gmra.mxu1 %v6548_v16  ;;  %v6385_v34 = vadd.f32 %v6384_v23, %v6281_v31  ;;  %v6517_v56 = vmax.f32 %v6227_v3, 0.0 }
 0x9bc   : > { %v6124_v26 = vpop.f32.mrf.mxu0  ;;  %v6478_v9 = vmax.f32 %v6385_v34, 0.0 }
 0x9bd   : > { %v6125_v50 = vadd.f32 %v6124_v26, %v12446_v20 }
 0x9be   : > { %v6282_v33 = vpop.f32.mrf.mxu2 }
 0x9bf   : > { %v6228_v24 = vpop.f32.mrf.mxu1  ;;  %v6283_v52 = vadd.f32 %v6282_v33, %v12600_v58 }
 0x9c0   : > { %v6229_v19 = vadd.f32 %v6228_v24, %v6125_v50 }
 0x9c1   : > { %v6386_v48 = vpop.f32.mrf.mxu3 }
 0x9c2   : > { %v6519_v4 = vmax.f32 %v6229_v19, 0.0  ;;  %v6387_v1 = vadd.f32 %v6386_v48, %v6283_v52 }
 0x9c3   : > { %6324 = vmatmul.bf16.gmra.mxu2 %v12309_v54 }
 0x9c4   : > { %v6480_v51 = vmax.f32 %v6387_v1, 0.0  ;;  %v12626_v18 = vpack.c.bf16 %v6519_v4, %v6517_v56  ;;  %v6127_v30 = vpop.f32.mrf.mxu0 }
 0x9c5   : > { %v6128_v17 = vadd.f32 %v6127_v30, %v12446_v20 }
 0x9c6   : > { %6428 = vmatmul.bf16.gmra.mxu3 %v12501_v44  ;;  %v6550_v49 = vpack.c.bf16 %v6480_v51, %v6478_v9  ;;  %v6285_v7 = vpop.f32.mrf.mxu2 }
 0x9c7   : > { %v6231_v61 = vpop.f32.mrf.mxu1  ;;  %6733 = vmatmul.bf16.gmra.mxu0 %v12497_v32  ;;  %v6286_v62 = vadd.f32 %v6285_v7, %v12600_v58 }
 0x9c8   : > { %v6232_v6 = vadd.f32 %v6231_v61, %v6128_v17 }
 0x9c9   : > { %v6389_v57 = vpop.f32.mrf.mxu3 }
 0x9ca   : > { %6837 = vmatmul.bf16.gmra.mxu1 %v6550_v49  ;;  %v6390_v13 = vadd.f32 %v6389_v57, %v6286_v62  ;;  %v6521_v60 = vmax.f32 %v6232_v6, 0.0 }
 0x9cc   : > { %v6129_v14 = vpop.f32.mrf.mxu0  ;;  %v6482_v16 = vmax.f32 %v6390_v13, 0.0 }
 0x9cd   : > { %v6130_v54 = vadd.f32 %v6129_v14, %v12446_v20 }
 0x9ce   : > { %v6287_v40 = vpop.f32.mrf.mxu2 }
 0x9cf   : > { %v6233_v29 = vpop.f32.mrf.mxu1  ;;  %v6288_v47 = vadd.f32 %v6287_v40, %v12600_v58 }
 0x9d0   : > { %v6234_v44 = vadd.f32 %v6233_v29, %v6130_v54 }
 0x9d1   : > { %v6391_v25 = vpop.f32.mrf.mxu3 }
 0x9d2   : > { %v6523_v0 = vmax.f32 %v6234_v44, 0.0  ;;  %v6392_v27 = vadd.f32 %v6391_v25, %v6288_v47 }
 0x9d3   : > { %6329 = vmatmul.bf16.gmra.mxu2 %v12333_v39 }
 0x9d4   : > { %v6484_v37 = vmax.f32 %v6392_v27, 0.0  ;;  %v12635_v32 = vpack.c.bf16 %v6523_v0, %v6521_v60  ;;  %v6132_v3 = vpop.f32.mrf.mxu0 }
 0x9d5   : > { %v6133_v23 = vadd.f32 %v6132_v3, %v12446_v20 }
 0x9d6   : > { %6433 = vmatmul.bf16.gmra.mxu3 %v12513_v11  ;;  %v6552_v26 = vpack.c.bf16 %v6484_v37, %v6482_v16  ;;  %v6290_v50 = vpop.f32.mrf.mxu2 }
 0x9d7   : > { %v6236_v31 = vpop.f32.mrf.mxu1  ;;  %6738 = vmatmul.bf16.gmra.mxu0 %v12509_v43  ;;  %v6291_v34 = vadd.f32 %v6290_v50, %v12600_v58 }
 0x9d8   : > { %v6237_v24 = vadd.f32 %v6236_v31, %v6133_v23 }
 0x9d9   : > { %v6394_v33 = vpop.f32.mrf.mxu3 }
 0x9da   : > { %6842 = vmatmul.bf16.gmra.mxu1 %v6552_v26  ;;  %v6395_v56 = vadd.f32 %v6394_v33, %v6291_v34  ;;  %v6525_v9 = vmax.f32 %v6237_v24, 0.0 }
 0x9dc   : > { %v6134_v19 = vpop.f32.mrf.mxu0  ;;  %v6486_v17 = vmax.f32 %v6395_v56, 0.0 }
 0x9dd   : > { %v6135_v39 = vadd.f32 %v6134_v19, %v12446_v20 }
 0x9de   : > { %v6292_v48 = vpop.f32.mrf.mxu2 }
 0x9df   : > { %v6238_v52 = vpop.f32.mrf.mxu1  ;;  %v6293_v4 = vadd.f32 %v6292_v48, %v12600_v58 }
 0x9e0   : > { %v6239_v11 = vadd.f32 %v6238_v52, %v6135_v39 }
 0x9e1   : > { %v6396_v1 = vpop.f32.mrf.mxu3 }
 0x9e2   : > { %v6527_v51 = vmax.f32 %v6239_v11, 0.0  ;;  %v6397_v30 = vadd.f32 %v6396_v1, %v6293_v4 }
 0x9e3   : > { %6334 = vmatmul.bf16.gmra.mxu2 %v12345_v53 }
 0x9e4   : > { %v6488_v61 = vmax.f32 %v6397_v30, 0.0  ;;  %v12644_v43 = vpack.c.bf16 %v6527_v51, %v6525_v9  ;;  %v6137_v49 = vpop.f32.mrf.mxu0 }
 0x9e5   : > { %v6138_v7 = vadd.f32 %v6137_v49, %v12446_v20 }
 0x9e6   : > { %6438 = vmatmul.bf16.gmra.mxu3 %v12531_v5  ;;  %v6554_v57 = vpack.c.bf16 %v6488_v61, %v6486_v17  ;;  %v6295_v62 = vpop.f32.mrf.mxu2 }
 0x9e7   : > { %v6241_v6 = vpop.f32.mrf.mxu1  ;;  %6743 = vmatmul.bf16.gmra.mxu0 %v12527_v12  ;;  %v6296_v29 = vadd.f32 %v6295_v62, %v12600_v58 }
 0x9e8   : > { %v6242_v14 = vadd.f32 %v6241_v6, %v6138_v7 }
 0x9e9   : > { %v6399_v54 = vpop.f32.mrf.mxu3 }
 0x9ea   : > { %6847 = vmatmul.bf16.gmra.mxu1 %v6554_v57  ;;  %v6400_v47 = vadd.f32 %v6399_v54, %v6296_v29  ;;  %v6529_v0 = vmax.f32 %v6242_v14, 0.0 }
 0x9ec   : > { %v6139_v40 = vpop.f32.mrf.mxu0  ;;  %v6490_v37 = vmax.f32 %v6400_v47, 0.0 }
 0x9ed   : > { %v6140_v53 = vadd.f32 %v6139_v40, %v12446_v20 }
 0x9ee   : > { %v6297_v44 = vpop.f32.mrf.mxu2 }
 0x9ef   : > { %v6243_v13 = vpop.f32.mrf.mxu1  ;;  %v6298_v25 = vadd.f32 %v6297_v44, %v12600_v58 }
 0x9f0   : > { %v6244_v5 = vadd.f32 %v6243_v13, %v6140_v53 }
 0x9f1   : > { %v6401_v60 = vpop.f32.mrf.mxu3 }
 0x9f2   : > { %v6531_v27 = vmax.f32 %v6244_v5, 0.0  ;;  %v6402_v16 = vadd.f32 %v6401_v60, %v6298_v25 }
 0x9f3   : > { %6339 = vmatmul.bf16.gmra.mxu2 %v12375_v42 }
 0x9f4   : > { %v6492_v3 = vmax.f32 %v6402_v16, 0.0  ;;  %v12653_v12 = vpack.c.bf16 %v6531_v27, %v6529_v0  ;;  %v6142_v23 = vpop.f32.mrf.mxu0 }
 0x9f5   : > { %v6143_v31 = vadd.f32 %v6142_v23, %v12446_v20 }
 0x9f6   : > { %6443 = vmatmul.bf16.gmra.mxu3 %v12543_v10  ;;  %v6556_v50 = vpack.c.bf16 %v6492_v3, %v6490_v37  ;;  %v6300_v24 = vpop.f32.mrf.mxu2 }
 0x9f7   : > { %v6246_v26 = vpop.f32.mrf.mxu1  ;;  %6748 = vmatmul.bf16.gmra.mxu0 %v12539_v55  ;;  %v6301_v19 = vadd.f32 %v6300_v24, %v12600_v58 }
 0x9f8   : > { %v6247_v33 = vadd.f32 %v6246_v26, %v6143_v31 }
 0x9f9   : > { %v6404_v34 = vpop.f32.mrf.mxu3 }
 0x9fa   : > { %6852 = vmatmul.bf16.gmra.mxu1 %v6556_v50  ;;  %v6405_v56 = vadd.f32 %v6404_v34, %v6301_v19  ;;  %v6533_v1 = vmax.f32 %v6247_v33, 0.0 }
 0x9fc   : > { %v6144_v39 = vpop.f32.mrf.mxu0  ;;  %v6494_v30 = vmax.f32 %v6405_v56, 0.0 }
 0x9fd   : > { %v6145_v42 = vadd.f32 %v6144_v39, %v12446_v20 }
 0x9fe   : > { %v6302_v48 = vpop.f32.mrf.mxu2 }
 0x9ff   : > { %v6248_v52 = vpop.f32.mrf.mxu1  ;;  %v6303_v11 = vadd.f32 %v6302_v48, %v12600_v58 }
 0xa00   : > { %v6249_v10 = vadd.f32 %v6248_v52, %v6145_v42 }
 0xa01   : > { %v6406_v4 = vpop.f32.mrf.mxu3 }
 0xa02   : > { %v6535_v9 = vmax.f32 %v6249_v10, 0.0  ;;  %v6407_v51 = vadd.f32 %v6406_v4, %v6303_v11 }
 0xa03   : > { %6344 = vmatmul.bf16.gmra.mxu2 %v12387_v22 }
 0xa04   : > { %v6496_v17 = vmax.f32 %v6407_v51, 0.0  ;;  %v12662_v55 = vpack.c.bf16 %v6535_v9, %v6533_v1  ;;  %v6147_v61 = vpop.f32.mrf.mxu0 }
 0xa05   : > { %v6148_v49 = vadd.f32 %v6147_v61, %v12446_v20 }
 0xa06   : > { %6448 = vmatmul.bf16.gmra.mxu3 %v12561_v36  ;;  %v6558_v6 = vpack.c.bf16 %v6496_v17, %v6494_v30  ;;  %v6305_v57 = vpop.f32.mrf.mxu2 }
 0xa07   : > { %v6251_v7 = vpop.f32.mrf.mxu1  ;;  %6753 = vmatmul.bf16.gmra.mxu0 %v12554_v63  ;;  %v6306_v54 = vadd.f32 %v6305_v57, %v12600_v58 }
 0xa08   : > { %v6252_v62 = vadd.f32 %v6251_v7, %v6148_v49 }
 0xa09   : > { %v6409_v14 = vpop.f32.mrf.mxu3 }
 0xa0a   : > { %6857 = vmatmul.bf16.gmra.mxu1 %v6558_v6  ;;  %v6410_v13 = vadd.f32 %v6409_v14, %v6306_v54  ;;  %v6537_v5 = vmax.f32 %v6252_v62, 0.0 }
 0xa0c   : > { %v6149_v29 = vpop.f32.mrf.mxu0  ;;  %v6498_v0 = vmax.f32 %v6410_v13, 0.0 }
 0xa0d   : > { %v6150_v22 = vadd.f32 %v6149_v29, %v12446_v20 }
 0xa0e   : > { %v6307_v53 = vpop.f32.mrf.mxu2 }
 0xa0f   : > { %v6253_v40 = vpop.f32.mrf.mxu1  ;;  %v6308_v44 = vadd.f32 %v6307_v53, %v12600_v58 }
 0xa10   : > { %v6254_v36 = vadd.f32 %v6253_v40, %v6150_v22 }
 0xa11   : > { %v6411_v47 = vpop.f32.mrf.mxu3 }
 0xa12   : > { %v6539_v25 = vmax.f32 %v6254_v36, 0.0  ;;  %v6412_v60 = vadd.f32 %v6411_v47, %v6308_v44 }
 0xa13   : > { %6349 = vmatmul.bf16.gmra.mxu2 %v12411_v46 }
 0xa14   : > { %v6500_v27 = vmax.f32 %v6412_v60, 0.0  ;;  %v12671_v63 = vpack.c.bf16 %v6539_v25, %v6537_v5  ;;  %v6152_v16 = vpop.f32.mrf.mxu0 }
 0xa15   : > { %v6153_v3 = vadd.f32 %v6152_v16, %v12446_v20 }
 0xa16   : > { %6453 = vmatmul.bf16.gmra.mxu3 %v12573_v41  ;;  %v6560_v37 = vpack.c.bf16 %v6500_v27, %v6498_v0  ;;  %v6310_v31 = vpop.f32.mrf.mxu2 }
 0xa17   : > { %v6256_v23 = vpop.f32.mrf.mxu1  ;;  %6758 = vmatmul.bf16.gmra.mxu0 %v12569_v2  ;;  %v6311_v24 = vadd.f32 %v6310_v31, %v12600_v58  ;;  %v12683_v2 = vld [vmem:[%s12999_s19] ss:$0 sm:$0xff] }
 0xa18   : > { %v6257_v26 = vadd.f32 %v6256_v23, %v6153_v3 }
 0xa19   : > { %v6414_v50 = vpop.f32.mrf.mxu3 }
 0xa1a   : > { %6862 = vmatmul.bf16.gmra.mxu1 %v6560_v37  ;;  %v6415_v41 = vadd.f32 %v6414_v50, %v6311_v24  ;;  %v6541_v48 = vmax.f32 %v6257_v26, 0.0 }
 0xa1c   : > { %v6154_v33 = vpop.f32.mrf.mxu0  ;;  %v6502_v11 = vmax.f32 %v6415_v41, 0.0 }
 0xa1d   : > { %v6155_v46 = vadd.f32 %v6154_v33, %v12446_v20 }
 0xa1e   : > { %v6312_v19 = vpop.f32.mrf.mxu2 }
 0xa1f   : > { %v6258_v34 = vpop.f32.mrf.mxu1  ;;  %v6313_v42 = vadd.f32 %v6312_v19, %v12600_v58 }
 0xa20   : > { %v6259_v39 = vadd.f32 %v6258_v34, %v6155_v46 }
 0xa21   : > { %v6416_v52 = vpop.f32.mrf.mxu3 }
 0xa22   : > { %v6543_v56 = vmax.f32 %v6259_v39, 0.0  ;;  %v6417_v10 = vadd.f32 %v6416_v52, %v6313_v42 }
 0xa23   : > { %6354 = vmatmul.bf16.gmra.mxu2 %v12429_v28 }
 0xa24   : > { %v6504_v4 = vmax.f32 %v6417_v10, 0.0  ;;  %v12686_v20 = vpack.c.bf16 %v6543_v56, %v6541_v48  ;;  %v6724_v1 = vpop.f32.mrf.mxu0 }
 0xa25   : > { %v6725_v51 = vadd.f32 %v12683_v2, %v6724_v1 }
 0xa26   : > { %6458 = vmatmul.bf16.gmra.mxu3 %v12585_v15  ;;  %v6562_v9 = vpack.c.bf16 %v6504_v4, %v6502_v11  ;;  %v6315_v17 = vpop.f32.mrf.mxu2 }
 0xa27   : > { %v6828_v30 = vpop.f32.mrf.mxu1  ;;  %6763 = vmatmul.bf16.gmra.mxu0 %v12581_v35  ;;  %v6316_v28 = vadd.f32 %v6315_v17, %v12600_v58 }
 0xa28   : > { %v6829_v61 = vadd.f32 %v6828_v30, %v6725_v51 }
 0xa29   : > { %v6419_v49 = vpop.f32.mrf.mxu3 }
 0xa2a   : > { %6867 = vmatmul.bf16.gmra.mxu1 %v6562_v9  ;;  %6924 = vst.msk [vmem:[%s12691_s1] sm:$0xff] %vm6923_vm3, %v6829_v61  ;;  %v6420_v62 = vadd.f32 %v6419_v49, %v6316_v28 }
 0xa2c   : > { %v6726_v15 = vpop.f32.mrf.mxu0  ;;  %v6506_v22 = vmax.f32 %v6420_v62, 0.0 }
 0xa2d   : > { %v6727_v7 = vadd.f32 %v12683_v2, %v6726_v15 }
 0xa2e   : > { %v6317_v57 = vpop.f32.mrf.mxu2 }
 0xa2f   : > { %v6830_v6 = vpop.f32.mrf.mxu1  ;;  %v6318_v54 = vadd.f32 %v6317_v57, %v12600_v58 }
 0xa30   : > { %v6831_v14 = vadd.f32 %v6830_v6, %v6727_v7 }
 0xa31   : > { %v6421_v29 = vpop.f32.mrf.mxu3 }
 0xa32   : > { %6925 = vst.msk [vmem:[%s12691_s1 + $0x8] sm:$0xff] %vm6923_vm3, %v6831_v14  ;;  %v6422_v35 = vadd.f32 %v6421_v29, %v6318_v54 }
 0xa33   : > { %6359 = vmatmul.bf16.gmra.mxu2 %v12455_v38 }
 0xa34   : > { %v6508_v40 = vmax.f32 %v6422_v35, 0.0  ;;  %v6729_v53 = vpop.f32.mrf.mxu0 }
 0xa35   : > { %v6730_v36 = vadd.f32 %v12683_v2, %v6729_v53 }
 0xa36   : > { %6463 = vmatmul.bf16.gmra.mxu3 %v12597_v21  ;;  %v6564_v13 = vpack.c.bf16 %v6508_v40, %v6506_v22  ;;  %v6320_v47 = vpop.f32.mrf.mxu2 }
 0xa37   : > { %v6833_v44 = vpop.f32.mrf.mxu1  ;;  %6768 = vmatmul.bf16.gmra.mxu0 %v12593_v8  ;;  %v6321_v60 = vadd.f32 %v6320_v47, %v12600_v58 }
 0xa38   : > { %v6834_v5 = vadd.f32 %v6833_v44, %v6730_v36 }
 0xa39   : > { %v6424_v25 = vpop.f32.mrf.mxu3 }
 0xa3a   : > { %6872 = vmatmul.bf16.gmra.mxu1 %v6564_v13  ;;  %6926 = vst.msk [vmem:[%s12691_s1 + $0x10] sm:$0xff] %vm6923_vm3, %v6834_v5  ;;  %v6425_v16 = vadd.f32 %v6424_v25, %v6321_v60 }
 0xa3c   : > { %v6731_v0 = vpop.f32.mrf.mxu0  ;;  %v6510_v8 = vmax.f32 %v6425_v16, 0.0 }
 0xa3d   : > { %v6732_v38 = vadd.f32 %v12683_v2, %v6731_v0 }
 0xa3e   : > { %v6322_v27 = vpop.f32.mrf.mxu2 }
 0xa3f   : > { %v6835_v21 = vpop.f32.mrf.mxu1  ;;  %v6323_v3 = vadd.f32 %v6322_v27, %v12600_v58 }
 0xa40   : > { %v6836_v37 = vadd.f32 %v6835_v21, %v6732_v38 }
 0xa41   : > { %v6426_v23 = vpop.f32.mrf.mxu3 }
 0xa42   : > { %6927 = vst.msk [vmem:[%s12691_s1 + $0x18] sm:$0xff] %vm6923_vm3, %v6836_v37  ;;  %v6427_v31 = vadd.f32 %v6426_v23, %v6323_v3 }
 0xa44   : > { %v6512_v26 = vmax.f32 %v6427_v31, 0.0  ;;  %v6734_v50 = vpop.f32.mrf.mxu0 }
 0xa45   : > { %v6735_v33 = vadd.f32 %v12683_v2, %v6734_v50 }
 0xa46   : > { %v6566_v24 = vpack.c.bf16 %v6512_v26, %v6510_v8  ;;  %v6325_v34 = vpop.f32.mrf.mxu2 }
 0xa47   : > { %v6838_v46 = vpop.f32.mrf.mxu1  ;;  %6773 = vmatmul.bf16.gmra.mxu0 %v12608_v45  ;;  %v6326_v39 = vadd.f32 %v6325_v34, %v12600_v58 }
 0xa48   : > { %v6839_v19 = vadd.f32 %v6838_v46, %v6735_v33 }
 0xa49   : > { %v6429_v41 = vpop.f32.mrf.mxu3 }
 0xa4a   : > { %6877 = vmatmul.bf16.gmra.mxu1 %v6566_v24  ;;  %6928 = vst.msk [vmem:[%s12691_s1 + $0x20] sm:$0xff] %vm6923_vm3, %v6839_v19  ;;  %v6430_v10 = vadd.f32 %v6429_v41, %v6326_v39 }
 0xa4c   : > { %v6736_v42 = vpop.f32.mrf.mxu0  ;;  %v6514_v45 = vmax.f32 %v6430_v10, 0.0 }
 0xa4d   : > { %v6737_v52 = vadd.f32 %v12683_v2, %v6736_v42 }
 0xa4e   : > { %v6327_v56 = vpop.f32.mrf.mxu2 }
 0xa4f   : > { %v6840_v48 = vpop.f32.mrf.mxu1  ;;  %v6328_v4 = vadd.f32 %v6327_v56, %v12600_v58 }
 0xa50   : > { %v6841_v11 = vadd.f32 %v6840_v48, %v6737_v52 }
 0xa51   : > { %v6431_v1 = vpop.f32.mrf.mxu3 }
 0xa52   : > { %6929 = vst.msk [vmem:[%s12691_s1 + $0x28] sm:$0xff] %vm6923_vm3, %v6841_v11  ;;  %v6432_v9 = vadd.f32 %v6431_v1, %v6328_v4 }
 0xa54   : > { %v6516_v51 = vmax.f32 %v6432_v9, 0.0  ;;  %v6739_v30 = vpop.f32.mrf.mxu0 }
 0xa55   : > { %v6740_v61 = vadd.f32 %v12683_v2, %v6739_v30 }
 0xa56   : > { %v6568_v17 = vpack.c.bf16 %v6516_v51, %v6514_v45  ;;  %v6330_v28 = vpop.f32.mrf.mxu2 }
 0xa57   : > { %v6843_v49 = vpop.f32.mrf.mxu1  ;;  %6778 = vmatmul.bf16.gmra.mxu0 %v12617_v59  ;;  %v6331_v6 = vadd.f32 %v6330_v28, %v12600_v58 }
 0xa58   : > { %v6844_v15 = vadd.f32 %v6843_v49, %v6740_v61 }
 0xa59   : > { %v6434_v7 = vpop.f32.mrf.mxu3 }
 0xa5a   : > { %6882 = vmatmul.bf16.gmra.mxu1 %v6568_v17  ;;  %6930 = vst.msk [vmem:[%s12691_s1 + $0x30] sm:$0xff] %vm6923_vm3, %v6844_v15  ;;  %v6435_v29 = vadd.f32 %v6434_v7, %v6331_v6 }
 0xa5c   : > { %v6741_v57 = vpop.f32.mrf.mxu0  ;;  %v6518_v59 = vmax.f32 %v6435_v29, 0.0 }
 0xa5d   : > { %v6742_v62 = vadd.f32 %v12683_v2, %v6741_v57 }
 0xa5e   : > { %v6332_v54 = vpop.f32.mrf.mxu2 }
 0xa5f   : > { %v6845_v14 = vpop.f32.mrf.mxu1  ;;  %v6333_v22 = vadd.f32 %v6332_v54, %v12600_v58 }
 0xa60   : > { %v6846_v35 = vadd.f32 %v6845_v14, %v6742_v62 }
 0xa61   : > { %v6436_v40 = vpop.f32.mrf.mxu3 }
 0xa62   : > { %6931 = vst.msk [vmem:[%s12691_s1 + $0x38] sm:$0xff] %vm6923_vm3, %v6846_v35  ;;  %v6437_v53 = vadd.f32 %v6436_v40, %v6333_v22 }
 0xa64   : > { %v6520_v13 = vmax.f32 %v6437_v53, 0.0  ;;  %v6744_v36 = vpop.f32.mrf.mxu0 }
 0xa65   : > { %v6745_v47 = vadd.f32 %v12683_v2, %v6744_v36 }
 0xa66   : > { %v6570_v44 = vpack.c.bf16 %v6520_v13, %v6518_v59  ;;  %v6335_v25 = vpop.f32.mrf.mxu2 }
 0xa67   : > { %v6848_v5 = vpop.f32.mrf.mxu1  ;;  %6783 = vmatmul.bf16.gmra.mxu0 %v12626_v18  ;;  %v6336_v38 = vadd.f32 %v6335_v25, %v12600_v58 }
 0xa68   : > { %v6849_v60 = vadd.f32 %v6848_v5, %v6745_v47 }
 0xa69   : > { %v6439_v0 = vpop.f32.mrf.mxu3 }
 0xa6a   : > { %6887 = vmatmul.bf16.gmra.mxu1 %v6570_v44  ;;  %6932 = vst.msk [vmem:[%s12691_s1 + $0x40] sm:$0xff] %vm6923_vm3, %v6849_v60  ;;  %v6440_v3 = vadd.f32 %v6439_v0, %v6336_v38 }
 0xa6c   : > { %v6746_v21 = vpop.f32.mrf.mxu0  ;;  %v6522_v18 = vmax.f32 %v6440_v3, 0.0 }
 0xa6d   : > { %v6747_v27 = vadd.f32 %v12683_v2, %v6746_v21 }
 0xa6e   : > { %v6337_v37 = vpop.f32.mrf.mxu2 }
 0xa6f   : > { %v6850_v16 = vpop.f32.mrf.mxu1  ;;  %v6338_v31 = vadd.f32 %v6337_v37, %v12600_v58 }
 0xa70   : > { %v6851_v23 = vadd.f32 %v6850_v16, %v6747_v27 }
 0xa71   : > { %v6441_v8 = vpop.f32.mrf.mxu3 }
 0xa72   : > { %6933 = vst.msk [vmem:[%s12691_s1 + $0x48] sm:$0xff] %vm6923_vm3, %v6851_v23  ;;  %v6442_v26 = vadd.f32 %v6441_v8, %v6338_v31 }
 0xa74   : > { %v6524_v50 = vmax.f32 %v6442_v26, 0.0  ;;  %v6749_v24 = vpop.f32.mrf.mxu0 }
 0xa75   : > { %v6750_v46 = vadd.f32 %v12683_v2, %v6749_v24 }
 0xa76   : > { %v6572_v33 = vpack.c.bf16 %v6524_v50, %v6522_v18  ;;  %v6340_v19 = vpop.f32.mrf.mxu2 }
 0xa77   : > { %v6853_v34 = vpop.f32.mrf.mxu1  ;;  %6788 = vmatmul.bf16.gmra.mxu0 %v12635_v32  ;;  %v6341_v42 = vadd.f32 %v6340_v19, %v12600_v58 }
 0xa78   : > { %v6854_v41 = vadd.f32 %v6853_v34, %v6750_v46 }
 0xa79   : > { %v6444_v39 = vpop.f32.mrf.mxu3 }
 0xa7a   : > { %6892 = vmatmul.bf16.gmra.mxu1 %v6572_v33  ;;  %6934 = vst.msk [vmem:[%s12691_s1 + $0x50] sm:$0xff] %vm6923_vm3, %v6854_v41  ;;  %v6445_v11 = vadd.f32 %v6444_v39, %v6341_v42 }
 0xa7c   : > { %v6751_v52 = vpop.f32.mrf.mxu0  ;;  %v6526_v32 = vmax.f32 %v6445_v11, 0.0 }
 0xa7d   : > { %v6752_v48 = vadd.f32 %v12683_v2, %v6751_v52 }
 0xa7e   : > { %v6342_v10 = vpop.f32.mrf.mxu2 }
 0xa7f   : > { %v6855_v56 = vpop.f32.mrf.mxu1  ;;  %v6343_v1 = vadd.f32 %v6342_v10, %v12600_v58 }
 0xa80   : > { %v6856_v4 = vadd.f32 %v6855_v56, %v6752_v48 }
 0xa81   : > { %v6446_v9 = vpop.f32.mrf.mxu3 }
 0xa82   : > { %6935 = vst.msk [vmem:[%s12691_s1 + $0x58] sm:$0xff] %vm6923_vm3, %v6856_v4  ;;  %v6447_v45 = vadd.f32 %v6446_v9, %v6343_v1 }
 0xa84   : > { %v6528_v51 = vmax.f32 %v6447_v45, 0.0  ;;  %v6754_v30 = vpop.f32.mrf.mxu0 }
 0xa85   : > { %v6755_v61 = vadd.f32 %v12683_v2, %v6754_v30 }
 0xa86   : > { %v6574_v17 = vpack.c.bf16 %v6528_v51, %v6526_v32  ;;  %v6345_v28 = vpop.f32.mrf.mxu2 }
 0xa87   : > { %v6858_v49 = vpop.f32.mrf.mxu1  ;;  %6793 = vmatmul.bf16.gmra.mxu0 %v12644_v43  ;;  %v6346_v6 = vadd.f32 %v6345_v28, %v12600_v58 }
 0xa88   : > { %v6859_v15 = vadd.f32 %v6858_v49, %v6755_v61 }
 0xa89   : > { %v6449_v7 = vpop.f32.mrf.mxu3 }
 0xa8a   : > { %6897 = vmatmul.bf16.gmra.mxu1 %v6574_v17  ;;  %6936 = vst.msk [vmem:[%s12691_s1 + $0x60] sm:$0xff] %vm6923_vm3, %v6859_v15  ;;  %v6450_v29 = vadd.f32 %v6449_v7, %v6346_v6 }
 0xa8c   : > { %v6756_v57 = vpop.f32.mrf.mxu0  ;;  %v6530_v43 = vmax.f32 %v6450_v29, 0.0 }
 0xa8d   : > { %v6757_v62 = vadd.f32 %v12683_v2, %v6756_v57 }
 0xa8e   : > { %v6347_v54 = vpop.f32.mrf.mxu2 }
 0xa8f   : > { %v6860_v14 = vpop.f32.mrf.mxu1  ;;  %v6348_v22 = vadd.f32 %v6347_v54, %v12600_v58 }
 0xa90   : > { %v6861_v35 = vadd.f32 %v6860_v14, %v6757_v62 }
 0xa91   : > { %v6451_v40 = vpop.f32.mrf.mxu3 }
 0xa92   : > { %6937 = vst.msk [vmem:[%s12691_s1 + $0x68] sm:$0xff] %vm6923_vm3, %v6861_v35  ;;  %v6452_v53 = vadd.f32 %v6451_v40, %v6348_v22 }
 0xa94   : > { %v6532_v59 = vmax.f32 %v6452_v53, 0.0  ;;  %v6759_v13 = vpop.f32.mrf.mxu0 }
 0xa95   : > { %v6760_v44 = vadd.f32 %v12683_v2, %v6759_v13 }
 0xa96   : > { %v6576_v36 = vpack.c.bf16 %v6532_v59, %v6530_v43  ;;  %v6350_v5 = vpop.f32.mrf.mxu2 }
 0xa97   : > { %v6863_v47 = vpop.f32.mrf.mxu1  ;;  %6798 = vmatmul.bf16.gmra.mxu0 %v12653_v12  ;;  %v6351_v0 = vadd.f32 %v6350_v5, %v12600_v58 }
 0xa98   : > { %v6864_v25 = vadd.f32 %v6863_v47, %v6760_v44 }
 0xa99   : > { %v6454_v60 = vpop.f32.mrf.mxu3 }
 0xa9a   : > { %6902 = vmatmul.bf16.gmra.mxu1 %v6576_v36  ;;  %6938 = vst.msk [vmem:[%s12691_s1 + $0x70] sm:$0xff] %vm6923_vm3, %v6864_v25  ;;  %v6455_v37 = vadd.f32 %v6454_v60, %v6351_v0 }
 0xa9c   : > { %v6761_v38 = vpop.f32.mrf.mxu0  ;;  %v6534_v12 = vmax.f32 %v6455_v37, 0.0 }
 0xa9d   : > { %v6762_v21 = vadd.f32 %v12683_v2, %v6761_v38 }
 0xa9e   : > { %v6352_v16 = vpop.f32.mrf.mxu2 }
 0xa9f   : > { %v6865_v27 = vpop.f32.mrf.mxu1  ;;  %v6353_v23 = vadd.f32 %v6352_v16, %v12600_v58 }
 0xaa0   : > { %v6866_v3 = vadd.f32 %v6865_v27, %v6762_v21 }
 0xaa1   : > { %v6456_v31 = vpop.f32.mrf.mxu3 }
 0xaa2   : > { %6939 = vst.msk [vmem:[%s12691_s1 + $0x78] sm:$0xff] %vm6923_vm3, %v6866_v3  ;;  %v6457_v8 = vadd.f32 %v6456_v31, %v6353_v23 }
 0xaa4   : > { %v6536_v26 = vmax.f32 %v6457_v8, 0.0  ;;  %v6764_v18 = vpop.f32.mrf.mxu0 }
 0xaa5   : > { %v6765_v24 = vadd.f32 %v12683_v2, %v6764_v18 }
 0xaa6   : > { %v6578_v50 = vpack.c.bf16 %v6536_v26, %v6534_v12  ;;  %v6355_v46 = vpop.f32.mrf.mxu2 }
 0xaa7   : > { %v6868_v33 = vpop.f32.mrf.mxu1  ;;  %6803 = vmatmul.bf16.gmra.mxu0 %v12662_v55  ;;  %v6356_v41 = vadd.f32 %v6355_v46, %v12600_v58 }
 0xaa8   : > { %v6869_v34 = vadd.f32 %v6868_v33, %v6765_v24 }
 0xaa9   : > { %v6459_v19 = vpop.f32.mrf.mxu3 }
 0xaaa   : > { %6907 = vmatmul.bf16.gmra.mxu1 %v6578_v50  ;;  %6940 = vst.msk [vmem:[%s12691_s1 + $0x80] sm:$0xff] %vm6923_vm3, %v6869_v34  ;;  %v6460_v56 = vadd.f32 %v6459_v19, %v6356_v41 }
 0xaac   : > { %v6766_v39 = vpop.f32.mrf.mxu0  ;;  %v6538_v55 = vmax.f32 %v6460_v56, 0.0 }
 0xaad   : > { %v6767_v42 = vadd.f32 %v12683_v2, %v6766_v39 }
 0xaae   : > { %v6357_v48 = vpop.f32.mrf.mxu2 }
 0xaaf   : > { %v6870_v52 = vpop.f32.mrf.mxu1  ;;  %v6358_v11 = vadd.f32 %v6357_v48, %v12600_v58 }
 0xab0   : > { %v6871_v10 = vadd.f32 %v6870_v52, %v6767_v42 }
 0xab1   : > { %v6461_v4 = vpop.f32.mrf.mxu3 }
 0xab2   : > { %6941 = vst.msk [vmem:[%s12691_s1 + $0x88] sm:$0xff] %vm6923_vm3, %v6871_v10  ;;  %v6462_v1 = vadd.f32 %v6461_v4, %v6358_v11 }
 0xab4   : > { %v6540_v9 = vmax.f32 %v6462_v1, 0.0  ;;  %v6769_v45 = vpop.f32.mrf.mxu0 }
 0xab5   : > { %v6770_v51 = vadd.f32 %v12683_v2, %v6769_v45 }
 0xab6   : > { %v6580_v32 = vpack.c.bf16 %v6540_v9, %v6538_v55  ;;  %v6360_v17 = vpop.f32.mrf.mxu2 }
 0xab7   : > { %v6873_v30 = vpop.f32.mrf.mxu1  ;;  %6808 = vmatmul.bf16.gmra.mxu0 %v12671_v63  ;;  %v6361_v28 = vadd.f32 %v6360_v17, %v12600_v58 }
 0xab8   : > { %v6874_v61 = vadd.f32 %v6873_v30, %v6770_v51 }
 0xab9   : > { %v6464_v49 = vpop.f32.mrf.mxu3 }
 0xaba   : > { %6912 = vmatmul.bf16.gmra.mxu1 %v6580_v32  ;;  %6942 = vst.msk [vmem:[%s12691_s1 + $0x90] sm:$0xff] %vm6923_vm3, %v6874_v61  ;;  %v6465_v62 = vadd.f32 %v6464_v49, %v6361_v28 }
 0xabc   : > { %v6771_v15 = vpop.f32.mrf.mxu0  ;;  %v6542_v35 = vmax.f32 %v6465_v62, 0.0 }
 0xabd   : > { %v6772_v7 = vadd.f32 %v12683_v2, %v6771_v15 }
 0xabe   : > { %v6362_v57 = vpop.f32.mrf.mxu2 }
 0xabf   : > { %v6875_v6 = vpop.f32.mrf.mxu1  ;;  %v6363_v54 = vadd.f32 %v6362_v57, %v12600_v58 }
 0xac0   : > { %v6876_v14 = vadd.f32 %v6875_v6, %v6772_v7 }
 0xac1   : > { %v6466_v29 = vpop.f32.mrf.mxu3 }
 0xac2   : > { %6943 = vst.msk [vmem:[%s12691_s1 + $0x98] sm:$0xff] %vm6923_vm3, %v6876_v14  ;;  %v6467_v63 = vadd.f32 %v6466_v29, %v6363_v54 }
 0xac4   : > { %v6544_v22 = vmax.f32 %v6467_v63, 0.0  ;;  %v6774_v40 = vpop.f32.mrf.mxu0 }
 0xac5   : > { %v6775_v43 = vadd.f32 %v12683_v2, %v6774_v40 }
 0xac6   : > { %v6582_v53 = vpack.c.bf16 %v6544_v22, %v6542_v35 }
 0xac7   : > { %v6878_v59 = vpop.f32.mrf.mxu1  ;;  %6813 = vmatmul.bf16.gmra.mxu0 %v12686_v20 }
 0xac8   : > { %v6879_v13 = vadd.f32 %v6878_v59, %v6775_v43 }
 0xaca   : > { %6917 = vmatmul.bf16.gmra.mxu1 %v6582_v53  ;;  %6944 = vst.msk [vmem:[%s12691_s1 + $0xa0] sm:$0xff] %vm6923_vm3, %v6879_v13 }
 0xacc   : > { %v6776_v58 = vpop.f32.mrf.mxu0 }
 0xacd   : > { %v6777_v36 = vadd.f32 %v12683_v2, %v6776_v58 }
 0xacf   : > { %v6880_v44 = vpop.f32.mrf.mxu1 }
 0xad0   : > { %v6881_v47 = vadd.f32 %v6880_v44, %v6777_v36 }
 0xad2   : > { %6945 = vst.msk [vmem:[%s12691_s1 + $0xa8] sm:$0xff] %vm6923_vm3, %v6881_v47 }
 0xad4   : > { %v6779_v5 = vpop.f32.mrf.mxu0 }
 0xad5   : > { %v6780_v25 = vadd.f32 %v12683_v2, %v6779_v5 }
 0xad7   : > { %v6883_v60 = vpop.f32.mrf.mxu1 }
 0xad8   : > { %v6884_v0 = vadd.f32 %v6883_v60, %v6780_v25 }
 0xada   : > { %6946 = vst.msk [vmem:[%s12691_s1 + $0xb0] sm:$0xff] %vm6923_vm3, %v6884_v0 }
 0xadc   : > { %v6781_v20 = vpop.f32.mrf.mxu0 }
 0xadd   : > { %v6782_v38 = vadd.f32 %v12683_v2, %v6781_v20 }
 0xadf   : > { %v6885_v21 = vpop.f32.mrf.mxu1 }
 0xae0   : > { %v6886_v27 = vadd.f32 %v6885_v21, %v6782_v38 }
 0xae2   : > { %6947 = vst.msk [vmem:[%s12691_s1 + $0xb8] sm:$0xff] %vm6923_vm3, %v6886_v27 }
 0xae4   : > { %v6784_v16 = vpop.f32.mrf.mxu0 }
 0xae5   : > { %v6785_v37 = vadd.f32 %v12683_v2, %v6784_v16 }
 0xae7   : > { %v6888_v3 = vpop.f32.mrf.mxu1 }
 0xae8   : > { %v6889_v23 = vadd.f32 %v6888_v3, %v6785_v37 }
 0xaea   : > { %6948 = vst.msk [vmem:[%s12691_s1 + $0xc0] sm:$0xff] %vm6923_vm3, %v6889_v23 }
 0xaec   : > { %v6786_v31 = vpop.f32.mrf.mxu0 }
 0xaed   : > { %v6787_v8 = vadd.f32 %v12683_v2, %v6786_v31 }
 0xaef   : > { %v6890_v12 = vpop.f32.mrf.mxu1 }
 0xaf0   : > { %v6891_v26 = vadd.f32 %v6890_v12, %v6787_v8 }
 0xaf2   : > { %6949 = vst.msk [vmem:[%s12691_s1 + $0xc8] sm:$0xff] %vm6923_vm3, %v6891_v26 }
 0xaf4   : > { %v6789_v18 = vpop.f32.mrf.mxu0 }
 0xaf5   : > { %v6790_v50 = vadd.f32 %v12683_v2, %v6789_v18 }
 0xaf7   : > { %v6893_v24 = vpop.f32.mrf.mxu1 }
 0xaf8   : > { %v6894_v33 = vadd.f32 %v6893_v24, %v6790_v50 }
 0xafa   : > { %6950 = vst.msk [vmem:[%s12691_s1 + $0xd0] sm:$0xff] %vm6923_vm3, %v6894_v33 }
 0xafc   : > { %v6791_v46 = vpop.f32.mrf.mxu0 }
 0xafd   : > { %v6792_v34 = vadd.f32 %v12683_v2, %v6791_v46 }
 0xaff   : > { %v6895_v19 = vpop.f32.mrf.mxu1 }
 0xb00   : > { %v6896_v41 = vadd.f32 %v6895_v19, %v6792_v34 }
 0xb02   : > { %6951 = vst.msk [vmem:[%s12691_s1 + $0xd8] sm:$0xff] %vm6923_vm3, %v6896_v41 }
 0xb04   : > { %v6794_v39 = vpop.f32.mrf.mxu0 }
 0xb05   : > { %v6795_v42 = vadd.f32 %v12683_v2, %v6794_v39 }
 0xb07   : > { %v6898_v52 = vpop.f32.mrf.mxu1 }
 0xb08   : > { %v6899_v48 = vadd.f32 %v6898_v52, %v6795_v42 }
 0xb0a   : > { %6952 = vst.msk [vmem:[%s12691_s1 + $0xe0] sm:$0xff] %vm6923_vm3, %v6899_v48 }
 0xb0c   : > { %v6796_v56 = vpop.f32.mrf.mxu0 }
 0xb0d   : > { %v6797_v10 = vadd.f32 %v12683_v2, %v6796_v56 }
 0xb0f   : > { %v6900_v11 = vpop.f32.mrf.mxu1 }
 0xb10   : > { %v6901_v4 = vadd.f32 %v6900_v11, %v6797_v10 }
 0xb12   : > { %6953 = vst.msk [vmem:[%s12691_s1 + $0xe8] sm:$0xff] %vm6923_vm3, %v6901_v4 }
 0xb14   : > { %v6799_v1 = vpop.f32.mrf.mxu0 }
 0xb15   : > { %v6800_v55 = vadd.f32 %v12683_v2, %v6799_v1 }
 0xb17   : > { %v6903_v9 = vpop.f32.mrf.mxu1 }
 0xb18   : > { %v6904_v45 = vadd.f32 %v6903_v9, %v6800_v55 }
 0xb1a   : > { %6954 = vst.msk [vmem:[%s12691_s1 + $0xf0] sm:$0xff] %vm6923_vm3, %v6904_v45 }
 0xb1c   : > { %v6801_v32 = vpop.f32.mrf.mxu0 }
 0xb1d   : > { %v6802_v51 = vadd.f32 %v12683_v2, %v6801_v32 }
 0xb1f   : > { %v6905_v30 = vpop.f32.mrf.mxu1 }
 0xb20   : > { %v6906_v17 = vadd.f32 %v6905_v30, %v6802_v51 }
 0xb22   : > { %6955 = vst.msk [vmem:[%s12691_s1 + $0xf8] sm:$0xff] %vm6923_vm3, %v6906_v17 }
 0xb24   : > { %v6804_v61 = vpop.f32.mrf.mxu0 }
 0xb25   : > { %v6805_v49 = vadd.f32 %v12683_v2, %v6804_v61 }
 0xb27   : > { %v6908_v28 = vpop.f32.mrf.mxu1 }
 0xb28   : > { %v6909_v15 = vadd.f32 %v6908_v28, %v6805_v49 }
 0xb2a   : > { %6956 = vst.msk [vmem:[%s12691_s1 + $0x100] sm:$0xff] %vm6923_vm3, %v6909_v15 }
 0xb2c   : > { %v6806_v7 = vpop.f32.mrf.mxu0 }
 0xb2d   : > { %v6807_v6 = vadd.f32 %v12683_v2, %v6806_v7 }
 0xb2f   : > { %v6910_v57 = vpop.f32.mrf.mxu1 }
 0xb30   : > { %v6911_v62 = vadd.f32 %v6910_v57, %v6807_v6 }
 0xb32   : > { %6957 = vst.msk [vmem:[%s12691_s1 + $0x108] sm:$0xff] %vm6923_vm3, %v6911_v62 }
 0xb34   : > { %v6809_v14 = vpop.f32.mrf.mxu0 }
 0xb35   : > { %v6810_v54 = vadd.f32 %v12683_v2, %v6809_v14 }
 0xb37   : > { %v6913_v29 = vpop.f32.mrf.mxu1 }
 0xb38   : > { %v6914_v63 = vadd.f32 %v6913_v29, %v6810_v54 }
 0xb3a   : > { %6958 = vst.msk [vmem:[%s12691_s1 + $0x110] sm:$0xff] %vm6923_vm3, %v6914_v63 }
 0xb3c   : > { %v6811_v35 = vpop.f32.mrf.mxu0 }
 0xb3d   : > { %v6812_v22 = vadd.f32 %v12683_v2, %v6811_v35 }
 0xb3f   : > { %v6915_v40 = vpop.f32.mrf.mxu1 }
 0xb40   : > { %v6916_v53 = vadd.f32 %v6915_v40, %v6812_v22 }
 0xb42   : > { %6959 = vst.msk [vmem:[%s12691_s1 + $0x118] sm:$0xff] %vm6923_vm3, %v6916_v53 }
 0xb44   : > { %v6814_v43 = vpop.f32.mrf.mxu0 }
 0xb45   : > { %v6815_v59 = vadd.f32 %v12683_v2, %v6814_v43 }
 0xb47   : > { %v6918_v13 = vpop.f32.mrf.mxu1 }
 0xb48   : > { %v6919_v58 = vadd.f32 %v6918_v13, %v6815_v59 }
 0xb4a   : > { %6960 = vst.msk [vmem:[%s12691_s1 + $0x120] sm:$0xff] %vm6923_vm3, %v6919_v58 }
 0xb4c   : > { %v6816_v36 = vpop.f32.mrf.mxu0 }
 0xb4d   : > { %v6817_v44 = vadd.f32 %v12683_v2, %v6816_v36 }
 0xb4e   : > { %6968 = sbr.rel (!%p8999_p4) target bundleno = 2963 (0xb93), region = 104 }
 0xb4f   : > { %v6920_v47 = vpop.f32.mrf.mxu1 }
 0xb50   : > { %v6921_v5 = vadd.f32 %v6920_v47, %v6817_v44 }
 0xb52   : > { %6961 = vst.msk [vmem:[%s12691_s1 + $0x128] sm:$0xff] %vm6923_vm3, %v6921_v5 }
 0xb53   : > { %s13145_s21 = smov (!%p6971_p8, %s6970_s21), 38 }
 0xb54   : > { %s8407_s24 = sshll.u32 %s13145_s21, 3 }
 0xb55   : > { %p8410_p9 = scmp.eq.s32.totalorder %s8407_s24, 0 }
 0xb56   : > { %s12851_s2 = sshrl.u32 (!%p8410_p9), %s13145_s21, 5 }
 0xb57   : > { %6979 = sbr.rel (%p8410_p9) target bundleno = 2963 (0xb93), region = 108  ;;  %p8411_p10 = scmp.le.s32.totalorder (!%p8410_p9), %s12851_s2, 0 }
 0xb5c   : > { %7258 = sbr.rel (%p8411_p10) target bundleno = 2946 (0xb82), region = 184  ;;  %s13136_s23 = smov (!%p8411_p10), %s12845_s20 }
 0xb5d   : > { %s13137_s30 = smov (!%p8411_p10), %s12691_s1  ;;  %s12860_s22 = smov (!%p8411_p10), 0  }
 0xb5e   : > { %s12862_s28 = smov (!%p8411_p10), 0  }
 0xb61 LB: >> { %v7104_v2 = vld [vmem:[%s8842_s30] sm:$0xff]  ;;  %v7106_v25 = vld [vmem:[%s8842_s30 + $0x8] sm:$0xff]  ;;  %v7108_v60 = vld [vmem:[%s8842_s30 + $0x10] sm:$0xff]  ;;  %s7168_s0 = sadd.s32 1, %s8846_s22  ;;  %s7098_s28 = sadd.s32 1, %s8850_s28   ;;  %s8850_s28 = sphi %s12862_s28, %s7098_s28   ;;  %s8846_s22 = sphi %s12860_s22, %s13140_s22   ;;  %s8842_s30 = sphi %s13137_s30, %s13139_s30   ;;  %s8838_s23 = sphi %s13136_s23, %s13138_s23  }
 0xb62   : >> { %7105 = vst [vmem:[%s8838_s23] sm:$0xff] %v7104_v2  ;;  %v7110_v0 = vld [vmem:[%s8842_s30 + $0x18] sm:$0xff]  ;;  %p7169_p11 = scmp.ge.s32.totalorder %s7168_s0, %s12851_s2  ;;  %v7112_v20 = vld [vmem:[%s8842_s30 + $0x20] sm:$0xff]  ;;  %v7114_v38 = vld [vmem:[%s8842_s30 + $0x28] sm:$0xff]  ;;  %p7097_p12 = scmp.ge.s32.totalorder %s7098_s28, %s12851_s2 }
 0xb63   : >> { %7107 = vst [vmem:[%s8838_s23 + $0x8] sm:$0xff] %v7106_v25  ;;  %v7116_v21 = vld [vmem:[%s8842_s30 + $0x30] sm:$0xff]  ;;  %v7118_v27 = vld [vmem:[%s8842_s30 + $0x38] sm:$0xff]  ;;  %v7120_v16 = vld [vmem:[%s8842_s30 + $0x40] sm:$0xff] }
 0xb64   : >> { %7109 = vst [vmem:[%s8838_s23 + $0x10] sm:$0xff] %v7108_v60  ;;  %s13147_s0 = smov (%p7169_p11, %s7168_s0), 0  ;;  %v7122_v37 = vld [vmem:[%s8842_s30 + $0x48] sm:$0xff]  ;;  %v7124_v3 = vld [vmem:[%s8842_s30 + $0x50] sm:$0xff]  ;;  %v7126_v23 = vld [vmem:[%s8842_s30 + $0x58] sm:$0xff] }
 0xb65   : >> { %7111 = vst [vmem:[%s8838_s23 + $0x18] sm:$0xff] %v7110_v0  ;;  %s8412_s25 = sshll.u32 %s13147_s0, 8  ;;  %v7128_v31 = vld [vmem:[%s8842_s30 + $0x60] sm:$0xff]  ;;  %v7130_v8 = vld [vmem:[%s8842_s30 + $0x68] sm:$0xff]  ;;  %v7132_v12 = vld [vmem:[%s8842_s30 + $0x70] sm:$0xff]  ;;  %s13140_s22 = smov %s13147_s0 }
 0xb66   : >> { %7113 = vst [vmem:[%s8838_s23 + $0x20] sm:$0xff] %v7112_v20  ;;  %s12894_s3 = scalar_lea.vmem %s12691_s1, %s8412_s25 [#allocation2]   ;;  %s12897_s26 = scalar_lea.vmem %s12845_s20, %s8412_s25   ;;  %v7134_v26 = vld [vmem:[%s8842_s30 + $0x78] sm:$0xff]  ;;  %v7136_v18 = vld [vmem:[%s8842_s30 + $0x80] sm:$0xff]  ;;  %v7138_v50 = vld [vmem:[%s8842_s30 + $0x88] sm:$0xff] }
 0xb67   : >> { %7115 = vst [vmem:[%s8838_s23 + $0x28] sm:$0xff] %v7114_v38  ;;  %v7140_v24 = vld [vmem:[%s8842_s30 + $0x90] sm:$0xff]  ;;  %v7142_v33 = vld [vmem:[%s8842_s30 + $0x98] sm:$0xff]  ;;  %v7144_v46 = vld [vmem:[%s8842_s30 + $0xa0] sm:$0xff] }
 0xb68   : >> { %7117 = vst [vmem:[%s8838_s23 + $0x30] sm:$0xff] %v7116_v21  ;;  %v7146_v34 = vld [vmem:[%s8842_s30 + $0xa8] sm:$0xff]  ;;  %v7148_v19 = vld [vmem:[%s8842_s30 + $0xb0] sm:$0xff]  ;;  %v7150_v41 = vld [vmem:[%s8842_s30 + $0xb8] sm:$0xff] }
 0xb69   : >> { %7119 = vst [vmem:[%s8838_s23 + $0x38] sm:$0xff] %v7118_v27  ;;  %v7152_v39 = vld [vmem:[%s8842_s30 + $0xc0] sm:$0xff]  ;;  %v7154_v42 = vld [vmem:[%s8842_s30 + $0xc8] sm:$0xff]  ;;  %v7156_v52 = vld [vmem:[%s8842_s30 + $0xd0] sm:$0xff] }
 0xb6a   : >> { %7121 = vst [vmem:[%s8838_s23 + $0x40] sm:$0xff] %v7120_v16  ;;  %v7158_v48 = vld [vmem:[%s8842_s30 + $0xd8] sm:$0xff]  ;;  %v7160_v56 = vld [vmem:[%s8842_s30 + $0xe0] sm:$0xff]  ;;  %v7162_v10 = vld [vmem:[%s8842_s30 + $0xe8] sm:$0xff] }
 0xb6b   : >> { %7123 = vst [vmem:[%s8838_s23 + $0x48] sm:$0xff] %v7122_v37  ;;  %v7164_v11 = vld [vmem:[%s8842_s30 + $0xf0] sm:$0xff]  ;;  %v7166_v4 = vld [vmem:[%s8842_s30 + $0xf8] sm:$0xff]  ;;  %s13139_s30 = smov %s12894_s3 }
 0xb6c   : >> { %7125 = vst [vmem:[%s8838_s23 + $0x50] sm:$0xff] %v7124_v3 }
 0xb6d   : >> { %7127 = vst [vmem:[%s8838_s23 + $0x58] sm:$0xff] %v7126_v23 }
 0xb6e   : >> { %7129 = vst [vmem:[%s8838_s23 + $0x60] sm:$0xff] %v7128_v31 }
 0xb6f   : >> { %7131 = vst [vmem:[%s8838_s23 + $0x68] sm:$0xff] %v7130_v8 }
 0xb70   : >> { %7133 = vst [vmem:[%s8838_s23 + $0x70] sm:$0xff] %v7132_v12 }
 0xb71   : >> { %7135 = vst [vmem:[%s8838_s23 + $0x78] sm:$0xff] %v7134_v26 }
 0xb72   : >> { %7137 = vst [vmem:[%s8838_s23 + $0x80] sm:$0xff] %v7136_v18 }
 0xb73   : >> { %7139 = vst [vmem:[%s8838_s23 + $0x88] sm:$0xff] %v7138_v50 }
 0xb74   : >> { %7141 = vst [vmem:[%s8838_s23 + $0x90] sm:$0xff] %v7140_v24 }
 0xb75   : >> { %7143 = vst [vmem:[%s8838_s23 + $0x98] sm:$0xff] %v7142_v33 }
 0xb76   : >> { %7145 = vst [vmem:[%s8838_s23 + $0xa0] sm:$0xff] %v7144_v46 }
 0xb77   : >> { %7147 = vst [vmem:[%s8838_s23 + $0xa8] sm:$0xff] %v7146_v34 }
 0xb78   : >> { %7149 = vst [vmem:[%s8838_s23 + $0xb0] sm:$0xff] %v7148_v19 }
 0xb79   : >> { %7151 = vst [vmem:[%s8838_s23 + $0xb8] sm:$0xff] %v7150_v41 }
 0xb7a   : >> { %7153 = vst [vmem:[%s8838_s23 + $0xc0] sm:$0xff] %v7152_v39 }
 0xb7b   : >> { %7155 = vst [vmem:[%s8838_s23 + $0xc8] sm:$0xff] %v7154_v42 }
 0xb7c   : >> { %7157 = vst [vmem:[%s8838_s23 + $0xd0] sm:$0xff] %v7156_v52 }
 0xb7d   : >> { %7159 = vst [vmem:[%s8838_s23 + $0xd8] sm:$0xff] %v7158_v48  ;;  %7100 = sbr.rel (!%p7097_p12) target bundleno = 2913 (0xb61), region = 190 }
 0xb7e   : >> { %7161 = vst [vmem:[%s8838_s23 + $0xe0] sm:$0xff] %v7160_v56 }
 0xb7f   : >> { %7163 = vst [vmem:[%s8838_s23 + $0xe8] sm:$0xff] %v7162_v10 }
 0xb80   : >> { %7165 = vst [vmem:[%s8838_s23 + $0xf0] sm:$0xff] %v7164_v11 }
 0xb81   : >> { %7167 = vst [vmem:[%s8838_s23 + $0xf8] sm:$0xff] %v7166_v4  ;;  %s13138_s23 = smov %s12897_s26 }
 0xb82 PF: > { %s12962_s27 = sand.u32 31, %s13145_s21   ;;  %s8679_s24 = sshll.u32 %s12851_s2, 8 }
 0xb83   : > { %s7179_s25 = scalar_lea.vmem %s12691_s1, %s8679_s24 [#allocation2]   ;;  %s7181_s4 = scalar_lea.vmem %s12845_s20, %s8679_s24  }
 0xb84   : > { %p8417_p13 = scmp.le.s32.totalorder %s12962_s27, 0 }
 0xb85   : > { %s8852_s26 = smov (!%p8417_p13), %s7181_s4   ;;  %s8856_s3 = smov (!%p8417_p13), %s7179_s25  }
 0xb86   : > { %7272 = sbr.rel (%p8417_p13) target bundleno = 2963 (0xb93), region = 195  ;;  %s8860_s5 = smov (!%p8417_p13), 0  }
 0xb87   : > { %s8864_s0 = smov (!%p8417_p13), 0  }
 0xb8b LB: >> { %v7191_v1 = vld [vmem:[%s8858_s3] sm:$0xff]  ;;  %s7193_s21 = sadd.s32 1, %s8862_s5  ;;  %s7185_s0 = sadd.s32 1, %s8866_s0   ;;  %s8866_s0 = sphi %s8864_s0, %s7185_s0   ;;  %s8862_s5 = sphi %s8860_s5, %s8861_s5   ;;  %s8858_s3 = sphi %s8856_s3, %s7198_s3   ;;  %s8854_s26 = sphi %s8852_s26, %s7199_s26  }
 0xb8c   : >> { %7192 = vst [vmem:[%s8854_s26] sm:$0xff] %v7191_v1  ;;  %p7194_p0 = scmp.ge.s32.totalorder %s7193_s21, %s12962_s27  ;;  %p7184_p1 = scmp.ge.s32.totalorder %s7185_s0, %s12962_s27 }
 0xb8e   : >> { %s13149_s21 = smov (%p7194_p0, %s7193_s21), 0  ;;  %7187 = sbr.rel (!%p7184_p1) target bundleno = 2955 (0xb8b), region = 201 }
 0xb8f   : >> { %s8418_s1 = sshll.u32 %s13149_s21, 3  ;;  %s8861_s5 = smov %s13149_s21  }
 0xb90   : >> { %s7198_s3 = scalar_lea.vmem %s7179_s25, %s8418_s1 [#allocation2]   ;;  %s7199_s26 = scalar_lea.vmem %s7181_s4, %s8418_s1  }
 0xb93 PF: > { %s13141_s23 = sld [smem:[#allocation5_spill]] }
 0xb94   : > { %s13142_s1 = sld [smem:[#allocation3_spill]] }
 0xb95   : > { %s13143_s22 = sld [smem:[#allocation6_spill]] }
 0xb99   : > { %p27_p2 = scmp.ge.s32.totalorder %s13141_s23, 4  }
 0xb9b   :  { %29 = sbr.rel (!%p27_p2) target bundleno = 10 (0xa), region = 212 }

</bundles_post_ra>
